<compile_context>
chip_gen: v6e
topology: v6e:2x2x1
jax: 0.10.0
libtpu: 0.0.40
codegen_flags: <defaults>
</compile_context>

<pallas_src>
import functools

import jax
import jax.numpy as jnp
from jax.experimental import pallas as pl
from jax.experimental.pallas import tpu as pltpu


# ----------------------------------------------------------------------------
# Fused conv3x3 (+ bias + ReLU + optional 2x2 max-pool) kernel
# ----------------------------------------------------------------------------
def _conv_kernel(x_ref, w_ref, b_ref, o_ref, acc_ref, *, H, W, Wp, Cin, pool):
    # x_ref : (L, Cin) bf16    -- zero-padded image, rows flattened as (h*Wp+w)
    # w_ref : (9*Cin, tco) bf16 -- tap-major (kh, kw, cin) rows
    # b_ref : (1, tco)  f32
    # o_ref : (Ho, Wo, tco)    -- Ho,Wo = H,W (no pool) or H//2,W//2 (pooled)
    # acc_ref: (H*Wp, tco) f32 VMEM scratch
    Mrows = H * Wp
    tco = o_ref.shape[-1]

    acc = jnp.zeros((Mrows, tco), jnp.float32)
    for kh in range(3):
        for kw in range(3):
            t = kh * 3 + kw
            start = kh * Wp + kw
            xs = x_ref[start:start + Mrows, :]            # (Mrows, Cin) bf16
            wt = w_ref[t * Cin:(t + 1) * Cin, :]          # (Cin, tco)   bf16
            acc = acc + jnp.dot(xs, wt, preferred_element_type=jnp.float32)

    # bias + ReLU in f32, keep in VMEM scratch for the (possibly strided) store
    acc = jnp.maximum(acc + b_ref[...], 0.0)
    acc_ref[...] = acc

    if pool:
        # Fused 2x2 / stride-2 max-pool.  Row j of acc corresponds to output
        # pixel (h, w) with j = h*Wp + w (columns w >= W are padding garbage
        # and are never read here).
        Wh = W // 2
        Hh = H // 2
        for ph in range(Hh):
            r0 = (2 * ph) * Wp
            r1 = (2 * ph + 1) * Wp
            m = jnp.maximum(
                jnp.maximum(acc_ref[pl.ds(r0, Wh, 2), :],
                            acc_ref[pl.ds(r0 + 1, Wh, 2), :]),
                jnp.maximum(acc_ref[pl.ds(r1, Wh, 2), :],
                            acc_ref[pl.ds(r1 + 1, Wh, 2), :]))
            o_ref[ph] = m.astype(o_ref.dtype)
    else:
        # Strip the two padding-garbage columns per row group at store time.
        for h in range(H):
            o_ref[h] = acc_ref[h * Wp:h * Wp + W, :].astype(o_ref.dtype)


def conv3x3(x, w, b, *, pool, out_dtype=jnp.bfloat16):
    """x: (N,H,W,Cin) bf16; w: (9*Cin,Cout) bf16; b: (1,Cout) f32."""
    N, H, W, Cin = x.shape
    Cout = w.shape[1]
    Wp = W + 2                      # padded width
    L = (H + 3) * Wp                # H padded by (1, 2) so tap slices stay in-bounds

    # Zero-pad (top=1, bottom=2, left=1, right=1) and flatten rows: cheap XLA
    # glue; the 9 shifted tap views are taken from VMEM inside the kernel.
    xp = jnp.pad(x, ((0, 0), (1, 2), (1, 1), (0, 0))).reshape(N, L, Cin)

    tco = 128 if Cout % 128 == 0 else Cout
    Ho, Wo = (H // 2, W // 2) if pool else (H, W)

    kernel = functools.partial(_conv_kernel, H=H, W=W, Wp=Wp, Cin=Cin, pool=pool)
    return pl.pallas_call(
        kernel,
        out_shape=jax.ShapeDtypeStruct((N, Ho, Wo, Cout), out_dtype),
        grid=(N, Cout // tco),
        in_specs=[
            pl.BlockSpec((None, L, Cin), lambda n, c: (n, 0, 0)),
            pl.BlockSpec((9 * Cin, tco), lambda n, c: (0, c)),
            pl.BlockSpec((1, tco), lambda n, c: (0, c)),
        ],
        out_specs=pl.BlockSpec((None, Ho, Wo, tco), lambda n, c: (n, 0, 0, c)),
        scratch_shapes=[pltpu.VMEM((H * Wp, tco), jnp.float32)],
        compiler_params=pltpu.CompilerParams(
            dimension_semantics=("parallel", "parallel")),
    )(xp, w, b)


# ----------------------------------------------------------------------------
# Tiled FC matmul (+ bias + optional ReLU) kernel: grid over (N tiles, K tiles)
# ----------------------------------------------------------------------------
def _fc_kernel(x_ref, w_ref, b_ref, o_ref, acc_ref, *, relu):
    k = pl.program_id(1)

    @pl.when(k == 0)
    def _():
        acc_ref[...] = jnp.zeros_like(acc_ref)

    acc_ref[...] += jnp.dot(x_ref[...], w_ref[...],
                            preferred_element_type=jnp.float32)

    @pl.when(k == pl.num_programs(1) - 1)
    def _():
        r = acc_ref[...] + b_ref[...]
        if relu:
            r = jnp.maximum(r, 0.0)
        o_ref[...] = r.astype(o_ref.dtype)


def _pick_tile(n, candidates):
    for c in candidates:
        if n % c == 0:
            return c
    return n


def fc_layer(x, w, b, *, relu, out_dtype):
    """y = relu?(x @ w + b); x:(M,K), w:(K,N) bf16, b:(1,N) f32."""
    M, K = x.shape
    _, N = w.shape
    tn = _pick_tile(N, (256, 128))
    tk = _pick_tile(K, (512, 256, 128))
    return pl.pallas_call(
        functools.partial(_fc_kernel, relu=relu),
        out_shape=jax.ShapeDtypeStruct((M, N), out_dtype),
        grid=(N // tn, K // tk),
        in_specs=[
            pl.BlockSpec((M, tk), lambda n, k: (0, k)),
            pl.BlockSpec((tk, tn), lambda n, k: (k, n)),
            pl.BlockSpec((1, tn), lambda n, k: (0, n)),
        ],
        out_specs=pl.BlockSpec((M, tn), lambda n, k: (0, n)),
        scratch_shapes=[pltpu.VMEM((M, tn), jnp.float32)],
        compiler_params=pltpu.CompilerParams(
            dimension_semantics=("parallel", "arbitrary")),
    )(x.astype(jnp.bfloat16), w, b)


# ----------------------------------------------------------------------------
# Parameters: torch-layout random init, then one-time repack to kernel layouts
# ----------------------------------------------------------------------------
def init_params(key, input_shape, num_classes):
    H, W, C = input_shape
    cfg = [
        ("conv1", C, 64), ("conv2", 64, 64),
        ("conv3", 64, 128), ("conv4", 128, 128),
        ("conv5", 128, 256), ("conv6", 256, 256),
    ]
    params = {}
    keys = jax.random.split(key, len(cfg) + 2)
    for (name, cin, cout), k in zip(cfg, keys[:len(cfg)]):
        k1, k2 = jax.random.split(k)
        scale = 1.0 / jnp.sqrt(cin * 9.0)
        w_t = jax.random.uniform(k1, (cout, cin, 3, 3), jnp.float32, -scale, scale)
        b_t = jax.random.uniform(k2, (cout,), jnp.float32, -scale, scale)
        # repack once: (Cout,Cin,3,3) -> (kh,kw,cin,cout) -> (9*Cin, Cout), bf16
        params[name + "_w"] = jnp.transpose(w_t, (2, 3, 1, 0)).reshape(
            9 * cin, cout).astype(jnp.bfloat16)
        params[name + "_b"] = b_t.reshape(1, cout).astype(jnp.float32)

    fc1_in = 256 * (H // 16) * (W // 16)
    k1, k2 = jax.random.split(keys[-2])
    s1 = 1.0 / jnp.sqrt(float(fc1_in))
    fc1_w = jax.random.uniform(k1, (512, fc1_in), jnp.float32, -s1, s1)
    params["fc1_w"] = fc1_w.T.astype(jnp.bfloat16)            # (in, out)
    params["fc1_b"] = jax.random.uniform(
        k2, (1, 512), jnp.float32, -s1, s1)
    k1, k2 = jax.random.split(keys[-1])
    s2 = 1.0 / jnp.sqrt(512.0)
    fc2_w = jax.random.uniform(k1, (num_classes, 512), jnp.float32, -s2, s2)
    params["fc2_w"] = fc2_w.T.astype(jnp.bfloat16)            # (in, out)
    params["fc2_b"] = jax.random.uniform(
        k2, (1, num_classes), jnp.float32, -s2, s2)
    return params


# ----------------------------------------------------------------------------
# Full forward pass (matches the PyTorch VGGish.forward, eval mode)
# ----------------------------------------------------------------------------
def vggish_forward(x_nchw, params):
    x = jnp.transpose(x_nchw, (0, 2, 3, 1)).astype(jnp.bfloat16)   # NCHW -> NHWC
    x = conv3x3(x, params["conv1_w"], params["conv1_b"], pool=True)
    x = conv3x3(x, params["conv2_w"], params["conv2_b"], pool=True)
    x = conv3x3(x, params["conv3_w"], params["conv3_b"], pool=False)
    x = conv3x3(x, params["conv4_w"], params["conv4_b"], pool=True)
    x = conv3x3(x, params["conv5_w"], params["conv5_b"], pool=False)
    x = conv3x3(x, params["conv6_w"], params["conv6_b"], pool=True)
    # flatten in torch NCHW order: x.view(N, -1)
    N = x.shape[0]
    x = jnp.transpose(x, (0, 3, 1, 2)).reshape(N, -1)
    # TODO(synk): nn.Dropout(p=0.5) is stochastic in train mode; implemented as
    # eval-mode identity here (pltpu.prng_random_bits could provide the mask).
    x = fc_layer(x, params["fc1_w"], params["fc1_b"], relu=True,
                 out_dtype=jnp.bfloat16)
    x = fc_layer(x, params["fc2_w"], params["fc2_b"], relu=False,
                 out_dtype=jnp.float32)
    return x


if __name__ == "__main__":
    # input_shape follows the PyTorch module's convention: (H, W, C)
    input_shape = (16, 16, 4)
    num_classes = 10
    batch = 2

    key = jax.random.PRNGKey(0)
    pkey, xkey = jax.random.split(key)
    params = init_params(pkey, input_shape, num_classes)

    # PyTorch-style NCHW input
    x = jax.random.normal(
        xkey, (batch, input_shape[2], input_shape[0], input_shape[1]),
        jnp.float32)

    fwd = jax.jit(vggish_forward)
    out = fwd(x, params)
    out = jax.block_until_ready(out)
    assert out.shape == (batch, num_classes), out.shape
    print("KERNEL_OK")
</pallas_src>

<mosaic_0001>
module attributes {stable_mosaic.version = 11 : i64} {
  func.func @_conv_kernel(%arg0: i32, %arg1: i32, %arg2: memref<1x342x4xbf16, #tpu.memory_space<vmem>>, %arg3: memref<36x64xbf16, #tpu.memory_space<vmem>>, %arg4: memref<1x64xf32, #tpu.memory_space<vmem>>, %arg5: memref<1x8x8x64xbf16, #tpu.memory_space<vmem>>, %arg6: memref<288x64xf32, #tpu.memory_space<vmem>>) attributes {dimension_semantics = [#tpu.dimension_semantics<parallel>, #tpu.dimension_semantics<parallel>], iteration_bounds = array<i64: 2, 1>, scalar_prefetch = 0 : i64, scratch_operands = 1 : i64, tpu.core_type = #tpu.core_type<tc>, window_params = [{transform_indices = @transform_0, window_bounds = array<i64: 1, 342, 4>}, {transform_indices = @transform_1, window_bounds = array<i64: 36, 64>}, {transform_indices = @transform_2, window_bounds = array<i64: 1, 64>}, {transform_indices = @transform_3, window_bounds = array<i64: 1, 8, 8, 64>}]} {
    %cst = arith.constant 0.000000e+00 : f32
    %0 = vector.broadcast %cst : f32 to vector<288x64xf32>
    %c0 = arith.constant 0 : index
    %c0_0 = arith.constant 0 : index
    %c0_1 = arith.constant 0 : index
    %1 = vector.load %arg2[%c0, %c0_0, %c0_1] : memref<1x342x4xbf16, #tpu.memory_space<vmem>>, vector<1x288x4xbf16>
    %2 = vector.shape_cast %1 : vector<1x288x4xbf16> to vector<288x4xbf16>
    %c0_2 = arith.constant 0 : index
    %c0_3 = arith.constant 0 : index
    %3 = vector.load %arg3[%c0_2, %c0_3] : memref<36x64xbf16, #tpu.memory_space<vmem>>, vector<4x64xbf16>
    %cst_4 = arith.constant dense<0.000000e+00> : vector<288x64xf32>
    %4 = tpu.matmul %2, %3, %cst_4 {dimension_numbers = #tpu.dot_dimension_numbers<[1], [0], [0], [1], [0, 0, 1, 1], [], []>} : vector<288x4xbf16>, vector<4x64xbf16>, vector<288x64xf32> -> vector<288x64xf32>
    %5 = arith.addf %0, %4 : vector<288x64xf32>
    %c0_5 = arith.constant 0 : index
    %c1 = arith.constant 1 : index
    %c0_6 = arith.constant 0 : index
    %6 = vector.load %arg2[%c0_5, %c1, %c0_6] : memref<1x342x4xbf16, #tpu.memory_space<vmem>>, vector<1x288x4xbf16>
    %7 = vector.shape_cast %6 : vector<1x288x4xbf16> to vector<288x4xbf16>
    %c4 = arith.constant 4 : index
    %c0_7 = arith.constant 0 : index
    %8 = vector.load %arg3[%c4, %c0_7] : memref<36x64xbf16, #tpu.memory_space<vmem>>, vector<4x64xbf16>
    %cst_8 = arith.constant dense<0.000000e+00> : vector<288x64xf32>
    %9 = tpu.matmul %7, %8, %cst_8 {dimension_numbers = #tpu.dot_dimension_numbers<[1], [0], [0], [1], [0, 0, 1, 1], [], []>} : vector<288x4xbf16>, vector<4x64xbf16>, vector<288x64xf32> -> vector<288x64xf32>
    %10 = arith.addf %5, %9 : vector<288x64xf32>
    %c0_9 = arith.constant 0 : index
    %c2 = arith.constant 2 : index
    %c0_10 = arith.constant 0 : index
    %11 = vector.load %arg2[%c0_9, %c2, %c0_10] : memref<1x342x4xbf16, #tpu.memory_space<vmem>>, vector<1x288x4xbf16>
    %12 = vector.shape_cast %11 : vector<1x288x4xbf16> to vector<288x4xbf16>
    %c8 = arith.constant 8 : index
    %c0_11 = arith.constant 0 : index
    %13 = vector.load %arg3[%c8, %c0_11] : memref<36x64xbf16, #tpu.memory_space<vmem>>, vector<4x64xbf16>
    %cst_12 = arith.constant dense<0.000000e+00> : vector<288x64xf32>
    %14 = tpu.matmul %12, %13, %cst_12 {dimension_numbers = #tpu.dot_dimension_numbers<[1], [0], [0], [1], [0, 0, 1, 1], [], []>} : vector<288x4xbf16>, vector<4x64xbf16>, vector<288x64xf32> -> vector<288x64xf32>
    %15 = arith.addf %10, %14 : vector<288x64xf32>
    %c0_13 = arith.constant 0 : index
    %c18 = arith.constant 18 : index
    %c0_14 = arith.constant 0 : index
    %16 = vector.load %arg2[%c0_13, %c18, %c0_14] : memref<1x342x4xbf16, #tpu.memory_space<vmem>>, vector<1x288x4xbf16>
    %17 = vector.shape_cast %16 : vector<1x288x4xbf16> to vector<288x4xbf16>
    %c12 = arith.constant 12 : index
    %c0_15 = arith.constant 0 : index
    %18 = vector.load %arg3[%c12, %c0_15] : memref<36x64xbf16, #tpu.memory_space<vmem>>, vector<4x64xbf16>
    %cst_16 = arith.constant dense<0.000000e+00> : vector<288x64xf32>
    %19 = tpu.matmul %17, %18, %cst_16 {dimension_numbers = #tpu.dot_dimension_numbers<[1], [0], [0], [1], [0, 0, 1, 1], [], []>} : vector<288x4xbf16>, vector<4x64xbf16>, vector<288x64xf32> -> vector<288x64xf32>
    %20 = arith.addf %15, %19 : vector<288x64xf32>
    %c0_17 = arith.constant 0 : index
    %c19 = arith.constant 19 : index
    %c0_18 = arith.constant 0 : index
    %21 = vector.load %arg2[%c0_17, %c19, %c0_18] : memref<1x342x4xbf16, #tpu.memory_space<vmem>>, vector<1x288x4xbf16>
    %22 = vector.shape_cast %21 : vector<1x288x4xbf16> to vector<288x4xbf16>
    %c16 = arith.constant 16 : index
    %c0_19 = arith.constant 0 : index
    %23 = vector.load %arg3[%c16, %c0_19] : memref<36x64xbf16, #tpu.memory_space<vmem>>, vector<4x64xbf16>
    %cst_20 = arith.constant dense<0.000000e+00> : vector<288x64xf32>
    %24 = tpu.matmul %22, %23, %cst_20 {dimension_numbers = #tpu.dot_dimension_numbers<[1], [0], [0], [1], [0, 0, 1, 1], [], []>} : vector<288x4xbf16>, vector<4x64xbf16>, vector<288x64xf32> -> vector<288x64xf32>
    %25 = arith.addf %20, %24 : vector<288x64xf32>
    %c0_21 = arith.constant 0 : index
    %c20 = arith.constant 20 : index
    %c0_22 = arith.constant 0 : index
    %26 = vector.load %arg2[%c0_21, %c20, %c0_22] : memref<1x342x4xbf16, #tpu.memory_space<vmem>>, vector<1x288x4xbf16>
    %27 = vector.shape_cast %26 : vector<1x288x4xbf16> to vector<288x4xbf16>
    %c20_23 = arith.constant 20 : index
    %c0_24 = arith.constant 0 : index
    %28 = vector.load %arg3[%c20_23, %c0_24] : memref<36x64xbf16, #tpu.memory_space<vmem>>, vector<4x64xbf16>
    %cst_25 = arith.constant dense<0.000000e+00> : vector<288x64xf32>
    %29 = tpu.matmul %27, %28, %cst_25 {dimension_numbers = #tpu.dot_dimension_numbers<[1], [0], [0], [1], [0, 0, 1, 1], [], []>} : vector<288x4xbf16>, vector<4x64xbf16>, vector<288x64xf32> -> vector<288x64xf32>
    %30 = arith.addf %25, %29 : vector<288x64xf32>
    %c0_26 = arith.constant 0 : index
    %c36 = arith.constant 36 : index
    %c0_27 = arith.constant 0 : index
    %31 = vector.load %arg2[%c0_26, %c36, %c0_27] : memref<1x342x4xbf16, #tpu.memory_space<vmem>>, vector<1x288x4xbf16>
    %32 = vector.shape_cast %31 : vector<1x288x4xbf16> to vector<288x4xbf16>
    %c24 = arith.constant 24 : index
    %c0_28 = arith.constant 0 : index
    %33 = vector.load %arg3[%c24, %c0_28] : memref<36x64xbf16, #tpu.memory_space<vmem>>, vector<4x64xbf16>
    %cst_29 = arith.constant dense<0.000000e+00> : vector<288x64xf32>
    %34 = tpu.matmul %32, %33, %cst_29 {dimension_numbers = #tpu.dot_dimension_numbers<[1], [0], [0], [1], [0, 0, 1, 1], [], []>} : vector<288x4xbf16>, vector<4x64xbf16>, vector<288x64xf32> -> vector<288x64xf32>
    %35 = arith.addf %30, %34 : vector<288x64xf32>
    %c0_30 = arith.constant 0 : index
    %c37 = arith.constant 37 : index
    %c0_31 = arith.constant 0 : index
    %36 = vector.load %arg2[%c0_30, %c37, %c0_31] : memref<1x342x4xbf16, #tpu.memory_space<vmem>>, vector<1x288x4xbf16>
    %37 = vector.shape_cast %36 : vector<1x288x4xbf16> to vector<288x4xbf16>
    %c28 = arith.constant 28 : index
    %c0_32 = arith.constant 0 : index
    %38 = vector.load %arg3[%c28, %c0_32] : memref<36x64xbf16, #tpu.memory_space<vmem>>, vector<4x64xbf16>
    %cst_33 = arith.constant dense<0.000000e+00> : vector<288x64xf32>
    %39 = tpu.matmul %37, %38, %cst_33 {dimension_numbers = #tpu.dot_dimension_numbers<[1], [0], [0], [1], [0, 0, 1, 1], [], []>} : vector<288x4xbf16>, vector<4x64xbf16>, vector<288x64xf32> -> vector<288x64xf32>
    %40 = arith.addf %35, %39 : vector<288x64xf32>
    %c0_34 = arith.constant 0 : index
    %c38 = arith.constant 38 : index
    %c0_35 = arith.constant 0 : index
    %41 = vector.load %arg2[%c0_34, %c38, %c0_35] : memref<1x342x4xbf16, #tpu.memory_space<vmem>>, vector<1x288x4xbf16>
    %42 = vector.shape_cast %41 : vector<1x288x4xbf16> to vector<288x4xbf16>
    %c32 = arith.constant 32 : index
    %c0_36 = arith.constant 0 : index
    %43 = vector.load %arg3[%c32, %c0_36] : memref<36x64xbf16, #tpu.memory_space<vmem>>, vector<4x64xbf16>
    %cst_37 = arith.constant dense<0.000000e+00> : vector<288x64xf32>
    %44 = tpu.matmul %42, %43, %cst_37 {dimension_numbers = #tpu.dot_dimension_numbers<[1], [0], [0], [1], [0, 0, 1, 1], [], []>} : vector<288x4xbf16>, vector<4x64xbf16>, vector<288x64xf32> -> vector<288x64xf32>
    %45 = arith.addf %40, %44 : vector<288x64xf32>
    %c0_38 = arith.constant 0 : index
    %c0_39 = arith.constant 0 : index
    %46 = vector.load %arg4[%c0_38, %c0_39] : memref<1x64xf32, #tpu.memory_space<vmem>>, vector<1x64xf32>
    %47 = vector.broadcast %46 : vector<1x64xf32> to vector<288x64xf32>
    %48 = arith.addf %45, %47 : vector<288x64xf32>
    %cst_40 = arith.constant 0.000000e+00 : f32
    %49 = vector.broadcast %cst_40 : f32 to vector<288x64xf32>
    %50 = arith.maximumf %48, %49 : vector<288x64xf32>
    %c0_41 = arith.constant 0 : index
    %c0_42 = arith.constant 0 : index
    %51 = vector.load %arg6[%c0_41, %c0_42] : memref<288x64xf32, #tpu.memory_space<vmem>>, vector<288x64xf32>
    tpu.vector_store %arg6[%c0_41, %c0_42], %50 {strides = array<i32>} : memref<288x64xf32, #tpu.memory_space<vmem>>, vector<288x64xf32>,
    %c0_43 = arith.constant 0 : index
    %c0_44 = arith.constant 0 : index
    %52 = tpu.strided_load %arg6[%c0_43, %c0_44] {strides = array<i32: 2, 1>} : memref<288x64xf32, #tpu.memory_space<vmem>>, vector<8x64xf32>
    %c1_45 = arith.constant 1 : index
    %c0_46 = arith.constant 0 : index
    %53 = tpu.strided_load %arg6[%c1_45, %c0_46] {strides = array<i32: 2, 1>} : memref<288x64xf32, #tpu.memory_space<vmem>>, vector<8x64xf32>
    %54 = arith.maximumf %52, %53 : vector<8x64xf32>
    %c18_47 = arith.constant 18 : index
    %c0_48 = arith.constant 0 : index
    %55 = tpu.strided_load %arg6[%c18_47, %c0_48] {strides = array<i32: 2, 1>} : memref<288x64xf32, #tpu.memory_space<vmem>>, vector<8x64xf32>
    %c19_49 = arith.constant 19 : index
    %c0_50 = arith.constant 0 : index
    %56 = tpu.strided_load %arg6[%c19_49, %c0_50] {strides = array<i32: 2, 1>} : memref<288x64xf32, #tpu.memory_space<vmem>>, vector<8x64xf32>
    %57 = arith.maximumf %55, %56 : vector<8x64xf32>
    %58 = arith.maximumf %54, %57 : vector<8x64xf32>
    %59 = arith.truncf %58 : vector<8x64xf32> to vector<8x64xbf16>
    %c0_51 = arith.constant 0 : index
    %c0_52 = arith.constant 0 : index
    %c0_53 = arith.constant 0 : index
    %c0_54 = arith.constant 0 : index
    %60 = vector.load %arg5[%c0_51, %c0_52, %c0_53, %c0_54] : memref<1x8x8x64xbf16, #tpu.memory_space<vmem>>, vector<1x1x8x64xbf16>
    %61 = vector.shape_cast %60 : vector<1x1x8x64xbf16> to vector<8x64xbf16>
    %62 = vector.shape_cast %59 : vector<8x64xbf16> to vector<1x1x8x64xbf16>
    tpu.vector_store %arg5[%c0_51, %c0_52, %c0_53, %c0_54], %62 {strides = array<i32>} : memref<1x8x8x64xbf16, #tpu.memory_space<vmem>>, vector<1x1x8x64xbf16>,
    %c36_55 = arith.constant 36 : index
    %c0_56 = arith.constant 0 : index
    %63 = tpu.strided_load %arg6[%c36_55, %c0_56] {strides = array<i32: 2, 1>} : memref<288x64xf32, #tpu.memory_space<vmem>>, vector<8x64xf32>
    %c37_57 = arith.constant 37 : index
    %c0_58 = arith.constant 0 : index
    %64 = tpu.strided_load %arg6[%c37_57, %c0_58] {strides = array<i32: 2, 1>} : memref<288x64xf32, #tpu.memory_space<vmem>>, vector<8x64xf32>
    %65 = arith.maximumf %63, %64 : vector<8x64xf32>
    %c54 = arith.constant 54 : index
    %c0_59 = arith.constant 0 : index
    %66 = tpu.strided_load %arg6[%c54, %c0_59] {strides = array<i32: 2, 1>} : memref<288x64xf32, #tpu.memory_space<vmem>>, vector<8x64xf32>
    %c55 = arith.constant 55 : index
    %c0_60 = arith.constant 0 : index
    %67 = tpu.strided_load %arg6[%c55, %c0_60] {strides = array<i32: 2, 1>} : memref<288x64xf32, #tpu.memory_space<vmem>>, vector<8x64xf32>
    %68 = arith.maximumf %66, %67 : vector<8x64xf32>
    %69 = arith.maximumf %65, %68 : vector<8x64xf32>
    %70 = arith.truncf %69 : vector<8x64xf32> to vector<8x64xbf16>
    %c0_61 = arith.constant 0 : index
    %c1_62 = arith.constant 1 : index
    %c0_63 = arith.constant 0 : index
    %c0_64 = arith.constant 0 : index
    %71 = vector.load %arg5[%c0_61, %c1_62, %c0_63, %c0_64] : memref<1x8x8x64xbf16, #tpu.memory_space<vmem>>, vector<1x1x8x64xbf16>
    %72 = vector.shape_cast %71 : vector<1x1x8x64xbf16> to vector<8x64xbf16>
    %73 = vector.shape_cast %70 : vector<8x64xbf16> to vector<1x1x8x64xbf16>
    tpu.vector_store %arg5[%c0_61, %c1_62, %c0_63, %c0_64], %73 {strides = array<i32>} : memref<1x8x8x64xbf16, #tpu.memory_space<vmem>>, vector<1x1x8x64xbf16>,
    %c72 = arith.constant 72 : index
    %c0_65 = arith.constant 0 : index
    %74 = tpu.strided_load %arg6[%c72, %c0_65] {strides = array<i32: 2, 1>} : memref<288x64xf32, #tpu.memory_space<vmem>>, vector<8x64xf32>
    %c73 = arith.constant 73 : index
    %c0_66 = arith.constant 0 : index
    %75 = tpu.strided_load %arg6[%c73, %c0_66] {strides = array<i32: 2, 1>} : memref<288x64xf32, #tpu.memory_space<vmem>>, vector<8x64xf32>
    %76 = arith.maximumf %74, %75 : vector<8x64xf32>
    %c90 = arith.constant 90 : index
    %c0_67 = arith.constant 0 : index
    %77 = tpu.strided_load %arg6[%c90, %c0_67] {strides = array<i32: 2, 1>} : memref<288x64xf32, #tpu.memory_space<vmem>>, vector<8x64xf32>
    %c91 = arith.constant 91 : index
    %c0_68 = arith.constant 0 : index
    %78 = tpu.strided_load %arg6[%c91, %c0_68] {strides = array<i32: 2, 1>} : memref<288x64xf32, #tpu.memory_space<vmem>>, vector<8x64xf32>
    %79 = arith.maximumf %77, %78 : vector<8x64xf32>
    %80 = arith.maximumf %76, %79 : vector<8x64xf32>
    %81 = arith.truncf %80 : vector<8x64xf32> to vector<8x64xbf16>
    %c0_69 = arith.constant 0 : index
    %c2_70 = arith.constant 2 : index
    %c0_71 = arith.constant 0 : index
    %c0_72 = arith.constant 0 : index
    %82 = vector.load %arg5[%c0_69, %c2_70, %c0_71, %c0_72] : memref<1x8x8x64xbf16, #tpu.memory_space<vmem>>, vector<1x1x8x64xbf16>
    %83 = vector.shape_cast %82 : vector<1x1x8x64xbf16> to vector<8x64xbf16>
    %84 = vector.shape_cast %81 : vector<8x64xbf16> to vector<1x1x8x64xbf16>
    tpu.vector_store %arg5[%c0_69, %c2_70, %c0_71, %c0_72], %84 {strides = array<i32>} : memref<1x8x8x64xbf16, #tpu.memory_space<vmem>>, vector<1x1x8x64xbf16>,
    %c108 = arith.constant 108 : index
    %c0_73 = arith.constant 0 : index
    %85 = tpu.strided_load %arg6[%c108, %c0_73] {strides = array<i32: 2, 1>} : memref<288x64xf32, #tpu.memory_space<vmem>>, vector<8x64xf32>
    %c109 = arith.constant 109 : index
    %c0_74 = arith.constant 0 : index
    %86 = tpu.strided_load %arg6[%c109, %c0_74] {strides = array<i32: 2, 1>} : memref<288x64xf32, #tpu.memory_space<vmem>>, vector<8x64xf32>
    %87 = arith.maximumf %85, %86 : vector<8x64xf32>
    %c126 = arith.constant 126 : index
    %c0_75 = arith.constant 0 : index
    %88 = tpu.strided_load %arg6[%c126, %c0_75] {strides = array<i32: 2, 1>} : memref<288x64xf32, #tpu.memory_space<vmem>>, vector<8x64xf32>
    %c127 = arith.constant 127 : index
    %c0_76 = arith.constant 0 : index
    %89 = tpu.strided_load %arg6[%c127, %c0_76] {strides = array<i32: 2, 1>} : memref<288x64xf32, #tpu.memory_space<vmem>>, vector<8x64xf32>
    %90 = arith.maximumf %88, %89 : vector<8x64xf32>
    %91 = arith.maximumf %87, %90 : vector<8x64xf32>
    %92 = arith.truncf %91 : vector<8x64xf32> to vector<8x64xbf16>
    %c0_77 = arith.constant 0 : index
    %c3 = arith.constant 3 : index
    %c0_78 = arith.constant 0 : index
    %c0_79 = arith.constant 0 : index
    %93 = vector.load %arg5[%c0_77, %c3, %c0_78, %c0_79] : memref<1x8x8x64xbf16, #tpu.memory_space<vmem>>, vector<1x1x8x64xbf16>
    %94 = vector.shape_cast %93 : vector<1x1x8x64xbf16> to vector<8x64xbf16>
    %95 = vector.shape_cast %92 : vector<8x64xbf16> to vector<1x1x8x64xbf16>
    tpu.vector_store %arg5[%c0_77, %c3, %c0_78, %c0_79], %95 {strides = array<i32>} : memref<1x8x8x64xbf16, #tpu.memory_space<vmem>>, vector<1x1x8x64xbf16>,
    %c144 = arith.constant 144 : index
    %c0_80 = arith.constant 0 : index
    %96 = tpu.strided_load %arg6[%c144, %c0_80] {strides = array<i32: 2, 1>} : memref<288x64xf32, #tpu.memory_space<vmem>>, vector<8x64xf32>
    %c145 = arith.constant 145 : index
    %c0_81 = arith.constant 0 : index
    %97 = tpu.strided_load %arg6[%c145, %c0_81] {strides = array<i32: 2, 1>} : memref<288x64xf32, #tpu.memory_space<vmem>>, vector<8x64xf32>
    %98 = arith.maximumf %96, %97 : vector<8x64xf32>
    %c162 = arith.constant 162 : index
    %c0_82 = arith.constant 0 : index
    %99 = tpu.strided_load %arg6[%c162, %c0_82] {strides = array<i32: 2, 1>} : memref<288x64xf32, #tpu.memory_space<vmem>>, vector<8x64xf32>
    %c163 = arith.constant 163 : index
    %c0_83 = arith.constant 0 : index
    %100 = tpu.strided_load %arg6[%c163, %c0_83] {strides = array<i32: 2, 1>} : memref<288x64xf32, #tpu.memory_space<vmem>>, vector<8x64xf32>
    %101 = arith.maximumf %99, %100 : vector<8x64xf32>
    %102 = arith.maximumf %98, %101 : vector<8x64xf32>
    %103 = arith.truncf %102 : vector<8x64xf32> to vector<8x64xbf16>
    %c0_84 = arith.constant 0 : index
    %c4_85 = arith.constant 4 : index
    %c0_86 = arith.constant 0 : index
    %c0_87 = arith.constant 0 : index
    %104 = vector.load %arg5[%c0_84, %c4_85, %c0_86, %c0_87] : memref<1x8x8x64xbf16, #tpu.memory_space<vmem>>, vector<1x1x8x64xbf16>
    %105 = vector.shape_cast %104 : vector<1x1x8x64xbf16> to vector<8x64xbf16>
    %106 = vector.shape_cast %103 : vector<8x64xbf16> to vector<1x1x8x64xbf16>
    tpu.vector_store %arg5[%c0_84, %c4_85, %c0_86, %c0_87], %106 {strides = array<i32>} : memref<1x8x8x64xbf16, #tpu.memory_space<vmem>>, vector<1x1x8x64xbf16>,
    %c180 = arith.constant 180 : index
    %c0_88 = arith.constant 0 : index
    %107 = tpu.strided_load %arg6[%c180, %c0_88] {strides = array<i32: 2, 1>} : memref<288x64xf32, #tpu.memory_space<vmem>>, vector<8x64xf32>
    %c181 = arith.constant 181 : index
    %c0_89 = arith.constant 0 : index
    %108 = tpu.strided_load %arg6[%c181, %c0_89] {strides = array<i32: 2, 1>} : memref<288x64xf32, #tpu.memory_space<vmem>>, vector<8x64xf32>
    %109 = arith.maximumf %107, %108 : vector<8x64xf32>
    %c198 = arith.constant 198 : index
    %c0_90 = arith.constant 0 : index
    %110 = tpu.strided_load %arg6[%c198, %c0_90] {strides = array<i32: 2, 1>} : memref<288x64xf32, #tpu.memory_space<vmem>>, vector<8x64xf32>
    %c199 = arith.constant 199 : index
    %c0_91 = arith.constant 0 : index
    %111 = tpu.strided_load %arg6[%c199, %c0_91] {strides = array<i32: 2, 1>} : memref<288x64xf32, #tpu.memory_space<vmem>>, vector<8x64xf32>
    %112 = arith.maximumf %110, %111 : vector<8x64xf32>
    %113 = arith.maximumf %109, %112 : vector<8x64xf32>
    %114 = arith.truncf %113 : vector<8x64xf32> to vector<8x64xbf16>
    %c0_92 = arith.constant 0 : index
    %c5 = arith.constant 5 : index
    %c0_93 = arith.constant 0 : index
    %c0_94 = arith.constant 0 : index
    %115 = vector.load %arg5[%c0_92, %c5, %c0_93, %c0_94] : memref<1x8x8x64xbf16, #tpu.memory_space<vmem>>, vector<1x1x8x64xbf16>
    %116 = vector.shape_cast %115 : vector<1x1x8x64xbf16> to vector<8x64xbf16>
    %117 = vector.shape_cast %114 : vector<8x64xbf16> to vector<1x1x8x64xbf16>
    tpu.vector_store %arg5[%c0_92, %c5, %c0_93, %c0_94], %117 {strides = array<i32>} : memref<1x8x8x64xbf16, #tpu.memory_space<vmem>>, vector<1x1x8x64xbf16>,
    %c216 = arith.constant 216 : index
    %c0_95 = arith.constant 0 : index
    %118 = tpu.strided_load %arg6[%c216, %c0_95] {strides = array<i32: 2, 1>} : memref<288x64xf32, #tpu.memory_space<vmem>>, vector<8x64xf32>
    %c217 = arith.constant 217 : index
    %c0_96 = arith.constant 0 : index
    %119 = tpu.strided_load %arg6[%c217, %c0_96] {strides = array<i32: 2, 1>} : memref<288x64xf32, #tpu.memory_space<vmem>>, vector<8x64xf32>
    %120 = arith.maximumf %118, %119 : vector<8x64xf32>
    %c234 = arith.constant 234 : index
    %c0_97 = arith.constant 0 : index
    %121 = tpu.strided_load %arg6[%c234, %c0_97] {strides = array<i32: 2, 1>} : memref<288x64xf32, #tpu.memory_space<vmem>>, vector<8x64xf32>
    %c235 = arith.constant 235 : index
    %c0_98 = arith.constant 0 : index
    %122 = tpu.strided_load %arg6[%c235, %c0_98] {strides = array<i32: 2, 1>} : memref<288x64xf32, #tpu.memory_space<vmem>>, vector<8x64xf32>
    %123 = arith.maximumf %121, %122 : vector<8x64xf32>
    %124 = arith.maximumf %120, %123 : vector<8x64xf32>
    %125 = arith.truncf %124 : vector<8x64xf32> to vector<8x64xbf16>
    %c0_99 = arith.constant 0 : index
    %c6 = arith.constant 6 : index
    %c0_100 = arith.constant 0 : index
    %c0_101 = arith.constant 0 : index
    %126 = vector.load %arg5[%c0_99, %c6, %c0_100, %c0_101] : memref<1x8x8x64xbf16, #tpu.memory_space<vmem>>, vector<1x1x8x64xbf16>
    %127 = vector.shape_cast %126 : vector<1x1x8x64xbf16> to vector<8x64xbf16>
    %128 = vector.shape_cast %125 : vector<8x64xbf16> to vector<1x1x8x64xbf16>
    tpu.vector_store %arg5[%c0_99, %c6, %c0_100, %c0_101], %128 {strides = array<i32>} : memref<1x8x8x64xbf16, #tpu.memory_space<vmem>>, vector<1x1x8x64xbf16>,
    %c252 = arith.constant 252 : index
    %c0_102 = arith.constant 0 : index
    %129 = tpu.strided_load %arg6[%c252, %c0_102] {strides = array<i32: 2, 1>} : memref<288x64xf32, #tpu.memory_space<vmem>>, vector<8x64xf32>
    %c253 = arith.constant 253 : index
    %c0_103 = arith.constant 0 : index
    %130 = tpu.strided_load %arg6[%c253, %c0_103] {strides = array<i32: 2, 1>} : memref<288x64xf32, #tpu.memory_space<vmem>>, vector<8x64xf32>
    %131 = arith.maximumf %129, %130 : vector<8x64xf32>
    %c270 = arith.constant 270 : index
    %c0_104 = arith.constant 0 : index
    %132 = tpu.strided_load %arg6[%c270, %c0_104] {strides = array<i32: 2, 1>} : memref<288x64xf32, #tpu.memory_space<vmem>>, vector<8x64xf32>
    %c271 = arith.constant 271 : index
    %c0_105 = arith.constant 0 : index
    %133 = tpu.strided_load %arg6[%c271, %c0_105] {strides = array<i32: 2, 1>} : memref<288x64xf32, #tpu.memory_space<vmem>>, vector<8x64xf32>
    %134 = arith.maximumf %132, %133 : vector<8x64xf32>
    %135 = arith.maximumf %131, %134 : vector<8x64xf32>
    %136 = arith.truncf %135 : vector<8x64xf32> to vector<8x64xbf16>
    %c0_106 = arith.constant 0 : index
    %c7 = arith.constant 7 : index
    %c0_107 = arith.constant 0 : index
    %c0_108 = arith.constant 0 : index
    %137 = vector.load %arg5[%c0_106, %c7, %c0_107, %c0_108] : memref<1x8x8x64xbf16, #tpu.memory_space<vmem>>, vector<1x1x8x64xbf16>
    %138 = vector.shape_cast %137 : vector<1x1x8x64xbf16> to vector<8x64xbf16>
    %139 = vector.shape_cast %136 : vector<8x64xbf16> to vector<1x1x8x64xbf16>
    tpu.vector_store %arg5[%c0_106, %c7, %c0_107, %c0_108], %139 {strides = array<i32>} : memref<1x8x8x64xbf16, #tpu.memory_space<vmem>>, vector<1x1x8x64xbf16>,
    return
  }
  func.func @transform_0(%arg0: i32, %arg1: i32) -> (i32, i32, i32) {
    %c0_i32 = arith.constant 0 : i32
    %c0_i32_0 = arith.constant 0 : i32
    %c0_i32_1 = arith.constant 0 : i32
    return %arg0, %c0_i32, %c0_i32_0 : i32, i32, i32
  }
  func.func @transform_1(%arg0: i32, %arg1: i32) -> (i32, i32) {
    %c0_i32 = arith.constant 0 : i32
    %c0_i32_0 = arith.constant 0 : i32
    return %c0_i32, %arg1 : i32, i32
  }
  func.func @transform_2(%arg0: i32, %arg1: i32) -> (i32, i32) {
    %c0_i32 = arith.constant 0 : i32
    %c0_i32_0 = arith.constant 0 : i32
    return %c0_i32, %arg1 : i32, i32
  }
  func.func @transform_3(%arg0: i32, %arg1: i32) -> (i32, i32, i32, i32) {
    %c0_i32 = arith.constant 0 : i32
    %c0_i32_0 = arith.constant 0 : i32
    %c0_i32_1 = arith.constant 0 : i32
    return %arg0, %c0_i32, %c0_i32_0, %arg1 : i32, i32, i32, i32
  }
}

module attributes {stable_mosaic.version = 11 : i64} {
  func.func @_conv_kernel(%arg0: i32, %arg1: i32, %arg2: memref<1x110x64xbf16, #tpu.memory_space<vmem>>, %arg3: memref<576x64xbf16, #tpu.memory_space<vmem>>, %arg4: memref<1x64xf32, #tpu.memory_space<vmem>>, %arg5: memref<1x4x4x64xbf16, #tpu.memory_space<vmem>>, %arg6: memref<80x64xf32, #tpu.memory_space<vmem>>) attributes {dimension_semantics = [#tpu.dimension_semantics<parallel>, #tpu.dimension_semantics<parallel>], iteration_bounds = array<i64: 2, 1>, scalar_prefetch = 0 : i64, scratch_operands = 1 : i64, tpu.core_type = #tpu.core_type<tc>, window_params = [{transform_indices = @transform_0, window_bounds = array<i64: 1, 110, 64>}, {transform_indices = @transform_1, window_bounds = array<i64: 576, 64>}, {transform_indices = @transform_2, window_bounds = array<i64: 1, 64>}, {transform_indices = @transform_3, window_bounds = array<i64: 1, 4, 4, 64>}]} {
    %cst = arith.constant 0.000000e+00 : f32
    %0 = vector.broadcast %cst : f32 to vector<80x64xf32>
    %c0 = arith.constant 0 : index
    %c0_0 = arith.constant 0 : index
    %c0_1 = arith.constant 0 : index
    %1 = vector.load %arg2[%c0, %c0_0, %c0_1] : memref<1x110x64xbf16, #tpu.memory_space<vmem>>, vector<1x80x64xbf16>
    %2 = vector.shape_cast %1 : vector<1x80x64xbf16> to vector<80x64xbf16>
    %c0_2 = arith.constant 0 : index
    %c0_3 = arith.constant 0 : index
    %3 = vector.load %arg3[%c0_2, %c0_3] : memref<576x64xbf16, #tpu.memory_space<vmem>>, vector<64x64xbf16>
    %cst_4 = arith.constant dense<0.000000e+00> : vector<80x64xf32>
    %4 = tpu.matmul %2, %3, %cst_4 {dimension_numbers = #tpu.dot_dimension_numbers<[1], [0], [0], [1], [0, 0, 1, 1], [], []>} : vector<80x64xbf16>, vector<64x64xbf16>, vector<80x64xf32> -> vector<80x64xf32>
    %5 = arith.addf %0, %4 : vector<80x64xf32>
    %c0_5 = arith.constant 0 : index
    %c1 = arith.constant 1 : index
    %c0_6 = arith.constant 0 : index
    %6 = vector.load %arg2[%c0_5, %c1, %c0_6] : memref<1x110x64xbf16, #tpu.memory_space<vmem>>, vector<1x80x64xbf16>
    %7 = vector.shape_cast %6 : vector<1x80x64xbf16> to vector<80x64xbf16>
    %c64 = arith.constant 64 : index
    %c0_7 = arith.constant 0 : index
    %8 = vector.load %arg3[%c64, %c0_7] : memref<576x64xbf16, #tpu.memory_space<vmem>>, vector<64x64xbf16>
    %cst_8 = arith.constant dense<0.000000e+00> : vector<80x64xf32>
    %9 = tpu.matmul %7, %8, %cst_8 {dimension_numbers = #tpu.dot_dimension_numbers<[1], [0], [0], [1], [0, 0, 1, 1], [], []>} : vector<80x64xbf16>, vector<64x64xbf16>, vector<80x64xf32> -> vector<80x64xf32>
    %10 = arith.addf %5, %9 : vector<80x64xf32>
    %c0_9 = arith.constant 0 : index
    %c2 = arith.constant 2 : index
    %c0_10 = arith.constant 0 : index
    %11 = vector.load %arg2[%c0_9, %c2, %c0_10] : memref<1x110x64xbf16, #tpu.memory_space<vmem>>, vector<1x80x64xbf16>
    %12 = vector.shape_cast %11 : vector<1x80x64xbf16> to vector<80x64xbf16>
    %c128 = arith.constant 128 : index
    %c0_11 = arith.constant 0 : index
    %13 = vector.load %arg3[%c128, %c0_11] : memref<576x64xbf16, #tpu.memory_space<vmem>>, vector<64x64xbf16>
    %cst_12 = arith.constant dense<0.000000e+00> : vector<80x64xf32>
    %14 = tpu.matmul %12, %13, %cst_12 {dimension_numbers = #tpu.dot_dimension_numbers<[1], [0], [0], [1], [0, 0, 1, 1], [], []>} : vector<80x64xbf16>, vector<64x64xbf16>, vector<80x64xf32> -> vector<80x64xf32>
    %15 = arith.addf %10, %14 : vector<80x64xf32>
    %c0_13 = arith.constant 0 : index
    %c10 = arith.constant 10 : index
    %c0_14 = arith.constant 0 : index
    %16 = vector.load %arg2[%c0_13, %c10, %c0_14] : memref<1x110x64xbf16, #tpu.memory_space<vmem>>, vector<1x80x64xbf16>
    %17 = vector.shape_cast %16 : vector<1x80x64xbf16> to vector<80x64xbf16>
    %c192 = arith.constant 192 : index
    %c0_15 = arith.constant 0 : index
    %18 = vector.load %arg3[%c192, %c0_15] : memref<576x64xbf16, #tpu.memory_space<vmem>>, vector<64x64xbf16>
    %cst_16 = arith.constant dense<0.000000e+00> : vector<80x64xf32>
    %19 = tpu.matmul %17, %18, %cst_16 {dimension_numbers = #tpu.dot_dimension_numbers<[1], [0], [0], [1], [0, 0, 1, 1], [], []>} : vector<80x64xbf16>, vector<64x64xbf16>, vector<80x64xf32> -> vector<80x64xf32>
    %20 = arith.addf %15, %19 : vector<80x64xf32>
    %c0_17 = arith.constant 0 : index
    %c11 = arith.constant 11 : index
    %c0_18 = arith.constant 0 : index
    %21 = vector.load %arg2[%c0_17, %c11, %c0_18] : memref<1x110x64xbf16, #tpu.memory_space<vmem>>, vector<1x80x64xbf16>
    %22 = vector.shape_cast %21 : vector<1x80x64xbf16> to vector<80x64xbf16>
    %c256 = arith.constant 256 : index
    %c0_19 = arith.constant 0 : index
    %23 = vector.load %arg3[%c256, %c0_19] : memref<576x64xbf16, #tpu.memory_space<vmem>>, vector<64x64xbf16>
    %cst_20 = arith.constant dense<0.000000e+00> : vector<80x64xf32>
    %24 = tpu.matmul %22, %23, %cst_20 {dimension_numbers = #tpu.dot_dimension_numbers<[1], [0], [0], [1], [0, 0, 1, 1], [], []>} : vector<80x64xbf16>, vector<64x64xbf16>, vector<80x64xf32> -> vector<80x64xf32>
    %25 = arith.addf %20, %24 : vector<80x64xf32>
    %c0_21 = arith.constant 0 : index
    %c12 = arith.constant 12 : index
    %c0_22 = arith.constant 0 : index
    %26 = vector.load %arg2[%c0_21, %c12, %c0_22] : memref<1x110x64xbf16, #tpu.memory_space<vmem>>, vector<1x80x64xbf16>
    %27 = vector.shape_cast %26 : vector<1x80x64xbf16> to vector<80x64xbf16>
    %c320 = arith.constant 320 : index
    %c0_23 = arith.constant 0 : index
    %28 = vector.load %arg3[%c320, %c0_23] : memref<576x64xbf16, #tpu.memory_space<vmem>>, vector<64x64xbf16>
    %cst_24 = arith.constant dense<0.000000e+00> : vector<80x64xf32>
    %29 = tpu.matmul %27, %28, %cst_24 {dimension_numbers = #tpu.dot_dimension_numbers<[1], [0], [0], [1], [0, 0, 1, 1], [], []>} : vector<80x64xbf16>, vector<64x64xbf16>, vector<80x64xf32> -> vector<80x64xf32>
    %30 = arith.addf %25, %29 : vector<80x64xf32>
    %c0_25 = arith.constant 0 : index
    %c20 = arith.constant 20 : index
    %c0_26 = arith.constant 0 : index
    %31 = vector.load %arg2[%c0_25, %c20, %c0_26] : memref<1x110x64xbf16, #tpu.memory_space<vmem>>, vector<1x80x64xbf16>
    %32 = vector.shape_cast %31 : vector<1x80x64xbf16> to vector<80x64xbf16>
    %c384 = arith.constant 384 : index
    %c0_27 = arith.constant 0 : index
    %33 = vector.load %arg3[%c384, %c0_27] : memref<576x64xbf16, #tpu.memory_space<vmem>>, vector<64x64xbf16>
    %cst_28 = arith.constant dense<0.000000e+00> : vector<80x64xf32>
    %34 = tpu.matmul %32, %33, %cst_28 {dimension_numbers = #tpu.dot_dimension_numbers<[1], [0], [0], [1], [0, 0, 1, 1], [], []>} : vector<80x64xbf16>, vector<64x64xbf16>, vector<80x64xf32> -> vector<80x64xf32>
    %35 = arith.addf %30, %34 : vector<80x64xf32>
    %c0_29 = arith.constant 0 : index
    %c21 = arith.constant 21 : index
    %c0_30 = arith.constant 0 : index
    %36 = vector.load %arg2[%c0_29, %c21, %c0_30] : memref<1x110x64xbf16, #tpu.memory_space<vmem>>, vector<1x80x64xbf16>
    %37 = vector.shape_cast %36 : vector<1x80x64xbf16> to vector<80x64xbf16>
    %c448 = arith.constant 448 : index
    %c0_31 = arith.constant 0 : index
    %38 = vector.load %arg3[%c448, %c0_31] : memref<576x64xbf16, #tpu.memory_space<vmem>>, vector<64x64xbf16>
    %cst_32 = arith.constant dense<0.000000e+00> : vector<80x64xf32>
    %39 = tpu.matmul %37, %38, %cst_32 {dimension_numbers = #tpu.dot_dimension_numbers<[1], [0], [0], [1], [0, 0, 1, 1], [], []>} : vector<80x64xbf16>, vector<64x64xbf16>, vector<80x64xf32> -> vector<80x64xf32>
    %40 = arith.addf %35, %39 : vector<80x64xf32>
    %c0_33 = arith.constant 0 : index
    %c22 = arith.constant 22 : index
    %c0_34 = arith.constant 0 : index
    %41 = vector.load %arg2[%c0_33, %c22, %c0_34] : memref<1x110x64xbf16, #tpu.memory_space<vmem>>, vector<1x80x64xbf16>
    %42 = vector.shape_cast %41 : vector<1x80x64xbf16> to vector<80x64xbf16>
    %c512 = arith.constant 512 : index
    %c0_35 = arith.constant 0 : index
    %43 = vector.load %arg3[%c512, %c0_35] : memref<576x64xbf16, #tpu.memory_space<vmem>>, vector<64x64xbf16>
    %cst_36 = arith.constant dense<0.000000e+00> : vector<80x64xf32>
    %44 = tpu.matmul %42, %43, %cst_36 {dimension_numbers = #tpu.dot_dimension_numbers<[1], [0], [0], [1], [0, 0, 1, 1], [], []>} : vector<80x64xbf16>, vector<64x64xbf16>, vector<80x64xf32> -> vector<80x64xf32>
    %45 = arith.addf %40, %44 : vector<80x64xf32>
    %c0_37 = arith.constant 0 : index
    %c0_38 = arith.constant 0 : index
    %46 = vector.load %arg4[%c0_37, %c0_38] : memref<1x64xf32, #tpu.memory_space<vmem>>, vector<1x64xf32>
    %47 = vector.broadcast %46 : vector<1x64xf32> to vector<80x64xf32>
    %48 = arith.addf %45, %47 : vector<80x64xf32>
    %cst_39 = arith.constant 0.000000e+00 : f32
    %49 = vector.broadcast %cst_39 : f32 to vector<80x64xf32>
    %50 = arith.maximumf %48, %49 : vector<80x64xf32>
    %c0_40 = arith.constant 0 : index
    %c0_41 = arith.constant 0 : index
    %51 = vector.load %arg6[%c0_40, %c0_41] : memref<80x64xf32, #tpu.memory_space<vmem>>, vector<80x64xf32>
    tpu.vector_store %arg6[%c0_40, %c0_41], %50 {strides = array<i32>} : memref<80x64xf32, #tpu.memory_space<vmem>>, vector<80x64xf32>,
    %c0_42 = arith.constant 0 : index
    %c0_43 = arith.constant 0 : index
    %52 = tpu.strided_load %arg6[%c0_42, %c0_43] {strides = array<i32: 2, 1>} : memref<80x64xf32, #tpu.memory_space<vmem>>, vector<4x64xf32>
    %c1_44 = arith.constant 1 : index
    %c0_45 = arith.constant 0 : index
    %53 = tpu.strided_load %arg6[%c1_44, %c0_45] {strides = array<i32: 2, 1>} : memref<80x64xf32, #tpu.memory_space<vmem>>, vector<4x64xf32>
    %54 = arith.maximumf %52, %53 : vector<4x64xf32>
    %c10_46 = arith.constant 10 : index
    %c0_47 = arith.constant 0 : index
    %55 = tpu.strided_load %arg6[%c10_46, %c0_47] {strides = array<i32: 2, 1>} : memref<80x64xf32, #tpu.memory_space<vmem>>, vector<4x64xf32>
    %c11_48 = arith.constant 11 : index
    %c0_49 = arith.constant 0 : index
    %56 = tpu.strided_load %arg6[%c11_48, %c0_49] {strides = array<i32: 2, 1>} : memref<80x64xf32, #tpu.memory_space<vmem>>, vector<4x64xf32>
    %57 = arith.maximumf %55, %56 : vector<4x64xf32>
    %58 = arith.maximumf %54, %57 : vector<4x64xf32>
    %59 = arith.truncf %58 : vector<4x64xf32> to vector<4x64xbf16>
    %c0_50 = arith.constant 0 : index
    %c0_51 = arith.constant 0 : index
    %c0_52 = arith.constant 0 : index
    %c0_53 = arith.constant 0 : index
    %60 = vector.load %arg5[%c0_50, %c0_51, %c0_52, %c0_53] : memref<1x4x4x64xbf16, #tpu.memory_space<vmem>>, vector<1x1x4x64xbf16>
    %61 = vector.shape_cast %60 : vector<1x1x4x64xbf16> to vector<4x64xbf16>
    %62 = vector.shape_cast %59 : vector<4x64xbf16> to vector<1x1x4x64xbf16>
    tpu.vector_store %arg5[%c0_50, %c0_51, %c0_52, %c0_53], %62 {strides = array<i32>} : memref<1x4x4x64xbf16, #tpu.memory_space<vmem>>, vector<1x1x4x64xbf16>,
    %c20_54 = arith.constant 20 : index
    %c0_55 = arith.constant 0 : index
    %63 = tpu.strided_load %arg6[%c20_54, %c0_55] {strides = array<i32: 2, 1>} : memref<80x64xf32, #tpu.memory_space<vmem>>, vector<4x64xf32>
    %c21_56 = arith.constant 21 : index
    %c0_57 = arith.constant 0 : index
    %64 = tpu.strided_load %arg6[%c21_56, %c0_57] {strides = array<i32: 2, 1>} : memref<80x64xf32, #tpu.memory_space<vmem>>, vector<4x64xf32>
    %65 = arith.maximumf %63, %64 : vector<4x64xf32>
    %c30 = arith.constant 30 : index
    %c0_58 = arith.constant 0 : index
    %66 = tpu.strided_load %arg6[%c30, %c0_58] {strides = array<i32: 2, 1>} : memref<80x64xf32, #tpu.memory_space<vmem>>, vector<4x64xf32>
    %c31 = arith.constant 31 : index
    %c0_59 = arith.constant 0 : index
    %67 = tpu.strided_load %arg6[%c31, %c0_59] {strides = array<i32: 2, 1>} : memref<80x64xf32, #tpu.memory_space<vmem>>, vector<4x64xf32>
    %68 = arith.maximumf %66, %67 : vector<4x64xf32>
    %69 = arith.maximumf %65, %68 : vector<4x64xf32>
    %70 = arith.truncf %69 : vector<4x64xf32> to vector<4x64xbf16>
    %c0_60 = arith.constant 0 : index
    %c1_61 = arith.constant 1 : index
    %c0_62 = arith.constant 0 : index
    %c0_63 = arith.constant 0 : index
    %71 = vector.load %arg5[%c0_60, %c1_61, %c0_62, %c0_63] : memref<1x4x4x64xbf16, #tpu.memory_space<vmem>>, vector<1x1x4x64xbf16>
    %72 = vector.shape_cast %71 : vector<1x1x4x64xbf16> to vector<4x64xbf16>
    %73 = vector.shape_cast %70 : vector<4x64xbf16> to vector<1x1x4x64xbf16>
    tpu.vector_store %arg5[%c0_60, %c1_61, %c0_62, %c0_63], %73 {strides = array<i32>} : memref<1x4x4x64xbf16, #tpu.memory_space<vmem>>, vector<1x1x4x64xbf16>,
    %c40 = arith.constant 40 : index
    %c0_64 = arith.constant 0 : index
    %74 = tpu.strided_load %arg6[%c40, %c0_64] {strides = array<i32: 2, 1>} : memref<80x64xf32, #tpu.memory_space<vmem>>, vector<4x64xf32>
    %c41 = arith.constant 41 : index
    %c0_65 = arith.constant 0 : index
    %75 = tpu.strided_load %arg6[%c41, %c0_65] {strides = array<i32: 2, 1>} : memref<80x64xf32, #tpu.memory_space<vmem>>, vector<4x64xf32>
    %76 = arith.maximumf %74, %75 : vector<4x64xf32>
    %c50 = arith.constant 50 : index
    %c0_66 = arith.constant 0 : index
    %77 = tpu.strided_load %arg6[%c50, %c0_66] {strides = array<i32: 2, 1>} : memref<80x64xf32, #tpu.memory_space<vmem>>, vector<4x64xf32>
    %c51 = arith.constant 51 : index
    %c0_67 = arith.constant 0 : index
    %78 = tpu.strided_load %arg6[%c51, %c0_67] {strides = array<i32: 2, 1>} : memref<80x64xf32, #tpu.memory_space<vmem>>, vector<4x64xf32>
    %79 = arith.maximumf %77, %78 : vector<4x64xf32>
    %80 = arith.maximumf %76, %79 : vector<4x64xf32>
    %81 = arith.truncf %80 : vector<4x64xf32> to vector<4x64xbf16>
    %c0_68 = arith.constant 0 : index
    %c2_69 = arith.constant 2 : index
    %c0_70 = arith.constant 0 : index
    %c0_71 = arith.constant 0 : index
    %82 = vector.load %arg5[%c0_68, %c2_69, %c0_70, %c0_71] : memref<1x4x4x64xbf16, #tpu.memory_space<vmem>>, vector<1x1x4x64xbf16>
    %83 = vector.shape_cast %82 : vector<1x1x4x64xbf16> to vector<4x64xbf16>
    %84 = vector.shape_cast %81 : vector<4x64xbf16> to vector<1x1x4x64xbf16>
    tpu.vector_store %arg5[%c0_68, %c2_69, %c0_70, %c0_71], %84 {strides = array<i32>} : memref<1x4x4x64xbf16, #tpu.memory_space<vmem>>, vector<1x1x4x64xbf16>,
    %c60 = arith.constant 60 : index
    %c0_72 = arith.constant 0 : index
    %85 = tpu.strided_load %arg6[%c60, %c0_72] {strides = array<i32: 2, 1>} : memref<80x64xf32, #tpu.memory_space<vmem>>, vector<4x64xf32>
    %c61 = arith.constant 61 : index
    %c0_73 = arith.constant 0 : index
    %86 = tpu.strided_load %arg6[%c61, %c0_73] {strides = array<i32: 2, 1>} : memref<80x64xf32, #tpu.memory_space<vmem>>, vector<4x64xf32>
    %87 = arith.maximumf %85, %86 : vector<4x64xf32>
    %c70 = arith.constant 70 : index
    %c0_74 = arith.constant 0 : index
    %88 = tpu.strided_load %arg6[%c70, %c0_74] {strides = array<i32: 2, 1>} : memref<80x64xf32, #tpu.memory_space<vmem>>, vector<4x64xf32>
    %c71 = arith.constant 71 : index
    %c0_75 = arith.constant 0 : index
    %89 = tpu.strided_load %arg6[%c71, %c0_75] {strides = array<i32: 2, 1>} : memref<80x64xf32, #tpu.memory_space<vmem>>, vector<4x64xf32>
    %90 = arith.maximumf %88, %89 : vector<4x64xf32>
    %91 = arith.maximumf %87, %90 : vector<4x64xf32>
    %92 = arith.truncf %91 : vector<4x64xf32> to vector<4x64xbf16>
    %c0_76 = arith.constant 0 : index
    %c3 = arith.constant 3 : index
    %c0_77 = arith.constant 0 : index
    %c0_78 = arith.constant 0 : index
    %93 = vector.load %arg5[%c0_76, %c3, %c0_77, %c0_78] : memref<1x4x4x64xbf16, #tpu.memory_space<vmem>>, vector<1x1x4x64xbf16>
    %94 = vector.shape_cast %93 : vector<1x1x4x64xbf16> to vector<4x64xbf16>
    %95 = vector.shape_cast %92 : vector<4x64xbf16> to vector<1x1x4x64xbf16>
    tpu.vector_store %arg5[%c0_76, %c3, %c0_77, %c0_78], %95 {strides = array<i32>} : memref<1x4x4x64xbf16, #tpu.memory_space<vmem>>, vector<1x1x4x64xbf16>,
    return
  }
  func.func @transform_0(%arg0: i32, %arg1: i32) -> (i32, i32, i32) {
    %c0_i32 = arith.constant 0 : i32
    %c0_i32_0 = arith.constant 0 : i32
    %c0_i32_1 = arith.constant 0 : i32
    return %arg0, %c0_i32, %c0_i32_0 : i32, i32, i32
  }
  func.func @transform_1(%arg0: i32, %arg1: i32) -> (i32, i32) {
    %c0_i32 = arith.constant 0 : i32
    %c0_i32_0 = arith.constant 0 : i32
    return %c0_i32, %arg1 : i32, i32
  }
  func.func @transform_2(%arg0: i32, %arg1: i32) -> (i32, i32) {
    %c0_i32 = arith.constant 0 : i32
    %c0_i32_0 = arith.constant 0 : i32
    return %c0_i32, %arg1 : i32, i32
  }
  func.func @transform_3(%arg0: i32, %arg1: i32) -> (i32, i32, i32, i32) {
    %c0_i32 = arith.constant 0 : i32
    %c0_i32_0 = arith.constant 0 : i32
    %c0_i32_1 = arith.constant 0 : i32
    return %arg0, %c0_i32, %c0_i32_0, %arg1 : i32, i32, i32, i32
  }
}

module attributes {stable_mosaic.version = 11 : i64} {
  func.func @_conv_kernel(%arg0: i32, %arg1: i32, %arg2: memref<1x42x64xbf16, #tpu.memory_space<vmem>>, %arg3: memref<576x128xbf16, #tpu.memory_space<vmem>>, %arg4: memref<1x128xf32, #tpu.memory_space<vmem>>, %arg5: memref<1x4x4x128xbf16, #tpu.memory_space<vmem>>, %arg6: memref<24x128xf32, #tpu.memory_space<vmem>>) attributes {dimension_semantics = [#tpu.dimension_semantics<parallel>, #tpu.dimension_semantics<parallel>], iteration_bounds = array<i64: 2, 1>, scalar_prefetch = 0 : i64, scratch_operands = 1 : i64, tpu.core_type = #tpu.core_type<tc>, window_params = [{transform_indices = @transform_0, window_bounds = array<i64: 1, 42, 64>}, {transform_indices = @transform_1, window_bounds = array<i64: 576, 128>}, {transform_indices = @transform_2, window_bounds = array<i64: 1, 128>}, {transform_indices = @transform_3, window_bounds = array<i64: 1, 4, 4, 128>}]} {
    %cst = arith.constant 0.000000e+00 : f32
    %0 = vector.broadcast %cst : f32 to vector<24x128xf32>
    %c0 = arith.constant 0 : index
    %c0_0 = arith.constant 0 : index
    %c0_1 = arith.constant 0 : index
    %1 = vector.load %arg2[%c0, %c0_0, %c0_1] : memref<1x42x64xbf16, #tpu.memory_space<vmem>>, vector<1x24x64xbf16>
    %2 = vector.shape_cast %1 : vector<1x24x64xbf16> to vector<24x64xbf16>
    %c0_2 = arith.constant 0 : index
    %c0_3 = arith.constant 0 : index
    %3 = vector.load %arg3[%c0_2, %c0_3] : memref<576x128xbf16, #tpu.memory_space<vmem>>, vector<64x128xbf16>
    %cst_4 = arith.constant dense<0.000000e+00> : vector<24x128xf32>
    %4 = tpu.matmul %2, %3, %cst_4 {dimension_numbers = #tpu.dot_dimension_numbers<[1], [0], [0], [1], [0, 0, 1, 1], [], []>} : vector<24x64xbf16>, vector<64x128xbf16>, vector<24x128xf32> -> vector<24x128xf32>
    %5 = arith.addf %0, %4 : vector<24x128xf32>
    %c0_5 = arith.constant 0 : index
    %c1 = arith.constant 1 : index
    %c0_6 = arith.constant 0 : index
    %6 = vector.load %arg2[%c0_5, %c1, %c0_6] : memref<1x42x64xbf16, #tpu.memory_space<vmem>>, vector<1x24x64xbf16>
    %7 = vector.shape_cast %6 : vector<1x24x64xbf16> to vector<24x64xbf16>
    %c64 = arith.constant 64 : index
    %c0_7 = arith.constant 0 : index
    %8 = vector.load %arg3[%c64, %c0_7] : memref<576x128xbf16, #tpu.memory_space<vmem>>, vector<64x128xbf16>
    %cst_8 = arith.constant dense<0.000000e+00> : vector<24x128xf32>
    %9 = tpu.matmul %7, %8, %cst_8 {dimension_numbers = #tpu.dot_dimension_numbers<[1], [0], [0], [1], [0, 0, 1, 1], [], []>} : vector<24x64xbf16>, vector<64x128xbf16>, vector<24x128xf32> -> vector<24x128xf32>
    %10 = arith.addf %5, %9 : vector<24x128xf32>
    %c0_9 = arith.constant 0 : index
    %c2 = arith.constant 2 : index
    %c0_10 = arith.constant 0 : index
    %11 = vector.load %arg2[%c0_9, %c2, %c0_10] : memref<1x42x64xbf16, #tpu.memory_space<vmem>>, vector<1x24x64xbf16>
    %12 = vector.shape_cast %11 : vector<1x24x64xbf16> to vector<24x64xbf16>
    %c128 = arith.constant 128 : index
    %c0_11 = arith.constant 0 : index
    %13 = vector.load %arg3[%c128, %c0_11] : memref<576x128xbf16, #tpu.memory_space<vmem>>, vector<64x128xbf16>
    %cst_12 = arith.constant dense<0.000000e+00> : vector<24x128xf32>
    %14 = tpu.matmul %12, %13, %cst_12 {dimension_numbers = #tpu.dot_dimension_numbers<[1], [0], [0], [1], [0, 0, 1, 1], [], []>} : vector<24x64xbf16>, vector<64x128xbf16>, vector<24x128xf32> -> vector<24x128xf32>
    %15 = arith.addf %10, %14 : vector<24x128xf32>
    %c0_13 = arith.constant 0 : index
    %c6 = arith.constant 6 : index
    %c0_14 = arith.constant 0 : index
    %16 = vector.load %arg2[%c0_13, %c6, %c0_14] : memref<1x42x64xbf16, #tpu.memory_space<vmem>>, vector<1x24x64xbf16>
    %17 = vector.shape_cast %16 : vector<1x24x64xbf16> to vector<24x64xbf16>
    %c192 = arith.constant 192 : index
    %c0_15 = arith.constant 0 : index
    %18 = vector.load %arg3[%c192, %c0_15] : memref<576x128xbf16, #tpu.memory_space<vmem>>, vector<64x128xbf16>
    %cst_16 = arith.constant dense<0.000000e+00> : vector<24x128xf32>
    %19 = tpu.matmul %17, %18, %cst_16 {dimension_numbers = #tpu.dot_dimension_numbers<[1], [0], [0], [1], [0, 0, 1, 1], [], []>} : vector<24x64xbf16>, vector<64x128xbf16>, vector<24x128xf32> -> vector<24x128xf32>
    %20 = arith.addf %15, %19 : vector<24x128xf32>
    %c0_17 = arith.constant 0 : index
    %c7 = arith.constant 7 : index
    %c0_18 = arith.constant 0 : index
    %21 = vector.load %arg2[%c0_17, %c7, %c0_18] : memref<1x42x64xbf16, #tpu.memory_space<vmem>>, vector<1x24x64xbf16>
    %22 = vector.shape_cast %21 : vector<1x24x64xbf16> to vector<24x64xbf16>
    %c256 = arith.constant 256 : index
    %c0_19 = arith.constant 0 : index
    %23 = vector.load %arg3[%c256, %c0_19] : memref<576x128xbf16, #tpu.memory_space<vmem>>, vector<64x128xbf16>
    %cst_20 = arith.constant dense<0.000000e+00> : vector<24x128xf32>
    %24 = tpu.matmul %22, %23, %cst_20 {dimension_numbers = #tpu.dot_dimension_numbers<[1], [0], [0], [1], [0, 0, 1, 1], [], []>} : vector<24x64xbf16>, vector<64x128xbf16>, vector<24x128xf32> -> vector<24x128xf32>
    %25 = arith.addf %20, %24 : vector<24x128xf32>
    %c0_21 = arith.constant 0 : index
    %c8 = arith.constant 8 : index
    %c0_22 = arith.constant 0 : index
    %26 = vector.load %arg2[%c0_21, %c8, %c0_22] : memref<1x42x64xbf16, #tpu.memory_space<vmem>>, vector<1x24x64xbf16>
    %27 = vector.shape_cast %26 : vector<1x24x64xbf16> to vector<24x64xbf16>
    %c320 = arith.constant 320 : index
    %c0_23 = arith.constant 0 : index
    %28 = vector.load %arg3[%c320, %c0_23] : memref<576x128xbf16, #tpu.memory_space<vmem>>, vector<64x128xbf16>
    %cst_24 = arith.constant dense<0.000000e+00> : vector<24x128xf32>
    %29 = tpu.matmul %27, %28, %cst_24 {dimension_numbers = #tpu.dot_dimension_numbers<[1], [0], [0], [1], [0, 0, 1, 1], [], []>} : vector<24x64xbf16>, vector<64x128xbf16>, vector<24x128xf32> -> vector<24x128xf32>
    %30 = arith.addf %25, %29 : vector<24x128xf32>
    %c0_25 = arith.constant 0 : index
    %c12 = arith.constant 12 : index
    %c0_26 = arith.constant 0 : index
    %31 = vector.load %arg2[%c0_25, %c12, %c0_26] : memref<1x42x64xbf16, #tpu.memory_space<vmem>>, vector<1x24x64xbf16>
    %32 = vector.shape_cast %31 : vector<1x24x64xbf16> to vector<24x64xbf16>
    %c384 = arith.constant 384 : index
    %c0_27 = arith.constant 0 : index
    %33 = vector.load %arg3[%c384, %c0_27] : memref<576x128xbf16, #tpu.memory_space<vmem>>, vector<64x128xbf16>
    %cst_28 = arith.constant dense<0.000000e+00> : vector<24x128xf32>
    %34 = tpu.matmul %32, %33, %cst_28 {dimension_numbers = #tpu.dot_dimension_numbers<[1], [0], [0], [1], [0, 0, 1, 1], [], []>} : vector<24x64xbf16>, vector<64x128xbf16>, vector<24x128xf32> -> vector<24x128xf32>
    %35 = arith.addf %30, %34 : vector<24x128xf32>
    %c0_29 = arith.constant 0 : index
    %c13 = arith.constant 13 : index
    %c0_30 = arith.constant 0 : index
    %36 = vector.load %arg2[%c0_29, %c13, %c0_30] : memref<1x42x64xbf16, #tpu.memory_space<vmem>>, vector<1x24x64xbf16>
    %37 = vector.shape_cast %36 : vector<1x24x64xbf16> to vector<24x64xbf16>
    %c448 = arith.constant 448 : index
    %c0_31 = arith.constant 0 : index
    %38 = vector.load %arg3[%c448, %c0_31] : memref<576x128xbf16, #tpu.memory_space<vmem>>, vector<64x128xbf16>
    %cst_32 = arith.constant dense<0.000000e+00> : vector<24x128xf32>
    %39 = tpu.matmul %37, %38, %cst_32 {dimension_numbers = #tpu.dot_dimension_numbers<[1], [0], [0], [1], [0, 0, 1, 1], [], []>} : vector<24x64xbf16>, vector<64x128xbf16>, vector<24x128xf32> -> vector<24x128xf32>
    %40 = arith.addf %35, %39 : vector<24x128xf32>
    %c0_33 = arith.constant 0 : index
    %c14 = arith.constant 14 : index
    %c0_34 = arith.constant 0 : index
    %41 = vector.load %arg2[%c0_33, %c14, %c0_34] : memref<1x42x64xbf16, #tpu.memory_space<vmem>>, vector<1x24x64xbf16>
    %42 = vector.shape_cast %41 : vector<1x24x64xbf16> to vector<24x64xbf16>
    %c512 = arith.constant 512 : index
    %c0_35 = arith.constant 0 : index
    %43 = vector.load %arg3[%c512, %c0_35] : memref<576x128xbf16, #tpu.memory_space<vmem>>, vector<64x128xbf16>
    %cst_36 = arith.constant dense<0.000000e+00> : vector<24x128xf32>
    %44 = tpu.matmul %42, %43, %cst_36 {dimension_numbers = #tpu.dot_dimension_numbers<[1], [0], [0], [1], [0, 0, 1, 1], [], []>} : vector<24x64xbf16>, vector<64x128xbf16>, vector<24x128xf32> -> vector<24x128xf32>
    %45 = arith.addf %40, %44 : vector<24x128xf32>
    %c0_37 = arith.constant 0 : index
    %c0_38 = arith.constant 0 : index
    %46 = vector.load %arg4[%c0_37, %c0_38] : memref<1x128xf32, #tpu.memory_space<vmem>>, vector<1x128xf32>
    %47 = vector.broadcast %46 : vector<1x128xf32> to vector<24x128xf32>
    %48 = arith.addf %45, %47 : vector<24x128xf32>
    %cst_39 = arith.constant 0.000000e+00 : f32
    %49 = vector.broadcast %cst_39 : f32 to vector<24x128xf32>
    %50 = arith.maximumf %48, %49 : vector<24x128xf32>
    %c0_40 = arith.constant 0 : index
    %c0_41 = arith.constant 0 : index
    %51 = vector.load %arg6[%c0_40, %c0_41] : memref<24x128xf32, #tpu.memory_space<vmem>>, vector<24x128xf32>
    tpu.vector_store %arg6[%c0_40, %c0_41], %50 {strides = array<i32>} : memref<24x128xf32, #tpu.memory_space<vmem>>, vector<24x128xf32>,
    %c0_42 = arith.constant 0 : index
    %c0_43 = arith.constant 0 : index
    %52 = vector.load %arg6[%c0_42, %c0_43] : memref<24x128xf32, #tpu.memory_space<vmem>>, vector<4x128xf32>
    %53 = arith.truncf %52 : vector<4x128xf32> to vector<4x128xbf16>
    %c0_44 = arith.constant 0 : index
    %c0_45 = arith.constant 0 : index
    %c0_46 = arith.constant 0 : index
    %c0_47 = arith.constant 0 : index
    %54 = vector.load %arg5[%c0_44, %c0_45, %c0_46, %c0_47] : memref<1x4x4x128xbf16, #tpu.memory_space<vmem>>, vector<1x1x4x128xbf16>
    %55 = vector.shape_cast %54 : vector<1x1x4x128xbf16> to vector<4x128xbf16>
    %56 = vector.shape_cast %53 : vector<4x128xbf16> to vector<1x1x4x128xbf16>
    tpu.vector_store %arg5[%c0_44, %c0_45, %c0_46, %c0_47], %56 {strides = array<i32>} : memref<1x4x4x128xbf16, #tpu.memory_space<vmem>>, vector<1x1x4x128xbf16>,
    %c6_48 = arith.constant 6 : index
    %c0_49 = arith.constant 0 : index
    %57 = vector.load %arg6[%c6_48, %c0_49] : memref<24x128xf32, #tpu.memory_space<vmem>>, vector<4x128xf32>
    %58 = arith.truncf %57 : vector<4x128xf32> to vector<4x128xbf16>
    %c0_50 = arith.constant 0 : index
    %c1_51 = arith.constant 1 : index
    %c0_52 = arith.constant 0 : index
    %c0_53 = arith.constant 0 : index
    %59 = vector.load %arg5[%c0_50, %c1_51, %c0_52, %c0_53] : memref<1x4x4x128xbf16, #tpu.memory_space<vmem>>, vector<1x1x4x128xbf16>
    %60 = vector.shape_cast %59 : vector<1x1x4x128xbf16> to vector<4x128xbf16>
    %61 = vector.shape_cast %58 : vector<4x128xbf16> to vector<1x1x4x128xbf16>
    tpu.vector_store %arg5[%c0_50, %c1_51, %c0_52, %c0_53], %61 {strides = array<i32>} : memref<1x4x4x128xbf16, #tpu.memory_space<vmem>>, vector<1x1x4x128xbf16>,
    %c12_54 = arith.constant 12 : index
    %c0_55 = arith.constant 0 : index
    %62 = vector.load %arg6[%c12_54, %c0_55] : memref<24x128xf32, #tpu.memory_space<vmem>>, vector<4x128xf32>
    %63 = arith.truncf %62 : vector<4x128xf32> to vector<4x128xbf16>
    %c0_56 = arith.constant 0 : index
    %c2_57 = arith.constant 2 : index
    %c0_58 = arith.constant 0 : index
    %c0_59 = arith.constant 0 : index
    %64 = vector.load %arg5[%c0_56, %c2_57, %c0_58, %c0_59] : memref<1x4x4x128xbf16, #tpu.memory_space<vmem>>, vector<1x1x4x128xbf16>
    %65 = vector.shape_cast %64 : vector<1x1x4x128xbf16> to vector<4x128xbf16>
    %66 = vector.shape_cast %63 : vector<4x128xbf16> to vector<1x1x4x128xbf16>
    tpu.vector_store %arg5[%c0_56, %c2_57, %c0_58, %c0_59], %66 {strides = array<i32>} : memref<1x4x4x128xbf16, #tpu.memory_space<vmem>>, vector<1x1x4x128xbf16>,
    %c18 = arith.constant 18 : index
    %c0_60 = arith.constant 0 : index
    %67 = vector.load %arg6[%c18, %c0_60] : memref<24x128xf32, #tpu.memory_space<vmem>>, vector<4x128xf32>
    %68 = arith.truncf %67 : vector<4x128xf32> to vector<4x128xbf16>
    %c0_61 = arith.constant 0 : index
    %c3 = arith.constant 3 : index
    %c0_62 = arith.constant 0 : index
    %c0_63 = arith.constant 0 : index
    %69 = vector.load %arg5[%c0_61, %c3, %c0_62, %c0_63] : memref<1x4x4x128xbf16, #tpu.memory_space<vmem>>, vector<1x1x4x128xbf16>
    %70 = vector.shape_cast %69 : vector<1x1x4x128xbf16> to vector<4x128xbf16>
    %71 = vector.shape_cast %68 : vector<4x128xbf16> to vector<1x1x4x128xbf16>
    tpu.vector_store %arg5[%c0_61, %c3, %c0_62, %c0_63], %71 {strides = array<i32>} : memref<1x4x4x128xbf16, #tpu.memory_space<vmem>>, vector<1x1x4x128xbf16>,
    return
  }
  func.func @transform_0(%arg0: i32, %arg1: i32) -> (i32, i32, i32) {
    %c0_i32 = arith.constant 0 : i32
    %c0_i32_0 = arith.constant 0 : i32
    %c0_i32_1 = arith.constant 0 : i32
    return %arg0, %c0_i32, %c0_i32_0 : i32, i32, i32
  }
  func.func @transform_1(%arg0: i32, %arg1: i32) -> (i32, i32) {
    %c0_i32 = arith.constant 0 : i32
    %c0_i32_0 = arith.constant 0 : i32
    return %c0_i32, %arg1 : i32, i32
  }
  func.func @transform_2(%arg0: i32, %arg1: i32) -> (i32, i32) {
    %c0_i32 = arith.constant 0 : i32
    %c0_i32_0 = arith.constant 0 : i32
    return %c0_i32, %arg1 : i32, i32
  }
  func.func @transform_3(%arg0: i32, %arg1: i32) -> (i32, i32, i32, i32) {
    %c0_i32 = arith.constant 0 : i32
    %c0_i32_0 = arith.constant 0 : i32
    %c0_i32_1 = arith.constant 0 : i32
    return %arg0, %c0_i32, %c0_i32_0, %arg1 : i32, i32, i32, i32
  }
}

module attributes {stable_mosaic.version = 11 : i64} {
  func.func @_conv_kernel(%arg0: i32, %arg1: i32, %arg2: memref<1x42x128xbf16, #tpu.memory_space<vmem>>, %arg3: memref<1152x128xbf16, #tpu.memory_space<vmem>>, %arg4: memref<1x128xf32, #tpu.memory_space<vmem>>, %arg5: memref<1x2x2x128xbf16, #tpu.memory_space<vmem>>, %arg6: memref<24x128xf32, #tpu.memory_space<vmem>>) attributes {dimension_semantics = [#tpu.dimension_semantics<parallel>, #tpu.dimension_semantics<parallel>], iteration_bounds = array<i64: 2, 1>, scalar_prefetch = 0 : i64, scratch_operands = 1 : i64, tpu.core_type = #tpu.core_type<tc>, window_params = [{transform_indices = @transform_0, window_bounds = array<i64: 1, 42, 128>}, {transform_indices = @transform_1, window_bounds = array<i64: 1152, 128>}, {transform_indices = @transform_2, window_bounds = array<i64: 1, 128>}, {transform_indices = @transform_3, window_bounds = array<i64: 1, 2, 2, 128>}]} {
    %cst = arith.constant 0.000000e+00 : f32
    %0 = vector.broadcast %cst : f32 to vector<24x128xf32>
    %c0 = arith.constant 0 : index
    %c0_0 = arith.constant 0 : index
    %c0_1 = arith.constant 0 : index
    %1 = vector.load %arg2[%c0, %c0_0, %c0_1] : memref<1x42x128xbf16, #tpu.memory_space<vmem>>, vector<1x24x128xbf16>
    %2 = vector.shape_cast %1 : vector<1x24x128xbf16> to vector<24x128xbf16>
    %c0_2 = arith.constant 0 : index
    %c0_3 = arith.constant 0 : index
    %3 = vector.load %arg3[%c0_2, %c0_3] : memref<1152x128xbf16, #tpu.memory_space<vmem>>, vector<128x128xbf16>
    %cst_4 = arith.constant dense<0.000000e+00> : vector<24x128xf32>
    %4 = tpu.matmul %2, %3, %cst_4 {dimension_numbers = #tpu.dot_dimension_numbers<[1], [0], [0], [1], [0, 0, 1, 1], [], []>} : vector<24x128xbf16>, vector<128x128xbf16>, vector<24x128xf32> -> vector<24x128xf32>
    %5 = arith.addf %0, %4 : vector<24x128xf32>
    %c0_5 = arith.constant 0 : index
    %c1 = arith.constant 1 : index
    %c0_6 = arith.constant 0 : index
    %6 = vector.load %arg2[%c0_5, %c1, %c0_6] : memref<1x42x128xbf16, #tpu.memory_space<vmem>>, vector<1x24x128xbf16>
    %7 = vector.shape_cast %6 : vector<1x24x128xbf16> to vector<24x128xbf16>
    %c128 = arith.constant 128 : index
    %c0_7 = arith.constant 0 : index
    %8 = vector.load %arg3[%c128, %c0_7] : memref<1152x128xbf16, #tpu.memory_space<vmem>>, vector<128x128xbf16>
    %cst_8 = arith.constant dense<0.000000e+00> : vector<24x128xf32>
    %9 = tpu.matmul %7, %8, %cst_8 {dimension_numbers = #tpu.dot_dimension_numbers<[1], [0], [0], [1], [0, 0, 1, 1], [], []>} : vector<24x128xbf16>, vector<128x128xbf16>, vector<24x128xf32> -> vector<24x128xf32>
    %10 = arith.addf %5, %9 : vector<24x128xf32>
    %c0_9 = arith.constant 0 : index
    %c2 = arith.constant 2 : index
    %c0_10 = arith.constant 0 : index
    %11 = vector.load %arg2[%c0_9, %c2, %c0_10] : memref<1x42x128xbf16, #tpu.memory_space<vmem>>, vector<1x24x128xbf16>
    %12 = vector.shape_cast %11 : vector<1x24x128xbf16> to vector<24x128xbf16>
    %c256 = arith.constant 256 : index
    %c0_11 = arith.constant 0 : index
    %13 = vector.load %arg3[%c256, %c0_11] : memref<1152x128xbf16, #tpu.memory_space<vmem>>, vector<128x128xbf16>
    %cst_12 = arith.constant dense<0.000000e+00> : vector<24x128xf32>
    %14 = tpu.matmul %12, %13, %cst_12 {dimension_numbers = #tpu.dot_dimension_numbers<[1], [0], [0], [1], [0, 0, 1, 1], [], []>} : vector<24x128xbf16>, vector<128x128xbf16>, vector<24x128xf32> -> vector<24x128xf32>
    %15 = arith.addf %10, %14 : vector<24x128xf32>
    %c0_13 = arith.constant 0 : index
    %c6 = arith.constant 6 : index
    %c0_14 = arith.constant 0 : index
    %16 = vector.load %arg2[%c0_13, %c6, %c0_14] : memref<1x42x128xbf16, #tpu.memory_space<vmem>>, vector<1x24x128xbf16>
    %17 = vector.shape_cast %16 : vector<1x24x128xbf16> to vector<24x128xbf16>
    %c384 = arith.constant 384 : index
    %c0_15 = arith.constant 0 : index
    %18 = vector.load %arg3[%c384, %c0_15] : memref<1152x128xbf16, #tpu.memory_space<vmem>>, vector<128x128xbf16>
    %cst_16 = arith.constant dense<0.000000e+00> : vector<24x128xf32>
    %19 = tpu.matmul %17, %18, %cst_16 {dimension_numbers = #tpu.dot_dimension_numbers<[1], [0], [0], [1], [0, 0, 1, 1], [], []>} : vector<24x128xbf16>, vector<128x128xbf16>, vector<24x128xf32> -> vector<24x128xf32>
    %20 = arith.addf %15, %19 : vector<24x128xf32>
    %c0_17 = arith.constant 0 : index
    %c7 = arith.constant 7 : index
    %c0_18 = arith.constant 0 : index
    %21 = vector.load %arg2[%c0_17, %c7, %c0_18] : memref<1x42x128xbf16, #tpu.memory_space<vmem>>, vector<1x24x128xbf16>
    %22 = vector.shape_cast %21 : vector<1x24x128xbf16> to vector<24x128xbf16>
    %c512 = arith.constant 512 : index
    %c0_19 = arith.constant 0 : index
    %23 = vector.load %arg3[%c512, %c0_19] : memref<1152x128xbf16, #tpu.memory_space<vmem>>, vector<128x128xbf16>
    %cst_20 = arith.constant dense<0.000000e+00> : vector<24x128xf32>
    %24 = tpu.matmul %22, %23, %cst_20 {dimension_numbers = #tpu.dot_dimension_numbers<[1], [0], [0], [1], [0, 0, 1, 1], [], []>} : vector<24x128xbf16>, vector<128x128xbf16>, vector<24x128xf32> -> vector<24x128xf32>
    %25 = arith.addf %20, %24 : vector<24x128xf32>
    %c0_21 = arith.constant 0 : index
    %c8 = arith.constant 8 : index
    %c0_22 = arith.constant 0 : index
    %26 = vector.load %arg2[%c0_21, %c8, %c0_22] : memref<1x42x128xbf16, #tpu.memory_space<vmem>>, vector<1x24x128xbf16>
    %27 = vector.shape_cast %26 : vector<1x24x128xbf16> to vector<24x128xbf16>
    %c640 = arith.constant 640 : index
    %c0_23 = arith.constant 0 : index
    %28 = vector.load %arg3[%c640, %c0_23] : memref<1152x128xbf16, #tpu.memory_space<vmem>>, vector<128x128xbf16>
    %cst_24 = arith.constant dense<0.000000e+00> : vector<24x128xf32>
    %29 = tpu.matmul %27, %28, %cst_24 {dimension_numbers = #tpu.dot_dimension_numbers<[1], [0], [0], [1], [0, 0, 1, 1], [], []>} : vector<24x128xbf16>, vector<128x128xbf16>, vector<24x128xf32> -> vector<24x128xf32>
    %30 = arith.addf %25, %29 : vector<24x128xf32>
    %c0_25 = arith.constant 0 : index
    %c12 = arith.constant 12 : index
    %c0_26 = arith.constant 0 : index
    %31 = vector.load %arg2[%c0_25, %c12, %c0_26] : memref<1x42x128xbf16, #tpu.memory_space<vmem>>, vector<1x24x128xbf16>
    %32 = vector.shape_cast %31 : vector<1x24x128xbf16> to vector<24x128xbf16>
    %c768 = arith.constant 768 : index
    %c0_27 = arith.constant 0 : index
    %33 = vector.load %arg3[%c768, %c0_27] : memref<1152x128xbf16, #tpu.memory_space<vmem>>, vector<128x128xbf16>
    %cst_28 = arith.constant dense<0.000000e+00> : vector<24x128xf32>
    %34 = tpu.matmul %32, %33, %cst_28 {dimension_numbers = #tpu.dot_dimension_numbers<[1], [0], [0], [1], [0, 0, 1, 1], [], []>} : vector<24x128xbf16>, vector<128x128xbf16>, vector<24x128xf32> -> vector<24x128xf32>
    %35 = arith.addf %30, %34 : vector<24x128xf32>
    %c0_29 = arith.constant 0 : index
    %c13 = arith.constant 13 : index
    %c0_30 = arith.constant 0 : index
    %36 = vector.load %arg2[%c0_29, %c13, %c0_30] : memref<1x42x128xbf16, #tpu.memory_space<vmem>>, vector<1x24x128xbf16>
    %37 = vector.shape_cast %36 : vector<1x24x128xbf16> to vector<24x128xbf16>
    %c896 = arith.constant 896 : index
    %c0_31 = arith.constant 0 : index
    %38 = vector.load %arg3[%c896, %c0_31] : memref<1152x128xbf16, #tpu.memory_space<vmem>>, vector<128x128xbf16>
    %cst_32 = arith.constant dense<0.000000e+00> : vector<24x128xf32>
    %39 = tpu.matmul %37, %38, %cst_32 {dimension_numbers = #tpu.dot_dimension_numbers<[1], [0], [0], [1], [0, 0, 1, 1], [], []>} : vector<24x128xbf16>, vector<128x128xbf16>, vector<24x128xf32> -> vector<24x128xf32>
    %40 = arith.addf %35, %39 : vector<24x128xf32>
    %c0_33 = arith.constant 0 : index
    %c14 = arith.constant 14 : index
    %c0_34 = arith.constant 0 : index
    %41 = vector.load %arg2[%c0_33, %c14, %c0_34] : memref<1x42x128xbf16, #tpu.memory_space<vmem>>, vector<1x24x128xbf16>
    %42 = vector.shape_cast %41 : vector<1x24x128xbf16> to vector<24x128xbf16>
    %c1024 = arith.constant 1024 : index
    %c0_35 = arith.constant 0 : index
    %43 = vector.load %arg3[%c1024, %c0_35] : memref<1152x128xbf16, #tpu.memory_space<vmem>>, vector<128x128xbf16>
    %cst_36 = arith.constant dense<0.000000e+00> : vector<24x128xf32>
    %44 = tpu.matmul %42, %43, %cst_36 {dimension_numbers = #tpu.dot_dimension_numbers<[1], [0], [0], [1], [0, 0, 1, 1], [], []>} : vector<24x128xbf16>, vector<128x128xbf16>, vector<24x128xf32> -> vector<24x128xf32>
    %45 = arith.addf %40, %44 : vector<24x128xf32>
    %c0_37 = arith.constant 0 : index
    %c0_38 = arith.constant 0 : index
    %46 = vector.load %arg4[%c0_37, %c0_38] : memref<1x128xf32, #tpu.memory_space<vmem>>, vector<1x128xf32>
    %47 = vector.broadcast %46 : vector<1x128xf32> to vector<24x128xf32>
    %48 = arith.addf %45, %47 : vector<24x128xf32>
    %cst_39 = arith.constant 0.000000e+00 : f32
    %49 = vector.broadcast %cst_39 : f32 to vector<24x128xf32>
    %50 = arith.maximumf %48, %49 : vector<24x128xf32>
    %c0_40 = arith.constant 0 : index
    %c0_41 = arith.constant 0 : index
    %51 = vector.load %arg6[%c0_40, %c0_41] : memref<24x128xf32, #tpu.memory_space<vmem>>, vector<24x128xf32>
    tpu.vector_store %arg6[%c0_40, %c0_41], %50 {strides = array<i32>} : memref<24x128xf32, #tpu.memory_space<vmem>>, vector<24x128xf32>,
    %c0_42 = arith.constant 0 : index
    %c0_43 = arith.constant 0 : index
    %52 = tpu.strided_load %arg6[%c0_42, %c0_43] {strides = array<i32: 2, 1>} : memref<24x128xf32, #tpu.memory_space<vmem>>, vector<2x128xf32>
    %c1_44 = arith.constant 1 : index
    %c0_45 = arith.constant 0 : index
    %53 = tpu.strided_load %arg6[%c1_44, %c0_45] {strides = array<i32: 2, 1>} : memref<24x128xf32, #tpu.memory_space<vmem>>, vector<2x128xf32>
    %54 = arith.maximumf %52, %53 : vector<2x128xf32>
    %c6_46 = arith.constant 6 : index
    %c0_47 = arith.constant 0 : index
    %55 = tpu.strided_load %arg6[%c6_46, %c0_47] {strides = array<i32: 2, 1>} : memref<24x128xf32, #tpu.memory_space<vmem>>, vector<2x128xf32>
    %c7_48 = arith.constant 7 : index
    %c0_49 = arith.constant 0 : index
    %56 = tpu.strided_load %arg6[%c7_48, %c0_49] {strides = array<i32: 2, 1>} : memref<24x128xf32, #tpu.memory_space<vmem>>, vector<2x128xf32>
    %57 = arith.maximumf %55, %56 : vector<2x128xf32>
    %58 = arith.maximumf %54, %57 : vector<2x128xf32>
    %59 = arith.truncf %58 : vector<2x128xf32> to vector<2x128xbf16>
    %c0_50 = arith.constant 0 : index
    %c0_51 = arith.constant 0 : index
    %c0_52 = arith.constant 0 : index
    %c0_53 = arith.constant 0 : index
    %60 = vector.load %arg5[%c0_50, %c0_51, %c0_52, %c0_53] : memref<1x2x2x128xbf16, #tpu.memory_space<vmem>>, vector<1x1x2x128xbf16>
    %61 = vector.shape_cast %60 : vector<1x1x2x128xbf16> to vector<2x128xbf16>
    %62 = vector.shape_cast %59 : vector<2x128xbf16> to vector<1x1x2x128xbf16>
    tpu.vector_store %arg5[%c0_50, %c0_51, %c0_52, %c0_53], %62 {strides = array<i32>} : memref<1x2x2x128xbf16, #tpu.memory_space<vmem>>, vector<1x1x2x128xbf16>,
    %c12_54 = arith.constant 12 : index
    %c0_55 = arith.constant 0 : index
    %63 = tpu.strided_load %arg6[%c12_54, %c0_55] {strides = array<i32: 2, 1>} : memref<24x128xf32, #tpu.memory_space<vmem>>, vector<2x128xf32>
    %c13_56 = arith.constant 13 : index
    %c0_57 = arith.constant 0 : index
    %64 = tpu.strided_load %arg6[%c13_56, %c0_57] {strides = array<i32: 2, 1>} : memref<24x128xf32, #tpu.memory_space<vmem>>, vector<2x128xf32>
    %65 = arith.maximumf %63, %64 : vector<2x128xf32>
    %c18 = arith.constant 18 : index
    %c0_58 = arith.constant 0 : index
    %66 = tpu.strided_load %arg6[%c18, %c0_58] {strides = array<i32: 2, 1>} : memref<24x128xf32, #tpu.memory_space<vmem>>, vector<2x128xf32>
    %c19 = arith.constant 19 : index
    %c0_59 = arith.constant 0 : index
    %67 = tpu.strided_load %arg6[%c19, %c0_59] {strides = array<i32: 2, 1>} : memref<24x128xf32, #tpu.memory_space<vmem>>, vector<2x128xf32>
    %68 = arith.maximumf %66, %67 : vector<2x128xf32>
    %69 = arith.maximumf %65, %68 : vector<2x128xf32>
    %70 = arith.truncf %69 : vector<2x128xf32> to vector<2x128xbf16>
    %c0_60 = arith.constant 0 : index
    %c1_61 = arith.constant 1 : index
    %c0_62 = arith.constant 0 : index
    %c0_63 = arith.constant 0 : index
    %71 = vector.load %arg5[%c0_60, %c1_61, %c0_62, %c0_63] : memref<1x2x2x128xbf16, #tpu.memory_space<vmem>>, vector<1x1x2x128xbf16>
    %72 = vector.shape_cast %71 : vector<1x1x2x128xbf16> to vector<2x128xbf16>
    %73 = vector.shape_cast %70 : vector<2x128xbf16> to vector<1x1x2x128xbf16>
    tpu.vector_store %arg5[%c0_60, %c1_61, %c0_62, %c0_63], %73 {strides = array<i32>} : memref<1x2x2x128xbf16, #tpu.memory_space<vmem>>, vector<1x1x2x128xbf16>,
    return
  }
  func.func @transform_0(%arg0: i32, %arg1: i32) -> (i32, i32, i32) {
    %c0_i32 = arith.constant 0 : i32
    %c0_i32_0 = arith.constant 0 : i32
    %c0_i32_1 = arith.constant 0 : i32
    return %arg0, %c0_i32, %c0_i32_0 : i32, i32, i32
  }
  func.func @transform_1(%arg0: i32, %arg1: i32) -> (i32, i32) {
    %c0_i32 = arith.constant 0 : i32
    %c0_i32_0 = arith.constant 0 : i32
    return %c0_i32, %arg1 : i32, i32
  }
  func.func @transform_2(%arg0: i32, %arg1: i32) -> (i32, i32) {
    %c0_i32 = arith.constant 0 : i32
    %c0_i32_0 = arith.constant 0 : i32
    return %c0_i32, %arg1 : i32, i32
  }
  func.func @transform_3(%arg0: i32, %arg1: i32) -> (i32, i32, i32, i32) {
    %c0_i32 = arith.constant 0 : i32
    %c0_i32_0 = arith.constant 0 : i32
    %c0_i32_1 = arith.constant 0 : i32
    return %arg0, %c0_i32, %c0_i32_0, %arg1 : i32, i32, i32, i32
  }
}

module attributes {stable_mosaic.version = 11 : i64} {
  func.func @_conv_kernel(%arg0: i32, %arg1: i32, %arg2: memref<1x20x128xbf16, #tpu.memory_space<vmem>>, %arg3: memref<1152x128xbf16, #tpu.memory_space<vmem>>, %arg4: memref<1x128xf32, #tpu.memory_space<vmem>>, %arg5: memref<1x2x2x128xbf16, #tpu.memory_space<vmem>>, %arg6: memref<8x128xf32, #tpu.memory_space<vmem>>) attributes {dimension_semantics = [#tpu.dimension_semantics<parallel>, #tpu.dimension_semantics<parallel>], iteration_bounds = array<i64: 2, 2>, scalar_prefetch = 0 : i64, scratch_operands = 1 : i64, tpu.core_type = #tpu.core_type<tc>, window_params = [{transform_indices = @transform_0, window_bounds = array<i64: 1, 20, 128>}, {transform_indices = @transform_1, window_bounds = array<i64: 1152, 128>}, {transform_indices = @transform_2, window_bounds = array<i64: 1, 128>}, {transform_indices = @transform_3, window_bounds = array<i64: 1, 2, 2, 128>}]} {
    %cst = arith.constant 0.000000e+00 : f32
    %0 = vector.broadcast %cst : f32 to vector<8x128xf32>
    %c0 = arith.constant 0 : index
    %c0_0 = arith.constant 0 : index
    %c0_1 = arith.constant 0 : index
    %1 = vector.load %arg2[%c0, %c0_0, %c0_1] : memref<1x20x128xbf16, #tpu.memory_space<vmem>>, vector<1x8x128xbf16>
    %2 = vector.shape_cast %1 : vector<1x8x128xbf16> to vector<8x128xbf16>
    %c0_2 = arith.constant 0 : index
    %c0_3 = arith.constant 0 : index
    %3 = vector.load %arg3[%c0_2, %c0_3] : memref<1152x128xbf16, #tpu.memory_space<vmem>>, vector<128x128xbf16>
    %cst_4 = arith.constant dense<0.000000e+00> : vector<8x128xf32>
    %4 = tpu.matmul %2, %3, %cst_4 {dimension_numbers = #tpu.dot_dimension_numbers<[1], [0], [0], [1], [0, 0, 1, 1], [], []>} : vector<8x128xbf16>, vector<128x128xbf16>, vector<8x128xf32> -> vector<8x128xf32>
    %5 = arith.addf %0, %4 : vector<8x128xf32>
    %c0_5 = arith.constant 0 : index
    %c1 = arith.constant 1 : index
    %c0_6 = arith.constant 0 : index
    %6 = vector.load %arg2[%c0_5, %c1, %c0_6] : memref<1x20x128xbf16, #tpu.memory_space<vmem>>, vector<1x8x128xbf16>
    %7 = vector.shape_cast %6 : vector<1x8x128xbf16> to vector<8x128xbf16>
    %c128 = arith.constant 128 : index
    %c0_7 = arith.constant 0 : index
    %8 = vector.load %arg3[%c128, %c0_7] : memref<1152x128xbf16, #tpu.memory_space<vmem>>, vector<128x128xbf16>
    %cst_8 = arith.constant dense<0.000000e+00> : vector<8x128xf32>
    %9 = tpu.matmul %7, %8, %cst_8 {dimension_numbers = #tpu.dot_dimension_numbers<[1], [0], [0], [1], [0, 0, 1, 1], [], []>} : vector<8x128xbf16>, vector<128x128xbf16>, vector<8x128xf32> -> vector<8x128xf32>
    %10 = arith.addf %5, %9 : vector<8x128xf32>
    %c0_9 = arith.constant 0 : index
    %c2 = arith.constant 2 : index
    %c0_10 = arith.constant 0 : index
    %11 = vector.load %arg2[%c0_9, %c2, %c0_10] : memref<1x20x128xbf16, #tpu.memory_space<vmem>>, vector<1x8x128xbf16>
    %12 = vector.shape_cast %11 : vector<1x8x128xbf16> to vector<8x128xbf16>
    %c256 = arith.constant 256 : index
    %c0_11 = arith.constant 0 : index
    %13 = vector.load %arg3[%c256, %c0_11] : memref<1152x128xbf16, #tpu.memory_space<vmem>>, vector<128x128xbf16>
    %cst_12 = arith.constant dense<0.000000e+00> : vector<8x128xf32>
    %14 = tpu.matmul %12, %13, %cst_12 {dimension_numbers = #tpu.dot_dimension_numbers<[1], [0], [0], [1], [0, 0, 1, 1], [], []>} : vector<8x128xbf16>, vector<128x128xbf16>, vector<8x128xf32> -> vector<8x128xf32>
    %15 = arith.addf %10, %14 : vector<8x128xf32>
    %c0_13 = arith.constant 0 : index
    %c4 = arith.constant 4 : index
    %c0_14 = arith.constant 0 : index
    %16 = vector.load %arg2[%c0_13, %c4, %c0_14] : memref<1x20x128xbf16, #tpu.memory_space<vmem>>, vector<1x8x128xbf16>
    %17 = vector.shape_cast %16 : vector<1x8x128xbf16> to vector<8x128xbf16>
    %c384 = arith.constant 384 : index
    %c0_15 = arith.constant 0 : index
    %18 = vector.load %arg3[%c384, %c0_15] : memref<1152x128xbf16, #tpu.memory_space<vmem>>, vector<128x128xbf16>
    %cst_16 = arith.constant dense<0.000000e+00> : vector<8x128xf32>
    %19 = tpu.matmul %17, %18, %cst_16 {dimension_numbers = #tpu.dot_dimension_numbers<[1], [0], [0], [1], [0, 0, 1, 1], [], []>} : vector<8x128xbf16>, vector<128x128xbf16>, vector<8x128xf32> -> vector<8x128xf32>
    %20 = arith.addf %15, %19 : vector<8x128xf32>
    %c0_17 = arith.constant 0 : index
    %c5 = arith.constant 5 : index
    %c0_18 = arith.constant 0 : index
    %21 = vector.load %arg2[%c0_17, %c5, %c0_18] : memref<1x20x128xbf16, #tpu.memory_space<vmem>>, vector<1x8x128xbf16>
    %22 = vector.shape_cast %21 : vector<1x8x128xbf16> to vector<8x128xbf16>
    %c512 = arith.constant 512 : index
    %c0_19 = arith.constant 0 : index
    %23 = vector.load %arg3[%c512, %c0_19] : memref<1152x128xbf16, #tpu.memory_space<vmem>>, vector<128x128xbf16>
    %cst_20 = arith.constant dense<0.000000e+00> : vector<8x128xf32>
    %24 = tpu.matmul %22, %23, %cst_20 {dimension_numbers = #tpu.dot_dimension_numbers<[1], [0], [0], [1], [0, 0, 1, 1], [], []>} : vector<8x128xbf16>, vector<128x128xbf16>, vector<8x128xf32> -> vector<8x128xf32>
    %25 = arith.addf %20, %24 : vector<8x128xf32>
    %c0_21 = arith.constant 0 : index
    %c6 = arith.constant 6 : index
    %c0_22 = arith.constant 0 : index
    %26 = vector.load %arg2[%c0_21, %c6, %c0_22] : memref<1x20x128xbf16, #tpu.memory_space<vmem>>, vector<1x8x128xbf16>
    %27 = vector.shape_cast %26 : vector<1x8x128xbf16> to vector<8x128xbf16>
    %c640 = arith.constant 640 : index
    %c0_23 = arith.constant 0 : index
    %28 = vector.load %arg3[%c640, %c0_23] : memref<1152x128xbf16, #tpu.memory_space<vmem>>, vector<128x128xbf16>
    %cst_24 = arith.constant dense<0.000000e+00> : vector<8x128xf32>
    %29 = tpu.matmul %27, %28, %cst_24 {dimension_numbers = #tpu.dot_dimension_numbers<[1], [0], [0], [1], [0, 0, 1, 1], [], []>} : vector<8x128xbf16>, vector<128x128xbf16>, vector<8x128xf32> -> vector<8x128xf32>
    %30 = arith.addf %25, %29 : vector<8x128xf32>
    %c0_25 = arith.constant 0 : index
    %c8 = arith.constant 8 : index
    %c0_26 = arith.constant 0 : index
    %31 = vector.load %arg2[%c0_25, %c8, %c0_26] : memref<1x20x128xbf16, #tpu.memory_space<vmem>>, vector<1x8x128xbf16>
    %32 = vector.shape_cast %31 : vector<1x8x128xbf16> to vector<8x128xbf16>
    %c768 = arith.constant 768 : index
    %c0_27 = arith.constant 0 : index
    %33 = vector.load %arg3[%c768, %c0_27] : memref<1152x128xbf16, #tpu.memory_space<vmem>>, vector<128x128xbf16>
    %cst_28 = arith.constant dense<0.000000e+00> : vector<8x128xf32>
    %34 = tpu.matmul %32, %33, %cst_28 {dimension_numbers = #tpu.dot_dimension_numbers<[1], [0], [0], [1], [0, 0, 1, 1], [], []>} : vector<8x128xbf16>, vector<128x128xbf16>, vector<8x128xf32> -> vector<8x128xf32>
    %35 = arith.addf %30, %34 : vector<8x128xf32>
    %c0_29 = arith.constant 0 : index
    %c9 = arith.constant 9 : index
    %c0_30 = arith.constant 0 : index
    %36 = vector.load %arg2[%c0_29, %c9, %c0_30] : memref<1x20x128xbf16, #tpu.memory_space<vmem>>, vector<1x8x128xbf16>
    %37 = vector.shape_cast %36 : vector<1x8x128xbf16> to vector<8x128xbf16>
    %c896 = arith.constant 896 : index
    %c0_31 = arith.constant 0 : index
    %38 = vector.load %arg3[%c896, %c0_31] : memref<1152x128xbf16, #tpu.memory_space<vmem>>, vector<128x128xbf16>
    %cst_32 = arith.constant dense<0.000000e+00> : vector<8x128xf32>
    %39 = tpu.matmul %37, %38, %cst_32 {dimension_numbers = #tpu.dot_dimension_numbers<[1], [0], [0], [1], [0, 0, 1, 1], [], []>} : vector<8x128xbf16>, vector<128x128xbf16>, vector<8x128xf32> -> vector<8x128xf32>
    %40 = arith.addf %35, %39 : vector<8x128xf32>
    %c0_33 = arith.constant 0 : index
    %c10 = arith.constant 10 : index
    %c0_34 = arith.constant 0 : index
    %41 = vector.load %arg2[%c0_33, %c10, %c0_34] : memref<1x20x128xbf16, #tpu.memory_space<vmem>>, vector<1x8x128xbf16>
    %42 = vector.shape_cast %41 : vector<1x8x128xbf16> to vector<8x128xbf16>
    %c1024 = arith.constant 1024 : index
    %c0_35 = arith.constant 0 : index
    %43 = vector.load %arg3[%c1024, %c0_35] : memref<1152x128xbf16, #tpu.memory_space<vmem>>, vector<128x128xbf16>
    %cst_36 = arith.constant dense<0.000000e+00> : vector<8x128xf32>
    %44 = tpu.matmul %42, %43, %cst_36 {dimension_numbers = #tpu.dot_dimension_numbers<[1], [0], [0], [1], [0, 0, 1, 1], [], []>} : vector<8x128xbf16>, vector<128x128xbf16>, vector<8x128xf32> -> vector<8x128xf32>
    %45 = arith.addf %40, %44 : vector<8x128xf32>
    %c0_37 = arith.constant 0 : index
    %c0_38 = arith.constant 0 : index
    %46 = vector.load %arg4[%c0_37, %c0_38] : memref<1x128xf32, #tpu.memory_space<vmem>>, vector<1x128xf32>
    %47 = vector.broadcast %46 : vector<1x128xf32> to vector<8x128xf32>
    %48 = arith.addf %45, %47 : vector<8x128xf32>
    %cst_39 = arith.constant 0.000000e+00 : f32
    %49 = vector.broadcast %cst_39 : f32 to vector<8x128xf32>
    %50 = arith.maximumf %48, %49 : vector<8x128xf32>
    %c0_40 = arith.constant 0 : index
    %c0_41 = arith.constant 0 : index
    %51 = vector.load %arg6[%c0_40, %c0_41] : memref<8x128xf32, #tpu.memory_space<vmem>>, vector<8x128xf32>
    tpu.vector_store %arg6[%c0_40, %c0_41], %50 {strides = array<i32>} : memref<8x128xf32, #tpu.memory_space<vmem>>, vector<8x128xf32>,
    %c0_42 = arith.constant 0 : index
    %c0_43 = arith.constant 0 : index
    %52 = vector.load %arg6[%c0_42, %c0_43] : memref<8x128xf32, #tpu.memory_space<vmem>>, vector<2x128xf32>
    %53 = arith.truncf %52 : vector<2x128xf32> to vector<2x128xbf16>
    %c0_44 = arith.constant 0 : index
    %c0_45 = arith.constant 0 : index
    %c0_46 = arith.constant 0 : index
    %c0_47 = arith.constant 0 : index
    %54 = vector.load %arg5[%c0_44, %c0_45, %c0_46, %c0_47] : memref<1x2x2x128xbf16, #tpu.memory_space<vmem>>, vector<1x1x2x128xbf16>
    %55 = vector.shape_cast %54 : vector<1x1x2x128xbf16> to vector<2x128xbf16>
    %56 = vector.shape_cast %53 : vector<2x128xbf16> to vector<1x1x2x128xbf16>
    tpu.vector_store %arg5[%c0_44, %c0_45, %c0_46, %c0_47], %56 {strides = array<i32>} : memref<1x2x2x128xbf16, #tpu.memory_space<vmem>>, vector<1x1x2x128xbf16>,
    %c4_48 = arith.constant 4 : index
    %c0_49 = arith.constant 0 : index
    %57 = vector.load %arg6[%c4_48, %c0_49] : memref<8x128xf32, #tpu.memory_space<vmem>>, vector<2x128xf32>
    %58 = arith.truncf %57 : vector<2x128xf32> to vector<2x128xbf16>
    %c0_50 = arith.constant 0 : index
    %c1_51 = arith.constant 1 : index
    %c0_52 = arith.constant 0 : index
    %c0_53 = arith.constant 0 : index
    %59 = vector.load %arg5[%c0_50, %c1_51, %c0_52, %c0_53] : memref<1x2x2x128xbf16, #tpu.memory_space<vmem>>, vector<1x1x2x128xbf16>
    %60 = vector.shape_cast %59 : vector<1x1x2x128xbf16> to vector<2x128xbf16>
    %61 = vector.shape_cast %58 : vector<2x128xbf16> to vector<1x1x2x128xbf16>
    tpu.vector_store %arg5[%c0_50, %c1_51, %c0_52, %c0_53], %61 {strides = array<i32>} : memref<1x2x2x128xbf16, #tpu.memory_space<vmem>>, vector<1x1x2x128xbf16>,
    return
  }
  func.func @transform_0(%arg0: i32, %arg1: i32) -> (i32, i32, i32) {
    %c0_i32 = arith.constant 0 : i32
    %c0_i32_0 = arith.constant 0 : i32
    %c0_i32_1 = arith.constant 0 : i32
    return %arg0, %c0_i32, %c0_i32_0 : i32, i32, i32
  }
  func.func @transform_1(%arg0: i32, %arg1: i32) -> (i32, i32) {
    %c0_i32 = arith.constant 0 : i32
    %c0_i32_0 = arith.constant 0 : i32
    return %c0_i32, %arg1 : i32, i32
  }
  func.func @transform_2(%arg0: i32, %arg1: i32) -> (i32, i32) {
    %c0_i32 = arith.constant 0 : i32
    %c0_i32_0 = arith.constant 0 : i32
    return %c0_i32, %arg1 : i32, i32
  }
  func.func @transform_3(%arg0: i32, %arg1: i32) -> (i32, i32, i32, i32) {
    %c0_i32 = arith.constant 0 : i32
    %c0_i32_0 = arith.constant 0 : i32
    %c0_i32_1 = arith.constant 0 : i32
    return %arg0, %c0_i32, %c0_i32_0, %arg1 : i32, i32, i32, i32
  }
}

module attributes {stable_mosaic.version = 11 : i64} {
  func.func @_fc_kernel(%arg0: i32, %arg1: i32, %arg2: memref<2x256xbf16, #tpu.memory_space<vmem>>, %arg3: memref<256x256xbf16, #tpu.memory_space<vmem>>, %arg4: memref<1x256xf32, #tpu.memory_space<vmem>>, %arg5: memref<2x256xbf16, #tpu.memory_space<vmem>>, %arg6: memref<2x256xf32, #tpu.memory_space<vmem>>) attributes {dimension_semantics = [#tpu.dimension_semantics<parallel>, #tpu.dimension_semantics<arbitrary>], iteration_bounds = array<i64: 2, 1>, scalar_prefetch = 0 : i64, scratch_operands = 1 : i64, tpu.core_type = #tpu.core_type<tc>, window_params = [{transform_indices = @transform_0, window_bounds = array<i64: 2, 256>}, {transform_indices = @transform_1, window_bounds = array<i64: 256, 256>}, {transform_indices = @transform_2, window_bounds = array<i64: 1, 256>}, {transform_indices = @transform_3, window_bounds = array<i64: 2, 256>}]} {
    %c0_i32 = arith.constant 0 : i32
    %0 = arith.cmpi eq, %arg1, %c0_i32 : i32
    %1 = arith.extui %0 : i1 to i32
    %c0_i32_0 = arith.constant 0 : i32
    %2 = arith.cmpi ne, %1, %c0_i32_0 : i32
    scf.if %2 {
      %cst_10 = arith.constant 0.000000e+00 : f32
      %12 = vector.broadcast %cst_10 : f32 to vector<2x256xf32>
      %c0_11 = arith.constant 0 : index
      %c0_12 = arith.constant 0 : index
      %13 = vector.load %arg6[%c0_11, %c0_12] : memref<2x256xf32, #tpu.memory_space<vmem>>, vector<2x256xf32>
      tpu.vector_store %arg6[%c0_11, %c0_12], %12 {strides = array<i32>} : memref<2x256xf32, #tpu.memory_space<vmem>>, vector<2x256xf32>,
    } else {
    }
    %c0 = arith.constant 0 : index
    %c0_1 = arith.constant 0 : index
    %3 = vector.load %arg6[%c0, %c0_1] : memref<2x256xf32, #tpu.memory_space<vmem>>, vector<2x256xf32>
    %c0_2 = arith.constant 0 : index
    %c0_3 = arith.constant 0 : index
    %4 = vector.load %arg2[%c0_2, %c0_3] : memref<2x256xbf16, #tpu.memory_space<vmem>>, vector<2x256xbf16>
    %c0_4 = arith.constant 0 : index
    %c0_5 = arith.constant 0 : index
    %5 = vector.load %arg3[%c0_4, %c0_5] : memref<256x256xbf16, #tpu.memory_space<vmem>>, vector<256x256xbf16>
    %cst = arith.constant dense<0.000000e+00> : vector<2x256xf32>
    %6 = tpu.matmul %4, %5, %cst {dimension_numbers = #tpu.dot_dimension_numbers<[1], [0], [0], [1], [0, 0, 1, 1], [], []>} : vector<2x256xbf16>, vector<256x256xbf16>, vector<2x256xf32> -> vector<2x256xf32>
    %7 = arith.addf %3, %6 : vector<2x256xf32>
    %c0_6 = arith.constant 0 : index
    %c0_7 = arith.constant 0 : index
    %8 = vector.load %arg6[%c0_6, %c0_7] : memref<2x256xf32, #tpu.memory_space<vmem>>, vector<2x256xf32>
    tpu.vector_store %arg6[%c0_6, %c0_7], %7 {strides = array<i32>} : memref<2x256xf32, #tpu.memory_space<vmem>>, vector<2x256xf32>,
    %c0_i32_8 = arith.constant 0 : i32
    %9 = arith.cmpi eq, %arg1, %c0_i32_8 : i32
    %10 = arith.extui %9 : i1 to i32
    %c0_i32_9 = arith.constant 0 : i32
    %11 = arith.cmpi ne, %10, %c0_i32_9 : i32
    scf.if %11 {
      %c0_10 = arith.constant 0 : index
      %c0_11 = arith.constant 0 : index
      %12 = vector.load %arg6[%c0_10, %c0_11] : memref<2x256xf32, #tpu.memory_space<vmem>>, vector<2x256xf32>
      %c0_12 = arith.constant 0 : index
      %c0_13 = arith.constant 0 : index
      %13 = vector.load %arg4[%c0_12, %c0_13] : memref<1x256xf32, #tpu.memory_space<vmem>>, vector<1x256xf32>
      %14 = vector.broadcast %13 : vector<1x256xf32> to vector<2x256xf32>
      %15 = arith.addf %12, %14 : vector<2x256xf32>
      %cst_14 = arith.constant 0.000000e+00 : f32
      %16 = vector.broadcast %cst_14 : f32 to vector<2x256xf32>
      %17 = arith.maximumf %15, %16 : vector<2x256xf32>
      %18 = arith.truncf %17 : vector<2x256xf32> to vector<2x256xbf16>
      %c0_15 = arith.constant 0 : index
      %c0_16 = arith.constant 0 : index
      %19 = vector.load %arg5[%c0_15, %c0_16] : memref<2x256xbf16, #tpu.memory_space<vmem>>, vector<2x256xbf16>
      tpu.vector_store %arg5[%c0_15, %c0_16], %18 {strides = array<i32>} : memref<2x256xbf16, #tpu.memory_space<vmem>>, vector<2x256xbf16>,
    } else {
    }
    return
  }
  func.func @transform_0(%arg0: i32, %arg1: i32) -> (i32, i32) {
    %c0_i32 = arith.constant 0 : i32
    %c0_i32_0 = arith.constant 0 : i32
    return %c0_i32, %arg1 : i32, i32
  }
  func.func @transform_1(%arg0: i32, %arg1: i32) -> (i32, i32) {
    %c0_i32 = arith.constant 0 : i32
    return %arg1, %arg0 : i32, i32
  }
  func.func @transform_2(%arg0: i32, %arg1: i32) -> (i32, i32) {
    %c0_i32 = arith.constant 0 : i32
    %c0_i32_0 = arith.constant 0 : i32
    return %c0_i32, %arg0 : i32, i32
  }
  func.func @transform_3(%arg0: i32, %arg1: i32) -> (i32, i32) {
    %c0_i32 = arith.constant 0 : i32
    %c0_i32_0 = arith.constant 0 : i32
    return %c0_i32, %arg0 : i32, i32
  }
}

module attributes {stable_mosaic.version = 11 : i64} {
  func.func @_conv_kernel(%arg0: i32, %arg1: i32, %arg2: memref<1x20x256xbf16, #tpu.memory_space<vmem>>, %arg3: memref<2304x128xbf16, #tpu.memory_space<vmem>>, %arg4: memref<1x128xf32, #tpu.memory_space<vmem>>, %arg5: memref<1x1x1x128xbf16, #tpu.memory_space<vmem>>, %arg6: memref<8x128xf32, #tpu.memory_space<vmem>>) attributes {dimension_semantics = [#tpu.dimension_semantics<parallel>, #tpu.dimension_semantics<parallel>], iteration_bounds = array<i64: 2, 2>, scalar_prefetch = 0 : i64, scratch_operands = 1 : i64, tpu.core_type = #tpu.core_type<tc>, window_params = [{transform_indices = @transform_0, window_bounds = array<i64: 1, 20, 256>}, {transform_indices = @transform_1, window_bounds = array<i64: 2304, 128>}, {transform_indices = @transform_2, window_bounds = array<i64: 1, 128>}, {transform_indices = @transform_3, window_bounds = array<i64: 1, 1, 1, 128>}]} {
    %cst = arith.constant 0.000000e+00 : f32
    %0 = vector.broadcast %cst : f32 to vector<8x128xf32>
    %c0 = arith.constant 0 : index
    %c0_0 = arith.constant 0 : index
    %c0_1 = arith.constant 0 : index
    %1 = vector.load %arg2[%c0, %c0_0, %c0_1] : memref<1x20x256xbf16, #tpu.memory_space<vmem>>, vector<1x8x256xbf16>
    %2 = vector.shape_cast %1 : vector<1x8x256xbf16> to vector<8x256xbf16>
    %c0_2 = arith.constant 0 : index
    %c0_3 = arith.constant 0 : index
    %3 = vector.load %arg3[%c0_2, %c0_3] : memref<2304x128xbf16, #tpu.memory_space<vmem>>, vector<256x128xbf16>
    %cst_4 = arith.constant dense<0.000000e+00> : vector<8x128xf32>
    %4 = tpu.matmul %2, %3, %cst_4 {dimension_numbers = #tpu.dot_dimension_numbers<[1], [0], [0], [1], [0, 0, 1, 1], [], []>} : vector<8x256xbf16>, vector<256x128xbf16>, vector<8x128xf32> -> vector<8x128xf32>
    %5 = arith.addf %0, %4 : vector<8x128xf32>
    %c0_5 = arith.constant 0 : index
    %c1 = arith.constant 1 : index
    %c0_6 = arith.constant 0 : index
    %6 = vector.load %arg2[%c0_5, %c1, %c0_6] : memref<1x20x256xbf16, #tpu.memory_space<vmem>>, vector<1x8x256xbf16>
    %7 = vector.shape_cast %6 : vector<1x8x256xbf16> to vector<8x256xbf16>
    %c256 = arith.constant 256 : index
    %c0_7 = arith.constant 0 : index
    %8 = vector.load %arg3[%c256, %c0_7] : memref<2304x128xbf16, #tpu.memory_space<vmem>>, vector<256x128xbf16>
    %cst_8 = arith.constant dense<0.000000e+00> : vector<8x128xf32>
    %9 = tpu.matmul %7, %8, %cst_8 {dimension_numbers = #tpu.dot_dimension_numbers<[1], [0], [0], [1], [0, 0, 1, 1], [], []>} : vector<8x256xbf16>, vector<256x128xbf16>, vector<8x128xf32> -> vector<8x128xf32>
    %10 = arith.addf %5, %9 : vector<8x128xf32>
    %c0_9 = arith.constant 0 : index
    %c2 = arith.constant 2 : index
    %c0_10 = arith.constant 0 : index
    %11 = vector.load %arg2[%c0_9, %c2, %c0_10] : memref<1x20x256xbf16, #tpu.memory_space<vmem>>, vector<1x8x256xbf16>
    %12 = vector.shape_cast %11 : vector<1x8x256xbf16> to vector<8x256xbf16>
    %c512 = arith.constant 512 : index
    %c0_11 = arith.constant 0 : index
    %13 = vector.load %arg3[%c512, %c0_11] : memref<2304x128xbf16, #tpu.memory_space<vmem>>, vector<256x128xbf16>
    %cst_12 = arith.constant dense<0.000000e+00> : vector<8x128xf32>
    %14 = tpu.matmul %12, %13, %cst_12 {dimension_numbers = #tpu.dot_dimension_numbers<[1], [0], [0], [1], [0, 0, 1, 1], [], []>} : vector<8x256xbf16>, vector<256x128xbf16>, vector<8x128xf32> -> vector<8x128xf32>
    %15 = arith.addf %10, %14 : vector<8x128xf32>
    %c0_13 = arith.constant 0 : index
    %c4 = arith.constant 4 : index
    %c0_14 = arith.constant 0 : index
    %16 = vector.load %arg2[%c0_13, %c4, %c0_14] : memref<1x20x256xbf16, #tpu.memory_space<vmem>>, vector<1x8x256xbf16>
    %17 = vector.shape_cast %16 : vector<1x8x256xbf16> to vector<8x256xbf16>
    %c768 = arith.constant 768 : index
    %c0_15 = arith.constant 0 : index
    %18 = vector.load %arg3[%c768, %c0_15] : memref<2304x128xbf16, #tpu.memory_space<vmem>>, vector<256x128xbf16>
    %cst_16 = arith.constant dense<0.000000e+00> : vector<8x128xf32>
    %19 = tpu.matmul %17, %18, %cst_16 {dimension_numbers = #tpu.dot_dimension_numbers<[1], [0], [0], [1], [0, 0, 1, 1], [], []>} : vector<8x256xbf16>, vector<256x128xbf16>, vector<8x128xf32> -> vector<8x128xf32>
    %20 = arith.addf %15, %19 : vector<8x128xf32>
    %c0_17 = arith.constant 0 : index
    %c5 = arith.constant 5 : index
    %c0_18 = arith.constant 0 : index
    %21 = vector.load %arg2[%c0_17, %c5, %c0_18] : memref<1x20x256xbf16, #tpu.memory_space<vmem>>, vector<1x8x256xbf16>
    %22 = vector.shape_cast %21 : vector<1x8x256xbf16> to vector<8x256xbf16>
    %c1024 = arith.constant 1024 : index
    %c0_19 = arith.constant 0 : index
    %23 = vector.load %arg3[%c1024, %c0_19] : memref<2304x128xbf16, #tpu.memory_space<vmem>>, vector<256x128xbf16>
    %cst_20 = arith.constant dense<0.000000e+00> : vector<8x128xf32>
    %24 = tpu.matmul %22, %23, %cst_20 {dimension_numbers = #tpu.dot_dimension_numbers<[1], [0], [0], [1], [0, 0, 1, 1], [], []>} : vector<8x256xbf16>, vector<256x128xbf16>, vector<8x128xf32> -> vector<8x128xf32>
    %25 = arith.addf %20, %24 : vector<8x128xf32>
    %c0_21 = arith.constant 0 : index
    %c6 = arith.constant 6 : index
    %c0_22 = arith.constant 0 : index
    %26 = vector.load %arg2[%c0_21, %c6, %c0_22] : memref<1x20x256xbf16, #tpu.memory_space<vmem>>, vector<1x8x256xbf16>
    %27 = vector.shape_cast %26 : vector<1x8x256xbf16> to vector<8x256xbf16>
    %c1280 = arith.constant 1280 : index
    %c0_23 = arith.constant 0 : index
    %28 = vector.load %arg3[%c1280, %c0_23] : memref<2304x128xbf16, #tpu.memory_space<vmem>>, vector<256x128xbf16>
    %cst_24 = arith.constant dense<0.000000e+00> : vector<8x128xf32>
    %29 = tpu.matmul %27, %28, %cst_24 {dimension_numbers = #tpu.dot_dimension_numbers<[1], [0], [0], [1], [0, 0, 1, 1], [], []>} : vector<8x256xbf16>, vector<256x128xbf16>, vector<8x128xf32> -> vector<8x128xf32>
    %30 = arith.addf %25, %29 : vector<8x128xf32>
    %c0_25 = arith.constant 0 : index
    %c8 = arith.constant 8 : index
    %c0_26 = arith.constant 0 : index
    %31 = vector.load %arg2[%c0_25, %c8, %c0_26] : memref<1x20x256xbf16, #tpu.memory_space<vmem>>, vector<1x8x256xbf16>
    %32 = vector.shape_cast %31 : vector<1x8x256xbf16> to vector<8x256xbf16>
    %c1536 = arith.constant 1536 : index
    %c0_27 = arith.constant 0 : index
    %33 = vector.load %arg3[%c1536, %c0_27] : memref<2304x128xbf16, #tpu.memory_space<vmem>>, vector<256x128xbf16>
    %cst_28 = arith.constant dense<0.000000e+00> : vector<8x128xf32>
    %34 = tpu.matmul %32, %33, %cst_28 {dimension_numbers = #tpu.dot_dimension_numbers<[1], [0], [0], [1], [0, 0, 1, 1], [], []>} : vector<8x256xbf16>, vector<256x128xbf16>, vector<8x128xf32> -> vector<8x128xf32>
    %35 = arith.addf %30, %34 : vector<8x128xf32>
    %c0_29 = arith.constant 0 : index
    %c9 = arith.constant 9 : index
    %c0_30 = arith.constant 0 : index
    %36 = vector.load %arg2[%c0_29, %c9, %c0_30] : memref<1x20x256xbf16, #tpu.memory_space<vmem>>, vector<1x8x256xbf16>
    %37 = vector.shape_cast %36 : vector<1x8x256xbf16> to vector<8x256xbf16>
    %c1792 = arith.constant 1792 : index
    %c0_31 = arith.constant 0 : index
    %38 = vector.load %arg3[%c1792, %c0_31] : memref<2304x128xbf16, #tpu.memory_space<vmem>>, vector<256x128xbf16>
    %cst_32 = arith.constant dense<0.000000e+00> : vector<8x128xf32>
    %39 = tpu.matmul %37, %38, %cst_32 {dimension_numbers = #tpu.dot_dimension_numbers<[1], [0], [0], [1], [0, 0, 1, 1], [], []>} : vector<8x256xbf16>, vector<256x128xbf16>, vector<8x128xf32> -> vector<8x128xf32>
    %40 = arith.addf %35, %39 : vector<8x128xf32>
    %c0_33 = arith.constant 0 : index
    %c10 = arith.constant 10 : index
    %c0_34 = arith.constant 0 : index
    %41 = vector.load %arg2[%c0_33, %c10, %c0_34] : memref<1x20x256xbf16, #tpu.memory_space<vmem>>, vector<1x8x256xbf16>
    %42 = vector.shape_cast %41 : vector<1x8x256xbf16> to vector<8x256xbf16>
    %c2048 = arith.constant 2048 : index
    %c0_35 = arith.constant 0 : index
    %43 = vector.load %arg3[%c2048, %c0_35] : memref<2304x128xbf16, #tpu.memory_space<vmem>>, vector<256x128xbf16>
    %cst_36 = arith.constant dense<0.000000e+00> : vector<8x128xf32>
    %44 = tpu.matmul %42, %43, %cst_36 {dimension_numbers = #tpu.dot_dimension_numbers<[1], [0], [0], [1], [0, 0, 1, 1], [], []>} : vector<8x256xbf16>, vector<256x128xbf16>, vector<8x128xf32> -> vector<8x128xf32>
    %45 = arith.addf %40, %44 : vector<8x128xf32>
    %c0_37 = arith.constant 0 : index
    %c0_38 = arith.constant 0 : index
    %46 = vector.load %arg4[%c0_37, %c0_38] : memref<1x128xf32, #tpu.memory_space<vmem>>, vector<1x128xf32>
    %47 = vector.broadcast %46 : vector<1x128xf32> to vector<8x128xf32>
    %48 = arith.addf %45, %47 : vector<8x128xf32>
    %cst_39 = arith.constant 0.000000e+00 : f32
    %49 = vector.broadcast %cst_39 : f32 to vector<8x128xf32>
    %50 = arith.maximumf %48, %49 : vector<8x128xf32>
    %c0_40 = arith.constant 0 : index
    %c0_41 = arith.constant 0 : index
    %51 = vector.load %arg6[%c0_40, %c0_41] : memref<8x128xf32, #tpu.memory_space<vmem>>, vector<8x128xf32>
    tpu.vector_store %arg6[%c0_40, %c0_41], %50 {strides = array<i32>} : memref<8x128xf32, #tpu.memory_space<vmem>>, vector<8x128xf32>,
    %c0_42 = arith.constant 0 : index
    %c0_43 = arith.constant 0 : index
    %52 = tpu.strided_load %arg6[%c0_42, %c0_43] {strides = array<i32: 2, 1>} : memref<8x128xf32, #tpu.memory_space<vmem>>, vector<1x128xf32>
    %c1_44 = arith.constant 1 : index
    %c0_45 = arith.constant 0 : index
    %53 = tpu.strided_load %arg6[%c1_44, %c0_45] {strides = array<i32: 2, 1>} : memref<8x128xf32, #tpu.memory_space<vmem>>, vector<1x128xf32>
    %54 = arith.maximumf %52, %53 : vector<1x128xf32>
    %c4_46 = arith.constant 4 : index
    %c0_47 = arith.constant 0 : index
    %55 = tpu.strided_load %arg6[%c4_46, %c0_47] {strides = array<i32: 2, 1>} : memref<8x128xf32, #tpu.memory_space<vmem>>, vector<1x128xf32>
    %c5_48 = arith.constant 5 : index
    %c0_49 = arith.constant 0 : index
    %56 = tpu.strided_load %arg6[%c5_48, %c0_49] {strides = array<i32: 2, 1>} : memref<8x128xf32, #tpu.memory_space<vmem>>, vector<1x128xf32>
    %57 = arith.maximumf %55, %56 : vector<1x128xf32>
    %58 = arith.maximumf %54, %57 : vector<1x128xf32>
    %59 = arith.truncf %58 : vector<1x128xf32> to vector<1x128xbf16>
    %c0_50 = arith.constant 0 : index
    %c0_51 = arith.constant 0 : index
    %c0_52 = arith.constant 0 : index
    %c0_53 = arith.constant 0 : index
    %60 = vector.load %arg5[%c0_50, %c0_51, %c0_52, %c0_53] : memref<1x1x1x128xbf16, #tpu.memory_space<vmem>>, vector<1x1x1x128xbf16>
    %61 = vector.shape_cast %60 : vector<1x1x1x128xbf16> to vector<1x128xbf16>
    %62 = vector.shape_cast %59 : vector<1x128xbf16> to vector<1x1x1x128xbf16>
    tpu.vector_store %arg5[%c0_50, %c0_51, %c0_52, %c0_53], %62 {strides = array<i32>} : memref<1x1x1x128xbf16, #tpu.memory_space<vmem>>, vector<1x1x1x128xbf16>,
    return
  }
  func.func @transform_0(%arg0: i32, %arg1: i32) -> (i32, i32, i32) {
    %c0_i32 = arith.constant 0 : i32
    %c0_i32_0 = arith.constant 0 : i32
    %c0_i32_1 = arith.constant 0 : i32
    return %arg0, %c0_i32, %c0_i32_0 : i32, i32, i32
  }
  func.func @transform_1(%arg0: i32, %arg1: i32) -> (i32, i32) {
    %c0_i32 = arith.constant 0 : i32
    %c0_i32_0 = arith.constant 0 : i32
    return %c0_i32, %arg1 : i32, i32
  }
  func.func @transform_2(%arg0: i32, %arg1: i32) -> (i32, i32) {
    %c0_i32 = arith.constant 0 : i32
    %c0_i32_0 = arith.constant 0 : i32
    return %c0_i32, %arg1 : i32, i32
  }
  func.func @transform_3(%arg0: i32, %arg1: i32) -> (i32, i32, i32, i32) {
    %c0_i32 = arith.constant 0 : i32
    %c0_i32_0 = arith.constant 0 : i32
    %c0_i32_1 = arith.constant 0 : i32
    return %arg0, %c0_i32, %c0_i32_0, %arg1 : i32, i32, i32, i32
  }
}

module attributes {stable_mosaic.version = 11 : i64} {
  func.func @_fc_kernel(%arg0: i32, %arg1: i32, %arg2: memref<2x512xbf16, #tpu.memory_space<vmem>>, %arg3: memref<512x10xbf16, #tpu.memory_space<vmem>>, %arg4: memref<1x10xf32, #tpu.memory_space<vmem>>, %arg5: memref<2x10xf32, #tpu.memory_space<vmem>>, %arg6: memref<2x10xf32, #tpu.memory_space<vmem>>) attributes {dimension_semantics = [#tpu.dimension_semantics<parallel>, #tpu.dimension_semantics<arbitrary>], iteration_bounds = array<i64: 1, 1>, scalar_prefetch = 0 : i64, scratch_operands = 1 : i64, tpu.core_type = #tpu.core_type<tc>, window_params = [{transform_indices = @transform_0, window_bounds = array<i64: 2, 512>}, {transform_indices = @transform_1, window_bounds = array<i64: 512, 10>}, {transform_indices = @transform_2, window_bounds = array<i64: 1, 10>}, {transform_indices = @transform_3, window_bounds = array<i64: 2, 10>}]} {
    %c0_i32 = arith.constant 0 : i32
    %0 = arith.cmpi eq, %arg1, %c0_i32 : i32
    %1 = arith.extui %0 : i1 to i32
    %c0_i32_0 = arith.constant 0 : i32
    %2 = arith.cmpi ne, %1, %c0_i32_0 : i32
    scf.if %2 {
      %cst_10 = arith.constant 0.000000e+00 : f32
      %12 = vector.broadcast %cst_10 : f32 to vector<2x10xf32>
      %c0_11 = arith.constant 0 : index
      %c0_12 = arith.constant 0 : index
      %13 = vector.load %arg6[%c0_11, %c0_12] : memref<2x10xf32, #tpu.memory_space<vmem>>, vector<2x10xf32>
      tpu.vector_store %arg6[%c0_11, %c0_12], %12 {strides = array<i32>} : memref<2x10xf32, #tpu.memory_space<vmem>>, vector<2x10xf32>,
    } else {
    }
    %c0 = arith.constant 0 : index
    %c0_1 = arith.constant 0 : index
    %3 = vector.load %arg6[%c0, %c0_1] : memref<2x10xf32, #tpu.memory_space<vmem>>, vector<2x10xf32>
    %c0_2 = arith.constant 0 : index
    %c0_3 = arith.constant 0 : index
    %4 = vector.load %arg2[%c0_2, %c0_3] : memref<2x512xbf16, #tpu.memory_space<vmem>>, vector<2x512xbf16>
    %c0_4 = arith.constant 0 : index
    %c0_5 = arith.constant 0 : index
    %5 = vector.load %arg3[%c0_4, %c0_5] : memref<512x10xbf16, #tpu.memory_space<vmem>>, vector<512x10xbf16>
    %cst = arith.constant dense<0.000000e+00> : vector<2x10xf32>
    %6 = tpu.matmul %4, %5, %cst {dimension_numbers = #tpu.dot_dimension_numbers<[1], [0], [0], [1], [0, 0, 1, 1], [], []>} : vector<2x512xbf16>, vector<512x10xbf16>, vector<2x10xf32> -> vector<2x10xf32>
    %7 = arith.addf %3, %6 : vector<2x10xf32>
    %c0_6 = arith.constant 0 : index
    %c0_7 = arith.constant 0 : index
    %8 = vector.load %arg6[%c0_6, %c0_7] : memref<2x10xf32, #tpu.memory_space<vmem>>, vector<2x10xf32>
    tpu.vector_store %arg6[%c0_6, %c0_7], %7 {strides = array<i32>} : memref<2x10xf32, #tpu.memory_space<vmem>>, vector<2x10xf32>,
    %c0_i32_8 = arith.constant 0 : i32
    %9 = arith.cmpi eq, %arg1, %c0_i32_8 : i32
    %10 = arith.extui %9 : i1 to i32
    %c0_i32_9 = arith.constant 0 : i32
    %11 = arith.cmpi ne, %10, %c0_i32_9 : i32
    scf.if %11 {
      %c0_10 = arith.constant 0 : index
      %c0_11 = arith.constant 0 : index
      %12 = vector.load %arg6[%c0_10, %c0_11] : memref<2x10xf32, #tpu.memory_space<vmem>>, vector<2x10xf32>
      %c0_12 = arith.constant 0 : index
      %c0_13 = arith.constant 0 : index
      %13 = vector.load %arg4[%c0_12, %c0_13] : memref<1x10xf32, #tpu.memory_space<vmem>>, vector<1x10xf32>
      %14 = vector.broadcast %13 : vector<1x10xf32> to vector<2x10xf32>
      %15 = arith.addf %12, %14 : vector<2x10xf32>
      %c0_14 = arith.constant 0 : index
      %c0_15 = arith.constant 0 : index
      %16 = vector.load %arg5[%c0_14, %c0_15] : memref<2x10xf32, #tpu.memory_space<vmem>>, vector<2x10xf32>
      tpu.vector_store %arg5[%c0_14, %c0_15], %15 {strides = array<i32>} : memref<2x10xf32, #tpu.memory_space<vmem>>, vector<2x10xf32>,
    } else {
    }
    return
  }
  func.func @transform_0(%arg0: i32, %arg1: i32) -> (i32, i32) {
    %c0_i32 = arith.constant 0 : i32
    %c0_i32_0 = arith.constant 0 : i32
    return %c0_i32, %arg1 : i32, i32
  }
  func.func @transform_1(%arg0: i32, %arg1: i32) -> (i32, i32) {
    %c0_i32 = arith.constant 0 : i32
    return %arg1, %arg0 : i32, i32
  }
  func.func @transform_2(%arg0: i32, %arg1: i32) -> (i32, i32) {
    %c0_i32 = arith.constant 0 : i32
    %c0_i32_0 = arith.constant 0 : i32
    return %c0_i32, %arg0 : i32, i32
  }
  func.func @transform_3(%arg0: i32, %arg1: i32) -> (i32, i32) {
    %c0_i32 = arith.constant 0 : i32
    %c0_i32_0 = arith.constant 0 : i32
    return %c0_i32, %arg0 : i32, i32
  }
}

</mosaic_0001>

<bundles_post_ra>
// kernel: vggish_forward.10
= control target key start
LH: loop header
LB: loop body
LE: loop exit
PB: predicated region body
PF: predicated region fallthrough
CT: control target
= control target key end

     0   :  { %s1640_s12 = smov 0   ;;  %s1642_s13 = smov 0   ;;  %s1859_s0 = inlined_call_operand.vmem [shape: bf16[2,42,64], index: 0, kind: input, shape index: {}]   ;;  %s1860_s1 = inlined_call_operand.vmem [shape: bf16[576,128], index: 1, kind: input, shape index: {}]   ;;  %s1861_s2 = inlined_call_operand.vmem [shape: f32[1,128], index: 2, kind: input, shape index: {}]   ;;  %s1862_s3 = inlined_call_operand.vmem [shape: bf16[2,4,4,128], index: 3, kind: output, shape index: {}]  }
   0x1   :  { %s1644_s14 = smov 0  }
   0x2 LB: > { %s25_s15 = sadd.s32 1, %s1614_s13  ;;  %p1282_p0 = scmp.ge.s32.totalorder %s1618_s14, 1  ;;  %s1618_s14 = sphi %s1644_s14, %s13_s14   ;;  %s1614_s13 = sphi %s1642_s13, %s1864_s13   ;;  %s1610_s12 = sphi %s1640_s12, %s1863_s12  }
   0x3   : > { %p27_p1 = scmp.ge.s32.totalorder %s25_s15, 2  ;;  %p168_p2 = scmp.lt.s32.totalorder %s1618_s14, 3 }
   0x5   : > { %s1866_s15 = smov (%p27_p1, %s25_s15), 0  ;;  %p169_p3 = pnand %p1282_p0, %p168_p2 }
   0x6   : > { %p202_p4 = scmp.lt.s32.totalorder (!%p169_p3), %s1610_s12, 1 }
   0x7   : > { %172 = sbr.rel (%p169_p3) target bundleno = 309 (0x135), region = 32 }
   0xc   : > { %v1547_v0 = vld [vmem:[%s1860_s1 + $0x38] sm:$0xff]   ;;  %v1549_v2 = vld [vmem:[%s1860_s1 + $0x30] sm:$0xff]   ;;  %s1868_s12 = smov (!%p202_p4, %s1610_s12), 1  ;;  %v1551_v4 = vld [vmem:[%s1860_s1 + $0x28] sm:$0xff]   ;;  %vm293_vm0 = vcmask 523264   ;;  %vm438_vm2 = vcmask 1046528  }
   0xd   : > { %v1548_v1 = vld [vmem:[%s1860_s1 + $0x18] sm:$0xff]   ;;  %1414 = vmatprep.subr.bf16.mxu0 %v1547_v0  ;;  %v1550_v3 = vld [vmem:[%s1860_s1 + $0x10] sm:$0xff]   ;;  %s1522_s26 = smul.u32 24, %s1868_s12  ;;  %v1552_v5 = vld [vmem:[%s1860_s1 + $0x8] sm:$0xff]   ;;  %vm253_vm1 = vsmask.f32 7424 }
   0xe   : > { %1426 = vmatprep.subr.bf16.mxu1 %v1548_v1  ;;  %1415 = vmatpush3.bf16.msra.mxu0 %v1547_v0  ;;  %v1553_v6 = vld [vmem:[%s1860_s1 + $0x20] sm:$0xff]   ;;  %v1558_v16 = vld [vmem:[%s1860_s1 + $0x58] sm:$0xff]   ;;  %v1560_v25 = vld [vmem:[%s1860_s1 + $0x50] sm:$0xff]   ;;  %vm539_vm3 = vcmask 1044480   ;;  %vm636_vm4 = vsmask.f32 4352 }
   0xf   : > { %1427 = vmatpush3.bf16.msra.mxu1 %v1548_v1  ;;  %1416 = vmatprep.subr.bf16.mxu0 %v1549_v2  ;;  %s1682_s4 = scalar_lea.vmem %s1859_s0, %s1522_s26  ;;  %v1554_v10 = vld [vmem:[%s1860_s1] sm:$0xff]   ;;  %v1559_v20 = vld [vmem:[%s1860_s1 + $0x78] sm:$0xff]   ;;  %v1561_v27 = vld [vmem:[%s1860_s1 + $0x70] sm:$0xff]   ;;  %vm848_vm5 = vcmask 1045504   ;;  %vm945_vm6 = vsmask.f32 5376 }
  0x10   : > { %1428 = vmatprep.subr.bf16.mxu1 %v1550_v3  ;;  %v223_v7 = vld [vmem:[%s1682_s4] sm:$0xf]  ;;  %v1689_v8 = vld [vmem:[%s1682_s4 + $0x4] sm:$0xf]  ;;  %v1692_v9 = vld [vmem:[%s1682_s4 + $0x8] sm:$0xf] }
  0x11   : > { %v234_v11 = vld [vmem:[%s1682_s4 + $0xc] sm:$0x1]  ;;  %v1286_v12 = vcombine.low %v223_v7, %v1689_v8  ;;  %v1294_v23 = vcombine.low %v1692_v9, %v1692_v9  ;;  %v426_v28 = vld [vmem:[%s1682_s4] sm:$0xe]  ;;  %v1567_v46 = vld [vmem:[%s1860_s1 + $0x98] sm:$0xff]   ;;  %v1323_v60 = vcombine.low %v1689_v8, %v1692_v9  ;;  %s1359_s26 = sshll.u32 %s1868_s12, 3 }
  0x12   : > { %1417 = vmatpush3.bf16.msra.mxu0 %v1549_v2  ;;  %v1700_v13 = vcombine.low %v1692_v9, %v234_v11  ;;  %v1301_v29 = vcombine.low %v426_v28, %v1689_v8  ;;  %v523_v31 = vld [vmem:[%s1682_s4] sm:$0x8]  ;;  %v524_v32 = vld [vmem:[%s1682_s4 + $0xc] sm:$0x7]  ;;  %v1570_v51 = vld [vmem:[%s1860_s1 + $0xb8] sm:$0xff]   ;;  %s221_s29 = scalar_lea.vmem %s1862_s3, %s1359_s26 }
  0x13   : > { %1429 = vmatpush3.bf16.msra.mxu1 %v1550_v3  ;;  %1418 = vmatprep.subr.bf16.mxu0 %v1551_v4  ;;  %v255_v14 = vshrl.u32 %v1286_v12, 16  ;;  %v257_v15 = vshll.u32 %v1286_v12, 16  ;;  %v1562_v33 = vld [vmem:[%s1860_s1 + $0x48] sm:$0xff]   ;;  %v1308_v34 = vcombine.low %v523_v31, %v1689_v8  ;;  %v1309_v35 = vcombine.low %v1692_v9, %v524_v32  ;;  %v1564_v42 = vld [vmem:[%s1860_s1 + $0x40] sm:$0xff]   ;;  %v1571_v54 = vld [vmem:[%s1860_s1 + $0x90] sm:$0xff]  }
  0x14   : > { %1430 = vmatprep.subr.bf16.mxu1 %v1552_v5  ;;  %1434 = vmatprep.mubr.msk.bf16.mxu1 %vm293_vm0, %v1286_v12  ;;  %v262_v17 = vshll.u32 %v1700_v13, 16  ;;  %v266_v18 = vshrl.u32 %v1700_v13, 16  ;;  %v440_v30 = vrot.slane %v1700_v13, 1  ;;  %v1563_v36 = vld [vmem:[%s1860_s1 + $0x68] sm:$0xff]   ;;  %v439_v37 = vrot.slane %v1301_v29, 1  ;;  %v1565_v45 = vld [vmem:[%s1860_s1 + $0x60] sm:$0xff]  }
  0x15   : > { %v259_v19 = vrot.slane %v257_v15, 1  ;;  %v540_v38 = vrot.slane %v1308_v34, 3  ;;  %v541_v39 = vrot.slane %v1309_v35, 3  ;;  %v638_v41 = vshrl.u32 %v1308_v34, 16  ;;  %v1750_v47 = vld [vmem:[%s1682_s4 + $0xc] sm:$0xf] }
  0x16   : > { %1419 = vmatpush3.bf16.msra.mxu0 %v1551_v4  ;;  %v264_v21 = vrot.slane %v262_v17, 1  ;;  %v441_v40 = vsel %vm438_vm2, %v439_v37, %v440_v30  ;;  %v641_v44 = vshll.u32 %v1308_v34, 16  ;;  %v1316_v50 = vcombine.low %v1692_v9, %v1750_v47  ;;  %v1572_v55 = vld [vmem:[%s1860_s1 + $0xb0] sm:$0xff]   ;;  %v1573_v61 = vld [vmem:[%s1860_s1 + $0x88] sm:$0xff]   ;;  %v826_v62 = vld [vmem:[%s1682_s4 + $0x4] sm:$0xc] }
  0x17   : > { %1431 = vmatpush3.bf16.msra.mxu1 %v1552_v5  ;;  %1420 = vmatprep.subr.bf16.mxu0 %v1553_v6  ;;  %v260_v22 = vor.u32 %v259_v19, %v255_v14  ;;  %v542_v43 = vsel %vm539_vm3, %v540_v38, %v541_v39  ;;  %v640_v48 = vrot.slane %v638_v41, 3  ;;  %v1574_v63 = vld [vmem:[%s1860_s1 + $0xa8] sm:$0xff]   ;;  %v933_v4 = vld [vmem:[%s1682_s4 + $0x10] sm:$0x7]  ;;  %v1575_v11 = vld [vmem:[%s1860_s1 + $0x80] sm:$0xff]  }
  0x18   : > { %1432 = vmatprep.subr.bf16.mxu1 %v1554_v10  ;;  %v268_v24 = vor.u32 %v266_v18, %v264_v21  ;;  %v643_v49 = vrot.slane %v641_v44, 4  ;;  %v646_v52 = vshrl.u32 %v1316_v50, 16  ;;  %v649_v53 = vshll.u32 %v1316_v50, 16  ;;  %v1775_v1 = vld [vmem:[%s1682_s4 + $0x8] sm:$0xf]  ;;  %v1576_v12 = vld [vmem:[%s1860_s1 + $0xa0] sm:$0xff]  }
  0x19   : > { %v265_v26 = vsel %vm253_vm1, %v260_v22, %v264_v21  ;;  %v828_v2 = vld [vmem:[%s1682_s4 + $0xc] sm:$0xf]  ;;  %v1331_v3 = vcombine.low %v826_v62, %v1775_v1  ;;  %v1578_v18 = vld [vmem:[%s1860_s1 + $0xd8] sm:$0xff]   ;;  %v1044_v31 = vld [vmem:[%s1682_s4 + $0x4] sm:$0x8] }
  0x1a   : > { %1421 = vmatpush3.bf16.msra.mxu0 %v1553_v6  ;;  %1422 = vmatprep.mubr.msk.bf16.mxu0 %vm293_vm0, %v265_v26  ;;  %v644_v56 = vor.u32 %v643_v49, %v640_v48  ;;  %v648_v57 = vrot.slane %v646_v52, 3  ;;  %v651_v58 = vrot.slane %v649_v53, 4  ;;  %v1782_v5 = vcombine.low %v828_v2, %v933_v4  ;;  %v829_v6 = vld [vmem:[%s1682_s4 + $0x10] sm:$0x3]  ;;  %v1581_v19 = vld [vmem:[%s1860_s1 + $0xf8] sm:$0xff]   ;;  %v1584_v29 = vld [vmem:[%s1860_s1 + $0xc8] sm:$0xff]  }
  0x1b   : > { %1433 = vmatpush3.bf16.msra.mxu1 %v1554_v10  ;;  %1438 = vmatprep.subr.bf16.mxu0 %v1558_v16  ;;  %v947_v7 = vshrl.u32 %v1331_v3, 16  ;;  %v950_v8 = vshll.u32 %v1331_v3, 16  ;;  %v1332_v13 = vcombine.low %v828_v2, %v829_v6  ;;  %v849_v21 = vrot.slane %v1331_v3, 2  ;;  %v1583_v26 = vld [vmem:[%s1860_s1 + $0xf0] sm:$0xff]   ;;  %v1586_v32 = vld [vmem:[%s1860_s1 + $0xc0] sm:$0xff]   ;;  %v1591_v35 = vld [vmem:[%s1860_s1 + $0x118] sm:$0xff]  }
  0x1c   : > { %1450 = vmatprep.subr.bf16.mxu1 %v1559_v20  ;;  %v652_v59 = vor.u32 %v651_v58, %v648_v57  ;;  %v955_v9 = vshrl.u32 %v1782_v5, 16  ;;  %v958_v10 = vshll.u32 %v1782_v5, 16  ;;  %v1346_v34 = vcombine.low %v1044_v31, %v1775_v1  ;;  %v1592_v38 = vld [vmem:[%s1860_s1 + $0x110] sm:$0xff]   ;;  %v1594_v41 = vld [vmem:[%s1860_s1 + $0x100] sm:$0xff]  }
  0x1d   : > { %1423 = vmatmul.mubr.msk.bf16.vlgmr.msra.gmra.mxu0 %vm293_vm0, %v268_v24  ;;  %v949_v14 = vrot.slane %v947_v7, 2  ;;  %v952_v15 = vrot.slane %v950_v8, 3  ;;  %v850_v22 = vrot.slane %v1332_v13, 2  ;;  %v1057_v37 = vrot.slane %v1782_v5, 3 }
  0x1e   : > { %1435 = vmatmul.mubr.msk.bf16.vlgmr.msra.gmra.mxu1 %vm293_vm0, %v1294_v23  ;;  %1439 = vmatpush3.bf16.msra.mxu0 %v1558_v16  ;;  %v653_v0 = vsel %vm636_vm4, %v644_v56, %v652_v59  ;;  %v957_v16 = vrot.slane %v955_v9, 2  ;;  %v960_v17 = vrot.slane %v958_v10, 3 }
  0x1f   : > { %1451 = vmatpush3.bf16.msra.mxu1 %v1559_v20  ;;  %1440 = vmatprep.subr.bf16.mxu0 %v1560_v25  ;;  %v1324_v20 = vcombine.low %v1750_v47, %v1750_v47  ;;  %v953_v23 = vor.u32 %v952_v15, %v949_v14 }
  0x20   : > { %1452 = vmatprep.subr.bf16.mxu1 %v1561_v27  ;;  %1446 = vmatprep.mubr.msk.bf16.mxu0 %vm293_vm0, %v441_v40  ;;  %v961_v24 = vor.u32 %v960_v17, %v957_v16  ;;  %v1593_v40 = vld [vmem:[%s1860_s1 + $0x108] sm:$0xff]  }
  0x21   : > { %1458 = vmatprep.mubr.msk.bf16.mxu1 %vm293_vm0, %v542_v43 }
  0x22   : > { %1441 = vmatpush3.bf16.msra.mxu0 %v1560_v25  ;;  %v1582_v25 = vld [vmem:[%s1860_s1 + $0xd0] sm:$0xff]   ;;  %v962_v28 = vsel %vm945_vm6, %v953_v23, %v961_v24 }
  0x23   : > { %1453 = vmatpush3.bf16.msra.mxu1 %v1561_v27  ;;  %1442 = vmatprep.subr.bf16.mxu0 %v1562_v33  ;;  %v851_v27 = vsel %vm848_vm5, %v849_v21, %v850_v22 }
  0x24   : > { %1454 = vmatprep.subr.bf16.mxu1 %v1563_v36 }
  0x26   : > { %1443 = vmatpush3.bf16.msra.mxu0 %v1562_v33  ;;  %v1587_v33 = vld [vmem:[%s1860_s1 + $0xe0] sm:$0xff]  }
  0x27   : > { %1455 = vmatpush3.bf16.msra.mxu1 %v1563_v36  ;;  %1444 = vmatprep.subr.bf16.mxu0 %v1564_v42  ;;  %v1056_v36 = vrot.slane %v1346_v34, 3 }
  0x28   : > { %1456 = vmatprep.subr.bf16.mxu1 %v1565_v45 }
  0x2a   : > { %1445 = vmatpush3.bf16.msra.mxu0 %v1564_v42 }
  0x2b   : > { %1457 = vmatpush3.bf16.msra.mxu1 %v1565_v45  ;;  %1462 = vmatprep.subr.bf16.mxu0 %v1567_v46 }
  0x2c   : > { %1474 = vmatprep.subr.bf16.mxu1 %v1570_v51 }
  0x2d   : > { %1447 = vmatmul.mubr.msk.bf16.vlgmr.msra.gmra.mxu0 %vm293_vm0, %v440_v30  ;;  %v1585_v30 = vld [vmem:[%s1860_s1 + $0xe8] sm:$0xff]  }
  0x2e   : > { %1459 = vmatmul.mubr.msk.bf16.vlgmr.msra.gmra.mxu1 %vm293_vm0, %v541_v39  ;;  %1463 = vmatpush3.bf16.msra.mxu0 %v1567_v46  ;;  %v1058_v39 = vsel %vm539_vm3, %v1056_v36, %v1057_v37 }
  0x2f   : > { %1475 = vmatpush3.bf16.msra.mxu1 %v1570_v51  ;;  %1464 = vmatprep.subr.bf16.mxu0 %v1571_v54 }
  0x30   : > { %1476 = vmatprep.subr.bf16.mxu1 %v1572_v55  ;;  %1470 = vmatprep.mubr.msk.bf16.mxu0 %vm293_vm0, %v653_v0 }
  0x31   : > { %1482 = vmatprep.mubr.msk.bf16.mxu1 %vm293_vm0, %v1323_v60 }
  0x32   : > { %1465 = vmatpush3.bf16.msra.mxu0 %v1571_v54 }
  0x33   : > { %1477 = vmatpush3.bf16.msra.mxu1 %v1572_v55  ;;  %1466 = vmatprep.subr.bf16.mxu0 %v1573_v61 }
  0x34   : > { %1478 = vmatprep.subr.bf16.mxu1 %v1574_v63 }
  0x36   : > { %1467 = vmatpush3.bf16.msra.mxu0 %v1573_v61 }
  0x37   : > { %1479 = vmatpush3.bf16.msra.mxu1 %v1574_v63  ;;  %1468 = vmatprep.subr.bf16.mxu0 %v1575_v11 }
  0x38   : > { %1480 = vmatprep.subr.bf16.mxu1 %v1576_v12 }
  0x3a   : > { %1469 = vmatpush3.bf16.msra.mxu0 %v1575_v11 }
  0x3b   : > { %1481 = vmatpush3.bf16.msra.mxu1 %v1576_v12  ;;  %1486 = vmatprep.subr.bf16.mxu0 %v1578_v18 }
  0x3c   : > { %1498 = vmatprep.subr.bf16.mxu1 %v1581_v19 }
  0x3d   : > { %1471 = vmatmul.mubr.msk.bf16.vlgmr.msra.gmra.mxu0 %vm293_vm0, %v652_v59 }
  0x3e   : > { %1483 = vmatmul.mubr.msk.bf16.vlgmr.msra.gmra.mxu1 %vm293_vm0, %v1324_v20  ;;  %1487 = vmatpush3.bf16.msra.mxu0 %v1578_v18 }
  0x3f   : > { %1499 = vmatpush3.bf16.msra.mxu1 %v1581_v19  ;;  %1488 = vmatprep.subr.bf16.mxu0 %v1582_v25 }
  0x40   : > { %1500 = vmatprep.subr.bf16.mxu1 %v1583_v26  ;;  %1494 = vmatprep.mubr.msk.bf16.mxu0 %vm293_vm0, %v851_v27 }
  0x41   : > { %1506 = vmatprep.mubr.msk.bf16.mxu1 %vm293_vm0, %v962_v28  ;;  %v1353_v28 = vld [vmem:[%s1861_s2] ss:$0 sm:$0xff] }
  0x42   : > { %1489 = vmatpush3.bf16.msra.mxu0 %v1582_v25 }
  0x43   : > { %1501 = vmatpush3.bf16.msra.mxu1 %v1583_v26  ;;  %1490 = vmatprep.subr.bf16.mxu0 %v1584_v29 }
  0x44   : > { %1502 = vmatprep.subr.bf16.mxu1 %v1585_v30 }
  0x46   : > { %1491 = vmatpush3.bf16.msra.mxu0 %v1584_v29 }
  0x47   : > { %1503 = vmatpush3.bf16.msra.mxu1 %v1585_v30  ;;  %1492 = vmatprep.subr.bf16.mxu0 %v1586_v32 }
  0x48   : > { %1504 = vmatprep.subr.bf16.mxu1 %v1587_v33 }
  0x4a   : > { %1493 = vmatpush3.bf16.msra.mxu0 %v1586_v32 }
  0x4b   : > { %1505 = vmatpush3.bf16.msra.mxu1 %v1587_v33  ;;  %1510 = vmatprep.subr.bf16.mxu0 %v1591_v35 }
  0x4d   : > { %1495 = vmatmul.mubr.msk.bf16.vlgmr.msra.gmra.mxu0 %vm293_vm0, %v850_v22 }
  0x4e   : > { %1507 = vmatmul.mubr.msk.bf16.vlgmr.msra.gmra.mxu1 %vm293_vm0, %v961_v24  ;;  %1511 = vmatpush3.bf16.msra.mxu0 %v1591_v35 }
  0x4f   : > { %1518 = vmatprep.mubr.msk.bf16.mxu0 %vm293_vm0, %v1058_v39  ;;  %1512 = vmatprep.subr.bf16.mxu0 %v1592_v38 }
  0x52   : > { %1513 = vmatpush3.bf16.msra.mxu0 %v1592_v38 }
  0x53   : > { %1514 = vmatprep.subr.bf16.mxu0 %v1593_v40 }
  0x56   : > { %1515 = vmatpush3.bf16.msra.mxu0 %v1593_v40 }
  0x57   : > { %1516 = vmatprep.subr.bf16.mxu0 %v1594_v41 }
  0x5a   : > { %1517 = vmatpush3.bf16.msra.mxu0 %v1594_v41 }
  0x5d   : > { %1519 = vmatmul.mubr.msk.bf16.vlgmr.msra.gmra.mxu0 %vm293_vm0, %v1057_v37 }
  0xdd   : > { %v1424_v42 = vpop.f32.mrf.mxu0 }
  0xde   : > { %v1436_v43 = vpop.f32.mrf.mxu1 }
  0xdf   : > { %v334_v44 = vpop.f32.mrf.mxu0  ;;  %v421_v0 = vadd.f32 %v1436_v43, %v1424_v42 }
  0xe0   : > { %v412_v45 = vpop.f32.mrf.mxu1 }
  0xe1   : > { %v1425_v46 = vpop.f32.mrf.mxu0  ;;  %v413_v3 = vadd.f32 %v412_v45, %v334_v44 }
  0xe2   : > { %v1437_v47 = vpop.f32.mrf.mxu1 }
  0xe3   : > { %v337_v48 = vpop.f32.mrf.mxu0 }
  0xe4   : > { %v415_v49 = vpop.f32.mrf.mxu1 }
  0xe5   : > { %v416_v10 = vadd.f32 %v415_v49, %v337_v48 }
  0xed   : > { %v1448_v50 = vpop.f32.mrf.mxu0 }
  0xee   : > { %v1460_v51 = vpop.f32.mrf.mxu1  ;;  %v522_v4 = vadd.f32 %v1448_v50, %v421_v0 }
  0xef   : > { %v506_v52 = vpop.f32.mrf.mxu0 }
  0xf0   : > { %v607_v53 = vpop.f32.mrf.mxu1  ;;  %v520_v7 = vadd.f32 %v506_v52, %v413_v3  ;;  %v623_v11 = vadd.f32 %v1460_v51, %v522_v4 }
  0xf1   : > { %v1449_v54 = vpop.f32.mrf.mxu0 }
  0xf2   : > { %v1461_v55 = vpop.f32.mrf.mxu1  ;;  %v621_v14 = vadd.f32 %v607_v53, %v520_v7 }
  0xf3   : > { %v509_v56 = vpop.f32.mrf.mxu0 }
  0xf4   : > { %v610_v57 = vpop.f32.mrf.mxu1  ;;  %v521_v15 = vadd.f32 %v509_v56, %v416_v10 }
  0xf6   : > { %v622_v18 = vadd.f32 %v610_v57, %v521_v15 }
  0xfd   : > { %v1472_v58 = vpop.f32.mrf.mxu0 }
  0xfe   : > { %v1484_v59 = vpop.f32.mrf.mxu1  ;;  %v734_v16 = vadd.f32 %v1472_v58, %v623_v11 }
  0xff   : > { %v718_v60 = vpop.f32.mrf.mxu0 }
 0x100   : > { %v809_v61 = vpop.f32.mrf.mxu1  ;;  %v732_v17 = vadd.f32 %v718_v60, %v621_v14  ;;  %v825_v19 = vadd.f32 %v1484_v59, %v734_v16 }
 0x101   : > { %v1473_v62 = vpop.f32.mrf.mxu0 }
 0x102   : > { %v1485_v63 = vpop.f32.mrf.mxu1  ;;  %v823_v20 = vadd.f32 %v809_v61, %v732_v17 }
 0x103   : > { %v721_v1 = vpop.f32.mrf.mxu0 }
 0x104   : > { %v812_v2 = vpop.f32.mrf.mxu1  ;;  %v733_v21 = vadd.f32 %v721_v1, %v622_v18 }
 0x106   : > { %v824_v25 = vadd.f32 %v812_v2, %v733_v21 }
 0x10d   : > { %v1496_v5 = vpop.f32.mrf.mxu0 }
 0x10e   : > { %v1508_v6 = vpop.f32.mrf.mxu1  ;;  %v932_v22 = vadd.f32 %v1496_v5, %v825_v19 }
 0x10f   : > { %v916_v8 = vpop.f32.mrf.mxu0 }
 0x110   : > { %v1027_v9 = vpop.f32.mrf.mxu1  ;;  %v930_v23 = vadd.f32 %v916_v8, %v823_v20  ;;  %v1043_v26 = vadd.f32 %v1508_v6, %v932_v22 }
 0x111   : > { %v1497_v12 = vpop.f32.mrf.mxu0 }
 0x112   : > { %v1509_v13 = vpop.f32.mrf.mxu1  ;;  %v1041_v29 = vadd.f32 %v1027_v9, %v930_v23 }
 0x113   : > { %v919_v24 = vpop.f32.mrf.mxu0 }
 0x114   : > { %v931_v30 = vadd.f32 %v919_v24, %v824_v25  ;;  %v1030_v32 = vpop.f32.mrf.mxu1 }
 0x116   : > { %v1042_v37 = vadd.f32 %v1030_v32, %v931_v30 }
 0x11d   : > { %v1520_v27 = vpop.f32.mrf.mxu0 }
 0x11e   : > { %v1139_v31 = vadd.f32 %v1520_v27, %v1043_v26 }
 0x11f   : > { %v1123_v33 = vpop.f32.mrf.mxu0 }
 0x120   : > { %v1149_v34 = vadd.f32 %v1353_v28, %v1139_v31  ;;  %v1137_v35 = vadd.f32 %v1123_v33, %v1041_v29 }
 0x121   : > { %v1521_v36 = vpop.f32.mrf.mxu0 }
 0x122   : > { %v1152_v38 = vmax.f32 %v1149_v34, 0.0  ;;  %v1147_v39 = vadd.f32 %v1353_v28, %v1137_v35 }
 0x123   : > { %v1126_v40 = vpop.f32.mrf.mxu0 }
 0x124   : > { %1155 = vst [vmem:[#allocation2 + $0x10] sm:$0xff] %v1152_v38  ;;  %v1150_v41 = vmax.f32 %v1147_v39, 0.0  ;;  %v1138_v42 = vadd.f32 %v1126_v40, %v1042_v37 }
 0x126   : > { %1153 = vst [vmem:[#allocation2] sm:$0xff] %v1150_v41  ;;  %v1148_v43 = vadd.f32 %v1353_v28, %v1138_v42 }
 0x128   : > { %v1151_v44 = vmax.f32 %v1148_v43, 0.0 }
 0x12a   : > { %1154 = vst [vmem:[#allocation2 + $0x8] sm:$0xff] %v1151_v44 }
 0x12b   : > { %v1167_v45 = vld [vmem:[#allocation2 + $0x12] sm:$0xf] }
 0x12c   : > { %v1168_v46 = vpack.c.bf16 %v1167_v45, %v1167_v45 }
 0x12d   : > { %v1156_v47 = vld [vmem:[#allocation2] sm:$0xf] }
 0x12e   : > { %1356 = vst [vmem:[%s221_s29 + $0x6] sm:$0x3] %v1168_v46  ;;  %v1157_v48 = vpack.c.bf16 %v1156_v47, %v1156_v47 }
 0x130   : > { %1158 = vst [vmem:[%s221_s29] sm:$0x3] %v1157_v48 }
 0x131   : > { %v1159_v49 = vld [vmem:[#allocation2 + $0x6] sm:$0xf]  ;;  %v1163_v50 = vld [vmem:[#allocation2 + $0xc] sm:$0xf] }
 0x132   : > { %v1160_v51 = vpack.c.bf16 %v1159_v49, %v1159_v49  ;;  %v1164_v52 = vpack.c.bf16 %v1163_v50, %v1163_v50 }
 0x134   : > { %1354 = vst [vmem:[%s221_s29 + $0x2] sm:$0x3] %v1160_v51  ;;  %1355 = vst [vmem:[%s221_s29 + $0x4] sm:$0x3] %v1164_v52 }
 0x135 PF: > { %s13_s14 = sadd.s32 1, %s1618_s14   ;;  %s1863_s12 = smov %s1614_s13 }
 0x136   : > { %p10_p5 = scmp.ge.s32.totalorder %s13_s14, 4   ;;  %s1864_s13 = smov %s1866_s15 }
 0x138   :  { %12 = sbr.rel (!%p10_p5) target bundleno = 2 (0x2), region = 71 }

// kernel: vggish_forward.9
= control target key start
LH: loop header
LB: loop body
LE: loop exit
PB: predicated region body
PF: predicated region fallthrough
CT: control target
= control target key end

     0   :  { %8 = vsyncpa [#allocation4], 0  ;;  %s2559_s12 = smov 0   ;;  %s2561_s13 = smov 0   ;;  %s3181_s0 = inlined_call_operand.vmem [shape: bf16[2,110,64], index: 0, kind: input, shape index: {}]   ;;  %s3182_s1 = inlined_call_operand.vmem [shape: bf16[576,64], index: 1, kind: input, shape index: {}]   ;;  %s3183_s2 = inlined_call_operand.hbm [shape: f32[1,64], index: 2, kind: input, shape index: {}]   ;;  %s3184_s3 = inlined_call_operand.vmem [shape: bf16[2,4,4,64], index: 3, kind: output, shape index: {}]  }
   0x1   :  { %s2563_s14 = smov 0  }
   0x2 LB: > { %s1922_s15 = sadd.s32 4294967295, %s2534_s14   ;;  %s26_s16 = sadd.s32 1, %s2530_s13  ;;  %s2534_s14 = sphi %s2563_s14, %s14_s14   ;;  %s2530_s13 = sphi %s2561_s13, %s3188_s13   ;;  %s2526_s12 = sphi %s2559_s12, %s3187_s12  }
   0x3   : > { %p28_p0 = scmp.ge.s32.totalorder %s26_s16, 2  ;;  %p1924_p1 = scmp.ge.s32.totalorder %s2534_s14, 1 }
   0x4   : > { %p137_p2 = scmp.lt.s32.totalorder %s2534_s14, 3  ;;  %p2584_p4 = scmp.eq.s32.totalorder %s1922_s15, 0 }
   0x5   : > { %s3190_s16 = smov (%p28_p0, %s26_s16), 0  ;;  %s2536_s19 = smov [#allocation3]  }
   0x6   : > { %p2580_p3 = pnand %p1924_p1, %p137_p2  ;;  %s159_s20 = sshll.u32 %s2536_s19, 4  ;;  %s160_s20 = int_to_ptr.vmem [resolvable:$true] %s159_s20 }
   0x7   : > { %s2493_s21 = scalar_lea.vmem %s160_s20, 16  ;;  %s2500_s22 = scalar_lea.vmem %s160_s20, 32 }
   0x8   : > { %p2390_p5 = pneg %p2580_p3  ;;  %p2494_p8 = scmp.ne.s32.totalorder %s160_s20, %s2493_s21 }
   0x9   : > { %p2501_p11 = scmp.lt.s32.totalorder %s160_s20, %s160_s20  ;;  %p2502_p12 = scmp.lt.s32.totalorder %s2500_s22, %s2493_s21 }
   0xa   : > { %p2391_p6 = pnand %p2584_p4, %p2390_p5 }
   0xb   : > { %p2503_p13 = por %p2502_p12, %p2501_p11 }
   0xc   : > { %p2484_p7 = pneg %p2391_p6 }
   0xe   : > { %p2496_p9 = pnand %p2494_p8, %p2484_p7 }
  0x10   : > { %p2497_p10 = pneg %p2496_p9 }
  0x12   : > { %p2504_p0 = pnand %p2503_p13, %p2497_p10 }
  0x14   : > { %2507 = shalt.err (!%p2504_p0)
}
  0x15   : > { %2393 = dma.hbm_to_vmem [thread:$0]  (!%p2391_p6), %s3183_s2, 16, %s160_s20, [#allocation4]  }
  0x16   : > { %180 = sbr.rel (%p2580_p3) target bundleno = 442 (0x1ba), region = 32 }
  0x1b   : > { %2521 = dma.done.wait (%p2584_p4), [#allocation4], 16  }
  0x1c   : > { %2523 = vsyncadd (%p2584_p4), [#allocation4], 4294967280  ;;  %p211_p1 = scmp.lt.s32.totalorder %s2526_s12, 1  ;;  %v2537_v0 = vmov 0.0   ;;  %vm2538_vm0 = vmmov 0   ;;  %v2423_v1 = vld [vmem:[%s3182_s1 + $0x38] sm:$0xff]  }
  0x1d   : > { %2377 = vmatprep.subr.bf16.mxu1 %v2537_v0  ;;  %2125 = vmatprep.subr.bf16.mxu0 %v2537_v0  ;;  %v2424_v2 = vld [vmem:[%s3182_s1 + $0x30] sm:$0xff]   ;;  %v2425_v5 = vld [vmem:[%s3182_s1 + $0x28] sm:$0xff]   ;;  %v2426_v12 = vld [vmem:[%s3182_s1 + $0x20] sm:$0xff]   ;;  %vm284_vm1 = vsmask.f32 7424  ;;  %vm353_vm2 = vcmask 523264  }
  0x1e   : > { %2141 = vmatprep.mubr.msk.bf16.mxu1 %vm2538_vm0, %v2537_v0  ;;  %s3192_s12 = smov (!%p211_p1, %s2526_s12), 1  ;;  %2133 = vmatprep.mubr.msk.bf16.mxu0 %vm2538_vm0, %v2537_v0  ;;  %v2429_v20 = vld [vmem:[%s3182_s1 + $0x18] sm:$0xff]   ;;  %v2433_v30 = vld [vmem:[%s3182_s1 + $0x10] sm:$0xff]   ;;  %v2436_v38 = vld [vmem:[%s3182_s1 + $0x8] sm:$0xff]   ;;  %vm561_vm3 = vcmask 1046528   ;;  %vm1075_vm5 = vcmask 1045504  }
  0x1f   : > { %s2385_s25 = smul.u32 56, %s3192_s12  ;;  %2381 = vmatpush3.bf16.msra.mxu1 %v2423_v1  ;;  %2126 = vmatpush3.bf16.msra.mxu0 %v2423_v1  ;;  %v2432_v24 = vld [vmem:[%s3182_s1 + $0x58] sm:$0xff]   ;;  %v2435_v35 = vld [vmem:[%s3182_s1 + $0x50] sm:$0xff]   ;;  %v2437_v43 = vld [vmem:[%s3182_s1 + $0x48] sm:$0xff]   ;;  %vm887_vm4 = vsmask.f32 6400 }
  0x20   : > { %2378 = vmatprep.subr.bf16.mxu1 %v2537_v0  ;;  %2127 = vmatprep.subr.bf16.mxu0 %v2537_v0  ;;  %v2440_v47 = vld [vmem:[%s3182_s1] sm:$0xff]   ;;  %v2443_v53 = vld [vmem:[%s3182_s1 + $0x98] sm:$0xff]   ;;  %v2445_v55 = vld [vmem:[%s3182_s1 + $0x90] sm:$0xff]   ;;  %vm1589_vm6 = vcmask 1044480   ;;  %vm1401_vm7 = vsmask.f32 5376 }
  0x21   : > { %s2621_s5 = scalar_lea.vmem %s3181_s0, %s2385_s25  ;;  %v2439_v48 = vld [vmem:[%s3182_s1 + $0x40] sm:$0xff]   ;;  %v2442_v56 = vld [vmem:[%s3182_s1 + $0x78] sm:$0xff]   ;;  %v2447_v60 = vld [vmem:[%s3182_s1 + $0x88] sm:$0xff]   ;;  %vm1771_vm8 = vcmask 517120  }
  0x22   : > { %v2626_v3 = vld [vmem:[%s2621_s5 + $0x10] sm:$0xff]   ;;  %v2629_v4 = vld [vmem:[%s2621_s5 + $0x18] sm:$0xff]   ;;  %v229_v9 = vld [vmem:[%s2621_s5] sm:$0xf] }
  0x23   : > { %2382 = vmatpush3.bf16.msra.mxu1 %v2424_v2  ;;  %2128 = vmatpush3.bf16.msra.mxu0 %v2424_v2  ;;  %v301_v6 = vshll.u32 %v2626_v3, 16  ;;  %v305_v7 = vshrl.u32 %v2626_v3, 16  ;;  %v309_v8 = vshll.u32 %v2629_v4, 16  ;;  %v2641_v10 = vld [vmem:[%s2621_s5 + $0x8] sm:$0xff]   ;;  %v2644_v11 = vld [vmem:[%s2621_s5 + $0x4] sm:$0xf] }
  0x24   : > { %2379 = vmatprep.subr.bf16.mxu1 %v2537_v0  ;;  %2129 = vmatprep.subr.bf16.mxu0 %v2537_v0  ;;  %v2650_v15 = vcombine.low %v229_v9, %v2644_v11  ;;  %v293_v16 = vshll.u32 %v2641_v10, 16  ;;  %v2661_v21 = vld [vmem:[%s2621_s5 + $0x20] sm:$0xff]   ;;  %v313_v25 = vshrl.u32 %v2629_v4, 16  ;;  %v297_v28 = vshrl.u32 %v2641_v10, 16  ;;  %v2444_v63 = vld [vmem:[%s3182_s1 + $0x70] sm:$0xff]   ;;  %v2446_v9 = vld [vmem:[%s3182_s1 + $0x68] sm:$0xff]  }
  0x25   : > { %v303_v13 = vrot.slane %v301_v6, 1  ;;  %v311_v14 = vrot.slane %v309_v8, 1  ;;  %v317_v27 = vshll.u32 %v2661_v21, 16  ;;  %v2679_v34 = vld [vmem:[%s2621_s5 + $0x28] ss:$0 sps:$4 sm:$0x11]  }
  0x26   : > { %v286_v18 = vshrl.u32 %v2650_v15, 16  ;;  %v288_v19 = vshll.u32 %v2650_v15, 16  ;;  %v295_v23 = vrot.slane %v293_v16, 1  ;;  %v549_v37 = vld [vmem:[%s2621_s5] sm:$0xe]  ;;  %v321_v40 = vshrl.u32 %v2661_v21, 16 }
  0x27   : > { %2383 = vmatpush3.bf16.msra.mxu1 %v2425_v5  ;;  %2130 = vmatpush3.bf16.msra.mxu0 %v2425_v5  ;;  %v307_v17 = vor.u32 %v305_v7, %v303_v13  ;;  %v315_v32 = vor.u32 %v313_v25, %v311_v14  ;;  %v319_v33 = vrot.slane %v317_v27, 1  ;;  %v325_v41 = vshll.u32 %v2679_v34, 16  ;;  %v2741_v57 = vld [vmem:[%s2621_s5 + $0x1c] sm:$0xff]   ;;  %v2744_v58 = vld [vmem:[%s2621_s5 + $0x24] sm:$0xff]  }
  0x28   : > { %2380 = vmatprep.subr.bf16.mxu1 %v2537_v0  ;;  %2131 = vmatprep.subr.bf16.mxu0 %v2537_v0  ;;  %v290_v22 = vrot.slane %v288_v19, 1  ;;  %v299_v36 = vor.u32 %v297_v28, %v295_v23  ;;  %v1957_v44 = vcombine.low %v549_v37, %v2644_v11  ;;  %v563_v50 = vrot.slane %v2641_v10, 1  ;;  %v2463_v5 = vld [vmem:[%s2621_s5 + $0x2c] ss:$0 sps:$4 sm:$0x11]   ;;  %v2449_v6 = vld [vmem:[%s3182_s1 + $0x80] sm:$0xff]  }
  0x29   : > { %v312_v26 = vsel %vm284_vm1, %v307_v17, %v311_v14  ;;  %v320_v39 = vsel %vm284_vm1, %v315_v32, %v319_v33  ;;  %v323_v45 = vor.u32 %v321_v40, %v319_v33  ;;  %v327_v46 = vrot.slane %v325_v41, 1  ;;  %v695_v14 = vld [vmem:[%s2621_s5 + $0x4] sm:$0xe]  ;;  %v2803_v17 = vld [vmem:[%s2621_s5 + $0xc] sm:$0xff]   ;;  %v2818_v28 = vld [vmem:[%s2621_s5 + $0x14] sm:$0xff]  }
  0x2a   : > { %v291_v29 = vor.u32 %v290_v22, %v286_v18  ;;  %v304_v42 = vsel %vm284_vm1, %v299_v36, %v303_v13  ;;  %v562_v49 = vrot.slane %v1957_v44, 1  ;;  %v565_v54 = vrot.slane %v2626_v3, 1  ;;  %v2448_v13 = vld [vmem:[%s3182_s1 + $0x60] sm:$0xff]  }
  0x2b   : > { %2384 = vmatpush3.bf16.msra.mxu1 %v2426_v12  ;;  %2132 = vmatpush3.bf16.msra.mxu0 %v2426_v12  ;;  %v328_v51 = vsel %vm284_vm1, %v323_v45, %v327_v46  ;;  %v747_v61 = vrot.slane %v2741_v57, 1  ;;  %v749_v62 = vrot.slane %v2744_v58, 1  ;;  %v567_v2 = vrot.slane %v2629_v4, 1  ;;  %v2460_v46 = vld [vmem:[%s3182_s1 + $0xc8] sm:$0xff]  }
  0x2c   : > { %2153 = vmatprep.subr.bf16.mxu1 %v2537_v0  ;;  %2181 = vmatprep.subr.bf16.mxu0 %v2537_v0  ;;  %v296_v31 = vsel %vm284_vm1, %v291_v29, %v295_v23  ;;  %v564_v52 = vsel %vm561_vm3, %v562_v49, %v563_v50  ;;  %v566_v59 = vsel %vm561_vm3, %v563_v50, %v565_v54  ;;  %v751_v7 = vrot.slane %v2463_v5, 1  ;;  %v2462_v5 = vld [vmem:[%s3182_s1 + $0xa0] sm:$0xff]  }
  0x2d   : > { %v2762_v1 = vsel %vm561_vm3, %v747_v61, %v749_v62  ;;  %v568_v8 = vsel %vm561_vm3, %v565_v54, %v567_v2  ;;  %v569_v12 = vrot.slane %v2661_v21, 1  ;;  %v571_v18 = vrot.slane %v2679_v34, 1 }
  0x2e   : > { %2142 = vmatmul.mubr.msk.bf16.vlgmr.msra.gmra.mxu1 %vm353_vm2, %v312_v26  ;;  %2134 = vmatmul.mubr.msk.bf16.vlgmr.msra.gmra.mxu0 %vm353_vm2, %v296_v31  ;;  %v2781_v11 = vsel %vm561_vm3, %v749_v62, %v751_v7  ;;  %v897_v22 = vshrl.u32 %v2803_v17, 16  ;;  %v900_v23 = vshll.u32 %v2803_v17, 16  ;;  %v906_v31 = vshrl.u32 %v2818_v28, 16 }
  0x2f   : > { %2154 = vmatpush3.bf16.msra.mxu1 %v2429_v20  ;;  %2182 = vmatpush3.bf16.msra.mxu0 %v2432_v24  ;;  %v572_v24 = vsel %vm561_vm3, %v569_v12, %v571_v18  ;;  %v909_v32 = vshll.u32 %v2818_v28, 16  ;;  %v743_v37 = vrot.slane %v2803_v17, 1  ;;  %v918_v40 = vshll.u32 %v2741_v57, 16 }
  0x30   : > { %2155 = vmatprep.subr.bf16.mxu1 %v2537_v0  ;;  %2145 = vmatprep.mubr.msk.bf16.mxu1 %vm2538_vm0, %v2537_v0  ;;  %v899_v26 = vrot.slane %v897_v22, 1  ;;  %v902_v27 = vrot.slane %v900_v23, 2  ;;  %v908_v34 = vrot.slane %v906_v31, 1  ;;  %v924_v50 = vshrl.u32 %v2744_v58, 16 }
  0x31   : > { %2183 = vmatprep.subr.bf16.mxu0 %v2537_v0  ;;  %2137 = vmatprep.mubr.msk.bf16.mxu0 %vm2538_vm0, %v2537_v0  ;;  %v920_v45 = vrot.slane %v918_v40, 2  ;;  %v1079_v31 = vrot.slane %v2818_v28, 2 }
  0x33   : > { %2156 = vmatpush3.bf16.msra.mxu1 %v2433_v30  ;;  %2184 = vmatpush3.bf16.msra.mxu0 %v2435_v35  ;;  %v903_v30 = vor.u32 %v902_v27, %v899_v26  ;;  %v911_v35 = vrot.slane %v909_v32, 2  ;;  %v2473_v26 = vld [vmem:[%s3182_s1 + $0x110] sm:$0xff]   ;;  %v2468_v27 = vld [vmem:[%s3182_s1 + $0xf8] sm:$0xff]  }
  0x34   : > { %2157 = vmatprep.subr.bf16.mxu1 %v2537_v0  ;;  %2185 = vmatprep.subr.bf16.mxu0 %v2537_v0  ;;  %v2471_v32 = vld [vmem:[%s3182_s1 + $0xf0] sm:$0xff]  }
  0x36   : > { %2146 = vmatmul.mubr.msk.bf16.gmra.mxu1 %vm353_vm2, %v320_v39  ;;  %2138 = vmatmul.mubr.msk.bf16.gmra.mxu0 %vm353_vm2, %v304_v42  ;;  %v915_v39 = vshrl.u32 %v2741_v57, 16  ;;  %v2452_v42 = vld [vmem:[%s3182_s1 + $0xb8] sm:$0xff]  }
  0x37   : > { %2158 = vmatpush3.bf16.msra.mxu1 %v2436_v38  ;;  %2186 = vmatpush3.bf16.msra.mxu0 %v2437_v43  ;;  %v912_v38 = vor.u32 %v911_v35, %v908_v34  ;;  %v2980_v35 = vld [vmem:[%s2621_s5 + $0x28] sm:$0xff]  }
  0x38   : > { %2149 = vmatprep.mubr.msk.bf16.mxu1 %vm2538_vm0, %v2537_v0  ;;  %2187 = vmatprep.subr.bf16.mxu0 %v2537_v0  ;;  %v917_v44 = vrot.slane %v915_v39, 1  ;;  %v2478_v39 = vld [vmem:[%s3182_s1 + $0xe0] sm:$0xff]  }
  0x39   : > { %2159 = vmatprep.subr.bf16.mxu1 %v2537_v0  ;;  %2189 = vmatprep.mubr.msk.bf16.mxu0 %vm2538_vm0, %v2537_v0  ;;  %v913_v43 = vsel %vm887_vm4, %v903_v30, %v912_v38 }
  0x3a   : > { %v921_v49 = vor.u32 %v920_v45, %v917_v44 }
  0x3b   : > { %2160 = vmatpush3.bf16.msra.mxu1 %v2440_v47  ;;  %2188 = vmatpush3.bf16.msra.mxu0 %v2439_v48  ;;  %v745_v47 = vrot.slane %v2818_v28, 1  ;;  %v2455_v48 = vld [vmem:[%s3182_s1 + $0xb0] sm:$0xff]  }
  0x3c   : > { %2209 = vmatprep.subr.bf16.mxu1 %v2537_v0  ;;  %2237 = vmatprep.subr.bf16.mxu0 %v2537_v0  ;;  %v922_v54 = vsel %vm887_vm4, %v912_v38, %v921_v49  ;;  %v1263_v38 = vrot.slane %v2980_v35, 2 }
  0x3e   : > { %2150 = vmatmul.mubr.msk.bf16.gmra.mxu1 %vm353_vm2, %v328_v51  ;;  %2190 = vmatmul.mubr.msk.bf16.vlgmr.msra.gmra.mxu0 %vm353_vm2, %v564_v52  ;;  %v927_v51 = vshll.u32 %v2744_v58, 16  ;;  %v2464_v52 = vld [vmem:[%s3182_s1 + $0xc0] sm:$0xff]  }
  0x3f   : > { %2161 = vmatprep.mubr.msk.bf16.mxu1 %vm2538_vm0, %v2537_v0  ;;  %2238 = vmatpush3.bf16.msra.mxu0 %v2443_v53  ;;  %v746_v53 = vsel %vm561_vm3, %v743_v37, %v745_v47 }
  0x40   : > { %2193 = vmatprep.mubr.msk.bf16.mxu0 %vm2538_vm0, %v2537_v0  ;;  %2239 = vmatprep.subr.bf16.mxu0 %v2537_v0 }
  0x43   : > { %2240 = vmatpush3.bf16.msra.mxu0 %v2445_v55  ;;  %v926_v55 = vrot.slane %v924_v50, 1 }
  0x44   : > { %2241 = vmatprep.subr.bf16.mxu0 %v2537_v0 }
  0x46   : > { %2162 = vmatmul.mubr.msk.bf16.vlgmr.msra.gmra.mxu1 %vm353_vm2, %v2650_v15  ;;  %2194 = vmatmul.mubr.msk.bf16.gmra.mxu0 %vm353_vm2, %v566_v59  ;;  %v570_v15 = vsel %vm561_vm3, %v567_v2, %v569_v12  ;;  %v2459_v59 = vld [vmem:[%s3182_s1 + $0xa8] sm:$0xff]  }
  0x47   : > { %2210 = vmatpush3.bf16.msra.mxu1 %v2442_v56  ;;  %2165 = vmatprep.mubr.msk.bf16.mxu1 %vm2538_vm0, %v2537_v0  ;;  %v929_v56 = vrot.slane %v927_v51, 2 }
  0x48   : > { %2211 = vmatprep.subr.bf16.mxu1 %v2537_v0  ;;  %2197 = vmatprep.mubr.msk.bf16.mxu0 %vm2538_vm0, %v2537_v0 }
  0x49   : > { %2242 = vmatpush3.bf16.msra.mxu0 %v2447_v60  ;;  %v2880_v60 = vld [vmem:[%s2621_s5 + $0x2c] ss:$0 sps:$4 sm:$0x33]   ;;  %v930_v62 = vor.u32 %v929_v56, %v926_v55 }
  0x4a   : > { %2243 = vmatprep.subr.bf16.mxu0 %v2537_v0  ;;  %v936_v2 = vshll.u32 %v2880_v60, 16 }
  0x4b   : > { %2212 = vmatpush3.bf16.msra.mxu1 %v2444_v63  ;;  %v933_v63 = vshrl.u32 %v2880_v60, 16  ;;  %v931_v7 = vsel %vm887_vm4, %v921_v49, %v930_v62 }
  0x4c   : > { %2213 = vmatprep.subr.bf16.mxu1 %v2537_v0 }
  0x4d   : > { %2244 = vmatpush3.bf16.msra.mxu0 %v2449_v6  ;;  %v748_v6 = vsel %vm561_vm3, %v745_v47, %v747_v61  ;;  %v1209_v61 = vld [vmem:[%s2621_s5 + $0x8] sm:$0xc]  ;;  %v1085_v47 = vrot.slane %v2880_v60, 2 }
  0x4e   : > { %2166 = vmatmul.mubr.msk.bf16.gmra.mxu1 %vm353_vm2, %v2641_v10  ;;  %2293 = vmatprep.subr.bf16.mxu0 %v2537_v0  ;;  %v2798_v10 = vld [vmem:[%s2621_s5 + $0x8] sm:$0xf] }
  0x4f   : > { %2198 = vmatmul.mubr.msk.bf16.gmra.mxu0 %vm353_vm2, %v568_v8  ;;  %2169 = vmatprep.mubr.msk.bf16.mxu1 %vm2538_vm0, %v2537_v0  ;;  %v1967_v16 = vcombine.low %v695_v14, %v2798_v10  ;;  %v935_v8 = vrot.slane %v933_v63, 1 }
  0x50   : > { %2201 = vmatprep.mubr.msk.bf16.mxu0 %vm2538_vm0, %v2537_v0  ;;  %2214 = vmatpush3.bf16.msra.mxu1 %v2446_v9  ;;  %v938_v9 = vrot.slane %v936_v2, 2 }
  0x51   : > { %2215 = vmatprep.subr.bf16.mxu1 %v2537_v0  ;;  %v889_v19 = vshrl.u32 %v1967_v16, 16  ;;  %v892_v20 = vshll.u32 %v1967_v16, 16  ;;  %v742_v36 = vrot.slane %v1967_v16, 1  ;;  %v2915_v16 = vld [vmem:[%s2621_s5 + $0x10] sm:$0xff]  }
  0x52   : > { %v939_v12 = vor.u32 %v938_v9, %v935_v8  ;;  %v1411_v49 = vshrl.u32 %v2915_v16, 16  ;;  %v1414_v50 = vshll.u32 %v2915_v16, 16 }
  0x53   : > { %v891_v25 = vrot.slane %v889_v19, 1  ;;  %v744_v41 = vsel %vm561_vm3, %v742_v36, %v743_v37  ;;  %v1257_v19 = vrot.slane %v2915_v16, 2  ;;  %v2475_v36 = vld [vmem:[%s3182_s1 + $0xe8] sm:$0xff]   ;;  %v1081_v37 = vrot.slane %v2741_v57, 2 }
  0x54   : > { %2216 = vmatpush3.bf16.msra.mxu1 %v2448_v13  ;;  %v2908_v13 = vld [vmem:[%s2621_s5 + $0xc] sm:$0xf]  ;;  %v940_v14 = vsel %vm887_vm4, %v930_v62, %v939_v12  ;;  %v1083_v57 = vrot.slane %v2744_v58, 2  ;;  %v1413_v56 = vrot.slane %v1411_v49, 2 }
  0x55   : > { %2265 = vmatprep.subr.bf16.mxu1 %v2537_v0  ;;  %v1082_v40 = vsel %vm1075_vm5, %v1079_v31, %v1081_v37 }
  0x56   : > { %2170 = vmatmul.mubr.msk.bf16.gmra.mxu1 %vm353_vm2, %v2626_v3  ;;  %v894_v3 = vrot.slane %v892_v20, 2  ;;  %v1063_v20 = vld [vmem:[%s2621_s5 + $0x4] sm:$0xc]  ;;  %v1084_v44 = vsel %vm1075_vm5, %v1081_v37, %v1083_v57 }
  0x57   : > { %2202 = vmatmul.mubr.msk.bf16.gmra.mxu0 %vm353_vm2, %v570_v15  ;;  %2173 = vmatprep.mubr.msk.bf16.mxu1 %vm2538_vm0, %v2537_v0  ;;  %v2912_v15 = vcombine.low %v1209_v61, %v2908_v13  ;;  %v1992_v22 = vcombine.low %v1063_v20, %v2798_v10  ;;  %v1077_v10 = vrot.slane %v2803_v17, 2 }
  0x58   : > { %2205 = vmatprep.mubr.msk.bf16.mxu0 %vm2538_vm0, %v2537_v0  ;;  %v895_v29 = vor.u32 %v894_v3, %v891_v25 }
  0x59   : > { %v1256_v18 = vrot.slane %v2912_v15, 2  ;;  %v1076_v25 = vrot.slane %v1992_v22, 2  ;;  %v1080_v28 = vsel %vm1075_vm5, %v1077_v10, %v1079_v31  ;;  %v1403_v58 = vshrl.u32 %v2912_v15, 16 }
  0x5a   : > { %v904_v33 = vsel %vm887_vm4, %v895_v29, %v903_v30  ;;  %v2954_v29 = vld [vmem:[%s2621_s5 + $0x20] sm:$0xff]   ;;  %v2476_v30 = vld [vmem:[%s3182_s1 + $0x108] sm:$0xff]  }
  0x5b   : > { %v1258_v23 = vsel %vm1075_vm5, %v1256_v18, %v1257_v19 }
  0x5e   : > { %2174 = vmatmul.mubr.msk.bf16.gmra.mxu1 %vm353_vm2, %v2629_v4  ;;  %v2453_v4 = vld [vmem:[%s3182_s1 + $0xd8] sm:$0xff]  }
  0x5f   : > { %2206 = vmatmul.mubr.msk.bf16.gmra.mxu0 %vm353_vm2, %v572_v24  ;;  %2177 = vmatprep.mubr.msk.bf16.mxu1 %vm2538_vm0, %v2537_v0  ;;  %v2933_v24 = vld [vmem:[%s2621_s5 + $0x18] sm:$0xff]  }
  0x60   : > { %2245 = vmatprep.mubr.msk.bf16.mxu0 %vm2538_vm0, %v2537_v0  ;;  %v1259_v3 = vrot.slane %v2933_v24, 2  ;;  %v1420_v2 = vshrl.u32 %v2933_v24, 16 }
  0x62   : > { %v1260_v17 = vsel %vm1075_vm5, %v1257_v19, %v1259_v3  ;;  %v1422_v8 = vrot.slane %v1420_v2, 2 }
  0x66   : > { %2178 = vmatmul.mubr.msk.bf16.gmra.mxu1 %vm353_vm2, %v2661_v21  ;;  %v2457_v21 = vld [vmem:[%s3182_s1 + $0xd0] sm:$0xff]  }
  0x67   : > { %2246 = vmatmul.mubr.msk.bf16.vlgmr.msra.gmra.mxu0 %vm353_vm2, %v904_v33  ;;  %2217 = vmatprep.mubr.msk.bf16.mxu1 %vm2538_vm0, %v2537_v0  ;;  %v1261_v33 = vrot.slane %v2954_v29, 2 }
  0x68   : > { %2294 = vmatpush3.bf16.msra.mxu0 %v2453_v4  ;;  %2249 = vmatprep.mubr.msk.bf16.mxu0 %vm2538_vm0, %v2537_v0  ;;  %v2479_v4 = vld [vmem:[%s3182_s1 + $0x100] sm:$0xff]  }
  0x69   : > { %2295 = vmatprep.subr.bf16.mxu0 %v2537_v0  ;;  %v1262_v34 = vsel %vm1075_vm5, %v1259_v3, %v1261_v33 }
  0x6c   : > { %2296 = vmatpush3.bf16.msra.mxu0 %v2457_v21  ;;  %v1264_v21 = vsel %vm1075_vm5, %v1261_v33, %v1263_v38 }
  0x6d   : > { %2297 = vmatprep.subr.bf16.mxu0 %v2537_v0 }
  0x6e   : > { %2218 = vmatmul.mubr.msk.bf16.vlgmr.msra.gmra.mxu1 %vm353_vm2, %v744_v41  ;;  %v2477_v41 = vld [vmem:[%s2621_s5 + $0x30] ss:$0 sps:$4 sm:$0x33]  }
  0x6f   : > { %2266 = vmatpush3.bf16.msra.mxu1 %v2452_v42  ;;  %2250 = vmatmul.mubr.msk.bf16.gmra.mxu0 %vm353_vm2, %v913_v43  ;;  %v1265_v42 = vrot.slane %v2477_v41, 2  ;;  %v1577_v43 = vld [vmem:[%s2621_s5 + $0x8] sm:$0x8] }
  0x70   : > { %2221 = vmatprep.mubr.msk.bf16.mxu1 %vm2538_vm0, %v2537_v0  ;;  %2267 = vmatprep.subr.bf16.mxu1 %v2537_v0 }
  0x71   : > { %2253 = vmatprep.mubr.msk.bf16.mxu0 %vm2538_vm0, %v2537_v0  ;;  %2298 = vmatpush3.bf16.msra.mxu0 %v2460_v46  ;;  %v1266_v45 = vsel %vm1075_vm5, %v1263_v38, %v1265_v42  ;;  %v2027_v46 = vcombine.low %v1577_v43, %v2908_v13  ;;  %v1429_v13 = vshrl.u32 %v2954_v29, 16 }
  0x72   : > { %2299 = vmatprep.subr.bf16.mxu0 %v2537_v0 }
  0x73   : > { %2268 = vmatpush3.bf16.msra.mxu1 %v2455_v48  ;;  %v1406_v48 = vshll.u32 %v2912_v15, 16  ;;  %v1590_v51 = vrot.slane %v2027_v46, 3  ;;  %v1595_v15 = vrot.slane %v2954_v29, 3  ;;  %v1431_v18 = vrot.slane %v1429_v13, 2 }
  0x74   : > { %2269 = vmatprep.subr.bf16.mxu1 %v2537_v0 }
  0x75   : > { %2300 = vmatpush3.bf16.msra.mxu0 %v2464_v52  ;;  %v1591_v52 = vrot.slane %v2915_v16, 3  ;;  %v1408_v55 = vrot.slane %v1406_v48, 3 }
  0x76   : > { %2222 = vmatmul.mubr.msk.bf16.gmra.mxu1 %vm353_vm2, %v746_v53  ;;  %2349 = vmatprep.subr.bf16.mxu0 %v2537_v0  ;;  %v1086_v53 = vsel %vm1075_vm5, %v1083_v57, %v1085_v47 }
  0x77   : > { %2254 = vmatmul.mubr.msk.bf16.gmra.mxu0 %vm353_vm2, %v922_v54  ;;  %2225 = vmatprep.mubr.msk.bf16.mxu1 %vm2538_vm0, %v2537_v0  ;;  %v1405_v54 = vrot.slane %v1403_v58, 2  ;;  %v1592_v60 = vsel %vm1589_vm6, %v1590_v51, %v1591_v52 }
  0x78   : > { %2257 = vmatprep.mubr.msk.bf16.mxu0 %vm2538_vm0, %v2537_v0  ;;  %2270 = vmatpush3.bf16.msra.mxu1 %v2459_v59  ;;  %v1416_v59 = vrot.slane %v1414_v50, 3 }
  0x79   : > { %2271 = vmatprep.subr.bf16.mxu1 %v2537_v0  ;;  %v1409_v62 = vor.u32 %v1408_v55, %v1405_v54 }
  0x7a   : > { %v1417_v63 = vor.u32 %v1416_v59, %v1413_v56 }
  0x7c   : > { %2272 = vmatpush3.bf16.msra.mxu1 %v2462_v5  ;;  %v1423_v5 = vshll.u32 %v2933_v24, 16 }
  0x7d   : > { %2321 = vmatprep.subr.bf16.mxu1 %v2537_v0 }
  0x7e   : > { %2226 = vmatmul.mubr.msk.bf16.gmra.mxu1 %vm353_vm2, %v748_v6  ;;  %v1593_v6 = vrot.slane %v2933_v24, 3  ;;  %v1425_v9 = vrot.slane %v1423_v5, 3  ;;  %v1597_v24 = vrot.slane %v2980_v35, 3 }
  0x7f   : > { %2258 = vmatmul.mubr.msk.bf16.gmra.mxu0 %vm353_vm2, %v931_v7  ;;  %2229 = vmatprep.mubr.msk.bf16.mxu1 %vm2538_vm0, %v2537_v0  ;;  %v1418_v7 = vsel %vm1401_vm7, %v1409_v62, %v1417_v63 }
  0x80   : > { %2261 = vmatprep.mubr.msk.bf16.mxu0 %vm2538_vm0, %v2537_v0  ;;  %v1594_v12 = vsel %vm1589_vm6, %v1591_v52, %v1593_v6  ;;  %v1426_v61 = vor.u32 %v1425_v9, %v1422_v8  ;;  %v1596_v20 = vsel %vm1589_vm6, %v1593_v6, %v1595_v15 }
  0x82   : > { %v1427_v16 = vsel %vm1401_vm7, %v1417_v63, %v1426_v61 }
  0x86   : > { %2230 = vmatmul.mubr.msk.bf16.gmra.mxu1 %vm353_vm2, %v2762_v1  ;;  %v2469_v1 = vld [vmem:[%s3182_s1 + $0x118] sm:$0xff]  }
  0x87   : > { %2262 = vmatmul.mubr.msk.bf16.gmra.mxu0 %vm353_vm2, %v940_v14  ;;  %2233 = vmatprep.mubr.msk.bf16.mxu1 %vm2538_vm0, %v2537_v0  ;;  %v1432_v14 = vshll.u32 %v2954_v29, 16 }
  0x88   : > { %2301 = vmatprep.mubr.msk.bf16.mxu0 %vm2538_vm0, %v2537_v0 }
  0x89   : > { %v1434_v19 = vrot.slane %v1432_v14, 3 }
  0x8b   : > { %v1435_v22 = vor.u32 %v1434_v19, %v1431_v18 }
  0x8e   : > { %2234 = vmatmul.mubr.msk.bf16.gmra.mxu1 %vm353_vm2, %v2781_v11  ;;  %v1078_v11 = vsel %vm1075_vm5, %v1076_v25, %v1077_v10  ;;  %v1436_v25 = vsel %vm1401_vm7, %v1426_v61, %v1435_v22 }
  0x8f   : > { %2302 = vmatmul.mubr.msk.bf16.vlgmr.msra.gmra.mxu0 %vm353_vm2, %v1258_v23  ;;  %2273 = vmatprep.mubr.msk.bf16.mxu1 %vm2538_vm0, %v2537_v0  ;;  %v1438_v23 = vshrl.u32 %v2980_v35, 16 }
  0x90   : > { %2350 = vmatpush3.bf16.msra.mxu0 %v2469_v1  ;;  %2305 = vmatprep.mubr.msk.bf16.mxu0 %vm2538_vm0, %v2537_v0  ;;  %v1441_v1 = vshll.u32 %v2980_v35, 16 }
  0x91   : > { %2351 = vmatprep.subr.bf16.mxu0 %v2537_v0  ;;  %v1440_v10 = vrot.slane %v1438_v23, 2 }
  0x92   : > { %v1443_v3 = vrot.slane %v1441_v1, 3 }
  0x94   : > { %2352 = vmatpush3.bf16.msra.mxu0 %v2473_v26  ;;  %v2481_v26 = vld [vmem:[%s2621_s5 + $0x30] ss:$0 sps:$4 sm:$0x77]   ;;  %s2043_s5 = sshll.u32 %s3192_s12, 3 }
  0x95   : > { %2353 = vmatprep.subr.bf16.mxu0 %v2537_v0  ;;  %v1450_v29 = vshll.u32 %v2481_v26, 16  ;;  %s3149_s12 = scalar_lea.vmem %s3184_s3, %s2043_s5 }
  0x96   : > { %2274 = vmatmul.mubr.msk.bf16.vlgmr.msra.gmra.mxu1 %vm353_vm2, %v1078_v11  ;;  %v1598_v11 = vsel %vm1589_vm6, %v1595_v15, %v1597_v24 }
  0x97   : > { %2322 = vmatpush3.bf16.msra.mxu1 %v2468_v27  ;;  %2306 = vmatmul.mubr.msk.bf16.gmra.mxu0 %vm353_vm2, %v1260_v17  ;;  %v1444_v27 = vor.u32 %v1443_v3, %v1440_v10  ;;  %v1447_v17 = vshrl.u32 %v2481_v26, 16  ;;  %v1452_v33 = vrot.slane %v1450_v29, 3 }
  0x98   : > { %2277 = vmatprep.mubr.msk.bf16.mxu1 %vm2538_vm0, %v2537_v0  ;;  %2323 = vmatprep.subr.bf16.mxu1 %v2537_v0 }
  0x99   : > { %2309 = vmatprep.mubr.msk.bf16.mxu0 %vm2538_vm0, %v2537_v0  ;;  %2354 = vmatpush3.bf16.msra.mxu0 %v2476_v30  ;;  %v1599_v30 = vrot.slane %v2481_v26, 3  ;;  %v1445_v31 = vsel %vm1401_vm7, %v1435_v22, %v1444_v27 }
  0x9a   : > { %2355 = vmatprep.subr.bf16.mxu0 %v2537_v0 }
  0x9b   : > { %2324 = vmatpush3.bf16.msra.mxu1 %v2471_v32  ;;  %v1449_v32 = vrot.slane %v1447_v17, 2 }
  0x9c   : > { %2325 = vmatprep.subr.bf16.mxu1 %v2537_v0 }
  0x9d   : > { %2356 = vmatpush3.bf16.msra.mxu0 %v2479_v4  ;;  %v1600_v4 = vsel %vm1589_vm6, %v1597_v24, %v1599_v30 }
  0x9e   : > { %2278 = vmatmul.mubr.msk.bf16.gmra.mxu1 %vm353_vm2, %v1080_v28  ;;  %v1453_v28 = vor.u32 %v1452_v33, %v1449_v32 }
  0x9f   : > { %2310 = vmatmul.mubr.msk.bf16.gmra.mxu0 %vm353_vm2, %v1262_v34  ;;  %2281 = vmatprep.mubr.msk.bf16.mxu1 %vm2538_vm0, %v2537_v0 }
  0xa0   : > { %2313 = vmatprep.mubr.msk.bf16.mxu0 %vm2538_vm0, %v2537_v0  ;;  %2326 = vmatpush3.bf16.msra.mxu1 %v2475_v36  ;;  %v1454_v34 = vsel %vm1401_vm7, %v1444_v27, %v1453_v28 }
  0xa1   : > { %2327 = vmatprep.subr.bf16.mxu1 %v2537_v0 }
  0xa4   : > { %2328 = vmatpush3.bf16.msra.mxu1 %v2478_v39 }
  0xa6   : > { %2282 = vmatmul.mubr.msk.bf16.gmra.mxu1 %vm353_vm2, %v1082_v40 }
  0xa7   : > { %2314 = vmatmul.mubr.msk.bf16.gmra.mxu0 %vm353_vm2, %v1264_v21  ;;  %2285 = vmatprep.mubr.msk.bf16.mxu1 %vm2538_vm0, %v2537_v0 }
  0xa8   : > { %2317 = vmatprep.mubr.msk.bf16.mxu0 %vm2538_vm0, %v2537_v0 }
  0xae   : > { %2286 = vmatmul.mubr.msk.bf16.gmra.mxu1 %vm353_vm2, %v1084_v44 }
  0xaf   : > { %2318 = vmatmul.mubr.msk.bf16.gmra.mxu0 %vm353_vm2, %v1266_v45  ;;  %2289 = vmatprep.mubr.msk.bf16.mxu1 %vm2538_vm0, %v2537_v0 }
  0xb0   : > { %2357 = vmatprep.mubr.msk.bf16.mxu0 %vm2538_vm0, %v2537_v0 }
  0xb6   : > { %2290 = vmatmul.mubr.msk.bf16.gmra.mxu1 %vm353_vm2, %v1086_v53 }
  0xb7   : > { %2358 = vmatmul.mubr.msk.bf16.vlgmr.msra.gmra.mxu0 %vm353_vm2, %v1592_v60  ;;  %2329 = vmatprep.mubr.msk.bf16.mxu1 %vm2538_vm0, %v2537_v0 }
  0xb8   : > { %2361 = vmatprep.mubr.msk.bf16.mxu0 %vm2538_vm0, %v2537_v0 }
  0xbe   : > { %2330 = vmatmul.mubr.msk.bf16.vlgmr.msra.gmra.mxu1 %vm353_vm2, %v1418_v7 }
  0xbf   : > { %2362 = vmatmul.mubr.msk.bf16.gmra.mxu0 %vm353_vm2, %v1594_v12  ;;  %2333 = vmatprep.mubr.msk.bf16.mxu1 %vm2538_vm0, %v2537_v0 }
  0xc0   : > { %2365 = vmatprep.mubr.msk.bf16.mxu0 %vm2538_vm0, %v2537_v0 }
  0xc6   : > { %2334 = vmatmul.mubr.msk.bf16.gmra.mxu1 %vm353_vm2, %v1427_v16 }
  0xc7   : > { %2366 = vmatmul.mubr.msk.bf16.gmra.mxu0 %vm353_vm2, %v1596_v20  ;;  %2337 = vmatprep.mubr.msk.bf16.mxu1 %vm2538_vm0, %v2537_v0 }
  0xc8   : > { %2369 = vmatprep.mubr.msk.bf16.mxu0 %vm2538_vm0, %v2537_v0 }
  0xce   : > { %2338 = vmatmul.mubr.msk.bf16.gmra.mxu1 %vm353_vm2, %v1436_v25 }
  0xcf   : > { %2370 = vmatmul.mubr.msk.bf16.gmra.mxu0 %vm353_vm2, %v1598_v11  ;;  %2341 = vmatprep.mubr.msk.bf16.mxu1 %vm2538_vm0, %v2537_v0 }
  0xd0   : > { %2373 = vmatprep.mubr.msk.bf16.mxu0 %vm2538_vm0, %v2537_v0 }
  0xd6   : > { %2342 = vmatmul.mubr.msk.bf16.gmra.mxu1 %vm353_vm2, %v1445_v31 }
  0xd7   : > { %2374 = vmatmul.mubr.msk.bf16.gmra.mxu0 %vm353_vm2, %v1600_v4  ;;  %2345 = vmatprep.mubr.msk.bf16.mxu1 %vm2538_vm0, %v2537_v0 }
  0xde   : > { %2346 = vmatmul.mubr.msk.bf16.gmra.mxu1 %vm353_vm2, %v1454_v34 }
  0xee   : > { %v419_v35 = vpop.f32.mrf.mxu1  ;;  %v403_v36 = vpop.f32.mrf.mxu0 }
  0xf0   : > { %v2143_v37 = vpop.f32.mrf.mxu1  ;;  %v2135_v38 = vpop.f32.mrf.mxu0 }
  0xf2   : > { %v422_v39 = vpop.f32.mrf.mxu1  ;;  %v406_v40 = vpop.f32.mrf.mxu0 }
  0xf4   : > { %v2144_v21 = vpop.f32.mrf.mxu1  ;;  %v2136_v41 = vpop.f32.mrf.mxu0 }
  0xf6   : > { %v427_v57 = vpop.f32.mrf.mxu1  ;;  %v411_v42 = vpop.f32.mrf.mxu0 }
  0xf8   : > { %v2147_v43 = vpop.f32.mrf.mxu1  ;;  %v2139_v44 = vpop.f32.mrf.mxu0 }
  0xfa   : > { %v430_v45 = vpop.f32.mrf.mxu1  ;;  %v414_v46 = vpop.f32.mrf.mxu0 }
  0xfc   : > { %v2148_v0 = vpop.f32.mrf.mxu1  ;;  %v2140_v47 = vpop.f32.mrf.mxu0 }
  0xfe   : > { %v435_v58 = vpop.f32.mrf.mxu1  ;;  %v646_v48 = vpop.f32.mrf.mxu0 }
 0x100   : > { %v2151_v49 = vpop.f32.mrf.mxu1  ;;  %v2191_v50 = vpop.f32.mrf.mxu0 }
 0x102   : > { %v438_v51 = vpop.f32.mrf.mxu1  ;;  %v649_v52 = vpop.f32.mrf.mxu0 }
 0x104   : > { %v2152_v53 = vpop.f32.mrf.mxu1  ;;  %v2192_v54 = vpop.f32.mrf.mxu0 }
 0x106   : > { %v510_v55 = vpop.f32.mrf.mxu1  ;;  %v654_v59 = vpop.f32.mrf.mxu0 }
 0x107   : > { %v511_v56 = vadd.f32 %v510_v55, %v403_v36 }
 0x108   : > { %v2163_v60 = vpop.f32.mrf.mxu1  ;;  %v2195_v62 = vpop.f32.mrf.mxu0 }
 0x109   : > { %v685_v63 = vadd.f32 %v646_v48, %v511_v56 }
 0x10a   : > { %v513_v2 = vpop.f32.mrf.mxu1  ;;  %v657_v6 = vpop.f32.mrf.mxu0 }
 0x10b   : > { %v514_v5 = vadd.f32 %v513_v2, %v406_v40 }
 0x10c   : > { %v2164_v7 = vpop.f32.mrf.mxu1  ;;  %v2196_v8 = vpop.f32.mrf.mxu0 }
 0x10d   : > { %v686_v9 = vadd.f32 %v649_v52, %v514_v5 }
 0x10e   : > { %v518_v12 = vpop.f32.mrf.mxu1 }
 0x10f   : > { %v519_v61 = vadd.f32 %v518_v12, %v411_v42  ;;  %v662_v13 = vpop.f32.mrf.mxu0 }
 0x110   : > { %v2167_v14 = vpop.f32.mrf.mxu1 }
 0x111   : > { %v2199_v15 = vpop.f32.mrf.mxu0  ;;  %v687_v16 = vadd.f32 %v654_v59, %v519_v61 }
 0x112   : > { %v521_v18 = vpop.f32.mrf.mxu1 }
 0x113   : > { %v522_v19 = vadd.f32 %v521_v18, %v414_v46  ;;  %v665_v20 = vpop.f32.mrf.mxu0 }
 0x114   : > { %v2168_v22 = vpop.f32.mrf.mxu1 }
 0x115   : > { %v2200_v23 = vpop.f32.mrf.mxu0  ;;  %v688_v1 = vadd.f32 %v657_v6, %v522_v19 }
 0x116   : > { %v526_v24 = vpop.f32.mrf.mxu1 }
 0x117   : > { %v527_v25 = vadd.f32 %v526_v24, %v419_v35  ;;  %v670_v10 = vpop.f32.mrf.mxu0 }
 0x118   : > { %v2171_v3 = vpop.f32.mrf.mxu1 }
 0x119   : > { %v2203_v26 = vpop.f32.mrf.mxu0  ;;  %v689_v11 = vadd.f32 %v662_v13, %v527_v25 }
 0x11a   : > { %v529_v27 = vpop.f32.mrf.mxu1 }
 0x11b   : > { %v530_v17 = vadd.f32 %v529_v27, %v422_v39  ;;  %v673_v29 = vpop.f32.mrf.mxu0 }
 0x11c   : > { %v2172_v30 = vpop.f32.mrf.mxu1 }
 0x11d   : > { %v2204_v31 = vpop.f32.mrf.mxu0  ;;  %v690_v32 = vadd.f32 %v665_v20, %v530_v17 }
 0x11e   : > { %v534_v33 = vpop.f32.mrf.mxu1 }
 0x11f   : > { %v535_v4 = vadd.f32 %v534_v33, %v427_v57  ;;  %v678_v28 = vpop.f32.mrf.mxu0 }
 0x120   : > { %v2175_v34 = vpop.f32.mrf.mxu1 }
 0x121   : > { %v2207_v36 = vpop.f32.mrf.mxu0  ;;  %v691_v37 = vadd.f32 %v670_v10, %v535_v4 }
 0x122   : > { %v537_v38 = vpop.f32.mrf.mxu1 }
 0x123   : > { %v538_v40 = vadd.f32 %v537_v38, %v430_v45  ;;  %v681_v21 = vpop.f32.mrf.mxu0 }
 0x124   : > { %v2176_v35 = vpop.f32.mrf.mxu1 }
 0x125   : > { %v2208_v41 = vpop.f32.mrf.mxu0  ;;  %v692_v42 = vadd.f32 %v673_v29, %v538_v40 }
 0x126   : > { %v542_v43 = vpop.f32.mrf.mxu1 }
 0x127   : > { %v543_v44 = vadd.f32 %v542_v43, %v435_v58  ;;  %v1014_v46 = vpop.f32.mrf.mxu0 }
 0x128   : > { %v2179_v39 = vpop.f32.mrf.mxu1 }
 0x129   : > { %v2247_v0 = vpop.f32.mrf.mxu0  ;;  %v693_v47 = vadd.f32 %v678_v28, %v543_v44 }
 0x12a   : > { %v545_v48 = vpop.f32.mrf.mxu1 }
 0x12b   : > { %v546_v49 = vadd.f32 %v545_v48, %v438_v51  ;;  %v1017_v50 = vpop.f32.mrf.mxu0 }
 0x12c   : > { %v2180_v57 = vpop.f32.mrf.mxu1 }
 0x12d   : > { %v2248_v52 = vpop.f32.mrf.mxu0  ;;  %v694_v53 = vadd.f32 %v681_v21, %v546_v49 }
 0x12e   : > { %v826_v54 = vpop.f32.mrf.mxu1 }
 0x12f   : > { %v865_v55 = vadd.f32 %v826_v54, %v685_v63  ;;  %v1022_v56 = vpop.f32.mrf.mxu0 }
 0x130   : > { %v2219_v45 = vpop.f32.mrf.mxu1 }
 0x131   : > { %v2251_v59 = vpop.f32.mrf.mxu0  ;;  %v3073_v60 = vadd.f32 %v1014_v46, %v865_v55 }
 0x132   : > { %v829_v62 = vpop.f32.mrf.mxu1 }
 0x133   : > { %v866_v2 = vadd.f32 %v829_v62, %v686_v9  ;;  %v1025_v58 = vpop.f32.mrf.mxu0 }
 0x134   : > { %v2220_v5 = vpop.f32.mrf.mxu1 }
 0x135   : > { %v2252_v6 = vpop.f32.mrf.mxu0  ;;  %v3075_v7 = vadd.f32 %v1017_v50, %v866_v2 }
 0x136   : > { %v834_v8 = vpop.f32.mrf.mxu1 }
 0x137   : > { %v867_v51 = vadd.f32 %v834_v8, %v687_v16  ;;  %v1030_v12 = vpop.f32.mrf.mxu0 }
 0x138   : > { %v2223_v61 = vpop.f32.mrf.mxu1 }
 0x139   : > { %v2255_v13 = vpop.f32.mrf.mxu0  ;;  %v3077_v14 = vadd.f32 %v1022_v56, %v867_v51 }
 0x13a   : > { %v837_v63 = vpop.f32.mrf.mxu1 }
 0x13b   : > { %v868_v15 = vadd.f32 %v837_v63, %v688_v1  ;;  %v1033_v18 = vpop.f32.mrf.mxu0 }
 0x13c   : > { %v2224_v19 = vpop.f32.mrf.mxu1 }
 0x13d   : > { %v2256_v20 = vpop.f32.mrf.mxu0  ;;  %v3079_v22 = vadd.f32 %v1025_v58, %v868_v15 }
 0x13e   : > { %v842_v9 = vpop.f32.mrf.mxu1 }
 0x13f   : > { %v869_v23 = vadd.f32 %v842_v9, %v689_v11  ;;  %v1038_v24 = vpop.f32.mrf.mxu0 }
 0x140   : > { %v2227_v25 = vpop.f32.mrf.mxu1 }
 0x141   : > { %v2259_v10 = vpop.f32.mrf.mxu0  ;;  %v3081_v3 = vadd.f32 %v1030_v12, %v869_v23 }
 0x142   : > { %v845_v16 = vpop.f32.mrf.mxu1 }
 0x143   : > { %v870_v26 = vadd.f32 %v845_v16, %v690_v32  ;;  %v1041_v27 = vpop.f32.mrf.mxu0 }
 0x144   : > { %v2228_v17 = vpop.f32.mrf.mxu1 }
 0x145   : > { %v2260_v29 = vpop.f32.mrf.mxu0  ;;  %v3083_v30 = vadd.f32 %v1033_v18, %v870_v26 }
 0x146   : > { %v850_v1 = vpop.f32.mrf.mxu1 }
 0x147   : > { %v871_v31 = vadd.f32 %v850_v1, %v691_v37  ;;  %v1046_v33 = vpop.f32.mrf.mxu0 }
 0x148   : > { %v2231_v4 = vpop.f32.mrf.mxu1 }
 0x149   : > { %v2263_v28 = vpop.f32.mrf.mxu0  ;;  %v3085_v34 = vadd.f32 %v1038_v24, %v871_v31 }
 0x14a   : > { %v853_v11 = vpop.f32.mrf.mxu1 }
 0x14b   : > { %v872_v36 = vadd.f32 %v853_v11, %v692_v42  ;;  %v1049_v38 = vpop.f32.mrf.mxu0 }
 0x14c   : > { %v2232_v40 = vpop.f32.mrf.mxu1 }
 0x14d   : > { %v2264_v21 = vpop.f32.mrf.mxu0  ;;  %v3087_v35 = vadd.f32 %v1041_v27, %v872_v36 }
 0x14e   : > { %v858_v32 = vpop.f32.mrf.mxu1 }
 0x14f   : > { %v873_v41 = vadd.f32 %v858_v32, %v693_v47  ;;  %v1340_v43 = vpop.f32.mrf.mxu0 }
 0x150   : > { %v2235_v44 = vpop.f32.mrf.mxu1 }
 0x151   : > { %v2303_v46 = vpop.f32.mrf.mxu0  ;;  %v3089_v39 = vadd.f32 %v1046_v33, %v873_v41  ;;  %v3117_v44 = vld [vmem:[#allocation3] ss:$0 sm:$0xff] }
 0x152   : > { %v861_v37 = vpop.f32.mrf.mxu1 }
 0x153   : > { %v874_v0 = vadd.f32 %v861_v37, %v694_v53  ;;  %v1343_v48 = vpop.f32.mrf.mxu0 }
 0x154   : > { %v2236_v49 = vpop.f32.mrf.mxu1 }
 0x155   : > { %v2304_v50 = vpop.f32.mrf.mxu0  ;;  %v3091_v57 = vadd.f32 %v1049_v38, %v874_v0 }
 0x156   : > { %v1160_v42 = vpop.f32.mrf.mxu1 }
 0x157   : > { %v1348_v52 = vpop.f32.mrf.mxu0  ;;  %v1199_v31 = vadd.f32 %v1160_v42, %v3073_v60 }
 0x158   : > { %v2275_v54 = vpop.f32.mrf.mxu1 }
 0x159   : > { %v2307_v55 = vpop.f32.mrf.mxu0  ;;  %v1379_v38 = vadd.f32 %v1340_v43, %v1199_v31 }
 0x15a   : > { %v1163_v56 = vpop.f32.mrf.mxu1 }
 0x15b   : > { %v3093_v45 = vpop.f32.mrf.mxu0  ;;  %v1200_v36 = vadd.f32 %v1163_v56, %v3075_v7 }
 0x15c   : > { %v2276_v47 = vpop.f32.mrf.mxu1 }
 0x15d   : > { %v2308_v59 = vpop.f32.mrf.mxu0  ;;  %v1380_v49 = vadd.f32 %v1343_v48, %v1200_v36 }
 0x15e   : > { %v1168_v62 = vpop.f32.mrf.mxu1 }
 0x15f   : > { %v3095_v2 = vpop.f32.mrf.mxu0  ;;  %v1201_v37 = vadd.f32 %v1168_v62, %v3077_v14 }
 0x160   : > { %v2279_v58 = vpop.f32.mrf.mxu1 }
 0x161   : > { %v2311_v5 = vpop.f32.mrf.mxu0  ;;  %v1381_v59 = vadd.f32 %v1348_v52, %v1201_v37 }
 0x162   : > { %v1171_v53 = vpop.f32.mrf.mxu1 }
 0x163   : > { %v3097_v6 = vpop.f32.mrf.mxu0  ;;  %v1202_v7 = vadd.f32 %v1171_v53, %v3079_v22 }
 0x164   : > { %v2280_v8 = vpop.f32.mrf.mxu1 }
 0x165   : > { %v2312_v51 = vpop.f32.mrf.mxu0 }
 0x166   : > { %v1176_v12 = vpop.f32.mrf.mxu1 }
 0x167   : > { %v3099_v61 = vpop.f32.mrf.mxu0  ;;  %v1203_v51 = vadd.f32 %v1176_v12, %v3081_v3 }
 0x168   : > { %v2283_v13 = vpop.f32.mrf.mxu1 }
 0x169   : > { %v2315_v63 = vpop.f32.mrf.mxu0 }
 0x16a   : > { %v1179_v15 = vpop.f32.mrf.mxu1 }
 0x16b   : > { %v3101_v18 = vpop.f32.mrf.mxu0 }
 0x16c   : > { %v2284_v19 = vpop.f32.mrf.mxu1 }
 0x16d   : > { %v2316_v20 = vpop.f32.mrf.mxu0  ;;  %v1382_v19 = vadd.f32 %v3093_v45, %v1202_v7 }
 0x16e   : > { %v3103_v9 = vpop.f32.mrf.mxu1 }
 0x16f   : > { %v3105_v23 = vpop.f32.mrf.mxu0 }
 0x170   : > { %v2287_v24 = vpop.f32.mrf.mxu1 }
 0x171   : > { %v2319_v25 = vpop.f32.mrf.mxu0 }
 0x172   : > { %v3107_v10 = vpop.f32.mrf.mxu1 }
 0x173   : > { %v3109_v16 = vpop.f32.mrf.mxu0 }
 0x174   : > { %v2288_v26 = vpop.f32.mrf.mxu1 }
 0x175   : > { %v2320_v27 = vpop.f32.mrf.mxu0  ;;  %v1204_v26 = vadd.f32 %v1179_v15, %v3083_v30 }
 0x176   : > { %v3111_v17 = vpop.f32.mrf.mxu1 }
 0x177   : > { %v1674_v29 = vpop.f32.mrf.mxu0  ;;  %v1384_v30 = vadd.f32 %v3097_v6, %v1204_v26 }
 0x178   : > { %v2291_v1 = vpop.f32.mrf.mxu1 }
 0x179   : > { %v2359_v33 = vpop.f32.mrf.mxu0  ;;  %v1383_v1 = vadd.f32 %v3095_v2, %v1203_v51 }
 0x17a   : > { %v3114_v4 = vpop.f32.mrf.mxu1 }
 0x17b   : > { %v1677_v28 = vpop.f32.mrf.mxu0 }
 0x17c   : > { %v2292_v11 = vpop.f32.mrf.mxu1 }
 0x17d   : > { %v2360_v40 = vpop.f32.mrf.mxu0  ;;  %v1205_v11 = vadd.f32 %v3103_v9, %v3085_v34 }
 0x17e   : > { %v1528_v21 = vpop.f32.mrf.mxu1 }
 0x17f   : > { %v1567_v32 = vadd.f32 %v1528_v21, %v1379_v38  ;;  %v1682_v41 = vpop.f32.mrf.mxu0 }
 0x180   : > { %v2331_v46 = vpop.f32.mrf.mxu1 }
 0x181   : > { %v1713_v0 = vadd.f32 %v1674_v29, %v1567_v32  ;;  %v2363_v60 = vpop.f32.mrf.mxu0 }
 0x182   : > { %v1531_v50 = vpop.f32.mrf.mxu1 }
 0x183   : > { %v1730_v42 = vadd.f32 %v3117_v44, %v1713_v0  ;;  %v1568_v54 = vadd.f32 %v1531_v50, %v1380_v49  ;;  %v1685_v55 = vpop.f32.mrf.mxu0  ;;  %v1385_v49 = vadd.f32 %v3099_v61, %v1205_v11 }
 0x184   : > { %v2332_v47 = vpop.f32.mrf.mxu1 }
 0x185   : > { %v1740_v43 = vmax.f32 %v1730_v42, 0.0  ;;  %v1714_v56 = vadd.f32 %v1677_v28, %v1568_v54  ;;  %v2364_v58 = vpop.f32.mrf.mxu0 }
 0x186   : > { %v1536_v5 = vpop.f32.mrf.mxu1 }
 0x187   : > { %1750 = vst.msk [vmem:[#allocation2] sm:$0xff] %vm353_vm2, %v1740_v43  ;;  %v1731_v14 = vadd.f32 %v3117_v44, %v1714_v56  ;;  %v1569_v62 = vadd.f32 %v1536_v5, %v1381_v59  ;;  %v1690_v48 = vpop.f32.mrf.mxu0  ;;  %v1207_v56 = vadd.f32 %v3111_v17, %v3089_v39 }
 0x188   : > { %v2335_v8 = vpop.f32.mrf.mxu1 }
 0x189   : > { %v1741_v13 = vmax.f32 %v1731_v14, 0.0  ;;  %v1715_v63 = vadd.f32 %v1682_v41, %v1569_v62  ;;  %v2367_v20 = vpop.f32.mrf.mxu0  ;;  %v1206_v41 = vadd.f32 %v3107_v10, %v3087_v35 }
 0x18a   : > { %v1539_v22 = vpop.f32.mrf.mxu1  ;;  %v1387_v20 = vadd.f32 %v3105_v23, %v1207_v56 }
 0x18b   : > { %1751 = vst.msk [vmem:[#allocation2 + $0x8] sm:$0xff] %vm353_vm2, %v1741_v13  ;;  %v1732_v52 = vadd.f32 %v3117_v44, %v1715_v63  ;;  %v1570_v53 = vadd.f32 %v1539_v22, %v1382_v19  ;;  %v1693_v24 = vpop.f32.mrf.mxu0  ;;  %v1386_v43 = vadd.f32 %v3101_v18, %v1206_v41  ;;  %v1208_v13 = vadd.f32 %v3114_v4, %v3091_v57 }
 0x18c   : > { %v2336_v25 = vpop.f32.mrf.mxu1 }
 0x18d   : > { %v1742_v27 = vmax.f32 %v1732_v52, 0.0  ;;  %v1716_v29 = vadd.f32 %v1685_v55, %v1570_v53  ;;  %v2368_v3 = vpop.f32.mrf.mxu0 }
 0x18e   : > { %v1544_v12 = vpop.f32.mrf.mxu1  ;;  %v1760_v46 = vld [vmem:[#allocation2] ss:$2 sm:$0xf]  ;;  %v1762_v37 = vld [vmem:[#allocation2 + $0x1] ss:$2 sm:$0xf] }
 0x18f   : > { %1752 = vst.msk [vmem:[#allocation2 + $0x10] sm:$0xff] %vm353_vm2, %v1742_v27  ;;  %v1733_v45 = vadd.f32 %v3117_v44, %v1716_v29  ;;  %v1571_v31 = vadd.f32 %v1544_v12, %v1383_v1  ;;  %v1698_v33 = vpop.f32.mrf.mxu0  ;;  %v1763_v54 = vmax.f32 %v1760_v46, %v1762_v37  ;;  %v1388_v12 = vadd.f32 %v3109_v16, %v1208_v13 }
 0x190   : > { %v2339_v28 = vpop.f32.mrf.mxu1 }
 0x191   : > { %v1743_v36 = vmax.f32 %v1733_v45, 0.0  ;;  %v1717_v38 = vadd.f32 %v1690_v48, %v1571_v31  ;;  %v2371_v15 = vpop.f32.mrf.mxu0 }
 0x192   : > { %v1547_v40 = vpop.f32.mrf.mxu1 }
 0x193   : > { %1753 = vst.msk [vmem:[#allocation2 + $0x18] sm:$0xff] %vm353_vm2, %v1743_v36  ;;  %v1734_v2 = vadd.f32 %v3117_v44, %v1717_v38  ;;  %v1572_v21 = vadd.f32 %v1547_v40, %v1384_v30  ;;  %v1701_v32 = vpop.f32.mrf.mxu0 }
 0x194   : > { %v2340_v0 = vpop.f32.mrf.mxu1 }
 0x195   : > { %v1744_v34 = vmax.f32 %v1734_v2, 0.0  ;;  %v1718_v9 = vadd.f32 %v1693_v24, %v1572_v21  ;;  %v2372_v6 = vpop.f32.mrf.mxu0 }
 0x196   : > { %v1765_v60 = vld [vmem:[#allocation2 + $0xa] ss:$2 sm:$0xf]  ;;  %v1767_v50 = vld [vmem:[#allocation2 + $0xb] ss:$2 sm:$0xf]  ;;  %v1552_v42 = vpop.f32.mrf.mxu1 }
 0x197   : > { %v1768_v55 = vmax.f32 %v1765_v60, %v1767_v50  ;;  %1754 = vst.msk [vmem:[#allocation2 + $0x20] sm:$0xff] %vm353_vm2, %v1744_v34  ;;  %v1735_v47 = vadd.f32 %v3117_v44, %v1718_v9  ;;  %v1573_v7 = vadd.f32 %v1552_v42, %v1385_v49  ;;  %v1706_v35 = vpop.f32.mrf.mxu0 }
 0x198   : > { %v2343_v10 = vpop.f32.mrf.mxu1 }
 0x199   : > { %v1769_v61 = vmax.f32 %v1763_v54, %v1768_v55  ;;  %v1745_v59 = vmax.f32 %v1735_v47, 0.0  ;;  %v1719_v58 = vadd.f32 %v1698_v33, %v1573_v7  ;;  %v2375_v5 = vpop.f32.mrf.mxu0 }
 0x19a   : > { %v1555_v14 = vpop.f32.mrf.mxu1  ;;  %v1774_v39 = vld [vmem:[#allocation2 + $0x14] ss:$2 sm:$0xf]  ;;  %v1776_v17 = vld [vmem:[#allocation2 + $0x15] ss:$2 sm:$0xf] }
 0x19b   : > { %v1770_v62 = vpack.c.bf16 %v1769_v61, %v1769_v61  ;;  %1755 = vst.msk [vmem:[#allocation2 + $0x28] sm:$0xff] %vm353_vm2, %v1745_v59  ;;  %v1736_v18 = vadd.f32 %v3117_v44, %v1719_v58  ;;  %v1574_v48 = vadd.f32 %v1555_v14, %v1386_v43  ;;  %v1709_v8 = vpop.f32.mrf.mxu0  ;;  %v1777_v25 = vmax.f32 %v1774_v39, %v1776_v17 }
 0x19c   : > { %v2344_v51 = vpop.f32.mrf.mxu1 }
 0x19d   : > { %1772 = vst.msk [vmem:[%s3149_s12] sm:$0x3] %vm1771_vm8, %v1770_v62  ;;  %v1746_v63 = vmax.f32 %v1736_v18, 0.0  ;;  %v1720_v19 = vadd.f32 %v1701_v32, %v1574_v48  ;;  %v2376_v22 = vpop.f32.mrf.mxu0 }
 0x19e   : > { %v1779_v52 = vld [vmem:[#allocation2 + $0x1e] ss:$2 sm:$0xf]  ;;  %v1781_v53 = vld [vmem:[#allocation2 + $0x1f] ss:$2 sm:$0xf]  ;;  %v1560_v24 = vpop.f32.mrf.mxu1 }
 0x19f   : > { %v1782_v26 = vmax.f32 %v1779_v52, %v1781_v53  ;;  %1756 = vst.msk [vmem:[#allocation2 + $0x30] sm:$0xff] %vm353_vm2, %v1746_v63  ;;  %v1737_v27 = vadd.f32 %v3117_v44, %v1720_v19  ;;  %v1575_v29 = vadd.f32 %v1560_v24, %v1387_v20 }
 0x1a0   : > { %v2347_v1 = vpop.f32.mrf.mxu1 }
 0x1a1   : > { %v1783_v57 = vmax.f32 %v1777_v25, %v1782_v26  ;;  %v1747_v4 = vmax.f32 %v1737_v27, 0.0  ;;  %v1721_v3 = vadd.f32 %v1706_v35, %v1575_v29 }
 0x1a2   : > { %v1563_v45 = vpop.f32.mrf.mxu1  ;;  %v1788_v30 = vld [vmem:[#allocation2 + $0x28] ss:$2 sm:$0xf]  ;;  %v1790_v15 = vld [vmem:[#allocation2 + $0x29] ss:$2 sm:$0xf] }
 0x1a3   : > { %v1784_v23 = vpack.c.bf16 %v1783_v57, %v1783_v57  ;;  %1757 = vst.msk [vmem:[#allocation2 + $0x38] sm:$0xff] %vm353_vm2, %v1747_v4  ;;  %v1738_v31 = vadd.f32 %v3117_v44, %v1721_v3  ;;  %v1576_v33 = vadd.f32 %v1563_v45, %v1388_v12  ;;  %v1791_v21 = vmax.f32 %v1788_v30, %v1790_v15 }
 0x1a4   : > { %v2348_v28 = vpop.f32.mrf.mxu1 }
 0x1a5   : > { %2038 = vst.msk [vmem:[%s3149_s12 + $0x2] sm:$0x3] %vm1771_vm8, %v1784_v23  ;;  %v1748_v11 = vmax.f32 %v1738_v31, 0.0  ;;  %v1722_v36 = vadd.f32 %v1709_v8, %v1576_v33 }
 0x1a7   : > { %1758 = vst.msk [vmem:[#allocation2 + $0x40] sm:$0xff] %vm353_vm2, %v1748_v11  ;;  %v1739_v38 = vadd.f32 %v3117_v44, %v1722_v36 }
 0x1a9   : > { %v1749_v16 = vmax.f32 %v1739_v38, 0.0 }
 0x1aa   : > { %v1793_v40 = vld [vmem:[#allocation2 + $0x32] ss:$2 sm:$0xf]  ;;  %v1795_v2 = vld [vmem:[#allocation2 + $0x33] ss:$2 sm:$0xf] }
 0x1ab   : > { %v1796_v32 = vmax.f32 %v1793_v40, %v1795_v2  ;;  %1759 = vst.msk [vmem:[#allocation2 + $0x48] sm:$0xff] %vm353_vm2, %v1749_v16 }
 0x1ad   : > { %v1797_v41 = vmax.f32 %v1791_v21, %v1796_v32 }
 0x1ae   : > { %v1802_v37 = vld [vmem:[#allocation2 + $0x3c] ss:$2 sm:$0xf]  ;;  %v1804_v0 = vld [vmem:[#allocation2 + $0x3d] ss:$2 sm:$0xf] }
 0x1af   : > { %v1798_v46 = vpack.c.bf16 %v1797_v41, %v1797_v41  ;;  %v1805_v49 = vmax.f32 %v1802_v37, %v1804_v0 }
 0x1b1   : > { %2039 = vst.msk [vmem:[%s3149_s12 + $0x4] sm:$0x3] %vm1771_vm8, %v1798_v46 }
 0x1b2   : > { %v1807_v34 = vld [vmem:[#allocation2 + $0x46] ss:$2 sm:$0xf]  ;;  %v1809_v9 = vld [vmem:[#allocation2 + $0x47] ss:$2 sm:$0xf] }
 0x1b3   : > { %v1810_v44 = vmax.f32 %v1807_v34, %v1809_v9 }
 0x1b5   : > { %v1811_v6 = vmax.f32 %v1805_v49, %v1810_v44 }
 0x1b7   : > { %v1812_v60 = vpack.c.bf16 %v1811_v6, %v1811_v6 }
 0x1b9   : > { %2040 = vst.msk [vmem:[%s3149_s12 + $0x6] sm:$0x3] %vm1771_vm8, %v1812_v60 }
 0x1ba PF: > { %s14_s14 = sadd.s32 1, %s2534_s14   ;;  %s3187_s12 = smov %s2530_s13 }
 0x1bb   : > { %p11_p2 = scmp.ge.s32.totalorder %s14_s14, 4   ;;  %s3188_s13 = smov %s3190_s16 }
 0x1bd   :  { %13 = sbr.rel (!%p11_p2) target bundleno = 2 (0x2), region = 89 }
 0x1c2   :  { %1842 = vsyncpa [#allocation4], 1 }
 0x1c3   :  { %1844 = vsyncpa [#allocation4 + $0x1], 1 }

// kernel: vggish_forward.8
= control target key start
LH: loop header
LB: loop body
LE: loop exit
PB: predicated region body
PF: predicated region fallthrough
CT: control target
= control target key end

     0   :  { %8 = vsyncpa [#allocation4], 0  ;;  %s6458_s0 = inlined_call_operand.vmem [shape: bf16[2,342,4], index: 0, kind: input, shape index: {}]   ;;  %s6459_s1 = inlined_call_operand.hbm [shape: bf16[36,64], index: 1, kind: input, shape index: {}]   ;;  %s6460_s2 = inlined_call_operand.hbm [shape: f32[1,64], index: 2, kind: input, shape index: {}]   ;;  %s6461_s3 = inlined_call_operand.vmem [shape: bf16[2,8,8,64], index: 3, kind: output, shape index: {}]  }
   0x1   :  { %9 = vsyncpa [#allocation6], 0  ;;  %s5019_s12 = smov 0   ;;  %s5021_s13 = smov 0  }
   0x2   :  { %s5023_s14 = smov 0  }
   0x3 LB: > { %s4021_s15 = sadd.s32 4294967295, %s4993_s14   ;;  %s27_s16 = sadd.s32 1, %s4989_s13  ;;  %s4993_s14 = sphi %s5023_s14, %s15_s14   ;;  %s4989_s13 = sphi %s5021_s13, %s6502_s13   ;;  %s4985_s12 = sphi %s5019_s12, %s6501_s12  }
   0x4   : > { %p29_p0 = scmp.ge.s32.totalorder %s27_s16, 2  ;;  %p4023_p1 = scmp.ge.s32.totalorder %s4993_s14, 1 }
   0x5   : > { %p138_p2 = scmp.lt.s32.totalorder %s4993_s14, 3  ;;  %p5044_p4 = scmp.eq.s32.totalorder %s4021_s15, 0 }
   0x6   : > { %s6504_s16 = smov (%p29_p0, %s27_s16), 0  ;;  %s4995_s19 = smov [#allocation3]  }
   0x7   : > { %p5040_p3 = pnand %p4023_p1, %p138_p2  ;;  %s152_s20 = sshll.u32 %s4995_s19, 4  ;;  %s153_s20 = int_to_ptr.vmem [resolvable:$true] %s152_s20 }
   0x8   : > { %s4996_s22 = smov [#allocation5]   ;;  %s4922_s24 = scalar_lea.vmem %s153_s20, 320 }
   0x9   : > { %p4806_p5 = pneg %p5040_p3  ;;  %s168_s23 = sshll.u32 %s4996_s22, 4  ;;  %s169_s23 = int_to_ptr.vmem [resolvable:$true] %s168_s23 }
   0xa   : > { %p4923_p8 = scmp.ne.s32.totalorder %s153_s20, %s4922_s24  ;;  %p4930_p11 = scmp.lt.s32.totalorder %s153_s20, %s153_s20 }
   0xb   : > { %p5052_p6 = pnand %p5044_p4, %p4806_p5  ;;  %p4931_p12 = scmp.lt.s32.totalorder %s4922_s24, %s4922_s24 }
   0xd   : > { %p4913_p7 = pneg %p5052_p6  ;;  %p4932_p13 = por %p4931_p12, %p4930_p11 }
   0xf   : > { %p4925_p9 = pnand %p4923_p8, %p4913_p7 }
  0x11   : > { %p4926_p10 = pneg %p4925_p9 }
  0x13   : > { %p4933_p0 = pnand %p4932_p13, %p4926_p10 }
  0x15   : > { %4936 = shalt.err (!%p4933_p0)
}
  0x16   : > { %s4997_s25 = smov 64   ;;  %s4998_s26 = smov 4  }
  0x17   : > { %4809 = dma.hbm_to_vmem [thread:$0]  (!%p5052_p6), %s6459_s1, 320, %s153_s20, [#allocation4], %s4997_s25, %s4997_s25, %s4998_s26  }
  0x18   : > { %s4948_s29 = scalar_lea.vmem %s169_s23, 16  ;;  %s4955_s30 = scalar_lea.vmem %s169_s23, 32 }
  0x19   : > { %p4949_p1 = scmp.ne.s32.totalorder %s169_s23, %s4948_s29  ;;  %p4956_p8 = scmp.lt.s32.totalorder %s169_s23, %s169_s23 }
  0x1a   : > { %p4957_p9 = scmp.lt.s32.totalorder %s4955_s30, %s4948_s29 }
  0x1b   : > { %p4951_p2 = pnand %p4949_p1, %p4913_p7 }
  0x1c   : > { %p4958_p10 = por %p4957_p9, %p4956_p8 }
  0x1d   : > { %p4952_p5 = pneg %p4951_p2 }
  0x1f   : > { %p4959_p11 = pnand %p4958_p10, %p4952_p5 }
  0x21   : > { %4962 = shalt.err (!%p4959_p11)
}
  0x22   : > { %4812 = dma.hbm_to_vmem [thread:$0]  (!%p5052_p6), %s6460_s2, 16, %s169_s23, [#allocation6]  }
  0x23   : > { %189 = sbr.rel (%p5040_p3) target bundleno = 601 (0x259), region = 32 }
  0x28   : > { %4976 = dma.done.wait (%p5044_p4), [#allocation4], 320  }
  0x29   : > { %4978 = vsyncadd (%p5044_p4), [#allocation4], 4294966976 }
  0x2a   : > { %4980 = dma.done.wait (%p5044_p4), [#allocation6], 16  }
  0x2b   : > { %4982 = vsyncadd (%p5044_p4), [#allocation6], 4294967280  ;;  %p220_p7 = scmp.lt.s32.totalorder %s4985_s12, 1  ;;  %vm574_vm0 = vcmask 1041408   ;;  %vm366_vm1 = vsmask.f32 7424 }
  0x2c   : > { %v4845_v0 = vld [vmem:[#allocation3] ss:$0 sps:$4 sm:$0xcc]   ;;  %vm519_vm2 = vcmask 31744   ;;  %v972_v16 = vld [vmem:[#allocation3 + $0x4] sm:$0x3] }
  0x2d   : > { %s6506_s12 = smov (!%p220_p7, %s4985_s12), 1  ;;  %v518_v4 = vrot.slane %v4845_v0, 2  ;;  %v1069_v27 = vsel %vm574_vm0, %v972_v16, 0  ;;  %v270_v28 = vld [vmem:[#allocation3] sm:$0x3]  ;;  %vm976_vm3 = vcmask 1046528  }
  0x2e   : > { %s4797_s6 = smul.u32 172, %s6506_s12  ;;  %v792_v32 = vsel %vm574_vm0, %v270_v28, 0  ;;  %vm2177_vm4 = vcmask 1045504   ;;  %vm1731_vm5 = vsmask.f32 6400  ;;  %vm3382_vm6 = vcmask 1044480  }
  0x2f   : > { %4787 = vmatprep.subr.msk.bf16.mxu0 %vm574_vm0, %v518_v4  ;;  %4788 = vmatprep.subr.msk.bf16.mxu1 %vm574_vm0, %v518_v4  ;;  %v576_v9 = vsel %vm574_vm0, %v518_v4, 0  ;;  %vm2932_vm7 = vsmask.f32 5376  ;;  %vm3769_vm8 = vcmask 523264   ;;  %s4271_s10 = sshll.u32 %s6506_s12, 5  ;;  %vm3817_vm9 = vcmask 519168  }
  0x30   : > { %s5092_s9 = scalar_lea.vmem %s6458_s0, %s4797_s6  ;;  %4444 = vmatpush3.bf16.msra.mxu0 %v576_v9  ;;  %4786 = vmatpush3.bf16.msra.mxu1 %v576_v9  ;;  %s6360_s17 = scalar_lea.vmem %s6461_s3, %s4271_s10 }
  0x31   : > { %v5095_v1 = vld [vmem:[%s5092_s9 + $0x8] sm:$0xff]   ;;  %v234_v2 = vld [vmem:[%s5092_s9] sm:$0xf]  ;;  %v5099_v3 = vld [vmem:[%s5092_s9 + $0x4] sm:$0xf]  ;;  %4790 = vmatprep.subr.msk.bf16.mxu0 %vm574_vm0, %v972_v16  ;;  %4789 = vmatprep.subr.msk.bf16.mxu1 %vm574_vm0, %v270_v28 }
  0x32   : > { %v5102_v5 = vcombine.low %v234_v2, %v5099_v3  ;;  %v375_v6 = vshll.u32 %v5095_v1, 16  ;;  %v379_v7 = vshrl.u32 %v5095_v1, 16  ;;  %v5107_v8 = vld [vmem:[%s5092_s9 + $0x50] sm:$0xff]   ;;  %v5115_v13 = vld [vmem:[%s5092_s9 + $0x58] sm:$0xff]   ;;  %v5124_v20 = vld [vmem:[%s5092_s9 + $0x60] sm:$0xff]  }
  0x33   : > { %v447_v14 = vshll.u32 %v5107_v8, 16  ;;  %v451_v15 = vshrl.u32 %v5107_v8, 16  ;;  %v5120_v17 = vld [vmem:[%s5092_s9 + $0x10] sm:$0xff]   ;;  %v455_v22 = vshll.u32 %v5115_v13, 16  ;;  %v459_v23 = vshrl.u32 %v5115_v13, 16  ;;  %v5137_v33 = vld [vmem:[%s5092_s9 + $0x18] sm:$0xff]  }
  0x34   : > { %v368_v10 = vshrl.u32 %v5102_v5, 16  ;;  %v370_v11 = vshll.u32 %v5102_v5, 16  ;;  %v377_v12 = vrot.slane %v375_v6, 1  ;;  %v383_v24 = vshll.u32 %v5120_v17, 16  ;;  %v5146_v41 = vld [vmem:[%s5092_s9 + $0x68] sm:$0xff]   ;;  %v5152_v44 = vld [vmem:[%s5092_s9 + $0x20] sm:$0xff]  }
  0x35   : > { %v5126_v21 = vrot.slane %v447_v14, 1  ;;  %v463_v26 = vshll.u32 %v5124_v20, 16  ;;  %v457_v30 = vrot.slane %v455_v22, 1  ;;  %v387_v36 = vshrl.u32 %v5120_v17, 16  ;;  %v5156_v46 = vld [vmem:[%s5092_s9 + $0x70] sm:$0xff]   ;;  %v5165_v54 = vld [vmem:[%s5092_s9 + $0x28] sm:$0xff]  }
  0x36   : > { %v372_v18 = vrot.slane %v370_v11, 1  ;;  %v381_v19 = vor.u32 %v379_v7, %v377_v12  ;;  %v385_v31 = vrot.slane %v383_v24, 1  ;;  %v391_v40 = vshll.u32 %v5137_v33, 16  ;;  %v5172_v62 = vld [vmem:[%s5092_s9 + $0x78] sm:$0xff]   ;;  %v5177_v4 = vld [vmem:[%s5092_s9 + $0x30] sm:$0xff]   ;;  %v5186_v16 = vld [vmem:[%s5092_s9 + $0x80] sm:$0xff]  }
  0x37   : > { %v453_v29 = vor.u32 %v451_v15, %v5126_v21  ;;  %v465_v35 = vrot.slane %v463_v26, 1  ;;  %v461_v38 = vor.u32 %v459_v23, %v457_v30  ;;  %v467_v43 = vshrl.u32 %v5124_v20, 16 }
  0x38   : > { %v373_v25 = vor.u32 %v372_v18, %v368_v10  ;;  %v386_v39 = vsel %vm366_vm1, %v381_v19, %v385_v31  ;;  %v389_v42 = vor.u32 %v387_v36, %v385_v31  ;;  %v395_v45 = vshrl.u32 %v5137_v33, 16  ;;  %v5189_v18 = vld [vmem:[%s5092_s9 + $0x38] sm:$0xff]  }
  0x39   : > { %v458_v37 = vsel %vm366_vm1, %v453_v29, %v457_v30  ;;  %v466_v47 = vsel %vm366_vm1, %v461_v38, %v465_v35  ;;  %v393_v48 = vrot.slane %v391_v40, 1  ;;  %v471_v49 = vshll.u32 %v5146_v41, 16  ;;  %v5202_v30 = vld [vmem:[%s5092_s9 + $0x40] sm:$0xff]  }
  0x3a   : > { %v378_v34 = vsel %vm366_vm1, %v373_v25, %v377_v12  ;;  %4465 = vmatprep.mubr.msk.bf16.mxu1 %vm519_vm2, %v458_v37  ;;  %v469_v50 = vor.u32 %v467_v43, %v465_v35  ;;  %v399_v51 = vshll.u32 %v5152_v44, 16  ;;  %v475_v52 = vshrl.u32 %v5146_v41, 16  ;;  %v5196_v25 = vld [vmem:[%s5092_s9 + $0x88] sm:$0xff]  }
  0x3b   : > { %4445 = vmatprep.mubr.msk.bf16.mxu0 %vm519_vm2, %v378_v34  ;;  %4466 = vmatmul.mubr.msk.bf16.vlgmr.msra.gmra.mxu1 %vm519_vm2, %v466_v47  ;;  %v479_v53 = vshll.u32 %v5156_v46, 16  ;;  %v394_v55 = vsel %vm366_vm1, %v389_v42, %v393_v48  ;;  %v473_v56 = vrot.slane %v471_v49, 1  ;;  %v397_v57 = vor.u32 %v395_v45, %v393_v48  ;;  %v4863_v42 = vld [vmem:[%s5092_s9 + $0x90] ss:$0 sps:$4 sm:$0x11]   ;;  %v5214_v48 = vld [vmem:[%s5092_s9 + $0x48] sm:$0xff]  }
  0x3c   : > { %4446 = vmatmul.mubr.msk.bf16.vlgmr.msra.gmra.mxu0 %vm519_vm2, %v386_v39  ;;  %4482 = vmatpush3.bf16.msra.mxu1 %v792_v32  ;;  %v403_v58 = vshrl.u32 %v5152_v44, 16  ;;  %v401_v59 = vrot.slane %v399_v51, 1  ;;  %v407_v61 = vshll.u32 %v5165_v54, 16  ;;  %v483_v2 = vshrl.u32 %v5156_v46, 16 }
  0x3d   : > { %4520 = vmatpush3.bf16.msra.mxu0 %v1069_v27  ;;  %4449 = vmatprep.mubr.msk.bf16.mxu0 %vm519_vm2, %v394_v55  ;;  %v481_v60 = vrot.slane %v479_v53, 1  ;;  %v474_v63 = vsel %vm366_vm1, %v469_v50, %v473_v56  ;;  %v477_v0 = vor.u32 %v475_v52, %v473_v56  ;;  %v487_v10 = vshll.u32 %v5172_v62, 16  ;;  %v4865_v56 = vld [vmem:[#allocation3 + $0x4] ss:$0 sps:$4 sm:$0xcc]  }
  0x3e   : > { %4469 = vmatprep.mubr.msk.bf16.mxu1 %vm519_vm2, %v474_v63  ;;  %v402_v6 = vsel %vm366_vm1, %v397_v57, %v401_v59  ;;  %v405_v7 = vor.u32 %v403_v58, %v401_v59  ;;  %v409_v9 = vrot.slane %v407_v61, 1  ;;  %v411_v14 = vshrl.u32 %v5165_v54, 16  ;;  %v1727_v59 = vld [vmem:[#allocation3 + $0x8] sm:$0x3] }
  0x3f   : > { %v482_v11 = vsel %vm366_vm1, %v477_v0, %v481_v60  ;;  %v485_v12 = vor.u32 %v483_v2, %v481_v60  ;;  %v415_v15 = vshll.u32 %v5177_v4, 16  ;;  %v489_v22 = vrot.slane %v487_v10, 1  ;;  %4792 = vmatprep.subr.msk.bf16.mxu0 %vm574_vm0, %v1727_v59 }
  0x40   : > { %v410_v19 = vsel %vm366_vm1, %v405_v7, %v409_v9  ;;  %v491_v23 = vshrl.u32 %v5172_v62, 16  ;;  %v419_v24 = vshrl.u32 %v5177_v4, 16  ;;  %v413_v26 = vor.u32 %v411_v14, %v409_v9  ;;  %v971_v7 = vld [vmem:[%s5092_s9] sm:$0xe] }
  0x41   : > { %v417_v27 = vrot.slane %v415_v15, 1  ;;  %v495_v28 = vshll.u32 %v5186_v16, 16  ;;  %v423_v29 = vshll.u32 %v5189_v18, 16  ;;  %v490_v31 = vsel %vm366_vm1, %v485_v12, %v489_v22 }
  0x42   : > { %v499_v32 = vshrl.u32 %v5186_v16, 16  ;;  %v503_v34 = vshll.u32 %v5196_v25, 16  ;;  %v493_v35 = vor.u32 %v491_v23, %v489_v22  ;;  %v431_v40 = vshll.u32 %v5202_v30, 16 }
  0x43   : > { %4470 = vmatmul.mubr.msk.bf16.gmra.mxu1 %vm519_vm2, %v482_v11  ;;  %v497_v36 = vrot.slane %v495_v28, 1  ;;  %v421_v37 = vor.u32 %v419_v24, %v417_v27  ;;  %v425_v38 = vrot.slane %v423_v29, 1  ;;  %v418_v43 = vsel %vm366_vm1, %v413_v26, %v417_v27 }
  0x44   : > { %4450 = vmatmul.mubr.msk.bf16.gmra.mxu0 %vm519_vm2, %v402_v6  ;;  %4473 = vmatprep.mubr.msk.bf16.mxu1 %vm519_vm2, %v490_v31  ;;  %v505_v39 = vrot.slane %v503_v34, 1  ;;  %v427_v47 = vshrl.u32 %v5189_v18, 16  ;;  %v511_v50 = vshll.u32 %v4863_v42, 16  ;;  %v435_v51 = vshrl.u32 %v5202_v30, 16 }
  0x45   : > { %4453 = vmatprep.mubr.msk.bf16.mxu0 %vm519_vm2, %v410_v19  ;;  %v501_v45 = vor.u32 %v499_v32, %v497_v36  ;;  %v426_v49 = vsel %vm366_vm1, %v421_v37, %v425_v38  ;;  %v498_v52 = vsel %vm366_vm1, %v493_v35, %v497_v36  ;;  %v507_v53 = vshrl.u32 %v5196_v25, 16  ;;  %v5267_v36 = vld [vmem:[#allocation3 + $0xc] sm:$0x3] }
  0x46   : > { %v439_v55 = vshll.u32 %v5214_v48, 16  ;;  %v433_v58 = vrot.slane %v431_v40, 1  ;;  %v429_v60 = vor.u32 %v427_v47, %v425_v38  ;;  %v1455_v61 = vrot.slane %v4865_v56, 2  ;;  %v1285_v47 = vld [vmem:[%s5092_s9 + $0xc] sm:$0xf] }
  0x47   : > { %v506_v57 = vsel %vm366_vm1, %v501_v45, %v505_v39  ;;  %v513_v63 = vrot.slane %v511_v50, 1  ;;  %v509_v6 = vor.u32 %v507_v53, %v505_v39  ;;  %v443_v10 = vshrl.u32 %v5214_v48, 16 }
  0x48   : > { %v437_v0 = vor.u32 %v435_v51, %v433_v58  ;;  %v441_v2 = vrot.slane %v439_v55, 1  ;;  %4791 = vmatprep.subr.msk.bf16.mxu1 %vm574_vm0, %v1455_v61  ;;  %v434_v9 = vsel %vm366_vm1, %v429_v60, %v433_v58  ;;  %v4089_v12 = vcombine.low %v971_v7, %v5099_v3  ;;  %v5241_v3 = vld [vmem:[#allocation3 + $0x8] ss:$0 sps:$4 sm:$0xcc]   ;;  %v5308_v51 = vld [vmem:[%s5092_s9 + $0x18] sm:$0xff]   ;;  %v5330_v60 = vld [vmem:[%s5092_s9 + $0x30] sm:$0xff]  }
  0x49   : > { %v514_v14 = vsel %vm366_vm1, %v509_v6, %v513_v63  ;;  %v978_v19 = vrot.slane %v5095_v1, 1  ;;  %v1010_v23 = vrot.slane %v5196_v25, 1  ;;  %v1012_v24 = vrot.slane %v4863_v42, 1  ;;  %v5337_v63 = vld [vmem:[%s5092_s9 + $0x38] sm:$0xff]   ;;  %v5346_v7 = vld [vmem:[%s5092_s9 + $0x40] sm:$0xff]  }
  0x4a   : > { %v442_v11 = vsel %vm366_vm1, %v437_v0, %v441_v2  ;;  %v445_v15 = vor.u32 %v443_v10, %v441_v2  ;;  %v977_v22 = vrot.slane %v4089_v12, 1  ;;  %v1511_v29 = vsel %vm574_vm0, %v1455_v61, 0 }
  0x4b   : > { %4474 = vmatmul.mubr.msk.bf16.gmra.mxu1 %vm519_vm2, %v498_v52  ;;  %v5248_v27 = vsel %vm976_vm3, %v1010_v23, %v1012_v24  ;;  %v980_v31 = vrot.slane %v5120_v17, 1  ;;  %v1957_v34 = vsel %vm574_vm0, %v1727_v59, 0  ;;  %v990_v39 = vrot.slane %v5189_v18, 1  ;;  %v5314_v52 = vld [vmem:[%s5092_s9 + $0x20] sm:$0xff]  }
  0x4c   : > { %4454 = vmatmul.mubr.msk.bf16.gmra.mxu0 %vm519_vm2, %v418_v43  ;;  %4477 = vmatprep.mubr.msk.bf16.mxu1 %vm519_vm2, %v506_v57  ;;  %v450_v26 = vsel %vm366_vm1, %v445_v15, %v5126_v21  ;;  %v979_v28 = vsel %vm976_vm3, %v977_v22, %v978_v19  ;;  %v982_v21 = vrot.slane %v5137_v33, 1  ;;  %v992_v42 = vrot.slane %v5202_v30, 1  ;;  %v5323_v57 = vld [vmem:[%s5092_s9 + $0x28] sm:$0xff]  }
  0x4d   : > { %4457 = vmatprep.mubr.msk.bf16.mxu0 %vm519_vm2, %v426_v49  ;;  %v981_v32 = vsel %vm976_vm3, %v978_v19, %v980_v31  ;;  %v5304_v49 = vld [vmem:[%s5092_s9 + $0x10] sm:$0xff]   ;;  %v998_v55 = vrot.slane %v5115_v13, 1  ;;  %v2181_v56 = vrot.slane %v5308_v51, 2  ;;  %v2183_v59 = vrot.slane %v5314_v52, 2 }
  0x4e   : > { %v983_v35 = vsel %vm976_vm3, %v980_v31, %v982_v21  ;;  %v993_v43 = vsel %vm976_vm3, %v990_v39, %v992_v42  ;;  %v2187_v6 = vrot.slane %v5330_v60, 2  ;;  %v2189_v10 = vrot.slane %v5337_v63, 2 }
  0x4f   : > { %v5340_v0 = vsel %vm2177_vm4, %v2181_v56, %v2183_v59  ;;  %v2191_v19 = vrot.slane %v5346_v7, 2  ;;  %v1002_v22 = vrot.slane %v5146_v41, 1 }
  0x50   : > { %v5362_v15 = vsel %vm2177_vm4, %v2187_v6, %v2189_v10 }
  0x53   : > { %4478 = vmatmul.mubr.msk.bf16.gmra.mxu1 %vm519_vm2, %v514_v14  ;;  %v1000_v14 = vrot.slane %v5124_v20, 1 }
  0x54   : > { %4458 = vmatmul.mubr.msk.bf16.gmra.mxu0 %vm519_vm2, %v434_v9  ;;  %4483 = vmatprep.mubr.msk.bf16.mxu1 %vm519_vm2, %v5102_v5  ;;  %v2218_v5 = vrot.slane %v5241_v3, 2 }
  0x55   : > { %4461 = vmatprep.mubr.msk.bf16.mxu0 %vm519_vm2, %v442_v11  ;;  %v5354_v11 = vld [vmem:[%s5092_s9 + $0x48] sm:$0xff]   ;;  %v1001_v31 = vsel %vm976_vm3, %v998_v55, %v1000_v14 }
  0x56   : > { %v2193_v24 = vrot.slane %v5354_v11, 2 }
  0x5b   : > { %4484 = vmatmul.mubr.msk.bf16.vlgmr.msra.gmra.mxu1 %vm519_vm2, %v5095_v1  ;;  %v984_v1 = vrot.slane %v5152_v44, 1 }
  0x5c   : > { %4462 = vmatmul.mubr.msk.bf16.gmra.mxu0 %vm519_vm2, %v450_v26  ;;  %4558 = vmatpush3.bf16.msra.mxu1 %v1511_v29  ;;  %v5372_v26 = vsel %vm2177_vm4, %v2189_v10, %v2191_v19  ;;  %v5378_v29 = vsel %vm2177_vm4, %v2191_v19, %v2193_v24 }
  0x5d   : > { %4521 = vmatprep.mubr.msk.bf16.mxu0 %vm519_vm2, %v979_v28  ;;  %4487 = vmatprep.mubr.msk.bf16.mxu1 %vm519_vm2, %v5120_v17  ;;  %v986_v17 = vrot.slane %v5165_v54, 1  ;;  %v985_v37 = vsel %vm976_vm3, %v982_v21, %v984_v1  ;;  %v5375_v28 = vld [vmem:[%s5092_s9 + $0x50] sm:$0xff]   ;;  %v1003_v21 = vsel %vm976_vm3, %v1000_v14, %v1002_v22  ;;  %v1753_v14 = vshll.u32 %v5308_v51, 16 }
  0x5e   : > { %4793 = vmatprep.subr.msk.bf16.mxu1 %vm574_vm0, %v2218_v5 }
  0x5f   : > { %v987_v38 = vsel %vm976_vm3, %v984_v1, %v986_v17 }
  0x63   : > { %4488 = vmatmul.mubr.msk.bf16.gmra.mxu1 %vm519_vm2, %v5137_v33  ;;  %v988_v33 = vrot.slane %v5177_v4, 1 }
  0x64   : > { %4522 = vmatmul.mubr.msk.bf16.vlgmr.msra.gmra.mxu0 %vm519_vm2, %v981_v32  ;;  %4491 = vmatprep.mubr.msk.bf16.mxu1 %vm519_vm2, %v5152_v44  ;;  %v2195_v32 = vrot.slane %v5375_v28, 2 }
  0x65   : > { %4596 = vmatpush3.bf16.msra.mxu0 %v1957_v34  ;;  %4525 = vmatprep.mubr.msk.bf16.mxu0 %vm519_vm2, %v983_v35  ;;  %v989_v44 = vsel %vm976_vm3, %v986_v17, %v988_v33  ;;  %v991_v40 = vsel %vm976_vm3, %v988_v33, %v990_v39  ;;  %v1004_v35 = vrot.slane %v5156_v46, 1  ;;  %v1006_v17 = vrot.slane %v5172_v62, 1  ;;  %v5407_v39 = vld [vmem:[%s5092_s9 + $0x68] sm:$0xff]  }
  0x66   : > { %4794 = vmatprep.subr.msk.bf16.mxu0 %vm574_vm0, %v5267_v36  ;;  %v5389_v34 = vsel %vm2177_vm4, %v2193_v24, %v2195_v32 }
  0x67   : > { %v1005_v33 = vsel %vm976_vm3, %v1002_v22, %v1004_v35 }
  0x6b   : > { %4492 = vmatmul.mubr.msk.bf16.gmra.mxu1 %vm519_vm2, %v5165_v54  ;;  %v994_v54 = vrot.slane %v5214_v48, 1 }
  0x6c   : > { %4526 = vmatmul.mubr.msk.bf16.gmra.mxu0 %vm519_vm2, %v985_v37  ;;  %4495 = vmatprep.mubr.msk.bf16.mxu1 %vm519_vm2, %v5177_v4  ;;  %v2172_v4 = vld [vmem:[%s5092_s9 + $0x8] sm:$0xc] }
  0x6d   : > { %4529 = vmatprep.mubr.msk.bf16.mxu0 %vm519_vm2, %v987_v38  ;;  %v995_v45 = vsel %vm976_vm3, %v992_v42, %v994_v54  ;;  %v4165_v50 = vcombine.low %v2172_v4, %v1285_v47  ;;  %v1284_v37 = vld [vmem:[%s5092_s9 + $0x8] sm:$0xe]  ;;  %v5403_v38 = vld [vmem:[%s5092_s9 + $0x60] sm:$0xff]  }
  0x6e   : > { %v4108_v42 = vcombine.low %v1284_v37, %v1285_v47  ;;  %v1741_v47 = vshrl.u32 %v5304_v49, 16 }
  0x6f   : > { %v2178_v53 = vrot.slane %v4165_v50, 2  ;;  %v1744_v50 = vshll.u32 %v5304_v49, 16 }
  0x70   : > { %v1733_v4 = vshrl.u32 %v4108_v42, 16 }
  0x73   : > { %4496 = vmatmul.mubr.msk.bf16.gmra.mxu1 %vm519_vm2, %v5189_v18  ;;  %v2179_v18 = vrot.slane %v5304_v49, 2 }
  0x74   : > { %4530 = vmatmul.mubr.msk.bf16.gmra.mxu0 %vm519_vm2, %v989_v44  ;;  %4499 = vmatprep.mubr.msk.bf16.mxu1 %vm519_vm2, %v5202_v30  ;;  %v996_v30 = vrot.slane %v5107_v8, 1  ;;  %v1007_v44 = vsel %vm976_vm3, %v1004_v35, %v1006_v17  ;;  %v5459_v35 = vld [vmem:[%s5092_s9 + $0x80] sm:$0xff]  }
  0x75   : > { %4533 = vmatprep.mubr.msk.bf16.mxu0 %vm519_vm2, %v991_v40  ;;  %v5326_v58 = vsel %vm2177_vm4, %v2178_v53, %v2179_v18  ;;  %v5333_v61 = vsel %vm2177_vm4, %v2179_v18, %v2181_v56  ;;  %v2199_v40 = vrot.slane %v5403_v38, 2  ;;  %v1415_v18 = vrot.slane %v4108_v42, 1  ;;  %v5429_v53 = vld [vmem:[%s5092_s9 + $0x70] sm:$0xff]  }
  0x76   : > { %v999_v2 = vsel %vm976_vm3, %v996_v30, %v998_v55 }
  0x7b   : > { %4500 = vmatmul.mubr.msk.bf16.gmra.mxu1 %vm519_vm2, %v5214_v48  ;;  %v997_v48 = vsel %vm976_vm3, %v994_v54, %v996_v30  ;;  %v1416_v30 = vrot.slane %v5304_v49, 1 }
  0x7c   : > { %4534 = vmatmul.mubr.msk.bf16.gmra.mxu0 %vm519_vm2, %v993_v43  ;;  %4503 = vmatprep.mubr.msk.bf16.mxu1 %vm519_vm2, %v5107_v8  ;;  %v2185_v8 = vrot.slane %v5323_v57, 2 }
  0x7d   : > { %4537 = vmatprep.mubr.msk.bf16.mxu0 %vm519_vm2, %v995_v45  ;;  %v1736_v45 = vshll.u32 %v4108_v42, 16  ;;  %v1417_v49 = vsel %vm976_vm3, %v1415_v18, %v1416_v30  ;;  %v1768_v18 = vshrl.u32 %v5323_v57, 16 }
  0x7e   : > { %v5349_v9 = vsel %vm2177_vm4, %v2183_v59, %v2185_v8  ;;  %v5357_v12 = vsel %vm2177_vm4, %v2185_v8, %v2187_v6  ;;  %v5436_v59 = vld [vmem:[%s5092_s9 + $0x78] sm:$0xff]   ;;  %v1743_v8 = vrot.slane %v1741_v47, 1  ;;  %v2203_v6 = vrot.slane %v5429_v53, 2 }
  0x83   : > { %4504 = vmatmul.mubr.msk.bf16.gmra.mxu1 %vm519_vm2, %v5115_v13  ;;  %v5382_v13 = vld [vmem:[%s5092_s9 + $0x58] sm:$0xff]  }
  0x84   : > { %4538 = vmatmul.mubr.msk.bf16.gmra.mxu0 %vm519_vm2, %v997_v48  ;;  %4507 = vmatprep.mubr.msk.bf16.mxu1 %vm519_vm2, %v5124_v20  ;;  %v2197_v20 = vrot.slane %v5382_v13, 2  ;;  %v1738_v48 = vrot.slane %v1736_v45, 2 }
  0x85   : > { %4541 = vmatprep.mubr.msk.bf16.mxu0 %vm519_vm2, %v999_v2  ;;  %v1746_v2 = vrot.slane %v1744_v50, 2 }
  0x86   : > { %v5394_v1 = vsel %vm2177_vm4, %v2195_v32, %v2197_v20  ;;  %v5414_v54 = vsel %vm2177_vm4, %v2197_v20, %v2199_v40  ;;  %v1418_v32 = vrot.slane %v5308_v51, 1  ;;  %v1420_v20 = vrot.slane %v5314_v52, 1 }
  0x87   : > { %v1747_v24 = vor.u32 %v1746_v2, %v1743_v8  ;;  %v2712_v2 = vsel %vm574_vm0, %v5267_v36, 0 }
  0x8b   : > { %4508 = vmatmul.mubr.msk.bf16.gmra.mxu1 %vm519_vm2, %v5146_v41  ;;  %v2201_v41 = vrot.slane %v5407_v39, 2 }
  0x8c   : > { %4542 = vmatmul.mubr.msk.bf16.gmra.mxu0 %vm519_vm2, %v1001_v31  ;;  %4511 = vmatprep.mubr.msk.bf16.mxu1 %vm519_vm2, %v5156_v46  ;;  %v1008_v46 = vrot.slane %v5186_v16, 1  ;;  %v1759_v31 = vshrl.u32 %v5314_v52, 16 }
  0x8d   : > { %4545 = vmatprep.mubr.msk.bf16.mxu0 %vm519_vm2, %v1003_v21  ;;  %v5419_v43 = vsel %vm2177_vm4, %v2199_v40, %v2201_v41  ;;  %v5443_v10 = vsel %vm2177_vm4, %v2201_v41, %v2203_v6  ;;  %v1762_v21 = vshll.u32 %v5314_v52, 16  ;;  %v2207_v41 = vrot.slane %v5459_v35, 2 }
  0x8e   : > { %v1009_v55 = vsel %vm976_vm3, %v1006_v17, %v1008_v46  ;;  %v1011_v56 = vsel %vm976_vm3, %v1008_v46, %v1010_v23  ;;  %v1750_v23 = vshrl.u32 %v5308_v51, 16  ;;  %v5461_v17 = vld [vmem:[#allocation3 + $0xc] ss:$0 sps:$4 sm:$0xcc]   ;;  %v1761_v40 = vrot.slane %v1759_v31, 1 }
  0x8f   : > { %v1764_v42 = vrot.slane %v1762_v21, 2  ;;  %v1419_v46 = vsel %vm976_vm3, %v1416_v30, %v1418_v32  ;;  %v2274_v52 = vsel %vm574_vm0, %v2218_v5, 0  ;;  %v3106_v45 = vrot.slane %v5461_v17, 2  ;;  %v5507_v31 = vld [vmem:[#allocation3 + $0x10] sm:$0x3] }
  0x90   : > { %v1752_v37 = vrot.slane %v1750_v23, 1  ;;  %v1771_v30 = vshll.u32 %v5323_v57, 16  ;;  %v1777_v5 = vshrl.u32 %v5330_v60, 16  ;;  %v3475_v17 = vsel %vm574_vm0, %v5507_v31, 0 }
  0x93   : > { %4512 = vmatmul.mubr.msk.bf16.gmra.mxu1 %vm519_vm2, %v5172_v62  ;;  %v1735_v62 = vrot.slane %v1733_v4, 1  ;;  %v1421_v4 = vsel %vm976_vm3, %v1418_v32, %v1420_v20 }
  0x94   : > { %4546 = vmatmul.mubr.msk.bf16.gmra.mxu0 %vm519_vm2, %v1005_v33  ;;  %4515 = vmatprep.mubr.msk.bf16.mxu1 %vm519_vm2, %v5186_v16  ;;  %v2205_v16 = vrot.slane %v5436_v59, 2  ;;  %v1755_v33 = vrot.slane %v1753_v14, 2 }
  0x95   : > { %4549 = vmatprep.mubr.msk.bf16.mxu0 %vm519_vm2, %v1007_v44  ;;  %v1739_v22 = vor.u32 %v1738_v48, %v1735_v62  ;;  %v1424_v62 = vrot.slane %v5330_v60, 1  ;;  %v5493_v48 = vld [vmem:[%s5092_s9 + $0x90] sm:$0xff]  }
  0x96   : > { %v5449_v19 = vsel %vm2177_vm4, %v2203_v6, %v2205_v16  ;;  %v5478_v47 = vsel %vm2177_vm4, %v2205_v16, %v2207_v41  ;;  %v1756_v50 = vor.u32 %v1755_v33, %v1752_v37  ;;  %v1770_v6 = vrot.slane %v1768_v18, 1 }
  0x97   : > { %v1748_v44 = vsel %vm1731_vm5, %v1739_v22, %v1747_v24  ;;  %v1773_v16 = vrot.slane %v1771_v30, 2  ;;  %v1786_v37 = vshrl.u32 %v5337_v63, 16  ;;  %v1789_v33 = vshll.u32 %v5337_v63, 16 }
  0x98   : > { %v1757_v8 = vsel %vm1731_vm5, %v1747_v24, %v1756_v50 }
  0x99   : > { %v1774_v32 = vor.u32 %v1773_v16, %v1770_v6  ;;  %v1432_v6 = vrot.slane %v5375_v28, 1  ;;  %v5544_v16 = vld [vmem:[%s5092_s9 + $0x14] sm:$0xf] }
  0x9b   : > { %4516 = vmatmul.mubr.msk.bf16.gmra.mxu1 %vm519_vm2, %v5196_v25  ;;  %v5464_v25 = vld [vmem:[%s5092_s9 + $0x88] sm:$0xff]  }
  0x9c   : > { %4550 = vmatmul.mubr.msk.bf16.gmra.mxu0 %vm519_vm2, %v1009_v55  ;;  %4559 = vmatprep.mubr.msk.bf16.mxu1 %vm519_vm2, %v1417_v49  ;;  %v2209_v51 = vrot.slane %v5464_v25, 2  ;;  %v1780_v55 = vshll.u32 %v5330_v60, 16  ;;  %v5502_v49 = vld [vmem:[%s5092_s9 + $0x98] ss:$0 sps:$4 sm:$0x33]   ;;  %v2211_v60 = vrot.slane %v5493_v48, 2 }
  0x9d   : > { %4553 = vmatprep.mubr.msk.bf16.mxu0 %vm519_vm2, %v1011_v56  ;;  %v1422_v56 = vrot.slane %v5323_v57, 1  ;;  %v1779_v57 = vrot.slane %v1777_v5, 1  ;;  %v2213_v21 = vrot.slane %v5502_v49, 2 }
  0x9e   : > { %v5484_v3 = vsel %vm2177_vm4, %v2207_v41, %v2209_v51  ;;  %v1782_v14 = vrot.slane %v1780_v55, 2  ;;  %v5513_v24 = vsel %vm2177_vm4, %v2209_v51, %v2211_v60  ;;  %v1426_v41 = vrot.slane %v5337_v63, 1 }
  0x9f   : > { %v1423_v22 = vsel %vm976_vm3, %v1420_v20, %v1422_v56  ;;  %v1425_v36 = vsel %vm976_vm3, %v1422_v56, %v1424_v62  ;;  %v5519_v20 = vsel %vm2177_vm4, %v2211_v60, %v2213_v21 }
  0xa0   : > { %v1427_v5 = vsel %vm976_vm3, %v1424_v62, %v1426_v41  ;;  %v1816_v62 = vshll.u32 %v5375_v28, 16 }
  0xa3   : > { %4560 = vmatmul.mubr.msk.bf16.vlgmr.msra.gmra.mxu1 %vm519_vm2, %v1419_v46  ;;  %v1428_v46 = vrot.slane %v5346_v7, 1 }
  0xa4   : > { %4554 = vmatmul.mubr.msk.bf16.gmra.mxu0 %vm519_vm2, %v5248_v27  ;;  %v1765_v27 = vor.u32 %v1764_v42, %v1761_v40  ;;  %4634 = vmatpush3.bf16.msra.mxu1 %v2274_v52  ;;  %v1795_v40 = vshrl.u32 %v5346_v7, 16  ;;  %v1798_v42 = vshll.u32 %v5346_v7, 16  ;;  %v1788_v52 = vrot.slane %v1786_v37, 1 }
  0xa5   : > { %4597 = vmatprep.mubr.msk.bf16.mxu0 %vm519_vm2, %v1748_v44  ;;  %4563 = vmatprep.mubr.msk.bf16.mxu1 %vm519_vm2, %v1421_v4  ;;  %v1783_v44 = vor.u32 %v1782_v14, %v1779_v57  ;;  %v1791_v4 = vrot.slane %v1789_v33, 2  ;;  %v1429_v55 = vsel %vm976_vm3, %v1426_v41, %v1428_v46  ;;  %v1804_v7 = vshrl.u32 %v5354_v11, 16  ;;  %v5554_v33 = vld [vmem:[%s5092_s9 + $0x20] sm:$0xff]  }
  0xa6   : > { %4795 = vmatprep.subr.msk.bf16.mxu1 %vm574_vm0, %v3106_v45  ;;  %v1766_v23 = vsel %vm1731_vm5, %v1756_v50, %v1765_v27  ;;  %v1775_v51 = vsel %vm1731_vm5, %v1765_v27, %v1774_v32  ;;  %v1797_v18 = vrot.slane %v1795_v40, 1  ;;  %v1800_v30 = vrot.slane %v1798_v42, 2 }
  0xa7   : > { %v1784_v50 = vsel %vm1731_vm5, %v1774_v32, %v1783_v44  ;;  %v1792_v63 = vor.u32 %v1791_v4, %v1788_v52  ;;  %v1807_v27 = vshll.u32 %v5354_v11, 16  ;;  %v1806_v14 = vrot.slane %v1804_v7, 1 }
  0xa8   : > { %v1801_v56 = vor.u32 %v1800_v30, %v1797_v18  ;;  %v1818_v37 = vrot.slane %v1816_v62, 2  ;;  %v3386_v42 = vrot.slane %v5554_v33, 3  ;;  %v1825_v52 = vshll.u32 %v5382_v13, 16 }
  0xa9   : > { %v1793_v57 = vsel %vm1731_vm5, %v1783_v44, %v1792_v63  ;;  %v1809_v60 = vrot.slane %v1807_v27, 2  ;;  %v1834_v18 = vshll.u32 %v5403_v38, 16 }
  0xaa   : > { %v1827_v27 = vrot.slane %v1825_v52, 2 }
  0xab   : > { %4564 = vmatmul.mubr.msk.bf16.gmra.mxu1 %vm519_vm2, %v1423_v22  ;;  %v5549_v22 = vld [vmem:[%s5092_s9 + $0x18] sm:$0xff]   ;;  %v1810_v41 = vor.u32 %v1809_v60, %v1806_v14 }
  0xac   : > { %4598 = vmatmul.mubr.msk.bf16.vlgmr.msra.gmra.mxu0 %vm519_vm2, %v1757_v8  ;;  %4567 = vmatprep.mubr.msk.bf16.mxu1 %vm519_vm2, %v1425_v36  ;;  %v1813_v8 = vshrl.u32 %v5375_v28, 16  ;;  %v1802_v36 = vsel %vm1731_vm5, %v1792_v63, %v1801_v56  ;;  %v3384_v40 = vrot.slane %v5549_v22, 3 }
  0xad   : > { %4672 = vmatpush3.bf16.msra.mxu0 %v2712_v2  ;;  %4601 = vmatprep.mubr.msk.bf16.mxu0 %vm519_vm2, %v1766_v23  ;;  %v1430_v2 = vrot.slane %v5354_v11, 1  ;;  %v3377_v23 = vld [vmem:[%s5092_s9 + $0x10] sm:$0x8]  ;;  %v1811_v63 = vsel %vm1731_vm5, %v1801_v56, %v1810_v41 }
  0xae   : > { %4796 = vmatprep.subr.msk.bf16.mxu0 %vm574_vm0, %v5507_v31  ;;  %v4242_v21 = vcombine.low %v3377_v23, %v5544_v16  ;;  %v1815_v32 = vrot.slane %v1813_v8, 1  ;;  %v5571_v30 = vsel %vm3382_vm6, %v3384_v40, %v3386_v42  ;;  %v5578_v8 = vld [vmem:[%s5092_s9 + $0x28] sm:$0xff]   ;;  %v1836_v23 = vrot.slane %v1834_v18, 2 }
  0xaf   : > { %v1431_v11 = vsel %vm976_vm3, %v1428_v46, %v1430_v2  ;;  %v1433_v44 = vsel %vm976_vm3, %v1430_v2, %v1432_v6  ;;  %v3388_v60 = vrot.slane %v5578_v8, 3 }
  0xb0   : > { %v3383_v28 = vrot.slane %v4242_v21, 3  ;;  %v1819_v4 = vor.u32 %v1818_v37, %v1815_v32  ;;  %v1840_v21 = vshrl.u32 %v5407_v39, 16  ;;  %v1849_v37 = vshrl.u32 %v5429_v53, 16 }
  0xb1   : > { %v5593_v32 = vsel %vm3382_vm6, %v3386_v42, %v3388_v60 }
  0xb2   : > { %v5565_v46 = vsel %vm3382_vm6, %v3383_v28, %v3384_v40  ;;  %v1820_v62 = vsel %vm1731_vm5, %v1810_v41, %v1819_v4  ;;  %v1438_v40 = vrot.slane %v5407_v39, 1  ;;  %v1842_v41 = vrot.slane %v1840_v21, 1 }
  0xb3   : > { %4568 = vmatmul.mubr.msk.bf16.gmra.mxu1 %vm519_vm2, %v1427_v5  ;;  %v1434_v5 = vrot.slane %v5382_v13, 1 }
  0xb4   : > { %4602 = vmatmul.mubr.msk.bf16.gmra.mxu0 %vm519_vm2, %v1775_v51  ;;  %4571 = vmatprep.mubr.msk.bf16.mxu1 %vm519_vm2, %v1429_v55  ;;  %v1822_v51 = vshrl.u32 %v5382_v13, 16  ;;  %v1436_v55 = vrot.slane %v5403_v38, 1 }
  0xb5   : > { %4605 = vmatprep.mubr.msk.bf16.mxu0 %vm519_vm2, %v1784_v50  ;;  %v1831_v50 = vshrl.u32 %v5403_v38, 16  ;;  %v1435_v14 = vsel %vm976_vm3, %v1432_v6, %v1434_v5 }
  0xb6   : > { %v1824_v7 = vrot.slane %v1822_v51, 1  ;;  %v1437_v13 = vsel %vm976_vm3, %v1434_v5, %v1436_v55  ;;  %v1439_v5 = vsel %vm976_vm3, %v1436_v55, %v1438_v40  ;;  %v1442_v55 = vrot.slane %v5436_v59, 1 }
  0xb7   : > { %v1833_v2 = vrot.slane %v1831_v50, 1  ;;  %v1851_v50 = vrot.slane %v1849_v37, 1 }
  0xb8   : > { %v1828_v56 = vor.u32 %v1827_v27, %v1824_v7  ;;  %v1867_v27 = vshrl.u32 %v5459_v35, 16 }
  0xb9   : > { %v1837_v6 = vor.u32 %v1836_v23, %v1833_v2  ;;  %v1444_v2 = vrot.slane %v5459_v35, 1 }
  0xba   : > { %v1829_v42 = vsel %vm1731_vm5, %v1819_v4, %v1828_v56 }
  0xbb   : > { %4572 = vmatmul.mubr.msk.bf16.gmra.mxu1 %vm519_vm2, %v1431_v11  ;;  %v1852_v11 = vshll.u32 %v5429_v53, 16  ;;  %v1838_v52 = vsel %vm1731_vm5, %v1828_v56, %v1837_v6  ;;  %v1869_v56 = vrot.slane %v1867_v27, 1  ;;  %v1445_v37 = vsel %vm976_vm3, %v1442_v55, %v1444_v2 }
  0xbc   : > { %4606 = vmatmul.mubr.msk.bf16.gmra.mxu0 %vm519_vm2, %v1793_v57  ;;  %4575 = vmatprep.mubr.msk.bf16.mxu1 %vm519_vm2, %v1433_v44  ;;  %v5582_v57 = vld [vmem:[%s5092_s9 + $0x30] sm:$0xff]   ;;  %v1440_v44 = vrot.slane %v5429_v53, 1  ;;  %v1861_v53 = vshll.u32 %v5436_v59, 16 }
  0xbd   : > { %4609 = vmatprep.mubr.msk.bf16.mxu0 %vm519_vm2, %v1802_v36  ;;  %v6462_v38 = vrot.slane %v5582_v57, 3  ;;  %v1843_v36 = vshll.u32 %v5407_v39, 16  ;;  %v1854_v18 = vrot.slane %v1852_v11, 2  ;;  %v1858_v39 = vshrl.u32 %v5436_v59, 16 }
  0xbe   : > { %v1876_v59 = vshrl.u32 %v5464_v25, 16 }
  0xbf   : > { %v5601_v28 = vsel %vm3382_vm6, %v3388_v60, %v6462_v38  ;;  %v1845_v51 = vrot.slane %v1843_v36, 2  ;;  %v1855_v4 = vor.u32 %v1854_v18, %v1851_v50  ;;  %v1863_v60 = vrot.slane %v1861_v53, 2 }
  0xc0   : > { %v1443_v36 = vsel %vm976_vm3, %v1440_v44, %v1442_v55  ;;  %v2489_v55 = vld [vmem:[%s5092_s9 + $0x10] sm:$0xc] }
  0xc1   : > { %v1846_v7 = vor.u32 %v1845_v51, %v1842_v41  ;;  %v1448_v41 = vrot.slane %v5493_v48, 1 }
  0xc3   : > { %4576 = vmatmul.mubr.msk.bf16.gmra.mxu1 %vm519_vm2, %v1435_v14  ;;  %v1847_v23 = vsel %vm1731_vm5, %v1837_v6, %v1846_v7  ;;  %v1860_v14 = vrot.slane %v1858_v39, 1  ;;  %v4886_v39 = vld [vmem:[%s5092_s9 + $0x98] ss:$0 sps:$4 sm:$0x11]  }
  0xc4   : > { %4610 = vmatmul.mubr.msk.bf16.gmra.mxu0 %vm519_vm2, %v1811_v63  ;;  %4579 = vmatprep.mubr.msk.bf16.mxu1 %vm519_vm2, %v1437_v13  ;;  %v1441_v63 = vsel %vm976_vm3, %v1438_v40, %v1440_v44  ;;  %v1856_v13 = vsel %vm1731_vm5, %v1846_v7, %v1855_v4  ;;  %v1885_v40 = vshrl.u32 %v5493_v48, 16  ;;  %v1446_v44 = vrot.slane %v5464_v25, 1 }
  0xc5   : > { %4613 = vmatprep.mubr.msk.bf16.mxu0 %vm519_vm2, %v1820_v62  ;;  %v1870_v62 = vshll.u32 %v5459_v35, 16  ;;  %v1864_v11 = vor.u32 %v1863_v60, %v1860_v14  ;;  %v1879_v35 = vshll.u32 %v5464_v25, 16 }
  0xc6   : > { %v1447_v7 = vsel %vm976_vm3, %v1444_v2, %v1446_v44  ;;  %v1449_v53 = vsel %vm976_vm3, %v1446_v44, %v1448_v41  ;;  %v5693_v44 = vld [vmem:[%s5092_s9 + $0x48] sm:$0xff]  }
  0xc7   : > { %v1872_v21 = vrot.slane %v1870_v62, 2  ;;  %v1865_v51 = vsel %vm1731_vm5, %v1855_v4, %v1864_v11  ;;  %v1881_v50 = vrot.slane %v1879_v35, 2  ;;  %v1897_v4 = vshll.u32 %v5502_v49, 16 }
  0xc8   : > { %v1450_v62 = vrot.slane %v4886_v39, 1 }
  0xc9   : > { %v1873_v6 = vor.u32 %v1872_v21, %v1869_v56  ;;  %v1899_v14 = vrot.slane %v1897_v4, 2 }
  0xca   : > { %v1451_v56 = vsel %vm976_vm3, %v1448_v41, %v1450_v62 }
  0xcb   : > { %4580 = vmatmul.mubr.msk.bf16.gmra.mxu1 %vm519_vm2, %v1439_v5  ;;  %v1874_v18 = vsel %vm1731_vm5, %v1864_v11, %v1873_v6  ;;  %v1887_v5 = vrot.slane %v1885_v40, 1  ;;  %v3162_v11 = vsel %vm574_vm0, %v3106_v45, 0  ;;  %v5689_v40 = vld [vmem:[%s5092_s9 + $0x40] sm:$0xff]  }
  0xcc   : > { %4614 = vmatmul.mubr.msk.bf16.gmra.mxu0 %vm519_vm2, %v1829_v42  ;;  %4583 = vmatprep.mubr.msk.bf16.mxu1 %vm519_vm2, %v1441_v63  ;;  %v1888_v42 = vshll.u32 %v5493_v48, 16  ;;  %v1894_v48 = vshrl.u32 %v5502_v49, 16 }
  0xcd   : > { %4617 = vmatprep.mubr.msk.bf16.mxu0 %vm519_vm2, %v1838_v52  ;;  %v1878_v52 = vrot.slane %v1876_v59, 1  ;;  %v2623_v59 = vrot.slane %v5554_v33, 2 }
  0xce   : > { %v1890_v63 = vrot.slane %v1888_v42, 2 }
  0xcf   : > { %v1882_v25 = vor.u32 %v1881_v50, %v1878_v52  ;;  %v2633_v52 = vrot.slane %v5693_v44, 2 }
  0xd0   : > { %v1891_v27 = vor.u32 %v1890_v63, %v1887_v5  ;;  %v5715_v63 = vld [vmem:[%s5092_s9 + $0x50] sm:$0xff]  }
  0xd1   : > { %v1883_v2 = vsel %vm1731_vm5, %v1873_v6, %v1882_v25  ;;  %v5677_v6 = vld [vmem:[%s5092_s9 + $0x38] sm:$0xff]  }
  0xd2   : > { %v1892_v60 = vsel %vm1731_vm5, %v1882_v25, %v1891_v27 }
  0xd3   : > { %4584 = vmatmul.mubr.msk.bf16.gmra.mxu1 %vm519_vm2, %v1443_v36  ;;  %v2621_v36 = vrot.slane %v5549_v22, 2 }
  0xd4   : > { %4618 = vmatmul.mubr.msk.bf16.gmra.mxu0 %vm519_vm2, %v1847_v23  ;;  %4587 = vmatprep.mubr.msk.bf16.mxu1 %vm519_vm2, %v1445_v37  ;;  %v1896_v23 = vrot.slane %v1894_v48, 1  ;;  %v2635_v48 = vrot.slane %v5715_v63, 2 }
  0xd5   : > { %4621 = vmatprep.mubr.msk.bf16.mxu0 %vm519_vm2, %v1856_v13  ;;  %v5649_v13 = vcombine.low %v2489_v55, %v5544_v16  ;;  %v2624_v35 = vsel %vm2177_vm4, %v2621_v36, %v2623_v59 }
  0xd6   : > { %v1900_v49 = vor.u32 %v1899_v14, %v1896_v23  ;;  %v2636_v23 = vsel %vm2177_vm4, %v2633_v52, %v2635_v48  ;;  %v5747_v14 = vld [vmem:[%s5092_s9 + $0x60] sm:$0xff]  }
  0xd7   : > { %v2620_v21 = vrot.slane %v5649_v13, 2 }
  0xd8   : > { %v1901_v16 = vsel %vm1731_vm5, %v1891_v27, %v1900_v49  ;;  %v5755_v49 = vld [vmem:[%s5092_s9 + $0x68] sm:$0xff]  }
  0xd9   : > { %v2622_v37 = vsel %vm2177_vm4, %v2620_v21, %v2621_v36  ;;  %v2639_v36 = vrot.slane %v5747_v14, 2 }
  0xdb   : > { %4588 = vmatmul.mubr.msk.bf16.gmra.mxu1 %vm519_vm2, %v1447_v7 }
  0xdc   : > { %4622 = vmatmul.mubr.msk.bf16.gmra.mxu0 %vm519_vm2, %v1865_v51  ;;  %4591 = vmatprep.mubr.msk.bf16.mxu1 %vm519_vm2, %v1449_v53  ;;  %v5723_v53 = vld [vmem:[%s5092_s9 + $0x58] sm:$0xff]  }
  0xdd   : > { %4625 = vmatprep.mubr.msk.bf16.mxu0 %vm519_vm2, %v1874_v18  ;;  %v2637_v62 = vrot.slane %v5723_v53, 2 }
  0xe3   : > { %4592 = vmatmul.mubr.msk.bf16.gmra.mxu1 %vm519_vm2, %v1451_v56 }
  0xe4   : > { %4626 = vmatmul.mubr.msk.bf16.gmra.mxu0 %vm519_vm2, %v1883_v2  ;;  %4635 = vmatprep.mubr.msk.bf16.mxu1 %vm519_vm2, %v5326_v58  ;;  %v2625_v58 = vrot.slane %v5578_v8, 2 }
  0xe5   : > { %4629 = vmatprep.mubr.msk.bf16.mxu0 %vm519_vm2, %v1892_v60 }
  0xe6   : > { %v2626_v45 = vsel %vm2177_vm4, %v2623_v59, %v2625_v58 }
  0xeb   : > { %4636 = vmatmul.mubr.msk.bf16.vlgmr.msra.gmra.mxu1 %vm519_vm2, %v5333_v61  ;;  %v2627_v61 = vrot.slane %v5582_v57, 2 }
  0xec   : > { %4630 = vmatmul.mubr.msk.bf16.gmra.mxu0 %vm519_vm2, %v1901_v16  ;;  %4710 = vmatpush3.bf16.msra.mxu1 %v3162_v11  ;;  %v2641_v11 = vrot.slane %v5755_v49, 2 }
  0xed   : > { %4673 = vmatprep.mubr.msk.bf16.mxu0 %vm519_vm2, %v2622_v37  ;;  %4639 = vmatprep.mubr.msk.bf16.mxu1 %vm519_vm2, %v5340_v0  ;;  %v2629_v0 = vrot.slane %v5677_v6, 2  ;;  %v2628_v31 = vsel %vm2177_vm4, %v2625_v58, %v2627_v61 }
  0xef   : > { %v2630_v42 = vsel %vm2177_vm4, %v2627_v61, %v2629_v0 }
  0xf3   : > { %4640 = vmatmul.mubr.msk.bf16.gmra.mxu1 %vm519_vm2, %v5349_v9  ;;  %v2631_v9 = vrot.slane %v5689_v40, 2 }
  0xf4   : > { %4674 = vmatmul.mubr.msk.bf16.vlgmr.msra.gmra.mxu0 %vm519_vm2, %v2624_v35  ;;  %4643 = vmatprep.mubr.msk.bf16.mxu1 %vm519_vm2, %v5357_v12  ;;  %v2640_v35 = vsel %vm2177_vm4, %v2637_v62, %v2639_v36 }
  0xf5   : > { %4748 = vmatpush3.bf16.msra.mxu0 %v3475_v17  ;;  %4677 = vmatprep.mubr.msk.bf16.mxu0 %vm519_vm2, %v2626_v45  ;;  %v2632_v5 = vsel %vm2177_vm4, %v2629_v0, %v2631_v9  ;;  %v5779_v17 = vld [vmem:[%s5092_s9 + $0x70] sm:$0xff]   ;;  %v5787_v0 = vld [vmem:[%s5092_s9 + $0x78] sm:$0xff]  }
  0xfb   : > { %v5700_v51 = vpop.f32.mrf.mxu1  ;;  %4644 = vmatmul.mubr.msk.bf16.gmra.mxu1 %vm519_vm2, %v5362_v15  ;;  %v2634_v15 = vsel %vm2177_vm4, %v2631_v9, %v2633_v52 }
  0xfc   : > { %v5695_v41 = vpop.f32.mrf.mxu0  ;;  %4678 = vmatmul.mubr.msk.bf16.gmra.mxu0 %vm519_vm2, %v2628_v31  ;;  %4647 = vmatprep.mubr.msk.bf16.mxu1 %vm519_vm2, %v5372_v26 }
  0xfd   : > { %4681 = vmatprep.mubr.msk.bf16.mxu0 %vm519_vm2, %v2630_v42  ;;  %v5709_v50 = vpop.f32.mrf.mxu1  ;;  %v2643_v42 = vrot.slane %v5779_v17, 2 }
  0xfe   : > { %v5704_v12 = vpop.f32.mrf.mxu0 }
  0xff   : > { %v5717_v7 = vpop.f32.mrf.mxu1 }
 0x100   : > { %v5711_v18 = vpop.f32.mrf.mxu0 }
 0x101   : > { %v5725_v25 = vpop.f32.mrf.mxu1 }
 0x102   : > { %v5719_v39 = vpop.f32.mrf.mxu0 }
 0x103   : > { %v5732_v4 = vpop.f32.mrf.mxu1  ;;  %4648 = vmatmul.mubr.msk.bf16.gmra.mxu1 %vm519_vm2, %v5378_v29  ;;  %v2638_v29 = vsel %vm2177_vm4, %v2635_v48, %v2637_v62  ;;  %v2644_v62 = vsel %vm2177_vm4, %v2641_v11, %v2643_v42 }
 0x104   : > { %v5727_v26 = vpop.f32.mrf.mxu0  ;;  %4682 = vmatmul.mubr.msk.bf16.gmra.mxu0 %vm519_vm2, %v2632_v5  ;;  %6470 = vst [vmem:[#allocation9_spill] sm:$0xff] %v5732_v4  ;;  %4651 = vmatprep.mubr.msk.bf16.mxu1 %vm519_vm2, %v5389_v34  ;;  %v2645_v5 = vrot.slane %v5787_v0, 2 }
 0x105   : > { %4685 = vmatprep.mubr.msk.bf16.mxu0 %vm519_vm2, %v2634_v15  ;;  %v5741_v55 = vpop.f32.mrf.mxu1 }
 0x106   : > { %v5736_v27 = vpop.f32.mrf.mxu0  ;;  %6471 = vst [vmem:[#allocation10_spill] sm:$0xff] %v5741_v55 }
 0x107   : > { %v5749_v60 = vpop.f32.mrf.mxu1 }
 0x108   : > { %v5743_v2 = vpop.f32.mrf.mxu0  ;;  %6472 = vst [vmem:[#allocation11_spill] sm:$0xff] %v5749_v60 }
 0x109   : > { %v5757_v21 = vpop.f32.mrf.mxu1 }
 0x10a   : > { %v5751_v56 = vpop.f32.mrf.mxu0  ;;  %6473 = vst [vmem:[#allocation12_spill] sm:$0xff] %v5757_v21  ;;  %v5851_v21 = vld [vmem:[%s5092_s9 + $0x98] sm:$0xff]  }
 0x10b   : > { %v5764_v16 = vpop.f32.mrf.mxu1  ;;  %4652 = vmatmul.mubr.msk.bf16.gmra.mxu1 %vm519_vm2, %v5394_v1  ;;  %v2642_v1 = vsel %vm2177_vm4, %v2639_v36, %v2641_v11 }
 0x10c   : > { %v5759_v34 = vpop.f32.mrf.mxu0  ;;  %4686 = vmatmul.mubr.msk.bf16.gmra.mxu0 %vm519_vm2, %v2636_v23  ;;  %6474 = vst [vmem:[#allocation13_spill] sm:$0xff] %v5764_v16  ;;  %4655 = vmatprep.mubr.msk.bf16.mxu1 %vm519_vm2, %v5414_v54  ;;  %v5811_v23 = vld [vmem:[%s5092_s9 + $0x80] sm:$0xff]   ;;  %v5845_v16 = vld [vmem:[%s5092_s9 + $0x90] sm:$0xff]  }
 0x10d   : > { %4689 = vmatprep.mubr.msk.bf16.mxu0 %vm519_vm2, %v2638_v29  ;;  %v5773_v59 = vpop.f32.mrf.mxu1  ;;  %6480 = vst [vmem:[#allocation19_spill] sm:$0xff] %v5811_v23 }
 0x10e   : > { %v5768_v37 = vpop.f32.mrf.mxu0  ;;  %6475 = vst [vmem:[#allocation14_spill] sm:$0xff] %v5773_v59 }
 0x10f   : > { %v5781_v45 = vpop.f32.mrf.mxu1 }
 0x110   : > { %v5775_v58 = vpop.f32.mrf.mxu0  ;;  %6476 = vst [vmem:[#allocation15_spill] sm:$0xff] %v5781_v45 }
 0x111   : > { %v5789_v31 = vpop.f32.mrf.mxu1 }
 0x112   : > { %v5783_v61 = vpop.f32.mrf.mxu0  ;;  %6477 = vst [vmem:[#allocation16_spill] sm:$0xff] %v5789_v31  ;;  %v2942_v31 = vshrl.u32 %v5549_v22, 16 }
 0x113   : > { %v5796_v9 = vpop.f32.mrf.mxu1  ;;  %4656 = vmatmul.mubr.msk.bf16.gmra.mxu1 %vm519_vm2, %v5419_v43  ;;  %v2646_v43 = vsel %vm2177_vm4, %v2643_v42, %v2645_v5 }
 0x114   : > { %v5791_v54 = vpop.f32.mrf.mxu0  ;;  %4690 = vmatmul.mubr.msk.bf16.gmra.mxu0 %vm519_vm2, %v2640_v35  ;;  %6478 = vst [vmem:[#allocation17_spill] sm:$0xff] %v5796_v9  ;;  %4659 = vmatprep.mubr.msk.bf16.mxu1 %vm519_vm2, %v5443_v10  ;;  %v5819_v35 = vld [vmem:[%s5092_s9 + $0x88] sm:$0xff]   ;;  %v2647_v10 = vrot.slane %v5811_v23, 2  ;;  %v2937_v9 = vshll.u32 %v5649_v13, 16 }
 0x115   : > { %4693 = vmatprep.mubr.msk.bf16.mxu0 %vm519_vm2, %v2642_v1  ;;  %v5805_v15 = vpop.f32.mrf.mxu1  ;;  %6482 = vst [vmem:[#allocation21_spill] sm:$0xff] %v5819_v35  ;;  %v2649_v42 = vrot.slane %v5819_v35, 2 }
 0x116   : > { %v5800_v52 = vpop.f32.mrf.mxu0  ;;  %6479 = vst [vmem:[#allocation18_spill] sm:$0xff] %v5805_v15  ;;  %v2648_v59 = vsel %vm2177_vm4, %v2645_v5, %v2647_v10  ;;  %v2939_v60 = vrot.slane %v2937_v9, 3  ;;  %v2954_v9 = vshll.u32 %v5554_v33, 16 }
 0x117   : > { %v5813_v29 = vpop.f32.mrf.mxu1 }
 0x118   : > { %v5807_v48 = vpop.f32.mrf.mxu0  ;;  %6481 = vst [vmem:[#allocation20_spill] sm:$0xff] %v5813_v29 }
 0x119   : > { %v5821_v1 = vpop.f32.mrf.mxu1 }
 0x11a   : > { %v5815_v36 = vpop.f32.mrf.mxu0  ;;  %6483 = vst [vmem:[#allocation22_spill] sm:$0xff] %v5821_v1 }
 0x11b   : > { %v4485_v11 = vpop.f32.mrf.mxu1  ;;  %4660 = vmatmul.mubr.msk.bf16.gmra.mxu1 %vm519_vm2, %v5449_v19  ;;  %v2945_v19 = vshll.u32 %v5549_v22, 16 }
 0x11c   : > { %v5823_v38 = vpop.f32.mrf.mxu0  ;;  %4694 = vmatmul.mubr.msk.bf16.gmra.mxu0 %vm519_vm2, %v2644_v62  ;;  %v837_v1 = vadd.f32 %v4485_v11, %v5695_v41  ;;  %4663 = vmatprep.mubr.msk.bf16.mxu1 %vm519_vm2, %v5478_v47  ;;  %v2650_v47 = vsel %vm2177_vm4, %v2647_v10, %v2649_v42  ;;  %v2651_v10 = vrot.slane %v5845_v16, 2 }
 0x11d   : > { %4697 = vmatprep.mubr.msk.bf16.mxu0 %vm519_vm2, %v2646_v43  ;;  %v828_v62 = vpop.f32.mrf.mxu1  ;;  %v2934_v43 = vshrl.u32 %v5649_v13, 16 }
 0x11e   : > { %v5830_v29 = vpop.f32.mrf.mxu0  ;;  %v829_v45 = vadd.f32 %v828_v62, %v5704_v12  ;;  %v2944_v12 = vrot.slane %v2942_v31, 2  ;;  %v2947_v62 = vrot.slane %v2945_v19, 3 }
 0x11f   : > { %v4486_v41 = vpop.f32.mrf.mxu1  ;;  %v2936_v22 = vrot.slane %v2934_v43, 2 }
 0x120   : > { %v5836_v15 = vpop.f32.mrf.mxu0  ;;  %v840_v35 = vadd.f32 %v4486_v41, %v5711_v18  ;;  %v2653_v41 = vrot.slane %v5851_v21, 2  ;;  %v2948_v19 = vor.u32 %v2947_v62, %v2944_v12  ;;  %v2956_v12 = vrot.slane %v2954_v9, 3 }
 0x121   : > { %v831_v13 = vpop.f32.mrf.mxu1  ;;  %v2940_v43 = vor.u32 %v2939_v60, %v2936_v22  ;;  %v2972_v9 = vshll.u32 %v5582_v57, 16 }
 0x122   : > { %v5847_v11 = vpop.f32.mrf.mxu0  ;;  %v832_v5 = vadd.f32 %v831_v13, %v5719_v39  ;;  %v2951_v39 = vshrl.u32 %v5554_v33, 16  ;;  %v2654_v33 = vsel %vm2177_vm4, %v2651_v10, %v2653_v41 }
 0x123   : > { %v4489_v4 = vpop.f32.mrf.mxu1  ;;  %4664 = vmatmul.mubr.msk.bf16.gmra.mxu1 %vm519_vm2, %v5484_v3  ;;  %v2960_v3 = vshrl.u32 %v5578_v8, 16 }
 0x124   : > { %v4523_v23 = vpop.f32.mrf.mxu0  ;;  %4698 = vmatmul.mubr.msk.bf16.gmra.mxu0 %vm519_vm2, %v2648_v59  ;;  %v853_v59 = vadd.f32 %v4489_v4, %v5727_v26  ;;  %4667 = vmatprep.mubr.msk.bf16.mxu1 %vm519_vm2, %v5513_v24  ;;  %v2652_v4 = vsel %vm2177_vm4, %v2649_v42, %v2651_v10  ;;  %v4908_v24 = vld [vmem:[%s5092_s9 + $0xa0] ss:$0 sps:$4 sm:$0x33]   ;;  %v2953_v22 = vrot.slane %v2951_v39, 2  ;;  %v2969_v39 = vshrl.u32 %v5582_v57, 16 }
 0x125   : > { %v5856_v55 = vadd.f32 %v4523_v23, %v837_v1  ;;  %4701 = vmatprep.mubr.msk.bf16.mxu0 %vm519_vm2, %v2650_v47  ;;  %v844_v23 = vpop.f32.mrf.mxu1  ;;  %v2963_v47 = vshll.u32 %v5578_v8, 16  ;;  %v2655_v10 = vrot.slane %v4908_v24, 2  ;;  %v2978_v24 = vshrl.u32 %v5677_v6, 16 }
 0x126   : > { %v1105_v18 = vpop.f32.mrf.mxu0  ;;  %v845_v13 = vadd.f32 %v844_v23, %v5736_v27  ;;  %v2949_v27 = vsel %vm2932_vm7, %v2940_v43, %v2948_v19 }
 0x127   : > { %v5864_v31 = vadd.f32 %v1105_v18, %v829_v45  ;;  %v4490_v45 = vpop.f32.mrf.mxu1  ;;  %v2965_v42 = vrot.slane %v2963_v47, 3 }
 0x128   : > { %v4524_v1 = vpop.f32.mrf.mxu0 }
 0x129   : > { %6484 = vst [vmem:[#allocation23_spill] sm:$0xff] %v5864_v31  ;;  %v5873_v26 = vadd.f32 %v4524_v1, %v840_v35  ;;  %v856_v31 = vadd.f32 %v4490_v45, %v5743_v2  ;;  %v847_v62 = vpop.f32.mrf.mxu1  ;;  %v2962_v35 = vrot.slane %v2960_v3, 2  ;;  %v2981_v45 = vshll.u32 %v5677_v6, 16 }
 0x12a   : > { %v1108_v18 = vpop.f32.mrf.mxu0  ;;  %v848_v23 = vadd.f32 %v847_v62, %v5751_v56  ;;  %v2957_v56 = vor.u32 %v2956_v12, %v2953_v22 }
 0x12b   : > { %v5879_v60 = vadd.f32 %v1108_v18, %v832_v5  ;;  %v4493_v2 = vpop.f32.mrf.mxu1  ;;  %4668 = vmatmul.mubr.msk.bf16.gmra.mxu1 %vm519_vm2, %v5519_v20 }
 0x12c   : > { %v4527_v8 = vpop.f32.mrf.mxu0  ;;  %4702 = vmatmul.mubr.msk.bf16.gmra.mxu0 %vm519_vm2, %v2652_v4  ;;  %v869_v43 = vadd.f32 %v4493_v2, %v5759_v34  ;;  %4711 = vmatprep.mubr.msk.bf16.mxu1 %vm519_vm2, %v2949_v27  ;;  %v2966_v4 = vor.u32 %v2965_v42, %v2962_v35  ;;  %v2958_v12 = vsel %vm2932_vm7, %v2948_v19, %v2957_v56  ;;  %v2983_v2 = vrot.slane %v2981_v45, 3 }
 0x12d   : > { %v5884_v1 = vadd.f32 %v4527_v8, %v853_v59  ;;  %4705 = vmatprep.mubr.msk.bf16.mxu0 %vm519_vm2, %v2654_v33  ;;  %v860_v59 = vpop.f32.mrf.mxu1  ;;  %v2656_v33 = vsel %vm2177_vm4, %v2653_v41, %v2655_v10  ;;  %v2974_v8 = vrot.slane %v2972_v9, 3  ;;  %v2987_v9 = vshrl.u32 %v5689_v40, 16 }
 0x12e   : > { %v1121_v5 = vpop.f32.mrf.mxu0  ;;  %v861_v20 = vadd.f32 %v860_v59, %v5768_v37  ;;  %v2967_v37 = vsel %vm2932_vm7, %v2957_v56, %v2966_v4 }
 0x12f   : > { %v5892_v3 = vadd.f32 %v1121_v5, %v845_v13  ;;  %v4494_v62 = vpop.f32.mrf.mxu1  ;;  %v2971_v13 = vrot.slane %v2969_v39, 2 }
 0x130   : > { %v4528_v47 = vpop.f32.mrf.mxu0  ;;  %v872_v27 = vadd.f32 %v4494_v62, %v5775_v58 }
 0x131   : > { %v5898_v18 = vadd.f32 %v4528_v47, %v856_v31  ;;  %v863_v35 = vpop.f32.mrf.mxu1  ;;  %v2980_v31 = vrot.slane %v2978_v24, 2  ;;  %v2975_v19 = vor.u32 %v2974_v8, %v2971_v13  ;;  %v2999_v47 = vshll.u32 %v5693_v44, 16 }
 0x132   : > { %v1124_v34 = vpop.f32.mrf.mxu0  ;;  %v864_v41 = vadd.f32 %v863_v35, %v5783_v61  ;;  %v2990_v61 = vshll.u32 %v5689_v40, 16  ;;  %v2989_v13 = vrot.slane %v2987_v9, 2  ;;  %v3014_v9 = vshrl.u32 %v5723_v53, 16 }
 0x133   : > { %v5902_v22 = vadd.f32 %v1124_v34, %v848_v23  ;;  %v4497_v58 = vpop.f32.mrf.mxu1  ;;  %4712 = vmatmul.mubr.msk.bf16.vlgmr.msra.gmra.mxu1 %vm519_vm2, %v2958_v12  ;;  %v2984_v59 = vor.u32 %v2983_v2, %v2980_v31  ;;  %v3392_v2 = vrot.slane %v5677_v6, 3 }
 0x134   : > { %v4531_v42 = vpop.f32.mrf.mxu0  ;;  %4706 = vmatmul.mubr.msk.bf16.gmra.mxu0 %vm519_vm2, %v2656_v33  ;;  %v885_v5 = vadd.f32 %v4497_v58, %v5791_v54  ;;  %4715 = vmatprep.mubr.msk.bf16.mxu1 %vm519_vm2, %v2967_v37  ;;  %v2976_v33 = vsel %vm2932_vm7, %v2966_v4, %v2975_v19  ;;  %v2992_v8 = vrot.slane %v2990_v61, 3  ;;  %v3017_v61 = vshll.u32 %v5723_v53, 16 }
 0x135   : > { %v5908_v10 = vadd.f32 %v4531_v42, %v869_v43  ;;  %4749 = vmatprep.mubr.msk.bf16.mxu0 %vm519_vm2, %v5565_v46  ;;  %v876_v43 = vpop.f32.mrf.mxu1  ;;  %v2996_v46 = vshrl.u32 %v5693_v44, 16  ;;  %v2985_v42 = vsel %vm2932_vm7, %v2975_v19, %v2984_v59 }
 0x136   : > { %v1137_v23 = vpop.f32.mrf.mxu0  ;;  %v877_v24 = vadd.f32 %v876_v43, %v5800_v52 }
 0x137   : > { %v5914_v39 = vadd.f32 %v1137_v23, %v861_v20  ;;  %v4498_v54 = vpop.f32.mrf.mxu1  ;;  %v2998_v52 = vrot.slane %v2996_v46, 2 }
 0x138   : > { %v4532_v56 = vpop.f32.mrf.mxu0  ;;  %v888_v62 = vadd.f32 %v4498_v54, %v5807_v48 }
 0x139   : > { %v5922_v45 = vadd.f32 %v4532_v56, %v872_v27  ;;  %v879_v12 = vpop.f32.mrf.mxu1  ;;  %v3001_v27 = vrot.slane %v2999_v47, 3 }
 0x13a   : > { %v1140_v20 = vpop.f32.mrf.mxu0  ;;  %v880_v37 = vadd.f32 %v879_v12, %v5815_v36  ;;  %v2993_v36 = vor.u32 %v2992_v8, %v2989_v13 }
 0x13b   : > { %v5926_v34 = vadd.f32 %v1140_v20, %v864_v41  ;;  %v4501_v48 = vpop.f32.mrf.mxu1  ;;  %4716 = vmatmul.mubr.msk.bf16.gmra.mxu1 %vm519_vm2, %v2976_v33  ;;  %v3005_v41 = vshrl.u32 %v5715_v63, 16 }
 0x13c   : > { %v4535_v35 = vpop.f32.mrf.mxu0  ;;  %4750 = vmatmul.mubr.msk.bf16.vlgmr.msra.gmra.mxu0 %vm519_vm2, %v5571_v30  ;;  %v3008_v30 = vshll.u32 %v5715_v63, 16  ;;  %v901_v58 = vadd.f32 %v4501_v48, %v5823_v38  ;;  %4719 = vmatprep.mubr.msk.bf16.mxu1 %vm519_vm2, %v2985_v42  ;;  %v6485_v38 = vrot.slane %v5582_v57, 3  ;;  %v2994_v13 = vsel %vm2932_vm7, %v2984_v59, %v2993_v36 }
 0x13d   : > { %v5932_v31 = vadd.f32 %v4535_v35, %v885_v5  ;;  %4753 = vmatprep.mubr.msk.bf16.mxu0 %vm519_vm2, %v5593_v32  ;;  %v892_v19 = vpop.f32.mrf.mxu1  ;;  %v3002_v32 = vor.u32 %v3001_v27, %v2998_v52  ;;  %v3019_v35 = vrot.slane %v3017_v61, 3  ;;  %v3023_v48 = vshrl.u32 %v5747_v14, 16 }
 0x13e   : > { %v1153_v4 = vpop.f32.mrf.mxu0  ;;  %v893_v6 = vadd.f32 %v892_v19, %v5830_v29  ;;  %v3393_v47 = vsel %vm3382_vm6, %v6485_v38, %v3392_v2  ;;  %v3010_v54 = vrot.slane %v3008_v30, 3 }
 0x13f   : > { %v5941_v23 = vadd.f32 %v1153_v4, %v877_v24  ;;  %v4502_v56 = vpop.f32.mrf.mxu1  ;;  %v3007_v24 = vrot.slane %v3005_v41, 2  ;;  %v3003_v29 = vsel %vm2932_vm7, %v2993_v36, %v3002_v32 }
 0x140   : > { %v4536_v5 = vpop.f32.mrf.mxu0  ;;  %v904_v20 = vadd.f32 %v4502_v56, %v5836_v15  ;;  %v3394_v15 = vrot.slane %v5689_v40, 3  ;;  %v3032_v40 = vshrl.u32 %v5755_v49, 16 }
 0x141   : > { %v5947_v43 = vadd.f32 %v4536_v5, %v888_v62  ;;  %v895_v8 = vpop.f32.mrf.mxu1  ;;  %v3016_v62 = vrot.slane %v3014_v9, 2  ;;  %v3011_v27 = vor.u32 %v3010_v54, %v3007_v24 }
 0x142   : > { %v1156_v46 = vpop.f32.mrf.mxu0  ;;  %v896_v57 = vadd.f32 %v895_v8, %v5847_v11  ;;  %v3026_v11 = vshll.u32 %v5747_v14, 16  ;;  %v3395_v19 = vsel %vm3382_vm6, %v3392_v2, %v3394_v15 }
 0x143   : > { %v5953_v33 = vadd.f32 %v1156_v46, %v880_v37  ;;  %v4505_v52 = vpop.f32.mrf.mxu1  ;;  %4720 = vmatmul.mubr.msk.bf16.gmra.mxu1 %vm519_vm2, %v2994_v13  ;;  %v3396_v37 = vrot.slane %v5693_v44, 3  ;;  %v3020_v30 = vor.u32 %v3019_v35, %v3016_v62  ;;  %v3012_v9 = vsel %vm2932_vm7, %v3002_v32, %v3011_v27 }
 0x144   : > { %v4539_v12 = vpop.f32.mrf.mxu0  ;;  %4754 = vmatmul.mubr.msk.bf16.gmra.mxu0 %vm519_vm2, %v5601_v28  ;;  %4723 = vmatprep.mubr.msk.bf16.mxu1 %vm519_vm2, %v3003_v29  ;;  %v3025_v46 = vrot.slane %v3023_v48, 2  ;;  %v3028_v38 = vrot.slane %v3026_v11, 3  ;;  %v3400_v29 = vrot.slane %v5723_v53, 3  ;;  %v3041_v62 = vshrl.u32 %v5779_v17, 16 }
 0x145   : > { %v5960_v42 = vadd.f32 %v4539_v12, %v901_v58  ;;  %4757 = vmatprep.mubr.msk.bf16.mxu0 %vm519_vm2, %v3393_v47  ;;  %v908_v4 = vpop.f32.mrf.mxu1  ;;  %v3035_v58 = vshll.u32 %v5755_v49, 16  ;;  %v3397_v61 = vsel %vm3382_vm6, %v3394_v15, %v3396_v37  ;;  %v3021_v54 = vsel %vm2932_vm7, %v3011_v27, %v3020_v30 }
 0x146   : > { %v1169_v59 = vpop.f32.mrf.mxu0  ;;  %v909_v13 = vadd.f32 %v908_v4, %v5709_v50  ;;  %v3044_v35 = vshll.u32 %v5779_v17, 16  ;;  %v3029_v50 = vor.u32 %v3028_v38, %v3025_v46  ;;  %v3050_v27 = vshrl.u32 %v5787_v0, 16 }
 0x147   : > { %v5966_v28 = vadd.f32 %v1169_v59, %v893_v6  ;;  %v4506_v44 = vpop.f32.mrf.mxu1  ;;  %v917_v6 = vadd.f32 %v4505_v52, %v5700_v51  ;;  %v3037_v2 = vrot.slane %v3035_v58, 3  ;;  %v3398_v51 = vrot.slane %v5715_v63, 3 }
 0x148   : > { %v4540_v41 = vpop.f32.mrf.mxu0  ;;  %v3053_v48 = vshll.u32 %v5787_v0, 16  ;;  %v3043_v58 = vrot.slane %v3041_v62, 2  ;;  %v3052_v38 = vrot.slane %v3050_v27, 2  ;;  %v6490_v27 = vld [vmem:[#allocation21_spill] sm:$0xff] }
 0x149   : > { %v5973_v36 = vadd.f32 %v4540_v41, %v904_v20  ;;  %v911_v47 = vpop.f32.mrf.mxu1  ;;  %v3034_v20 = vrot.slane %v3032_v40, 2  ;;  %v3399_v4 = vsel %vm3382_vm6, %v3396_v37, %v3398_v51  ;;  %v3401_v40 = vsel %vm3382_vm6, %v3398_v51, %v3400_v29 }
 0x14a   : > { %v1172_v5 = vpop.f32.mrf.mxu0  ;;  %v912_v53 = vadd.f32 %v911_v47, %v5725_v25  ;;  %v3055_v37 = vrot.slane %v3053_v48, 3  ;;  %v6487_v47 = vld [vmem:[#allocation10_spill] sm:$0xff]  ;;  %v3404_v51 = vrot.slane %v5755_v49, 3  ;;  %v3068_v48 = vshrl.u32 %v6490_v27, 16 }
 0x14b   : > { %v5979_v56 = vadd.f32 %v1172_v5, %v896_v57  ;;  %v4509_v32 = vpop.f32.mrf.mxu1  ;;  %4724 = vmatmul.mubr.msk.bf16.gmra.mxu1 %vm519_vm2, %v3012_v9  ;;  %v920_v57 = vadd.f32 %v4506_v44, %v5717_v7  ;;  %v3038_v63 = vor.u32 %v3037_v2, %v3034_v20  ;;  %v6486_v44 = vld [vmem:[#allocation9_spill] sm:$0xff]  ;;  %v3402_v20 = vrot.slane %v5747_v14, 3 }
 0x14c   : > { %v4543_v24 = vpop.f32.mrf.mxu0  ;;  %4758 = vmatmul.mubr.msk.bf16.gmra.mxu0 %vm519_vm2, %v3395_v19  ;;  %4727 = vmatprep.mubr.msk.bf16.mxu1 %vm519_vm2, %v3021_v54  ;;  %v3046_v19 = vrot.slane %v3044_v35, 3  ;;  %v933_v5 = vadd.f32 %v4509_v32, %v6486_v44  ;;  %v6488_v32 = vld [vmem:[#allocation11_spill] sm:$0xff]  ;;  %v3056_v14 = vor.u32 %v3055_v37, %v3052_v38 }
 0x14d   : > { %v5984_v8 = vadd.f32 %v4543_v24, %v917_v6  ;;  %4761 = vmatprep.mubr.msk.bf16.mxu0 %vm519_vm2, %v3397_v61  ;;  %v924_v52 = vpop.f32.mrf.mxu1  ;;  %v3030_v61 = vsel %vm2932_vm7, %v3020_v30, %v3029_v50  ;;  %v3039_v25 = vsel %vm2932_vm7, %v3029_v50, %v3038_v63  ;;  %v6489_v35 = vld [vmem:[#allocation19_spill] sm:$0xff]  ;;  %v3405_v44 = vsel %vm3382_vm6, %v3402_v20, %v3404_v51 }
 0x14e   : > { %v1185_v12 = vpop.f32.mrf.mxu0  ;;  %v925_v24 = vadd.f32 %v924_v52, %v6487_v47  ;;  %v3062_v50 = vshll.u32 %v6489_v35, 16 }
 0x14f   : > { %v5993_v15 = vadd.f32 %v1185_v12, %v909_v13  ;;  %v4510_v41 = vpop.f32.mrf.mxu1  ;;  %v3047_v13 = vor.u32 %v3046_v19, %v3043_v58 }
 0x150   : > { %v4544_v59 = vpop.f32.mrf.mxu0  ;;  %v936_v12 = vadd.f32 %v4510_v41, %v6488_v32  ;;  %v3403_v41 = vsel %vm3382_vm6, %v3400_v29, %v3402_v20  ;;  %v3064_v38 = vrot.slane %v3062_v50, 3  ;;  %v3077_v50 = vshrl.u32 %v5845_v16, 16 }
 0x151   : > { %v5999_v11 = vadd.f32 %v4544_v59, %v920_v57  ;;  %v927_v6 = vpop.f32.mrf.mxu1  ;;  %v3059_v57 = vshrl.u32 %v6489_v35, 16  ;;  %v3048_v19 = vsel %vm2932_vm7, %v3038_v63, %v3047_v13  ;;  %v3406_v63 = vrot.slane %v5779_v17, 3 }
 0x152   : > { %v1188_v7 = vpop.f32.mrf.mxu0 }
 0x153   : > { %v6004_v9 = vadd.f32 %v1188_v7, %v912_v53  ;;  %v4513_v2 = vpop.f32.mrf.mxu1  ;;  %4728 = vmatmul.mubr.msk.bf16.gmra.mxu1 %vm519_vm2, %v3030_v61  ;;  %v3071_v53 = vshll.u32 %v6490_v27, 16 }
 0x154   : > { %v4547_v46 = vpop.f32.mrf.mxu0  ;;  %4762 = vmatmul.mubr.msk.bf16.gmra.mxu0 %vm519_vm2, %v3399_v4  ;;  %4731 = vmatprep.mubr.msk.bf16.mxu1 %vm519_vm2, %v3039_v25  ;;  %v6491_v4 = vld [vmem:[#allocation12_spill] sm:$0xff]  ;;  %v3061_v25 = vrot.slane %v3059_v57, 2  ;;  %v3408_v57 = vrot.slane %v5787_v0, 3 }
 0x155   : > { %v6010_v54 = vadd.f32 %v4547_v46, %v933_v5  ;;  %4765 = vmatprep.mubr.msk.bf16.mxu0 %vm519_vm2, %v3401_v40  ;;  %v940_v52 = vpop.f32.mrf.mxu1  ;;  %v928_v7 = vadd.f32 %v927_v6, %v6491_v4  ;;  %v6492_v5 = vld [vmem:[#allocation13_spill] sm:$0xff]  ;;  %v3057_v6 = vsel %vm2932_vm7, %v3047_v13, %v3056_v14  ;;  %v3073_v29 = vrot.slane %v3071_v53, 3  ;;  %v6495_v0 = vld [vmem:[#allocation16_spill] sm:$0xff] }
 0x156   : > { %v1201_v30 = vpop.f32.mrf.mxu0  ;;  %v949_v61 = vadd.f32 %v4513_v2, %v6492_v5  ;;  %v3080_v13 = vshll.u32 %v5845_v16, 16  ;;  %v3407_v5 = vsel %vm3382_vm6, %v3404_v51, %v3406_v63 }
 0x157   : > { %v6017_v62 = vadd.f32 %v1201_v30, %v925_v24  ;;  %v4514_v40 = vpop.f32.mrf.mxu1  ;;  %v3070_v24 = vrot.slane %v3068_v48, 2  ;;  %v6493_v30 = vld [vmem:[#allocation14_spill] sm:$0xff] }
 0x158   : > { %v4548_v59 = vpop.f32.mrf.mxu0  ;;  %v941_v32 = vadd.f32 %v940_v52, %v6493_v30  ;;  %v3065_v52 = vor.u32 %v3064_v38, %v3061_v25  ;;  %v3079_v30 = vrot.slane %v3077_v50, 2  ;;  %v6056_v25 = vld [vmem:[%s5092_s9 + $0xa0] ss:$0 sps:$4 sm:$0x77]   ;;  %v6496_v38 = vld [vmem:[#allocation17_spill] sm:$0xff] }
 0x159   : > { %v6025_v49 = vadd.f32 %v4548_v59, %v936_v12  ;;  %v943_v37 = vpop.f32.mrf.mxu1  ;;  %v6494_v59 = vld [vmem:[#allocation15_spill] sm:$0xff] }
 0x15a   : > { %v1204_v58 = vpop.f32.mrf.mxu0  ;;  %v952_v48 = vadd.f32 %v4514_v40, %v6494_v59 }
 0x15b   : > { %v6031_v46 = vadd.f32 %v1204_v58, %v928_v7  ;;  %v4517_v20 = vpop.f32.mrf.mxu1  ;;  %4732 = vmatmul.mubr.msk.bf16.gmra.mxu1 %vm519_vm2, %v3048_v19  ;;  %v3074_v7 = vor.u32 %v3073_v29, %v3070_v24  ;;  %v3089_v58 = vshll.u32 %v5851_v21, 16  ;;  %v944_v19 = vadd.f32 %v943_v37, %v6495_v0 }
 0x15c   : > { %v4551_v47 = vpop.f32.mrf.mxu0  ;;  %4766 = vmatmul.mubr.msk.bf16.gmra.mxu0 %vm519_vm2, %v3403_v41  ;;  %4735 = vmatprep.mubr.msk.bf16.mxu1 %vm519_vm2, %v3057_v6  ;;  %v3086_v41 = vshrl.u32 %v5851_v21, 16  ;;  %v3082_v6 = vrot.slane %v3080_v13, 3  ;;  %v965_v24 = vadd.f32 %v4517_v20, %v6496_v38  ;;  %v3410_v20 = vrot.slane %v6489_v35, 3 }
 0x15d   : > { %v6036_v12 = vadd.f32 %v4551_v47, %v949_v61  ;;  %4769 = vmatprep.mubr.msk.bf16.mxu0 %vm519_vm2, %v3405_v44  ;;  %v956_v4 = vpop.f32.mrf.mxu1  ;;  %v3409_v47 = vsel %vm3382_vm6, %v3406_v63, %v3408_v57  ;;  %v3075_v51 = vsel %vm2932_vm7, %v3065_v52, %v3074_v7 }
 0x15e   : > { %v1217_v2 = vpop.f32.mrf.mxu0  ;;  %v3088_v59 = vrot.slane %v3086_v41, 2  ;;  %v3083_v0 = vor.u32 %v3082_v6, %v3079_v30  ;;  %v6500_v30 = vld [vmem:[#allocation23_spill] sm:$0xff] }
 0x15f   : > { %v6045_v53 = vadd.f32 %v1217_v2, %v941_v32  ;;  %v4518_v40 = vpop.f32.mrf.mxu1  ;;  %v3066_v32 = vsel %vm2932_vm7, %v3056_v14, %v3065_v52  ;;  %v6498_v52 = vld [vmem:[#allocation20_spill] sm:$0xff] }
 0x160   : > { %v4552_v17 = vpop.f32.mrf.mxu0  ;;  %v968_v41 = vadd.f32 %v4518_v40, %v6498_v52 }
 0x161   : > { %v6051_v44 = vadd.f32 %v4552_v17, %v952_v48  ;;  %v959_v2 = vpop.f32.mrf.mxu1  ;;  %v3091_v48 = vrot.slane %v3089_v58, 3  ;;  %v6497_v17 = vld [vmem:[#allocation18_spill] sm:$0xff] }
 0x162   : > { %v1220_v61 = vpop.f32.mrf.mxu0  ;;  %v957_v63 = vadd.f32 %v956_v4, %v6497_v17 }
 0x163   : > { %v6059_v29 = vadd.f32 %v1220_v61, %v944_v19  ;;  %v4561_v13 = vpop.f32.mrf.mxu1  ;;  %4736 = vmatmul.mubr.msk.bf16.gmra.mxu1 %vm519_vm2, %v3066_v32  ;;  %v3412_v19 = vrot.slane %v6490_v27, 3  ;;  %v3098_v61 = vshll.u32 %v6056_v25, 16  ;;  %v3092_v38 = vor.u32 %v3091_v48, %v3088_v59 }
 0x164   : > { %v4555_v37 = vpop.f32.mrf.mxu0  ;;  %4770 = vmatmul.mubr.msk.bf16.gmra.mxu0 %vm519_vm2, %v3407_v5  ;;  %v3095_v5 = vshrl.u32 %v6056_v25, 16  ;;  %v1692_v58 = vadd.f32 %v4561_v13, %v5856_v55  ;;  %4739 = vmatprep.mubr.msk.bf16.mxu1 %vm519_vm2, %v3075_v51  ;;  %v3084_v55 = vsel %vm2932_vm7, %v3074_v7, %v3083_v0  ;;  %v3414_v7 = vrot.slane %v5845_v16, 3 }
 0x165   : > { %v6065_v50 = vadd.f32 %v4555_v37, %v965_v24  ;;  %4773 = vmatprep.mubr.msk.bf16.mxu0 %vm519_vm2, %v3409_v47  ;;  %v1547_v35 = vpop.f32.mrf.mxu1  ;;  %v6499_v24 = vld [vmem:[#allocation22_spill] sm:$0xff]  ;;  %v3411_v37 = vsel %vm3382_vm6, %v3408_v57, %v3410_v20  ;;  %v3100_v59 = vrot.slane %v3098_v61, 3  ;;  %v3093_v52 = vsel %vm2932_vm7, %v3083_v0, %v3092_v38 }
 0x166   : > { %v1233_v14 = vpop.f32.mrf.mxu0  ;;  %v960_v32 = vadd.f32 %v959_v2, %v6499_v24  ;;  %v1690_v6 = vadd.f32 %v1547_v35, %v6500_v30  ;;  %v3415_v16 = vsel %vm3382_vm6, %v3412_v19, %v3414_v7 }
 0x167   : > { %v6074_v4 = vadd.f32 %v1233_v14, %v957_v63  ;;  %v4562_v40 = vpop.f32.mrf.mxu1  ;;  %v3413_v63 = vsel %vm3382_vm6, %v3410_v20, %v3412_v19  ;;  %v3097_v14 = vrot.slane %v3095_v5, 2  ;;  %v3416_v5 = vrot.slane %v5851_v21, 3 }
 0x168   : > { %v4556_v47 = vpop.f32.mrf.mxu0  ;;  %v1693_v51 = vadd.f32 %v4562_v40, %v5873_v26  ;;  %v3418_v19 = vrot.slane %v6056_v25, 3 }
 0x169   : > { %v6080_v27 = vadd.f32 %v4556_v47, %v968_v41  ;;  %v1550_v48 = vpop.f32.mrf.mxu1  ;;  %v3101_v0 = vor.u32 %v3100_v59, %v3097_v14 }
 0x16a   : > { %v1236_v17 = vpop.f32.mrf.mxu0  ;;  %v1691_v57 = vadd.f32 %v1550_v48, %v5879_v60 }
 0x16b   : > { %v6086_v13 = vadd.f32 %v1236_v17, %v960_v32  ;;  %v4565_v20 = vpop.f32.mrf.mxu1  ;;  %4740 = vmatmul.mubr.msk.bf16.gmra.mxu1 %vm519_vm2, %v3084_v55 }
 0x16c   : > { %v4599_v2 = vpop.f32.mrf.mxu0  ;;  %4774 = vmatmul.mubr.msk.bf16.gmra.mxu0 %vm519_vm2, %v3411_v37  ;;  %v1696_v61 = vadd.f32 %v4565_v20, %v5884_v1  ;;  %4743 = vmatprep.mubr.msk.bf16.mxu1 %vm519_vm2, %v3093_v52  ;;  %v3417_v37 = vsel %vm3382_vm6, %v3414_v7, %v3416_v5 }
 0x16d   : > { %v6091_v41 = vadd.f32 %v4599_v2, %v1692_v58  ;;  %4777 = vmatprep.mubr.msk.bf16.mxu0 %vm519_vm2, %v3413_v63  ;;  %v1563_v60 = vpop.f32.mrf.mxu1 }
 0x16e   : > { %v1993_v26 = vpop.f32.mrf.mxu0  ;;  %v1694_v47 = vadd.f32 %v1563_v60, %v5892_v3 }
 0x16f   : > { %v6098_v35 = vadd.f32 %v1993_v26, %v1690_v6  ;;  %v4566_v32 = vpop.f32.mrf.mxu1  ;;  %v3102_v6 = vsel %vm2932_vm7, %v3092_v38, %v3101_v0 }
 0x170   : > { %v4600_v58 = vpop.f32.mrf.mxu0  ;;  %v1697_v21 = vadd.f32 %v4566_v32, %v5898_v18 }
 0x171   : > { %v6102_v24 = vadd.f32 %v4600_v58, %v1693_v51  ;;  %v1566_v40 = vpop.f32.mrf.mxu1 }
 0x172   : > { %v1996_v30 = vpop.f32.mrf.mxu0  ;;  %v1695_v3 = vadd.f32 %v1566_v40, %v5902_v22  ;;  %v3419_v22 = vsel %vm3382_vm6, %v3416_v5, %v3418_v19 }
 0x173   : > { %v6107_v1 = vadd.f32 %v1996_v30, %v1691_v57  ;;  %v4569_v63 = vpop.f32.mrf.mxu1  ;;  %4744 = vmatmul.mubr.msk.bf16.gmra.mxu1 %vm519_vm2, %v3102_v6 }
 0x174   : > { %v4603_v17 = vpop.f32.mrf.mxu0  ;;  %4778 = vmatmul.mubr.msk.bf16.gmra.mxu0 %vm519_vm2, %v3415_v16  ;;  %v1700_v51 = vadd.f32 %v4569_v63, %v5908_v10 }
 0x175   : > { %v6112_v55 = vadd.f32 %v4603_v17, %v1696_v61  ;;  %4781 = vmatprep.mubr.msk.bf16.mxu0 %vm519_vm2, %v3417_v37  ;;  %v1579_v38 = vpop.f32.mrf.mxu1 }
 0x176   : > { %v2009_v18 = vpop.f32.mrf.mxu0  ;;  %v1698_v48 = vadd.f32 %v1579_v38, %v5914_v39 }
 0x177   : > { %v6118_v14 = vadd.f32 %v2009_v18, %v1694_v47  ;;  %v4570_v52 = vpop.f32.mrf.mxu1 }
 0x178   : > { %v4604_v59 = vpop.f32.mrf.mxu0  ;;  %v1701_v25 = vadd.f32 %v4570_v52, %v5922_v45 }
 0x179   : > { %v6121_v2 = vadd.f32 %v4604_v59, %v1697_v21  ;;  %v1582_v20 = vpop.f32.mrf.mxu1 }
 0x17a   : > { %v2012_v57 = vpop.f32.mrf.mxu0  ;;  %v1699_v10 = vadd.f32 %v1582_v20, %v5926_v34 }
 0x17b   : > { %v6125_v7 = vadd.f32 %v2012_v57, %v1695_v3  ;;  %v4573_v0 = vpop.f32.mrf.mxu1 }
 0x17c   : > { %v4607_v26 = vpop.f32.mrf.mxu0  ;;  %4782 = vmatmul.mubr.msk.bf16.gmra.mxu0 %vm519_vm2, %v3419_v22  ;;  %v1704_v60 = vadd.f32 %v4573_v0, %v5932_v31 }
 0x17d   : > { %v6129_v61 = vadd.f32 %v4607_v26, %v1700_v51  ;;  %v1595_v5 = vpop.f32.mrf.mxu1 }
 0x17e   : > { %v2025_v39 = vpop.f32.mrf.mxu0  ;;  %v1702_v45 = vadd.f32 %v1595_v5, %v5941_v23 }
 0x17f   : > { %v6132_v58 = vadd.f32 %v2025_v39, %v1698_v48  ;;  %v4574_v32 = vpop.f32.mrf.mxu1 }
 0x180   : > { %v4608_v47 = vpop.f32.mrf.mxu0  ;;  %v1705_v37 = vadd.f32 %v4574_v32, %v5947_v43 }
 0x181   : > { %v6135_v16 = vadd.f32 %v4608_v47, %v1701_v25  ;;  %v1598_v34 = vpop.f32.mrf.mxu1 }
 0x182   : > { %v2028_v30 = vpop.f32.mrf.mxu0  ;;  %v1703_v40 = vadd.f32 %v1598_v34, %v5953_v33 }
 0x183   : > { %v6138_v21 = vadd.f32 %v2028_v30, %v1699_v10  ;;  %v4577_v31 = vpop.f32.mrf.mxu1 }
 0x184   : > { %v4611_v6 = vpop.f32.mrf.mxu0  ;;  %v1708_v19 = vadd.f32 %v4577_v31, %v5960_v42 }
 0x185   : > { %v6141_v17 = vadd.f32 %v4611_v6, %v1704_v60  ;;  %v1611_v23 = vpop.f32.mrf.mxu1 }
 0x186   : > { %v2041_v3 = vpop.f32.mrf.mxu0  ;;  %v1706_v51 = vadd.f32 %v1611_v23, %v5966_v28 }
 0x187   : > { %v6144_v63 = vadd.f32 %v2041_v3, %v1702_v45  ;;  %v4578_v43 = vpop.f32.mrf.mxu1 }
 0x188   : > { %v4612_v18 = vpop.f32.mrf.mxu0  ;;  %v1709_v48 = vadd.f32 %v4578_v43, %v5973_v36 }
 0x189   : > { %v6147_v38 = vadd.f32 %v4612_v18, %v1705_v37  ;;  %v1614_v33 = vpop.f32.mrf.mxu1 }
 0x18a   : > { %v2044_v59 = vpop.f32.mrf.mxu0  ;;  %v1707_v57 = vadd.f32 %v1614_v33, %v5979_v56 }
 0x18b   : > { %v6150_v22 = vadd.f32 %v2044_v59, %v1703_v40  ;;  %v4581_v42 = vpop.f32.mrf.mxu1 }
 0x18c   : > { %v4615_v52 = vpop.f32.mrf.mxu0  ;;  %v1712_v26 = vadd.f32 %v4581_v42, %v5984_v8 }
 0x18d   : > { %v6153_v25 = vadd.f32 %v4615_v52, %v1708_v19  ;;  %v1627_v28 = vpop.f32.mrf.mxu1 }
 0x18e   : > { %v2057_v20 = vpop.f32.mrf.mxu0  ;;  %v1710_v39 = vadd.f32 %v1627_v28, %v5993_v15 }
 0x18f   : > { %v6156_v10 = vadd.f32 %v2057_v20, %v1706_v51  ;;  %v4582_v36 = vpop.f32.mrf.mxu1 }
 0x190   : > { %v4616_v0 = vpop.f32.mrf.mxu0  ;;  %v1713_v47 = vadd.f32 %v4582_v36, %v5999_v11 }
 0x191   : > { %v6159_v60 = vadd.f32 %v4616_v0, %v1709_v48  ;;  %v1630_v56 = vpop.f32.mrf.mxu1 }
 0x192   : > { %v2060_v5 = vpop.f32.mrf.mxu0  ;;  %v1711_v30 = vadd.f32 %v1630_v56, %v6004_v9 }
 0x193   : > { %v6162_v45 = vadd.f32 %v2060_v5, %v1707_v57  ;;  %v4585_v8 = vpop.f32.mrf.mxu1 }
 0x194   : > { %v4619_v32 = vpop.f32.mrf.mxu0  ;;  %v1716_v6 = vadd.f32 %v4585_v8, %v6010_v54 }
 0x195   : > { %v6165_v37 = vadd.f32 %v4619_v32, %v1712_v26  ;;  %v1643_v15 = vpop.f32.mrf.mxu1 }
 0x196   : > { %v2073_v34 = vpop.f32.mrf.mxu0  ;;  %v1714_v3 = vadd.f32 %v1643_v15, %v6017_v62 }
 0x197   : > { %v6168_v40 = vadd.f32 %v2073_v34, %v1710_v39  ;;  %v4586_v11 = vpop.f32.mrf.mxu1 }
 0x198   : > { %v4620_v31 = vpop.f32.mrf.mxu0  ;;  %v1717_v18 = vadd.f32 %v4586_v11, %v6025_v49 }
 0x199   : > { %v6171_v19 = vadd.f32 %v4620_v31, %v1713_v47  ;;  %v1646_v9 = vpop.f32.mrf.mxu1 }
 0x19a   : > { %v2076_v23 = vpop.f32.mrf.mxu0  ;;  %v1715_v59 = vadd.f32 %v1646_v9, %v6031_v46 }
 0x19b   : > { %v6174_v51 = vadd.f32 %v2076_v23, %v1711_v30  ;;  %v4589_v54 = vpop.f32.mrf.mxu1 }
 0x19c   : > { %v4623_v43 = vpop.f32.mrf.mxu0  ;;  %v1720_v52 = vadd.f32 %v4589_v54, %v6036_v12 }
 0x19d   : > { %v6177_v48 = vadd.f32 %v4623_v43, %v1716_v6  ;;  %v1659_v62 = vpop.f32.mrf.mxu1 }
 0x19e   : > { %v2089_v33 = vpop.f32.mrf.mxu0  ;;  %v1718_v20 = vadd.f32 %v1659_v62, %v6045_v53 }
 0x19f   : > { %v6180_v57 = vadd.f32 %v2089_v33, %v1714_v3  ;;  %v4590_v49 = vpop.f32.mrf.mxu1 }
 0x1a0   : > { %v4624_v42 = vpop.f32.mrf.mxu0  ;;  %v1721_v0 = vadd.f32 %v4590_v49, %v6051_v44 }
 0x1a1   : > { %v6183_v26 = vadd.f32 %v4624_v42, %v1717_v18  ;;  %v1662_v46 = vpop.f32.mrf.mxu1 }
 0x1a2   : > { %v2092_v28 = vpop.f32.mrf.mxu0  ;;  %v1719_v5 = vadd.f32 %v1662_v46, %v6059_v29 }
 0x1a3   : > { %v6186_v39 = vadd.f32 %v2092_v28, %v1715_v59  ;;  %v4593_v12 = vpop.f32.mrf.mxu1 }
 0x1a4   : > { %v4627_v36 = vpop.f32.mrf.mxu0  ;;  %v1724_v32 = vadd.f32 %v4593_v12, %v6065_v50 }
 0x1a5   : > { %v6189_v47 = vadd.f32 %v4627_v36, %v1720_v52  ;;  %v1675_v53 = vpop.f32.mrf.mxu1 }
 0x1a6   : > { %v2105_v56 = vpop.f32.mrf.mxu0  ;;  %v1722_v34 = vadd.f32 %v1675_v53, %v6074_v4 }
 0x1a7   : > { %v6192_v30 = vadd.f32 %v2105_v56, %v1718_v20  ;;  %v4594_v44 = vpop.f32.mrf.mxu1 }
 0x1a8   : > { %v4628_v8 = vpop.f32.mrf.mxu0  ;;  %v1725_v31 = vadd.f32 %v4594_v44, %v6080_v27 }
 0x1a9   : > { %v6195_v6 = vadd.f32 %v4628_v8, %v1721_v0  ;;  %v1678_v29 = vpop.f32.mrf.mxu1 }
 0x1aa   : > { %v2108_v15 = vpop.f32.mrf.mxu0  ;;  %v1723_v23 = vadd.f32 %v1678_v29, %v6086_v13 }
 0x1ab   : > { %v6198_v3 = vadd.f32 %v2108_v15, %v1719_v5  ;;  %v4637_v50 = vpop.f32.mrf.mxu1 }
 0x1ac   : > { %v4631_v11 = vpop.f32.mrf.mxu0  ;;  %v2455_v43 = vadd.f32 %v4637_v50, %v6091_v41 }
 0x1ad   : > { %v6201_v18 = vadd.f32 %v4631_v11, %v1724_v32  ;;  %v2310_v4 = vpop.f32.mrf.mxu1 }
 0x1ae   : > { %v2121_v9 = vpop.f32.mrf.mxu0  ;;  %v2453_v33 = vadd.f32 %v2310_v4, %v6098_v35 }
 0x1af   : > { %v6204_v59 = vadd.f32 %v2121_v9, %v1722_v34  ;;  %v4638_v27 = vpop.f32.mrf.mxu1 }
 0x1b0   : > { %v4632_v54 = vpop.f32.mrf.mxu0  ;;  %v2456_v42 = vadd.f32 %v4638_v27, %v6102_v24 }
 0x1b1   : > { %v6207_v52 = vadd.f32 %v4632_v54, %v1725_v31  ;;  %v2313_v13 = vpop.f32.mrf.mxu1 }
 0x1b2   : > { %v2124_v62 = vpop.f32.mrf.mxu0  ;;  %v2454_v28 = vadd.f32 %v2313_v13, %v6107_v1 }
 0x1b3   : > { %v6210_v20 = vadd.f32 %v2124_v62, %v1723_v23  ;;  %v4641_v41 = vpop.f32.mrf.mxu1 }
 0x1b4   : > { %v4675_v49 = vpop.f32.mrf.mxu0  ;;  %v2459_v36 = vadd.f32 %v4641_v41, %v6112_v55 }
 0x1b5   : > { %v6213_v0 = vadd.f32 %v4675_v49, %v2455_v43  ;;  %v2326_v35 = vpop.f32.mrf.mxu1 }
 0x1b6   : > { %v2748_v46 = vpop.f32.mrf.mxu0  ;;  %v2457_v56 = vadd.f32 %v2326_v35, %v6118_v14 }
 0x1b7   : > { %v6216_v5 = vadd.f32 %v2748_v46, %v2453_v33  ;;  %v4642_v24 = vpop.f32.mrf.mxu1 }
 0x1b8   : > { %v4676_v12 = vpop.f32.mrf.mxu0  ;;  %v2460_v8 = vadd.f32 %v4642_v24, %v6121_v2 }
 0x1b9   : > { %v6219_v32 = vadd.f32 %v4676_v12, %v2456_v42  ;;  %v2329_v1 = vpop.f32.mrf.mxu1 }
 0x1ba   : > { %v2751_v53 = vpop.f32.mrf.mxu0  ;;  %v2458_v15 = vadd.f32 %v2329_v1, %v6125_v7 }
 0x1bb   : > { %v6222_v34 = vadd.f32 %v2751_v53, %v2454_v28  ;;  %v4645_v55 = vpop.f32.mrf.mxu1 }
 0x1bc   : > { %v4679_v44 = vpop.f32.mrf.mxu0  ;;  %v2463_v11 = vadd.f32 %v4645_v55, %v6129_v61 }
 0x1bd   : > { %v6225_v31 = vadd.f32 %v4679_v44, %v2459_v36  ;;  %v2342_v14 = vpop.f32.mrf.mxu1 }
 0x1be   : > { %v2764_v29 = vpop.f32.mrf.mxu0  ;;  %v2461_v9 = vadd.f32 %v2342_v14, %v6132_v58 }
 0x1bf   : > { %v6228_v23 = vadd.f32 %v2764_v29, %v2457_v56  ;;  %v4646_v2 = vpop.f32.mrf.mxu1 }
 0x1c0   : > { %v4680_v50 = vpop.f32.mrf.mxu0  ;;  %v2464_v54 = vadd.f32 %v4646_v2, %v6135_v16 }
 0x1c1   : > { %v6231_v43 = vadd.f32 %v4680_v50, %v2460_v8  ;;  %v2345_v7 = vpop.f32.mrf.mxu1 }
 0x1c2   : > { %v2767_v4 = vpop.f32.mrf.mxu0  ;;  %v2462_v62 = vadd.f32 %v2345_v7, %v6138_v21 }
 0x1c3   : > { %v6234_v33 = vadd.f32 %v2767_v4, %v2458_v15  ;;  %v4649_v61 = vpop.f32.mrf.mxu1 }
 0x1c4   : > { %v4683_v27 = vpop.f32.mrf.mxu0  ;;  %v2467_v49 = vadd.f32 %v4649_v61, %v6141_v17 }
 0x1c5   : > { %v6237_v42 = vadd.f32 %v4683_v27, %v2463_v11  ;;  %v2358_v58 = vpop.f32.mrf.mxu1 }
 0x1c6   : > { %v2780_v13 = vpop.f32.mrf.mxu0  ;;  %v2465_v46 = vadd.f32 %v2358_v58, %v6144_v63 }
 0x1c7   : > { %v6240_v28 = vadd.f32 %v2780_v13, %v2461_v9  ;;  %v4650_v16 = vpop.f32.mrf.mxu1 }
 0x1c8   : > { %v4684_v41 = vpop.f32.mrf.mxu0  ;;  %v2468_v12 = vadd.f32 %v4650_v16, %v6147_v38 }
 0x1c9   : > { %v6243_v36 = vadd.f32 %v4684_v41, %v2464_v54  ;;  %v2361_v21 = vpop.f32.mrf.mxu1 }
 0x1ca   : > { %v2783_v35 = vpop.f32.mrf.mxu0  ;;  %v2466_v53 = vadd.f32 %v2361_v21, %v6150_v22 }
 0x1cb   : > { %v6246_v56 = vadd.f32 %v2783_v35, %v2462_v62  ;;  %v4653_v17 = vpop.f32.mrf.mxu1 }
 0x1cc   : > { %v4687_v24 = vpop.f32.mrf.mxu0  ;;  %v2471_v44 = vadd.f32 %v4653_v17, %v6153_v25 }
 0x1cd   : > { %v6249_v8 = vadd.f32 %v4687_v24, %v2467_v49  ;;  %v2374_v63 = vpop.f32.mrf.mxu1 }
 0x1ce   : > { %v2796_v1 = vpop.f32.mrf.mxu0  ;;  %v2469_v29 = vadd.f32 %v2374_v63, %v6156_v10 }
 0x1cf   : > { %v6252_v15 = vadd.f32 %v2796_v1, %v2465_v46  ;;  %v4654_v38 = vpop.f32.mrf.mxu1 }
 0x1d0   : > { %v4688_v55 = vpop.f32.mrf.mxu0  ;;  %v2472_v50 = vadd.f32 %v4654_v38, %v6159_v60 }
 0x1d1   : > { %v6255_v11 = vadd.f32 %v4688_v55, %v2468_v12  ;;  %v2377_v22 = vpop.f32.mrf.mxu1 }
 0x1d2   : > { %v2799_v14 = vpop.f32.mrf.mxu0  ;;  %v2470_v4 = vadd.f32 %v2377_v22, %v6162_v45 }
 0x1d3   : > { %v6258_v9 = vadd.f32 %v2799_v14, %v2466_v53  ;;  %v4657_v25 = vpop.f32.mrf.mxu1 }
 0x1d4   : > { %v4691_v2 = vpop.f32.mrf.mxu0  ;;  %v2475_v27 = vadd.f32 %v4657_v25, %v6165_v37 }
 0x1d5   : > { %v6261_v54 = vadd.f32 %v4691_v2, %v2471_v44  ;;  %v2390_v10 = vpop.f32.mrf.mxu1 }
 0x1d6   : > { %v2812_v7 = vpop.f32.mrf.mxu0  ;;  %v2473_v13 = vadd.f32 %v2390_v10, %v6168_v40 }
 0x1d7   : > { %v6264_v62 = vadd.f32 %v2812_v7, %v2469_v29  ;;  %v4658_v60 = vpop.f32.mrf.mxu1 }
 0x1d8   : > { %v4692_v61 = vpop.f32.mrf.mxu0  ;;  %v2476_v41 = vadd.f32 %v4658_v60, %v6171_v19 }
 0x1d9   : > { %v6267_v49 = vadd.f32 %v4692_v61, %v2472_v50  ;;  %v2393_v45 = vpop.f32.mrf.mxu1 }
 0x1da   : > { %v2815_v58 = vpop.f32.mrf.mxu0  ;;  %v2474_v35 = vadd.f32 %v2393_v45, %v6174_v51 }
 0x1db   : > { %v6270_v46 = vadd.f32 %v2815_v58, %v2470_v4  ;;  %v4661_v37 = vpop.f32.mrf.mxu1 }
 0x1dc   : > { %v4695_v16 = vpop.f32.mrf.mxu0  ;;  %v2479_v24 = vadd.f32 %v4661_v37, %v6177_v48 }
 0x1dd   : > { %v6273_v12 = vadd.f32 %v4695_v16, %v2475_v27  ;;  %v2406_v40 = vpop.f32.mrf.mxu1 }
 0x1de   : > { %v2828_v21 = vpop.f32.mrf.mxu0  ;;  %v2477_v1 = vadd.f32 %v2406_v40, %v6180_v57 }
 0x1df   : > { %v6276_v53 = vadd.f32 %v2828_v21, %v2473_v13  ;;  %v4662_v19 = vpop.f32.mrf.mxu1 }
 0x1e0   : > { %v4696_v17 = vpop.f32.mrf.mxu0  ;;  %v2480_v55 = vadd.f32 %v4662_v19, %v6183_v26 }
 0x1e1   : > { %v6279_v44 = vadd.f32 %v4696_v17, %v2476_v41  ;;  %v2409_v51 = vpop.f32.mrf.mxu1 }
 0x1e2   : > { %v2831_v63 = vpop.f32.mrf.mxu0  ;;  %v2478_v14 = vadd.f32 %v2409_v51, %v6186_v39 }
 0x1e3   : > { %v6282_v29 = vadd.f32 %v2831_v63, %v2474_v35  ;;  %v4665_v48 = vpop.f32.mrf.mxu1 }
 0x1e4   : > { %v4699_v38 = vpop.f32.mrf.mxu0  ;;  %v2483_v2 = vadd.f32 %v4665_v48, %v6189_v47 }
 0x1e5   : > { %v6285_v50 = vadd.f32 %v4699_v38, %v2479_v24  ;;  %v2422_v57 = vpop.f32.mrf.mxu1 }
 0x1e6   : > { %v2844_v22 = vpop.f32.mrf.mxu0  ;;  %v2481_v7 = vadd.f32 %v2422_v57, %v6192_v30 }
 0x1e7   : > { %v6288_v4 = vadd.f32 %v2844_v22, %v2477_v1  ;;  %v4666_v26 = vpop.f32.mrf.mxu1 }
 0x1e8   : > { %v4700_v25 = vpop.f32.mrf.mxu0  ;;  %v2484_v61 = vadd.f32 %v4666_v26, %v6195_v6  ;;  %v6318_v26 = vld [vmem:[#allocation5] ss:$0 sm:$0xff] }
 0x1e9   : > { %v6291_v27 = vadd.f32 %v4700_v25, %v2480_v55  ;;  %v2425_v39 = vpop.f32.mrf.mxu1 }
 0x1ea   : > { %v2847_v10 = vpop.f32.mrf.mxu0  ;;  %v2482_v58 = vadd.f32 %v2425_v39, %v6198_v3 }
 0x1eb   : > { %v6294_v13 = vadd.f32 %v2847_v10, %v2478_v14  ;;  %v4669_v47 = vpop.f32.mrf.mxu1 }
 0x1ec   : > { %v4703_v60 = vpop.f32.mrf.mxu0  ;;  %v2487_v16 = vadd.f32 %v4669_v47, %v6201_v18 }
 0x1ed   : > { %v6297_v41 = vadd.f32 %v4703_v60, %v2483_v2  ;;  %v2438_v30 = vpop.f32.mrf.mxu1 }
 0x1ee   : > { %v2860_v45 = vpop.f32.mrf.mxu0  ;;  %v2485_v21 = vadd.f32 %v2438_v30, %v6204_v59 }
 0x1ef   : > { %v6300_v35 = vadd.f32 %v2860_v45, %v2481_v7  ;;  %v4670_v6 = vpop.f32.mrf.mxu1 }
 0x1f0   : > { %v4704_v37 = vpop.f32.mrf.mxu0  ;;  %v2488_v17 = vadd.f32 %v4670_v6, %v6207_v52 }
 0x1f1   : > { %v6303_v24 = vadd.f32 %v4704_v37, %v2484_v61  ;;  %v2441_v3 = vpop.f32.mrf.mxu1 }
 0x1f2   : > { %v2863_v40 = vpop.f32.mrf.mxu0  ;;  %v2486_v63 = vadd.f32 %v2441_v3, %v6210_v20 }
 0x1f3   : > { %v6306_v1 = vadd.f32 %v2863_v40, %v2482_v58  ;;  %v4713_v18 = vpop.f32.mrf.mxu1 }
 0x1f4   : > { %v4707_v19 = vpop.f32.mrf.mxu0  ;;  %v3343_v52 = vadd.f32 %v4713_v18, %v6213_v0 }
 0x1f5   : > { %v6309_v55 = vadd.f32 %v4707_v19, %v2487_v16  ;;  %v3198_v14 = vpop.f32.mrf.mxu1 }
 0x1f6   : > { %v2876_v51 = vpop.f32.mrf.mxu0  ;;  %v3341_v20 = vadd.f32 %v3198_v14, %v6216_v5 }
 0x1f7   : > { %v6311_v38 = vadd.f32 %v2876_v51, %v2485_v21  ;;  %v4714_v22 = vpop.f32.mrf.mxu1 }
 0x1f8   : > { %v4708_v59 = vpop.f32.mrf.mxu0  ;;  %v3344_v60 = vadd.f32 %v4714_v22, %v6219_v32 }
 0x1f9   : > { %v6313_v48 = vadd.f32 %v4708_v59, %v2488_v17  ;;  %v3201_v25 = vpop.f32.mrf.mxu1 }
 0x1fa   : > { %v2879_v2 = vpop.f32.mrf.mxu0  ;;  %v3342_v0 = vadd.f32 %v3201_v25, %v6222_v34 }
 0x1fb   : > { %v6316_v57 = vadd.f32 %v2879_v2, %v2486_v63  ;;  %v4717_v61 = vpop.f32.mrf.mxu1 }
 0x1fc   : > { %v4751_v7 = vpop.f32.mrf.mxu0  ;;  %v3347_v5 = vadd.f32 %v4717_v61, %v6225_v31 }
 0x1fd   : > { %v3656_v10 = vadd.f32 %v4751_v7, %v3343_v52  ;;  %v3214_v45 = vpop.f32.mrf.mxu1 }
 0x1fe   : > { %v3511_v39 = vpop.f32.mrf.mxu0  ;;  %v3345_v18 = vadd.f32 %v3214_v45, %v6228_v23 }
 0x1ff   : > { %v3699_v58 = vadd.f32 %v6318_v26, %v3656_v10  ;;  %v3654_v47 = vadd.f32 %v3511_v39, %v3341_v20  ;;  %v4718_v6 = vpop.f32.mrf.mxu1 }
 0x200   : > { %v4752_v16 = vpop.f32.mrf.mxu0  ;;  %v3348_v31 = vadd.f32 %v4718_v6, %v6231_v43 }
 0x201   : > { %v3735_v30 = vmax.f32 %v3699_v58, 0.0  ;;  %v3697_v37 = vadd.f32 %v6318_v26, %v3654_v47  ;;  %v3657_v21 = vadd.f32 %v4752_v16, %v3344_v60  ;;  %v3217_v19 = vpop.f32.mrf.mxu1 }
 0x202   : > { %v3514_v40 = vpop.f32.mrf.mxu0  ;;  %v3346_v23 = vadd.f32 %v3217_v19, %v6234_v33 }
 0x203   : > { %3772 = vst.msk [vmem:[#allocation2 + $0x10] sm:$0xff] %vm3769_vm8, %v3735_v30  ;;  %v3733_v17 = vmax.f32 %v3697_v37, 0.0  ;;  %v3700_v32 = vadd.f32 %v6318_v26, %v3657_v21  ;;  %v3655_v3 = vadd.f32 %v3514_v40, %v3342_v0  ;;  %v4721_v59 = vpop.f32.mrf.mxu1 }
 0x204   : > { %v4755_v63 = vpop.f32.mrf.mxu0  ;;  %v3351_v43 = vadd.f32 %v4721_v59, %v6237_v42 }
 0x205   : > { %3770 = vst.msk [vmem:[#allocation2] sm:$0xff] %vm3769_vm8, %v3733_v17  ;;  %v3736_v34 = vmax.f32 %v3700_v32, 0.0  ;;  %v3698_v51 = vadd.f32 %v6318_v26, %v3655_v3  ;;  %v3660_v14 = vadd.f32 %v4755_v63, %v3347_v5  ;;  %v3230_v7 = vpop.f32.mrf.mxu1 }
 0x206   : > { %v3527_v22 = vpop.f32.mrf.mxu0  ;;  %v3349_v33 = vadd.f32 %v3230_v7, %v6240_v28 }
 0x207   : > { %3773 = vst.msk [vmem:[#allocation2 + $0x18] sm:$0xff] %vm3769_vm8, %v3736_v34  ;;  %v3734_v2 = vmax.f32 %v3698_v51, 0.0  ;;  %v3703_v52 = vadd.f32 %v6318_v26, %v3660_v14  ;;  %v3658_v25 = vadd.f32 %v3527_v22, %v3345_v18  ;;  %v4722_v60 = vpop.f32.mrf.mxu1 }
 0x208   : > { %v4756_v20 = vpop.f32.mrf.mxu0  ;;  %v3352_v3 = vadd.f32 %v4722_v60, %v6243_v36 }
 0x209   : > { %3771 = vst.msk [vmem:[#allocation2 + $0x8] sm:$0xff] %vm3769_vm8, %v3734_v2  ;;  %v3739_v10 = vmax.f32 %v3703_v52, 0.0  ;;  %v3701_v61 = vadd.f32 %v6318_v26, %v3658_v25  ;;  %v3661_v39 = vadd.f32 %v4756_v20, %v3348_v31  ;;  %v3233_v0 = vpop.f32.mrf.mxu1 }
 0x20a   : > { %v3530_v58 = vpop.f32.mrf.mxu0  ;;  %v3350_v28 = vadd.f32 %v3233_v0, %v6246_v56 }
 0x20b   : > { %3776 = vst.msk [vmem:[#allocation2 + $0x30] sm:$0xff] %vm3769_vm8, %v3739_v10  ;;  %v3737_v47 = vmax.f32 %v3701_v61, 0.0  ;;  %v3704_v45 = vadd.f32 %v6318_v26, %v3661_v39  ;;  %v3659_v16 = vadd.f32 %v3530_v58, %v3346_v23  ;;  %v4725_v40 = vpop.f32.mrf.mxu1 }
 0x20c   : > { %v4759_v30 = vpop.f32.mrf.mxu0  ;;  %v3355_v2 = vadd.f32 %v4725_v40, %v6249_v8 }
 0x20d   : > { %3774 = vst.msk [vmem:[#allocation2 + $0x20] sm:$0xff] %vm3769_vm8, %v3737_v47  ;;  %v3740_v37 = vmax.f32 %v3704_v45, 0.0  ;;  %v3702_v21 = vadd.f32 %v6318_v26, %v3659_v16  ;;  %v3664_v6 = vadd.f32 %v4759_v30, %v3351_v43  ;;  %v3246_v19 = vpop.f32.mrf.mxu1 }
 0x20e   : > { %v3543_v5 = vpop.f32.mrf.mxu0  ;;  %v3353_v8 = vadd.f32 %v3246_v19, %v6252_v15 }
 0x20f   : > { %3777 = vst.msk [vmem:[#allocation2 + $0x38] sm:$0xff] %vm3769_vm8, %v3740_v37  ;;  %v3738_v42 = vmax.f32 %v3702_v21, 0.0  ;;  %v3707_v17 = vadd.f32 %v6318_v26, %v3664_v6  ;;  %v3662_v32 = vadd.f32 %v3543_v5, %v3349_v33  ;;  %v4726_v59 = vpop.f32.mrf.mxu1 }
 0x210   : > { %v4760_v63 = vpop.f32.mrf.mxu0  ;;  %v3806_v51 = vld [vmem:[#allocation2] ss:$2 sm:$0xff]  ;;  %v3808_v14 = vld [vmem:[#allocation2 + $0x1] ss:$2 sm:$0xff]  ;;  %v3356_v30 = vadd.f32 %v4726_v59, %v6255_v11 }
 0x211   : > { %3775 = vst.msk [vmem:[#allocation2 + $0x28] sm:$0xff] %vm3769_vm8, %v3738_v42  ;;  %v3743_v18 = vmax.f32 %v3707_v17, 0.0  ;;  %v3705_v34 = vadd.f32 %v6318_v26, %v3662_v32  ;;  %v3665_v22 = vadd.f32 %v4760_v63, %v3352_v3  ;;  %v3249_v20 = vpop.f32.mrf.mxu1  ;;  %v3809_v10 = vmax.f32 %v3806_v51, %v3808_v14 }
 0x212   : > { %v3546_v31 = vpop.f32.mrf.mxu0  ;;  %v3354_v6 = vadd.f32 %v3249_v20, %v6258_v9 }
 0x213   : > { %3780 = vst.msk [vmem:[#allocation2 + $0x50] sm:$0xff] %vm3769_vm8, %v3743_v18  ;;  %v3741_v36 = vmax.f32 %v3705_v34, 0.0  ;;  %v3663_v52 = vadd.f32 %v3546_v31, %v3350_v28  ;;  %v3708_v56 = vadd.f32 %v6318_v26, %v3665_v22  ;;  %v4729_v43 = vpop.f32.mrf.mxu1 }
 0x214   : > { %v3811_v25 = vld [vmem:[#allocation2 + $0x12] ss:$2 sm:$0xff]  ;;  %v3813_v7 = vld [vmem:[#allocation2 + $0x13] ss:$2 sm:$0xff]  ;;  %v4763_v23 = vpop.f32.mrf.mxu0  ;;  %v3359_v11 = vadd.f32 %v4729_v43, %v6261_v54 }
 0x215   : > { %v3814_v61 = vmax.f32 %v3811_v25, %v3813_v7  ;;  %3778 = vst.msk [vmem:[#allocation2 + $0x40] sm:$0xff] %vm3769_vm8, %v3741_v36  ;;  %v3706_v39 = vadd.f32 %v6318_v26, %v3663_v52  ;;  %v3668_v60 = vadd.f32 %v4763_v23, %v3355_v2  ;;  %v3744_v58 = vmax.f32 %v3708_v56, 0.0  ;;  %v3262_v33 = vpop.f32.mrf.mxu1 }
 0x216   : > { %v3559_v47 = vpop.f32.mrf.mxu0  ;;  %v3357_v36 = vadd.f32 %v3262_v33, %v6264_v62 }
 0x217   : > { %v3815_v45 = vmax.f32 %v3809_v10, %v3814_v61  ;;  %v3742_v16 = vmax.f32 %v3706_v39, 0.0  ;;  %v3711_v0 = vadd.f32 %v6318_v26, %v3668_v60  ;;  %3781 = vst.msk [vmem:[#allocation2 + $0x58] sm:$0xff] %vm3769_vm8, %v3744_v58  ;;  %v3666_v15 = vadd.f32 %v3559_v47, %v3353_v8  ;;  %v4730_v32 = vpop.f32.mrf.mxu1 }
 0x218   : > { %v4764_v37 = vpop.f32.mrf.mxu0  ;;  %v3820_v5 = vld [vmem:[#allocation2 + $0x24] ss:$2 sm:$0xff]  ;;  %v3822_v42 = vld [vmem:[#allocation2 + $0x25] ss:$2 sm:$0xff]  ;;  %v3360_v23 = vadd.f32 %v4730_v32, %v6267_v49 }
 0x219   : > { %v3816_v21 = vpack.c.bf16 %v3815_v45, %v3815_v45  ;;  %3779 = vst.msk [vmem:[#allocation2 + $0x48] sm:$0xff] %vm3769_vm8, %v3742_v16  ;;  %v3747_v40 = vmax.f32 %v3711_v0, 0.0  ;;  %v3709_v17 = vadd.f32 %v6318_v26, %v3666_v15  ;;  %v3669_v3 = vadd.f32 %v4764_v37, %v3356_v30  ;;  %v3265_v51 = vpop.f32.mrf.mxu1 }
 0x21a   : > { %v3562_v19 = vpop.f32.mrf.mxu0  ;;  %v3823_v59 = vmax.f32 %v3820_v5, %v3822_v42  ;;  %v3358_v62 = vadd.f32 %v3265_v51, %v6270_v46 }
 0x21b   : > { %3818 = vst.msk [vmem:[%s6360_s17] sm:$0xf] %vm3817_vm9, %v3816_v21  ;;  %v3667_v63 = vadd.f32 %v3562_v19, %v3354_v6  ;;  %v3745_v9 = vmax.f32 %v3709_v17, 0.0  ;;  %v3712_v34 = vadd.f32 %v6318_v26, %v3669_v3  ;;  %v4733_v52 = vpop.f32.mrf.mxu1 }
 0x21c   : > { %3784 = vst.msk [vmem:[#allocation2 + $0x70] sm:$0xff] %vm3769_vm8, %v3747_v40  ;;  %v3825_v28 = vld [vmem:[#allocation2 + $0x36] ss:$2 sm:$0xff]  ;;  %v3827_v18 = vld [vmem:[#allocation2 + $0x37] ss:$2 sm:$0xff]  ;;  %v4767_v14 = vpop.f32.mrf.mxu0  ;;  %v3363_v49 = vadd.f32 %v4733_v52, %v6273_v12 }
 0x21d   : > { %v3828_v22 = vmax.f32 %v3825_v28, %v3827_v18  ;;  %v3710_v31 = vadd.f32 %v6318_v26, %v3667_v63  ;;  %v3672_v2 = vadd.f32 %v4767_v14, %v3359_v11  ;;  %3782 = vst.msk [vmem:[#allocation2 + $0x60] sm:$0xff] %vm3769_vm8, %v3745_v9  ;;  %v3748_v54 = vmax.f32 %v3712_v34, 0.0  ;;  %v3278_v10 = vpop.f32.mrf.mxu1 }
 0x21e   : > { %v3575_v25 = vpop.f32.mrf.mxu0  ;;  %v3361_v21 = vadd.f32 %v3278_v10, %v6276_v53 }
 0x21f   : > { %v3829_v7 = vmax.f32 %v3823_v59, %v3828_v22  ;;  %v3746_v56 = vmax.f32 %v3710_v31, 0.0  ;;  %v3715_v20 = vadd.f32 %v6318_v26, %v3672_v2  ;;  %3785 = vst.msk [vmem:[#allocation2 + $0x78] sm:$0xff] %vm3769_vm8, %v3748_v54  ;;  %v3670_v61 = vadd.f32 %v3575_v25, %v3357_v36  ;;  %v4734_v43 = vpop.f32.mrf.mxu1 }
 0x220   : > { %v4768_v39 = vpop.f32.mrf.mxu0  ;;  %v3834_v15 = vld [vmem:[#allocation2 + $0x48] ss:$2 sm:$0xff]  ;;  %v3836_v37 = vld [vmem:[#allocation2 + $0x49] ss:$2 sm:$0xff]  ;;  %v3364_v28 = vadd.f32 %v4734_v43, %v6279_v44 }
 0x221   : > { %v3830_v60 = vpack.c.bf16 %v3829_v7, %v3829_v7  ;;  %3783 = vst.msk [vmem:[#allocation2 + $0x68] sm:$0xff] %vm3769_vm8, %v3746_v56  ;;  %v3751_v8 = vmax.f32 %v3715_v20, 0.0  ;;  %v3713_v58 = vadd.f32 %v6318_v26, %v3670_v61  ;;  %v3673_v47 = vadd.f32 %v4768_v39, %v3360_v23  ;;  %v3281_v33 = vpop.f32.mrf.mxu1 }
 0x222   : > { %v3578_v45 = vpop.f32.mrf.mxu0  ;;  %v3837_v19 = vmax.f32 %v3834_v15, %v3836_v37  ;;  %v3362_v34 = vadd.f32 %v3281_v33, %v6282_v29 }
 0x223   : > { %4262 = vst.msk [vmem:[%s6360_s17 + $0x4] sm:$0xf] %vm3817_vm9, %v3830_v60  ;;  %v3671_v16 = vadd.f32 %v3578_v45, %v3358_v62  ;;  %v3749_v0 = vmax.f32 %v3713_v58, 0.0  ;;  %v3716_v30 = vadd.f32 %v6318_v26, %v3673_v47  ;;  %v4737_v42 = vpop.f32.mrf.mxu1 }
 0x224   : > { %3788 = vst.msk [vmem:[#allocation2 + $0x90] sm:$0xff] %vm3769_vm8, %v3751_v8  ;;  %v4771_v46 = vpop.f32.mrf.mxu0  ;;  %v3367_v36 = vadd.f32 %v4737_v42, %v6285_v50 }
 0x225   : > { %v3714_v6 = vadd.f32 %v6318_v26, %v3671_v16  ;;  %v3676_v40 = vadd.f32 %v4771_v46, %v3363_v49  ;;  %3786 = vst.msk [vmem:[#allocation2 + $0x80] sm:$0xff] %vm3769_vm8, %v3749_v0  ;;  %v3752_v5 = vmax.f32 %v3716_v30, 0.0  ;;  %v3294_v53 = vpop.f32.mrf.mxu1 }
 0x226   : > { %v3591_v12 = vpop.f32.mrf.mxu0  ;;  %v3365_v23 = vadd.f32 %v3294_v53, %v6288_v4 }
 0x227   : > { %v3750_v17 = vmax.f32 %v3714_v6, 0.0  ;;  %v3719_v32 = vadd.f32 %v6318_v26, %v3676_v40  ;;  %v3674_v3 = vadd.f32 %v3591_v12, %v3361_v21  ;;  %3789 = vst.msk [vmem:[#allocation2 + $0x98] sm:$0xff] %vm3769_vm8, %v3752_v5  ;;  %v4738_v59 = vpop.f32.mrf.mxu1 }
 0x228   : > { %v3839_v11 = vld [vmem:[#allocation2 + $0x5a] ss:$2 sm:$0xff]  ;;  %v3841_v63 = vld [vmem:[#allocation2 + $0x5b] ss:$2 sm:$0xff]  ;;  %v4772_v18 = vpop.f32.mrf.mxu0  ;;  %v3368_v49 = vadd.f32 %v4738_v59, %v6291_v27 }
 0x229   : > { %v3842_v9 = vmax.f32 %v3839_v11, %v3841_v63  ;;  %3787 = vst.msk [vmem:[#allocation2 + $0x88] sm:$0xff] %vm3769_vm8, %v3750_v17  ;;  %v3755_v51 = vmax.f32 %v3719_v32, 0.0  ;;  %v3717_v14 = vadd.f32 %v6318_v26, %v3674_v3  ;;  %v3677_v22 = vadd.f32 %v4772_v18, %v3364_v28  ;;  %v3297_v25 = vpop.f32.mrf.mxu1  ;;  %v3848_v56 = vld [vmem:[#allocation2 + $0x6c] ss:$2 sm:$0xff]  ;;  %v3850_v20 = vld [vmem:[#allocation2 + $0x6d] ss:$2 sm:$0xff] }
 0x22a   : > { %v3594_v31 = vpop.f32.mrf.mxu0  ;;  %v3851_v43 = vmax.f32 %v3848_v56, %v3850_v20  ;;  %v3366_v30 = vadd.f32 %v3297_v25, %v6294_v13 }
 0x22b   : > { %v3843_v2 = vmax.f32 %v3837_v19, %v3842_v9  ;;  %3792 = vst.msk [vmem:[#allocation2 + $0xb0] sm:$0xff] %vm3769_vm8, %v3755_v51  ;;  %v3753_v44 = vmax.f32 %v3717_v14, 0.0  ;;  %v3675_v54 = vadd.f32 %v3594_v31, %v3362_v34  ;;  %v3720_v52 = vadd.f32 %v6318_v26, %v3677_v22  ;;  %v4741_v39 = vpop.f32.mrf.mxu1 }
 0x22c   : > { %v4775_v29 = vpop.f32.mrf.mxu0  ;;  %v3371_v40 = vadd.f32 %v4741_v39, %v6297_v41 }
 0x22d   : > { %v3844_v7 = vpack.c.bf16 %v3843_v2, %v3843_v2  ;;  %3790 = vst.msk [vmem:[#allocation2 + $0xa0] sm:$0xff] %vm3769_vm8, %v3753_v44  ;;  %v3718_v10 = vadd.f32 %v6318_v26, %v3675_v54  ;;  %v3680_v61 = vadd.f32 %v4775_v29, %v3367_v36  ;;  %v3756_v50 = vmax.f32 %v3720_v52, 0.0  ;;  %v3310_v4 = vpop.f32.mrf.mxu1 }
 0x22e   : > { %v3607_v60 = vpop.f32.mrf.mxu0  ;;  %v3862_v17 = vld [vmem:[#allocation2 + $0x90] ss:$2 sm:$0xff]  ;;  %v3864_v32 = vld [vmem:[#allocation2 + $0x91] ss:$2 sm:$0xff]  ;;  %v3369_v19 = vadd.f32 %v3310_v4, %v6300_v35 }
 0x22f   : > { %4263 = vst.msk [vmem:[%s6360_s17 + $0x8] sm:$0xf] %vm3817_vm9, %v3844_v7  ;;  %v3754_v62 = vmax.f32 %v3718_v10, 0.0  ;;  %v3723_v8 = vadd.f32 %v6318_v26, %v3680_v61  ;;  %v3678_v58 = vadd.f32 %v3607_v60, %v3365_v23  ;;  %v4742_v15 = vpop.f32.mrf.mxu1  ;;  %v3865_v51 = vmax.f32 %v3862_v17, %v3864_v32 }
 0x230   : > { %v3853_v47 = vld [vmem:[#allocation2 + $0x7e] ss:$2 sm:$0xff]  ;;  %v3855_v45 = vld [vmem:[#allocation2 + $0x7f] ss:$2 sm:$0xff]  ;;  %3793 = vst.msk [vmem:[#allocation2 + $0xb8] sm:$0xff] %vm3769_vm8, %v3756_v50  ;;  %v4776_v16 = vpop.f32.mrf.mxu0  ;;  %v3372_v22 = vadd.f32 %v4742_v15, %v6303_v24 }
 0x231   : > { %v3856_v0 = vmax.f32 %v3853_v47, %v3855_v45  ;;  %3791 = vst.msk [vmem:[#allocation2 + $0xa8] sm:$0xff] %vm3769_vm8, %v3754_v62  ;;  %v3759_v33 = vmax.f32 %v3723_v8, 0.0  ;;  %v3721_v46 = vadd.f32 %v6318_v26, %v3678_v58  ;;  %v3681_v37 = vadd.f32 %v4776_v16, %v3368_v49  ;;  %v3313_v12 = vpop.f32.mrf.mxu1 }
 0x232   : > { %v3610_v21 = vpop.f32.mrf.mxu0  ;;  %v3370_v36 = vadd.f32 %v3313_v12, %v6306_v1 }
 0x233   : > { %v3857_v6 = vmax.f32 %v3851_v43, %v3856_v0  ;;  %3796 = vst.msk [vmem:[#allocation2 + $0xd0] sm:$0xff] %vm3769_vm8, %v3759_v33  ;;  %v3757_v27 = vmax.f32 %v3721_v46, 0.0  ;;  %v3679_v5 = vadd.f32 %v3610_v21, %v3366_v30  ;;  %v3724_v42 = vadd.f32 %v6318_v26, %v3681_v37  ;;  %v4745_v28 = vpop.f32.mrf.mxu1 }
 0x234   : > { %v4779_v13 = vpop.f32.mrf.mxu0  ;;  %v3375_v20 = vadd.f32 %v4745_v28, %v6309_v55 }
 0x235   : > { %v3858_v3 = vpack.c.bf16 %v3857_v6, %v3857_v6  ;;  %3794 = vst.msk [vmem:[#allocation2 + $0xc0] sm:$0xff] %vm3769_vm8, %v3757_v27  ;;  %v3722_v11 = vadd.f32 %v6318_v26, %v3679_v5  ;;  %v3684_v63 = vadd.f32 %v4779_v13, %v3371_v40  ;;  %v3760_v41 = vmax.f32 %v3724_v42, 0.0  ;;  %v3326_v35 = vpop.f32.mrf.mxu1 }
 0x236   : > { %v3623_v53 = vpop.f32.mrf.mxu0  ;;  %v3373_v39 = vadd.f32 %v3326_v35, %v6311_v38 }
 0x237   : > { %4264 = vst.msk [vmem:[%s6360_s17 + $0xc] sm:$0xf] %vm3817_vm9, %v3858_v3  ;;  %v3758_v18 = vmax.f32 %v3722_v11, 0.0  ;;  %v3727_v9 = vadd.f32 %v6318_v26, %v3684_v63  ;;  %v3682_v34 = vadd.f32 %v3623_v53, %v3369_v19  ;;  %v4746_v52 = vpop.f32.mrf.mxu1 }
 0x238   : > { %v3867_v14 = vld [vmem:[#allocation2 + $0xa2] ss:$2 sm:$0xff]  ;;  %v3869_v59 = vld [vmem:[#allocation2 + $0xa3] ss:$2 sm:$0xff]  ;;  %3797 = vst.msk [vmem:[#allocation2 + $0xd8] sm:$0xff] %vm3769_vm8, %v3760_v41  ;;  %v4780_v31 = vpop.f32.mrf.mxu0  ;;  %v3376_v55 = vadd.f32 %v4746_v52, %v6313_v48 }
 0x239   : > { %v3870_v2 = vmax.f32 %v3867_v14, %v3869_v59  ;;  %3795 = vst.msk [vmem:[#allocation2 + $0xc8] sm:$0xff] %vm3769_vm8, %v3758_v18  ;;  %v3763_v44 = vmax.f32 %v3727_v9, 0.0  ;;  %v3725_v54 = vadd.f32 %v6318_v26, %v3682_v34  ;;  %v3685_v25 = vadd.f32 %v4780_v31, %v3372_v22  ;;  %v3329_v8 = vpop.f32.mrf.mxu1 }
 0x23a   : > { %v3626_v29 = vpop.f32.mrf.mxu0  ;;  %v3374_v33 = vadd.f32 %v3329_v8, %v6316_v57 }
 0x23b   : > { %v3871_v7 = vmax.f32 %v3865_v51, %v3870_v2  ;;  %3800 = vst.msk [vmem:[#allocation2 + $0xf0] sm:$0xff] %vm3769_vm8, %v3763_v44  ;;  %v3761_v24 = vmax.f32 %v3725_v54, 0.0  ;;  %v3683_v56 = vadd.f32 %v3626_v29, %v3370_v36  ;;  %v3728_v23 = vadd.f32 %v6318_v26, %v3685_v25 }
 0x23c   : > { %v4783_v10 = vpop.f32.mrf.mxu0  ;;  %v3876_v61 = vld [vmem:[#allocation2 + $0xb4] ss:$2 sm:$0xff]  ;;  %v3878_v50 = vld [vmem:[#allocation2 + $0xb5] ss:$2 sm:$0xff] }
 0x23d   : > { %v3872_v1 = vpack.c.bf16 %v3871_v7, %v3871_v7  ;;  %3798 = vst.msk [vmem:[#allocation2 + $0xe0] sm:$0xff] %vm3769_vm8, %v3761_v24  ;;  %v3726_v60 = vadd.f32 %v6318_v26, %v3683_v56  ;;  %v3764_v62 = vmax.f32 %v3728_v23, 0.0  ;;  %v3688_v58 = vadd.f32 %v4783_v10, %v3375_v20 }
 0x23e   : > { %v3639_v43 = vpop.f32.mrf.mxu0  ;;  %v3879_v49 = vmax.f32 %v3876_v61, %v3878_v50 }
 0x23f   : > { %4265 = vst.msk [vmem:[%s6360_s17 + $0x10] sm:$0xf] %vm3817_vm9, %v3872_v1  ;;  %v3762_v47 = vmax.f32 %v3726_v60, 0.0  ;;  %v3686_v45 = vadd.f32 %v3639_v43, %v3373_v39  ;;  %v3731_v38 = vadd.f32 %v6318_v26, %v3688_v58 }
 0x240   : > { %v3881_v4 = vld [vmem:[#allocation2 + $0xc6] ss:$2 sm:$0xff]  ;;  %v3883_v16 = vld [vmem:[#allocation2 + $0xc7] ss:$2 sm:$0xff]  ;;  %3801 = vst.msk [vmem:[#allocation2 + $0xf8] sm:$0xff] %vm3769_vm8, %v3764_v62  ;;  %v4784_v0 = vpop.f32.mrf.mxu0 }
 0x241   : > { %v3884_v30 = vmax.f32 %v3881_v4, %v3883_v16  ;;  %3799 = vst.msk [vmem:[#allocation2 + $0xe8] sm:$0xff] %vm3769_vm8, %v3762_v47  ;;  %v3729_v46 = vadd.f32 %v6318_v26, %v3686_v45  ;;  %v3689_v15 = vadd.f32 %v4784_v0, %v3376_v55  ;;  %v3767_v48 = vmax.f32 %v3731_v38, 0.0 }
 0x242   : > { %v3642_v37 = vpop.f32.mrf.mxu0 }
 0x243   : > { %v3885_v21 = vmax.f32 %v3879_v49, %v3884_v30  ;;  %v3765_v6 = vmax.f32 %v3729_v46, 0.0  ;;  %v3732_v40 = vadd.f32 %v6318_v26, %v3689_v15  ;;  %v3687_v27 = vadd.f32 %v3642_v37, %v3374_v33  ;;  %3804 = vst.msk [vmem:[#allocation2 + $0x110] sm:$0xff] %vm3769_vm8, %v3767_v48 }
 0x244   : > { %v3890_v12 = vld [vmem:[#allocation2 + $0xd8] ss:$2 sm:$0xff]  ;;  %v3892_v13 = vld [vmem:[#allocation2 + $0xd9] ss:$2 sm:$0xff] }
 0x245   : > { %v3886_v5 = vpack.c.bf16 %v3885_v21, %v3885_v21  ;;  %3802 = vst.msk [vmem:[#allocation2 + $0x100] sm:$0xff] %vm3769_vm8, %v3765_v6  ;;  %v3768_v57 = vmax.f32 %v3732_v40, 0.0  ;;  %v3730_v42 = vadd.f32 %v6318_v26, %v3687_v27  ;;  %v3893_v19 = vmax.f32 %v3890_v12, %v3892_v13 }
 0x247   : > { %4266 = vst.msk [vmem:[%s6360_s17 + $0x14] sm:$0xf] %vm3817_vm9, %v3886_v5  ;;  %v3766_v17 = vmax.f32 %v3730_v42, 0.0 }
 0x248   : > { %3805 = vst.msk [vmem:[#allocation2 + $0x118] sm:$0xff] %vm3769_vm8, %v3768_v57  ;;  %v3895_v32 = vld [vmem:[#allocation2 + $0xea] ss:$2 sm:$0xff]  ;;  %v3897_v3 = vld [vmem:[#allocation2 + $0xeb] ss:$2 sm:$0xff] }
 0x249   : > { %v3898_v11 = vmax.f32 %v3895_v32, %v3897_v3  ;;  %3803 = vst.msk [vmem:[#allocation2 + $0x108] sm:$0xff] %vm3769_vm8, %v3766_v17 }
 0x24b   : > { %v3899_v63 = vmax.f32 %v3893_v19, %v3898_v11 }
 0x24d   : > { %v3900_v41 = vpack.c.bf16 %v3899_v63, %v3899_v63 }
 0x24f   : > { %4267 = vst.msk [vmem:[%s6360_s17 + $0x18] sm:$0xf] %vm3817_vm9, %v3900_v41 }
 0x250   : > { %v3904_v28 = vld [vmem:[#allocation2 + $0xfc] ss:$2 sm:$0xff]  ;;  %v3906_v26 = vld [vmem:[#allocation2 + $0xfd] ss:$2 sm:$0xff] }
 0x251   : > { %v3909_v53 = vld [vmem:[#allocation2 + $0x10e] ss:$2 sm:$0xff]  ;;  %v3907_v18 = vmax.f32 %v3904_v28, %v3906_v26  ;;  %v3911_v9 = vld [vmem:[#allocation2 + $0x10f] ss:$2 sm:$0xff] }
 0x252   : > { %v3912_v34 = vmax.f32 %v3909_v53, %v3911_v9 }
 0x254   : > { %v3913_v51 = vmax.f32 %v3907_v18, %v3912_v34 }
 0x256   : > { %v3914_v14 = vpack.c.bf16 %v3913_v51, %v3913_v51 }
 0x258   : > { %4268 = vst.msk [vmem:[%s6360_s17 + $0x1c] sm:$0xf] %vm3817_vm9, %v3914_v14 }
 0x259 PF: > { %s15_s14 = sadd.s32 1, %s4993_s14   ;;  %s6501_s12 = smov %s4989_s13 }
 0x25a   : > { %p12_p3 = scmp.ge.s32.totalorder %s15_s14, 4   ;;  %s6502_s13 = smov %s6504_s16 }
 0x25c   :  { %14 = sbr.rel (!%p12_p3) target bundleno = 3 (0x3), region = 111 }
 0x261   :  { %3944 = vsyncpa [#allocation4], 1 }
 0x262   :  { %3946 = vsyncpa [#allocation4 + $0x1], 1 }
 0x263   :  { %3947 = vsyncpa [#allocation6], 1 }

// kernel: vggish_forward.11
= control target key start
LH: loop header
LB: loop body
LE: loop exit
PB: predicated region body
PF: predicated region fallthrough
CT: control target
= control target key end

     0   :  { %s2053_s12 = smov 0   ;;  %s2055_s13 = smov 0   ;;  %s2377_s0 = inlined_call_operand.vmem [shape: bf16[2,42,128], index: 0, kind: input, shape index: {}]   ;;  %s2378_s1 = inlined_call_operand.vmem [shape: bf16[1152,128], index: 1, kind: input, shape index: {}]   ;;  %s2379_s2 = inlined_call_operand.vmem [shape: f32[1,128], index: 2, kind: input, shape index: {}]   ;;  %s2380_s3 = inlined_call_operand.vmem [shape: bf16[2,2,2,128], index: 3, kind: output, shape index: {}]  }
   0x1   :  { %s2057_s14 = smov 0  }
   0x2 LB: > { %s25_s15 = sadd.s32 1, %s2027_s13  ;;  %p1537_p0 = scmp.ge.s32.totalorder %s2031_s14, 1  ;;  %s2031_s14 = sphi %s2057_s14, %s13_s14   ;;  %s2027_s13 = sphi %s2055_s13, %s2382_s13   ;;  %s2023_s12 = sphi %s2053_s12, %s2381_s12  }
   0x3   : > { %p27_p1 = scmp.ge.s32.totalorder %s25_s15, 2  ;;  %p168_p2 = scmp.lt.s32.totalorder %s2031_s14, 3 }
   0x5   : > { %s2384_s15 = smov (%p27_p1, %s25_s15), 0  ;;  %p169_p3 = pnand %p1537_p0, %p168_p2 }
   0x6   : > { %p201_p4 = scmp.lt.s32.totalorder (!%p169_p3), %s2023_s12, 1 }
   0x7   : > { %172 = sbr.rel (%p169_p3) target bundleno = 394 (0x18a), region = 32 }
   0xc   : > { %v1924_v0 = vld [vmem:[%s2378_s1 + $0x78] sm:$0xff]   ;;  %v1926_v2 = vld [vmem:[%s2378_s1 + $0x70] sm:$0xff]   ;;  %v1928_v4 = vld [vmem:[%s2378_s1 + $0x68] sm:$0xff]   ;;  %s2386_s12 = smov (!%p201_p4, %s2023_s12), 1  ;;  %vm267_vm0 = vsmask.f32 7424 }
   0xd   : > { %v1925_v1 = vld [vmem:[%s2378_s1 + $0x38] sm:$0xff]   ;;  %1719 = vmatprep.subr.bf16.mxu0 %v1924_v0  ;;  %v1927_v3 = vld [vmem:[%s2378_s1 + $0x30] sm:$0xff]   ;;  %v1929_v5 = vld [vmem:[%s2378_s1 + $0x28] sm:$0xff]   ;;  %s1899_s5 = smul.u32 24, %s2386_s12  ;;  %vm500_vm1 = vcmask 1046528   ;;  %vm629_vm2 = vcmask 1044480  }
   0xe   : > { %1739 = vmatprep.subr.bf16.mxu1 %v1925_v1  ;;  %1720 = vmatpush3.bf16.msra.mxu0 %v1924_v0  ;;  %v1930_v6 = vld [vmem:[%s2378_s1 + $0x60] sm:$0xff]   ;;  %v1932_v8 = vld [vmem:[%s2378_s1 + $0x58] sm:$0xff]   ;;  %v1934_v10 = vld [vmem:[%s2378_s1 + $0x50] sm:$0xff]   ;;  %vm754_vm3 = vsmask.f32 4352  ;;  %vm1022_vm4 = vcmask 1045504  }
   0xf   : > { %1740 = vmatpush3.bf16.msra.mxu1 %v1925_v1  ;;  %1721 = vmatprep.subr.bf16.mxu0 %v1926_v2  ;;  %v1931_v7 = vld [vmem:[%s2378_s1 + $0x20] sm:$0xff]   ;;  %v1933_v9 = vld [vmem:[%s2378_s1 + $0x18] sm:$0xff]   ;;  %s2107_s16 = scalar_lea.vmem %s2377_s0, %s1899_s5  ;;  %v1935_v14 = vld [vmem:[%s2378_s1 + $0x10] sm:$0xff]   ;;  %vm1147_vm5 = vsmask.f32 5376  ;;  %s1539_s30 = sshll.u32 %s2386_s12, 1 }
  0x10   : > { %1741 = vmatprep.subr.bf16.mxu1 %v1927_v3  ;;  %v221_v11 = vld [vmem:[%s2107_s16] sm:$0xf]  ;;  %v2114_v12 = vld [vmem:[%s2107_s16 + $0x4] sm:$0xf]  ;;  %v2117_v13 = vld [vmem:[%s2107_s16 + $0x8] sm:$0xf]  ;;  %s219_s6 = scalar_lea.vmem %s2380_s3, %s1539_s30 }
  0x11   : > { %v240_v15 = vld [vmem:[%s2107_s16 + $0xc] sm:$0x1]  ;;  %v1540_v16 = vcombine.low %v221_v11, %v2114_v12  ;;  %v1938_v26 = vld [vmem:[%s2378_s1 + $0x40] sm:$0xff]   ;;  %v1943_v30 = vld [vmem:[%s2378_s1 + $0xb8] sm:$0xff]   ;;  %v1550_v33 = vcombine.low %v2117_v13, %v2117_v13 }
  0x12   : > { %1722 = vmatpush3.bf16.msra.mxu0 %v1926_v2  ;;  %v2125_v17 = vcombine.low %v2117_v13, %v240_v15  ;;  %v1936_v20 = vld [vmem:[%s2378_s1 + $0x48] sm:$0xff]   ;;  %v1939_v27 = vld [vmem:[%s2378_s1] sm:$0xff]   ;;  %v1944_v31 = vld [vmem:[%s2378_s1 + $0xf8] sm:$0xff]   ;;  %v1587_v15 = vcombine.low %v2114_v12, %v2117_v13 }
  0x13   : > { %1742 = vmatpush3.bf16.msra.mxu1 %v1927_v3  ;;  %1723 = vmatprep.subr.bf16.mxu0 %v1928_v4  ;;  %v269_v18 = vshrl.u32 %v1540_v16, 16  ;;  %v271_v19 = vshll.u32 %v1540_v16, 16  ;;  %v1937_v22 = vld [vmem:[%s2378_s1 + $0x8] sm:$0xff]   ;;  %v1945_v34 = vld [vmem:[%s2378_s1 + $0xb0] sm:$0xff]   ;;  %v480_v36 = vld [vmem:[%s2107_s16] sm:$0xe] }
  0x14   : > { %1743 = vmatprep.subr.bf16.mxu1 %v1929_v5  ;;  %1755 = vmatprep.mubr.bf16.mxu1 %v1540_v16  ;;  %v276_v21 = vshll.u32 %v2125_v17, 16  ;;  %v280_v29 = vshrl.u32 %v2125_v17, 16  ;;  %v1946_v35 = vld [vmem:[%s2378_s1 + $0xf0] sm:$0xff]   ;;  %v1559_v37 = vcombine.low %v480_v36, %v2114_v12  ;;  %v502_v38 = vrot.slane %v2125_v17, 1  ;;  %v605_v39 = vld [vmem:[%s2107_s16] sm:$0x8] }
  0x15   : > { %v273_v23 = vrot.slane %v271_v19, 1  ;;  %v606_v40 = vld [vmem:[%s2107_s16 + $0xc] sm:$0x7]  ;;  %v1568_v42 = vcombine.low %v605_v39, %v2114_v12  ;;  %v1949_v49 = vld [vmem:[%s2378_s1 + $0xa0] sm:$0xff]   ;;  %v1951_v52 = vld [vmem:[%s2378_s1 + $0x98] sm:$0xff]  }
  0x16   : > { %1724 = vmatpush3.bf16.msra.mxu0 %v1928_v4  ;;  %v278_v24 = vrot.slane %v276_v21, 1  ;;  %v1947_v41 = vld [vmem:[%s2378_s1 + $0xa8] sm:$0xff]   ;;  %v1569_v43 = vcombine.low %v2117_v13, %v606_v40  ;;  %v501_v45 = vrot.slane %v1559_v37, 1  ;;  %v1950_v51 = vld [vmem:[%s2378_s1 + $0xe0] sm:$0xff]   ;;  %v1952_v53 = vld [vmem:[%s2378_s1 + $0xd8] sm:$0xff]  }
  0x17   : > { %1744 = vmatpush3.bf16.msra.mxu1 %v1929_v5  ;;  %1725 = vmatprep.subr.bf16.mxu0 %v1930_v6  ;;  %v274_v25 = vor.u32 %v273_v23, %v269_v18  ;;  %v1948_v44 = vld [vmem:[%s2378_s1 + $0xe8] sm:$0xff]   ;;  %v630_v46 = vrot.slane %v1568_v42, 3  ;;  %v1953_v54 = vld [vmem:[%s2378_s1 + $0x90] sm:$0xff]   ;;  %v756_v58 = vshrl.u32 %v1568_v42, 16  ;;  %v759_v59 = vshll.u32 %v1568_v42, 16  ;;  %v1957_v0 = vld [vmem:[%s2378_s1 + $0x80] sm:$0xff]  }
  0x18   : > { %1745 = vmatprep.subr.bf16.mxu1 %v1931_v7  ;;  %v282_v32 = vor.u32 %v280_v29, %v278_v24  ;;  %v2169_v47 = vrot.slane %v1569_v43, 3  ;;  %v503_v48 = vsel %vm500_vm1, %v501_v45, %v502_v38  ;;  %v1954_v55 = vld [vmem:[%s2378_s1 + $0xd0] sm:$0xff]   ;;  %v1955_v56 = vld [vmem:[%s2378_s1 + $0x88] sm:$0xff]   ;;  %v1958_v1 = vld [vmem:[%s2378_s1 + $0xc0] sm:$0xff]  }
  0x19   : > { %v279_v28 = vsel %vm267_vm0, %v274_v25, %v278_v24  ;;  %v2198_v57 = vld [vmem:[%s2107_s16 + $0xc] sm:$0xf]  ;;  %v758_v2 = vrot.slane %v756_v58, 3  ;;  %v761_v3 = vrot.slane %v759_v59, 4  ;;  %v1965_v11 = vld [vmem:[%s2378_s1 + $0x170] sm:$0xff]   ;;  %v1968_v12 = vld [vmem:[%s2378_s1 + $0x120] sm:$0xff]  }
  0x1a   : > { %1726 = vmatpush3.bf16.msra.mxu0 %v1930_v6  ;;  %1735 = vmatprep.mubr.bf16.mxu0 %v279_v28  ;;  %v632_v50 = vsel %vm629_vm2, %v630_v46, %v2169_v47  ;;  %v1578_v60 = vcombine.low %v2117_v13, %v2198_v57  ;;  %v1956_v61 = vld [vmem:[%s2378_s1 + $0xc8] sm:$0xff]   ;;  %v1960_v6 = vld [vmem:[%s2378_s1 + $0x138] sm:$0xff]   ;;  %v1969_v13 = vld [vmem:[%s2378_s1 + $0x160] sm:$0xff]  }
  0x1b   : > { %1746 = vmatpush3.bf16.msra.mxu1 %v1931_v7  ;;  %1727 = vmatprep.subr.bf16.mxu0 %v1932_v8  ;;  %v1963_v7 = vld [vmem:[%s2378_s1 + $0x178] sm:$0xff]   ;;  %v1966_v16 = vld [vmem:[%s2378_s1 + $0x128] sm:$0xff]   ;;  %v1127_v19 = vld [vmem:[%s2107_s16 + $0x10] sm:$0x7] }
  0x1c   : > { %1747 = vmatprep.subr.bf16.mxu1 %v1933_v9  ;;  %v764_v62 = vshrl.u32 %v1578_v60, 16  ;;  %v767_v63 = vshll.u32 %v1578_v60, 16  ;;  %v1967_v17 = vld [vmem:[%s2378_s1 + $0x168] sm:$0xff]   ;;  %v1971_v21 = vld [vmem:[%s2378_s1 + $0x158] sm:$0xff]   ;;  %v1266_v24 = vld [vmem:[%s2107_s16 + $0x4] sm:$0x8] }
  0x1d   : > { %v994_v18 = vld [vmem:[%s2107_s16 + $0xc] sm:$0xf]  ;;  %v993_v23 = vld [vmem:[%s2107_s16 + $0x8] sm:$0xf]  ;;  %v992_v28 = vld [vmem:[%s2107_s16 + $0x4] sm:$0xc] }
  0x1e   : > { %1728 = vmatpush3.bf16.msra.mxu0 %v1932_v8  ;;  %v766_v4 = vrot.slane %v764_v62, 3  ;;  %v769_v5 = vrot.slane %v767_v63, 4  ;;  %v762_v8 = vor.u32 %v761_v3, %v758_v2  ;;  %v1616_v25 = vcombine.low %v1266_v24, %v993_v23  ;;  %v1973_v29 = vld [vmem:[%s2378_s1 + $0x150] sm:$0xff]   ;;  %v1976_v40 = vld [vmem:[%s2378_s1 + $0x100] sm:$0xff]   ;;  %v1985_v58 = vld [vmem:[%s2378_s1 + $0x1a8] sm:$0xff]  }
  0x1f   : > { %1748 = vmatpush3.bf16.msra.mxu1 %v1933_v9  ;;  %1729 = vmatprep.subr.bf16.mxu0 %v1934_v10  ;;  %v1986_v59 = vld [vmem:[%s2378_s1 + $0x1e8] sm:$0xff]   ;;  %v1987_v60 = vld [vmem:[%s2378_s1 + $0x1a0] sm:$0xff]   ;;  %v1989_v62 = vld [vmem:[%s2378_s1 + $0x198] sm:$0xff]  }
  0x20   : > { %1749 = vmatprep.subr.bf16.mxu1 %v1935_v14  ;;  %v2217_v9 = vor.u32 %v769_v5, %v766_v4  ;;  %v1990_v63 = vld [vmem:[%s2378_s1 + $0x1d8] sm:$0xff]   ;;  %v1993_v2 = vld [vmem:[%s2378_s1 + $0x188] sm:$0xff]   ;;  %v1995_v4 = vld [vmem:[%s2378_s1 + $0x180] sm:$0xff]  }
  0x21   : > { %v1994_v3 = vld [vmem:[%s2378_s1 + $0x1c8] sm:$0xff]   ;;  %v1996_v5 = vld [vmem:[%s2378_s1 + $0x1c0] sm:$0xff]  }
  0x22   : > { %1730 = vmatpush3.bf16.msra.mxu0 %v1934_v10  ;;  %v1964_v10 = vld [vmem:[%s2378_s1 + $0x130] sm:$0xff]  }
  0x23   : > { %1750 = vmatpush3.bf16.msra.mxu1 %v1935_v14  ;;  %1731 = vmatprep.subr.bf16.mxu0 %v1936_v20  ;;  %v771_v14 = vsel %vm754_vm3, %v762_v8, %v2217_v9  ;;  %v2002_v8 = vld [vmem:[%s2378_s1 + $0x228] sm:$0xff]  }
  0x24   : > { %1751 = vmatprep.subr.bf16.mxu1 %v1937_v22 }
  0x26   : > { %1732 = vmatpush3.bf16.msra.mxu0 %v1936_v20  ;;  %v1970_v20 = vld [vmem:[%s2378_s1 + $0x118] sm:$0xff]  }
  0x27   : > { %1752 = vmatpush3.bf16.msra.mxu1 %v1937_v22  ;;  %1733 = vmatprep.subr.bf16.mxu0 %v1938_v26  ;;  %v2251_v22 = vcombine.low %v994_v18, %v1127_v19 }
  0x28   : > { %1753 = vmatprep.subr.bf16.mxu1 %v1939_v27 }
  0x29   : > { %v1160_v39 = vshll.u32 %v2251_v22, 16 }
  0x2a   : > { %1734 = vmatpush3.bf16.msra.mxu0 %v1938_v26  ;;  %v1287_v26 = vrot.slane %v2251_v22, 3 }
  0x2b   : > { %1754 = vmatpush3.bf16.msra.mxu1 %v1939_v27  ;;  %1759 = vmatprep.subr.bf16.mxu0 %v1943_v30  ;;  %v1972_v27 = vld [vmem:[%s2378_s1 + $0x110] sm:$0xff]   ;;  %v1162_v46 = vrot.slane %v1160_v39, 3 }
  0x2c   : > { %1779 = vmatprep.subr.bf16.mxu1 %v1944_v31 }
  0x2d   : > { %1736 = vmatmul.mubr.bf16.vlgmr.msra.gmra.mxu0 %v282_v32 }
  0x2e   : > { %1756 = vmatmul.mubr.bf16.vlgmr.msra.gmra.mxu1 %v1550_v33  ;;  %1760 = vmatpush3.bf16.msra.mxu0 %v1943_v30  ;;  %v1286_v30 = vrot.slane %v1616_v25, 3  ;;  %v1974_v33 = vld [vmem:[%s2378_s1 + $0x108] sm:$0xff]  }
  0x2f   : > { %1780 = vmatpush3.bf16.msra.mxu1 %v1944_v31  ;;  %1761 = vmatprep.subr.bf16.mxu0 %v1945_v34  ;;  %v1597_v31 = vcombine.low %v992_v28, %v993_v23 }
  0x30   : > { %1781 = vmatprep.subr.bf16.mxu1 %v1946_v35  ;;  %1775 = vmatprep.mubr.bf16.mxu0 %v503_v48  ;;  %v2266_v32 = vsel %vm629_vm2, %v1286_v30, %v1287_v26  ;;  %v1982_v48 = vld [vmem:[%s2378_s1 + $0x1f8] sm:$0xff]  }
  0x31   : > { %1795 = vmatprep.mubr.bf16.mxu1 %v632_v50  ;;  %v1149_v36 = vshrl.u32 %v1597_v31, 16  ;;  %v1152_v37 = vshll.u32 %v1597_v31, 16 }
  0x32   : > { %1762 = vmatpush3.bf16.msra.mxu0 %v1945_v34  ;;  %v1975_v34 = vld [vmem:[%s2378_s1 + $0x148] sm:$0xff]  }
  0x33   : > { %1782 = vmatpush3.bf16.msra.mxu1 %v1946_v35  ;;  %1763 = vmatprep.subr.bf16.mxu0 %v1947_v41  ;;  %v995_v35 = vld [vmem:[%s2107_s16 + $0x10] sm:$0x3]  ;;  %v1151_v43 = vrot.slane %v1149_v36, 2 }
  0x34   : > { %1783 = vmatprep.subr.bf16.mxu1 %v1948_v44  ;;  %v1598_v42 = vcombine.low %v994_v18, %v995_v35 }
  0x36   : > { %1764 = vmatpush3.bf16.msra.mxu0 %v1947_v41  ;;  %v1977_v41 = vld [vmem:[%s2378_s1 + $0x140] sm:$0xff]   ;;  %v1024_v50 = vrot.slane %v1598_v42, 2 }
  0x37   : > { %1784 = vmatpush3.bf16.msra.mxu1 %v1948_v44  ;;  %1765 = vmatprep.subr.bf16.mxu0 %v1949_v49  ;;  %v1154_v44 = vrot.slane %v1152_v37, 3 }
  0x38   : > { %1785 = vmatprep.subr.bf16.mxu1 %v1950_v51 }
  0x3a   : > { %1766 = vmatpush3.bf16.msra.mxu0 %v1949_v49  ;;  %v1023_v49 = vrot.slane %v1597_v31, 2 }
  0x3b   : > { %1786 = vmatpush3.bf16.msra.mxu1 %v1950_v51  ;;  %1767 = vmatprep.subr.bf16.mxu0 %v1951_v52  ;;  %v1588_v51 = vcombine.low %v2198_v57, %v2198_v57 }
  0x3c   : > { %1787 = vmatprep.subr.bf16.mxu1 %v1952_v53 }
  0x3e   : > { %1768 = vmatpush3.bf16.msra.mxu0 %v1951_v52  ;;  %v1155_v52 = vor.u32 %v1154_v44, %v1151_v43 }
  0x3f   : > { %1788 = vmatpush3.bf16.msra.mxu1 %v1952_v53  ;;  %1769 = vmatprep.subr.bf16.mxu0 %v1953_v54 }
  0x40   : > { %1789 = vmatprep.subr.bf16.mxu1 %v1954_v55 }
  0x42   : > { %1770 = vmatpush3.bf16.msra.mxu0 %v1953_v54  ;;  %v1983_v54 = vld [vmem:[%s2378_s1 + $0x1b0] sm:$0xff]  }
  0x43   : > { %1790 = vmatpush3.bf16.msra.mxu1 %v1954_v55  ;;  %1771 = vmatprep.subr.bf16.mxu0 %v1955_v56  ;;  %v1984_v55 = vld [vmem:[%s2378_s1 + $0x1f0] sm:$0xff]  }
  0x44   : > { %1791 = vmatprep.subr.bf16.mxu1 %v1956_v61 }
  0x46   : > { %1772 = vmatpush3.bf16.msra.mxu0 %v1955_v56  ;;  %v1025_v56 = vsel %vm1022_vm4, %v1023_v49, %v1024_v50 }
  0x47   : > { %1792 = vmatpush3.bf16.msra.mxu1 %v1956_v61  ;;  %1773 = vmatprep.subr.bf16.mxu0 %v1957_v0  ;;  %v1988_v61 = vld [vmem:[%s2378_s1 + $0x1e0] sm:$0xff]  }
  0x48   : > { %1793 = vmatprep.subr.bf16.mxu1 %v1958_v1 }
  0x4a   : > { %1774 = vmatpush3.bf16.msra.mxu0 %v1957_v0  ;;  %v1991_v0 = vld [vmem:[%s2378_s1 + $0x190] sm:$0xff]  }
  0x4b   : > { %1794 = vmatpush3.bf16.msra.mxu1 %v1958_v1  ;;  %1799 = vmatprep.subr.bf16.mxu0 %v1960_v6  ;;  %v1992_v1 = vld [vmem:[%s2378_s1 + $0x1d0] sm:$0xff]  }
  0x4c   : > { %1819 = vmatprep.subr.bf16.mxu1 %v1963_v7 }
  0x4d   : > { %1776 = vmatmul.mubr.bf16.vlgmr.msra.gmra.mxu0 %v502_v38  ;;  %v1157_v38 = vshrl.u32 %v2251_v22, 16 }
  0x4e   : > { %1800 = vmatpush3.bf16.msra.mxu0 %v1960_v6  ;;  %1796 = vmatmul.mubr.bf16.vlgmr.msra.gmra.mxu1 %v2169_v47  ;;  %v1979_v47 = vld [vmem:[%s2378_s1 + $0x1b8] sm:$0xff]  }
  0x4f   : > { %1820 = vmatpush3.bf16.msra.mxu1 %v1963_v7  ;;  %1801 = vmatprep.subr.bf16.mxu0 %v1964_v10  ;;  %v1159_v45 = vrot.slane %v1157_v38, 2  ;;  %v2000_v6 = vld [vmem:[%s2378_s1 + $0x238] sm:$0xff]   ;;  %v2001_v7 = vld [vmem:[%s2378_s1 + $0x230] sm:$0xff]  }
  0x50   : > { %1821 = vmatprep.subr.bf16.mxu1 %v1965_v11  ;;  %1815 = vmatprep.mubr.bf16.mxu0 %v771_v14  ;;  %v2006_v14 = vld [vmem:[%s2378_s1 + $0x208] sm:$0xff]  }
  0x51   : > { %1835 = vmatprep.mubr.bf16.mxu1 %v1587_v15  ;;  %v1163_v53 = vor.u32 %v1162_v46, %v1159_v45  ;;  %v2007_v15 = vld [vmem:[%s2378_s1 + $0x200] sm:$0xff]  }
  0x52   : > { %1802 = vmatpush3.bf16.msra.mxu0 %v1964_v10  ;;  %v2004_v10 = vld [vmem:[%s2378_s1 + $0x218] sm:$0xff]  }
  0x53   : > { %1822 = vmatpush3.bf16.msra.mxu1 %v1965_v11  ;;  %1803 = vmatprep.subr.bf16.mxu0 %v1966_v16  ;;  %v1164_v57 = vsel %vm1147_vm5, %v1155_v52, %v1163_v53  ;;  %v2005_v11 = vld [vmem:[%s2378_s1 + $0x210] sm:$0xff]  }
  0x54   : > { %1823 = vmatprep.subr.bf16.mxu1 %v1967_v17 }
  0x56   : > { %1804 = vmatpush3.bf16.msra.mxu0 %v1966_v16 }
  0x57   : > { %1824 = vmatpush3.bf16.msra.mxu1 %v1967_v17  ;;  %1805 = vmatprep.subr.bf16.mxu0 %v1968_v12 }
  0x58   : > { %1825 = vmatprep.subr.bf16.mxu1 %v1969_v13 }
  0x5a   : > { %1806 = vmatpush3.bf16.msra.mxu0 %v1968_v12 }
  0x5b   : > { %1826 = vmatpush3.bf16.msra.mxu1 %v1969_v13  ;;  %1807 = vmatprep.subr.bf16.mxu0 %v1970_v20 }
  0x5c   : > { %1827 = vmatprep.subr.bf16.mxu1 %v1971_v21 }
  0x5e   : > { %1808 = vmatpush3.bf16.msra.mxu0 %v1970_v20 }
  0x5f   : > { %1828 = vmatpush3.bf16.msra.mxu1 %v1971_v21  ;;  %1809 = vmatprep.subr.bf16.mxu0 %v1972_v27 }
  0x60   : > { %1829 = vmatprep.subr.bf16.mxu1 %v1973_v29 }
  0x62   : > { %1810 = vmatpush3.bf16.msra.mxu0 %v1972_v27 }
  0x63   : > { %1830 = vmatpush3.bf16.msra.mxu1 %v1973_v29  ;;  %1811 = vmatprep.subr.bf16.mxu0 %v1974_v33 }
  0x64   : > { %1831 = vmatprep.subr.bf16.mxu1 %v1975_v34 }
  0x66   : > { %1812 = vmatpush3.bf16.msra.mxu0 %v1974_v33 }
  0x67   : > { %1832 = vmatpush3.bf16.msra.mxu1 %v1975_v34  ;;  %1813 = vmatprep.subr.bf16.mxu0 %v1976_v40 }
  0x68   : > { %1833 = vmatprep.subr.bf16.mxu1 %v1977_v41 }
  0x6a   : > { %1814 = vmatpush3.bf16.msra.mxu0 %v1976_v40 }
  0x6b   : > { %1834 = vmatpush3.bf16.msra.mxu1 %v1977_v41  ;;  %1839 = vmatprep.subr.bf16.mxu0 %v1979_v47 }
  0x6c   : > { %1859 = vmatprep.subr.bf16.mxu1 %v1982_v48 }
  0x6d   : > { %1816 = vmatmul.mubr.bf16.vlgmr.msra.gmra.mxu0 %v2217_v9  ;;  %v2003_v9 = vld [vmem:[%s2378_s1 + $0x220] sm:$0xff]  }
  0x6e   : > { %1840 = vmatpush3.bf16.msra.mxu0 %v1979_v47  ;;  %1836 = vmatmul.mubr.bf16.vlgmr.msra.gmra.mxu1 %v1588_v51 }
  0x6f   : > { %1860 = vmatpush3.bf16.msra.mxu1 %v1982_v48  ;;  %1841 = vmatprep.subr.bf16.mxu0 %v1983_v54 }
  0x70   : > { %1861 = vmatprep.subr.bf16.mxu1 %v1984_v55  ;;  %1855 = vmatprep.mubr.bf16.mxu0 %v1025_v56 }
  0x71   : > { %1875 = vmatprep.mubr.bf16.mxu1 %v1164_v57 }
  0x72   : > { %1842 = vmatpush3.bf16.msra.mxu0 %v1983_v54 }
  0x73   : > { %1862 = vmatpush3.bf16.msra.mxu1 %v1984_v55  ;;  %1843 = vmatprep.subr.bf16.mxu0 %v1985_v58 }
  0x74   : > { %1863 = vmatprep.subr.bf16.mxu1 %v1986_v59 }
  0x76   : > { %1844 = vmatpush3.bf16.msra.mxu0 %v1985_v58 }
  0x77   : > { %1864 = vmatpush3.bf16.msra.mxu1 %v1986_v59  ;;  %1845 = vmatprep.subr.bf16.mxu0 %v1987_v60 }
  0x78   : > { %1865 = vmatprep.subr.bf16.mxu1 %v1988_v61 }
  0x7a   : > { %1846 = vmatpush3.bf16.msra.mxu0 %v1987_v60 }
  0x7b   : > { %1866 = vmatpush3.bf16.msra.mxu1 %v1988_v61  ;;  %1847 = vmatprep.subr.bf16.mxu0 %v1989_v62 }
  0x7c   : > { %1867 = vmatprep.subr.bf16.mxu1 %v1990_v63 }
  0x7e   : > { %1848 = vmatpush3.bf16.msra.mxu0 %v1989_v62 }
  0x7f   : > { %1868 = vmatpush3.bf16.msra.mxu1 %v1990_v63  ;;  %1849 = vmatprep.subr.bf16.mxu0 %v1991_v0 }
  0x80   : > { %1869 = vmatprep.subr.bf16.mxu1 %v1992_v1 }
  0x82   : > { %1850 = vmatpush3.bf16.msra.mxu0 %v1991_v0  ;;  %v1625_v0 = vld [vmem:[%s2379_s2] ss:$0 sm:$0xff] }
  0x83   : > { %1870 = vmatpush3.bf16.msra.mxu1 %v1992_v1  ;;  %1851 = vmatprep.subr.bf16.mxu0 %v1993_v2 }
  0x84   : > { %1871 = vmatprep.subr.bf16.mxu1 %v1994_v3 }
  0x86   : > { %1852 = vmatpush3.bf16.msra.mxu0 %v1993_v2 }
  0x87   : > { %1872 = vmatpush3.bf16.msra.mxu1 %v1994_v3  ;;  %1853 = vmatprep.subr.bf16.mxu0 %v1995_v4 }
  0x88   : > { %1873 = vmatprep.subr.bf16.mxu1 %v1996_v5 }
  0x8a   : > { %1854 = vmatpush3.bf16.msra.mxu0 %v1995_v4 }
  0x8b   : > { %1874 = vmatpush3.bf16.msra.mxu1 %v1996_v5  ;;  %1879 = vmatprep.subr.bf16.mxu0 %v2000_v6 }
  0x8d   : > { %1856 = vmatmul.mubr.bf16.vlgmr.msra.gmra.mxu0 %v1024_v50 }
  0x8e   : > { %1880 = vmatpush3.bf16.msra.mxu0 %v2000_v6  ;;  %1876 = vmatmul.mubr.bf16.vlgmr.msra.gmra.mxu1 %v1163_v53 }
  0x8f   : > { %1881 = vmatprep.subr.bf16.mxu0 %v2001_v7  ;;  %1895 = vmatprep.mubr.bf16.mxu0 %v2266_v32 }
  0x92   : > { %1882 = vmatpush3.bf16.msra.mxu0 %v2001_v7 }
  0x93   : > { %1883 = vmatprep.subr.bf16.mxu0 %v2002_v8 }
  0x96   : > { %1884 = vmatpush3.bf16.msra.mxu0 %v2002_v8 }
  0x97   : > { %1885 = vmatprep.subr.bf16.mxu0 %v2003_v9 }
  0x9a   : > { %1886 = vmatpush3.bf16.msra.mxu0 %v2003_v9 }
  0x9b   : > { %1887 = vmatprep.subr.bf16.mxu0 %v2004_v10 }
  0x9e   : > { %1888 = vmatpush3.bf16.msra.mxu0 %v2004_v10 }
  0x9f   : > { %1889 = vmatprep.subr.bf16.mxu0 %v2005_v11 }
  0xa2   : > { %1890 = vmatpush3.bf16.msra.mxu0 %v2005_v11 }
  0xa3   : > { %1891 = vmatprep.subr.bf16.mxu0 %v2006_v14 }
  0xa6   : > { %1892 = vmatpush3.bf16.msra.mxu0 %v2006_v14 }
  0xa7   : > { %1893 = vmatprep.subr.bf16.mxu0 %v2007_v15 }
  0xaa   : > { %1894 = vmatpush3.bf16.msra.mxu0 %v2007_v15 }
  0xad   : > { %1896 = vmatmul.mubr.bf16.vlgmr.msra.gmra.mxu0 %v1287_v26 }
  0xed   : > { %v1737_v16 = vpop.f32.mrf.mxu0 }
  0xee   : > { %v1757_v17 = vpop.f32.mrf.mxu1 }
  0xef   : > { %v475_v12 = vadd.f32 %v1757_v17, %v1737_v16  ;;  %v367_v13 = vpop.f32.mrf.mxu0 }
  0xf0   : > { %v466_v18 = vpop.f32.mrf.mxu1 }
  0xf1   : > { %v467_v19 = vadd.f32 %v466_v18, %v367_v13  ;;  %v1738_v20 = vpop.f32.mrf.mxu0 }
  0xf2   : > { %v1758_v21 = vpop.f32.mrf.mxu1 }
  0xf3   : > { %v370_v23 = vpop.f32.mrf.mxu0 }
  0xf4   : > { %v469_v24 = vpop.f32.mrf.mxu1 }
  0xf5   : > { %v470_v25 = vadd.f32 %v469_v24, %v370_v23 }
 0x10d   : > { %v1777_v27 = vpop.f32.mrf.mxu0 }
 0x10e   : > { %v604_v28 = vadd.f32 %v1777_v27, %v475_v12  ;;  %v1797_v29 = vpop.f32.mrf.mxu1 }
 0x10f   : > { %v588_v30 = vpop.f32.mrf.mxu0 }
 0x110   : > { %v602_v31 = vadd.f32 %v588_v30, %v467_v19  ;;  %v733_v32 = vadd.f32 %v1797_v29, %v604_v28  ;;  %v717_v33 = vpop.f32.mrf.mxu1 }
 0x111   : > { %v1778_v22 = vpop.f32.mrf.mxu0 }
 0x112   : > { %v731_v26 = vadd.f32 %v717_v33, %v602_v31  ;;  %v1798_v34 = vpop.f32.mrf.mxu1 }
 0x113   : > { %v591_v35 = vpop.f32.mrf.mxu0 }
 0x114   : > { %v720_v36 = vpop.f32.mrf.mxu1  ;;  %v603_v51 = vadd.f32 %v591_v35, %v470_v25 }
 0x116   : > { %v732_v54 = vadd.f32 %v720_v36, %v603_v51 }
 0x12d   : > { %v1817_v37 = vpop.f32.mrf.mxu0 }
 0x12e   : > { %v1837_v38 = vpop.f32.mrf.mxu1  ;;  %v872_v52 = vadd.f32 %v1817_v37, %v733_v32 }
 0x12f   : > { %v856_v39 = vpop.f32.mrf.mxu0 }
 0x130   : > { %v975_v40 = vpop.f32.mrf.mxu1  ;;  %v870_v53 = vadd.f32 %v856_v39, %v731_v26  ;;  %v991_v55 = vadd.f32 %v1837_v38, %v872_v52 }
 0x131   : > { %v1818_v41 = vpop.f32.mrf.mxu0 }
 0x132   : > { %v1838_v42 = vpop.f32.mrf.mxu1  ;;  %v989_v56 = vadd.f32 %v975_v40, %v870_v53 }
 0x133   : > { %v859_v43 = vpop.f32.mrf.mxu0 }
 0x134   : > { %v978_v44 = vpop.f32.mrf.mxu1  ;;  %v871_v57 = vadd.f32 %v859_v43, %v732_v54 }
 0x136   : > { %v990_v61 = vadd.f32 %v978_v44, %v871_v57 }
 0x14d   : > { %v1857_v45 = vpop.f32.mrf.mxu0 }
 0x14e   : > { %v1877_v46 = vpop.f32.mrf.mxu1  ;;  %v1126_v58 = vadd.f32 %v1857_v45, %v991_v55 }
 0x14f   : > { %v1110_v47 = vpop.f32.mrf.mxu0 }
 0x150   : > { %v1249_v48 = vpop.f32.mrf.mxu1  ;;  %v1124_v59 = vadd.f32 %v1110_v47, %v989_v56  ;;  %v1265_v62 = vadd.f32 %v1877_v46, %v1126_v58 }
 0x151   : > { %v1858_v49 = vpop.f32.mrf.mxu0 }
 0x152   : > { %v1878_v50 = vpop.f32.mrf.mxu1  ;;  %v1263_v1 = vadd.f32 %v1249_v48, %v1124_v59 }
 0x153   : > { %v1113_v60 = vpop.f32.mrf.mxu0 }
 0x154   : > { %v1125_v2 = vadd.f32 %v1113_v60, %v990_v61  ;;  %v1252_v4 = vpop.f32.mrf.mxu1 }
 0x156   : > { %v1264_v9 = vadd.f32 %v1252_v4, %v1125_v2 }
 0x16d   : > { %v1897_v63 = vpop.f32.mrf.mxu0 }
 0x16e   : > { %v1389_v3 = vadd.f32 %v1897_v63, %v1265_v62 }
 0x16f   : > { %v1373_v5 = vpop.f32.mrf.mxu0 }
 0x170   : > { %v1399_v6 = vadd.f32 %v1625_v0, %v1389_v3  ;;  %v1387_v7 = vadd.f32 %v1373_v5, %v1263_v1 }
 0x171   : > { %v1898_v8 = vpop.f32.mrf.mxu0 }
 0x172   : > { %v1402_v10 = vmax.f32 %v1399_v6, 0.0  ;;  %v1397_v11 = vadd.f32 %v1625_v0, %v1387_v7 }
 0x173   : > { %v1376_v14 = vpop.f32.mrf.mxu0 }
 0x174   : > { %1405 = vst [vmem:[#allocation2 + $0x10] sm:$0xff] %v1402_v10  ;;  %v1400_v15 = vmax.f32 %v1397_v11, 0.0  ;;  %v1388_v16 = vadd.f32 %v1376_v14, %v1264_v9 }
 0x176   : > { %1403 = vst [vmem:[#allocation2] sm:$0xff] %v1400_v15  ;;  %v1398_v17 = vadd.f32 %v1625_v0, %v1388_v16 }
 0x178   : > { %v1401_v12 = vmax.f32 %v1398_v17, 0.0 }
 0x17a   : > { %1404 = vst [vmem:[#allocation2 + $0x8] sm:$0xff] %v1401_v12 }
 0x17b   : > { %v1424_v19 = vld [vmem:[#allocation2 + $0x12] ss:$2 sm:$0x3]  ;;  %v1426_v20 = vld [vmem:[#allocation2 + $0x13] ss:$2 sm:$0x3] }
 0x17c   : > { %v1427_v29 = vmax.f32 %v1424_v19, %v1426_v20 }
 0x17d   : > { %v1406_v13 = vld [vmem:[#allocation2] ss:$2 sm:$0x3]  ;;  %v1408_v18 = vld [vmem:[#allocation2 + $0x1] ss:$2 sm:$0x3] }
 0x17e   : > { %v1409_v24 = vmax.f32 %v1406_v13, %v1408_v18 }
 0x181   : > { %v1411_v21 = vld [vmem:[#allocation2 + $0x6] ss:$2 sm:$0x3]  ;;  %v1413_v23 = vld [vmem:[#allocation2 + $0x7] ss:$2 sm:$0x3] }
 0x182   : > { %v1414_v25 = vmax.f32 %v1411_v21, %v1413_v23  ;;  %v1419_v27 = vld [vmem:[#allocation2 + $0xc] ss:$2 sm:$0x3]  ;;  %v1421_v28 = vld [vmem:[#allocation2 + $0xd] ss:$2 sm:$0x3] }
 0x183   : > { %v1422_v30 = vmax.f32 %v1419_v27, %v1421_v28 }
 0x184   : > { %v1415_v31 = vmax.f32 %v1409_v24, %v1414_v25 }
 0x185   : > { %v1428_v32 = vmax.f32 %v1422_v30, %v1427_v29 }
 0x186   : > { %v1416_v33 = vpack.c.bf16 %v1415_v31, %v1415_v31 }
 0x187   : > { %v1429_v22 = vpack.c.bf16 %v1428_v32, %v1428_v32 }
 0x188   : > { %1417 = vst [vmem:[%s219_s6] sm:$0x1] %v1416_v33 }
 0x189   : > { %1626 = vst [vmem:[%s219_s6 + $0x1] sm:$0x1] %v1429_v22 }
 0x18a PF: > { %s13_s14 = sadd.s32 1, %s2031_s14   ;;  %s2381_s12 = smov %s2027_s13 }
 0x18b   : > { %p10_p5 = scmp.ge.s32.totalorder %s13_s14, 4   ;;  %s2382_s13 = smov %s2384_s15 }
 0x18d   :  { %12 = sbr.rel (!%p10_p5) target bundleno = 2 (0x2), region = 76 }

// kernel: vggish_forward.14
= control target key start
LH: loop header
LB: loop body
LE: loop exit
PB: predicated region body
PF: predicated region fallthrough
CT: control target
= control target key end

     0   :  { %s1015_s12 = smov 0   ;;  %s1017_s13 = smov 0   ;;  %s1204_s0 = inlined_call_operand.vmem [shape: bf16[2,256], index: 0, kind: input, shape index: {}]   ;;  %s1205_s1 = inlined_call_operand.vmem [shape: bf16[256,512], index: 1, kind: input, shape index: {}]   ;;  %s1206_s2 = inlined_call_operand.vmem [shape: f32[1,512], index: 2, kind: input, shape index: {}]   ;;  %s1207_s3 = inlined_call_operand.vmem [shape: bf16[2,512], index: 3, kind: output, shape index: {}]  }
   0x1   :  { %s1019_s14 = smov 0   ;;  %s1021_s15 = smov 0  }
   0x2   :  { %s1023_s16 = smov 0  }
   0x3 LB: > { %s25_s17 = sadd.s32 1, %s986_s15  ;;  %p67_p1 = scmp.ne.s32.totalorder %s978_s13, %s974_s12  ;;  %s990_s16 = sphi %s1023_s16, %s13_s16   ;;  %s986_s15 = sphi %s1021_s15, %s1211_s15   ;;  %s982_s14 = sphi %s1019_s14, %s1210_s14   ;;  %s978_s13 = sphi %s1017_s13, %s1209_s13   ;;  %s974_s12 = sphi %s1015_s12, %s1208_s12  }
   0x4   : > { %p27_p0 = scmp.ge.s32.totalorder %s25_s17, 2  ;;  %p68_p2 = scmp.eq.s32.totalorder %s990_s16, 0 }
   0x5   : > { %s60_s19 = sadd.s32 1, %s978_s13  ;;  %p815_p5 = scmp.ge.s32.totalorder %s990_s16, 2 }
   0x6   : > { %s1213_s17 = smov (%p27_p0, %s25_s17), 0  ;;  %p69_p3 = por %p68_p2, %p67_p1 }
   0x7   : > { %s56_s18 = ssub.s32 %s986_s15, %s1213_s17  ;;  %153 = sbr.rel (%p815_p5) target bundleno = 32 (0x20), region = 20 }
   0x8   : > { %p58_p4 = scmp.eq.s32.totalorder %s56_s18, 0 }
   0xa   : > { %s1050_s20 = scalar_select %p58_p4, %s978_s13, %s60_s19  }
   0xc   : > { %156 = sbr.rel (!%p69_p3) target bundleno = 32 (0x20), region = 24  ;;  %s158_s21 = sand.u32 (%p69_p3), 1, %s978_s13  }
   0xd   : > { %s860_s22 = sshll.u32 (%p69_p3), %s986_s15, 3  ;;  %s816_s23 = sshll.u32 (%p69_p3), %s158_s21, 8 }
   0xe   : > { %s1058_s26 = scalar_lea.vmem (%p69_p3), %s1205_s1, %s860_s22  ;;  %s1063_s27 = scalar_lea.vmem (%p69_p3), [#allocation3], %s816_s23 }
   0xf   : > { %v257_v0 = vld [vmem:[%s1058_s26] sm:$0xff] (%p69_p3)  ;;  %v259_v1 = vld [vmem:[%s1058_s26 + $0x10] sm:$0xff] (%p69_p3) }
  0x10   : > { %v261_v2 = vld [vmem:[%s1058_s26 + $0x20] sm:$0xff] (%p69_p3)  ;;  %258 = vst [vmem:[%s1063_s27] sm:$0xff] (%p69_p3), %v257_v0  ;;  %260 = vst [vmem:[%s1063_s27 + $0x8] sm:$0xff] (%p69_p3), %v259_v1  ;;  %v263_v3 = vld [vmem:[%s1058_s26 + $0x30] sm:$0xff] (%p69_p3) }
  0x11   : > { %262 = vst [vmem:[%s1063_s27 + $0x10] sm:$0xff] %v261_v2  ;;  %v265_v4 = vld [vmem:[%s1058_s26 + $0x40] sm:$0xff]  ;;  %v267_v5 = vld [vmem:[%s1058_s26 + $0x50] sm:$0xff]  ;;  %264 = vst [vmem:[%s1063_s27 + $0x18] sm:$0xff] %v263_v3 }
  0x12   : > { %266 = vst [vmem:[%s1063_s27 + $0x20] sm:$0xff] %v265_v4  ;;  %268 = vst [vmem:[%s1063_s27 + $0x28] sm:$0xff] %v267_v5  ;;  %v269_v6 = vld [vmem:[%s1058_s26 + $0x60] sm:$0xff]  ;;  %v271_v7 = vld [vmem:[%s1058_s26 + $0x70] sm:$0xff] }
  0x13   : > { %v273_v8 = vld [vmem:[%s1058_s26 + $0x80] sm:$0xff]  ;;  %270 = vst [vmem:[%s1063_s27 + $0x30] sm:$0xff] %v269_v6  ;;  %272 = vst [vmem:[%s1063_s27 + $0x38] sm:$0xff] %v271_v7  ;;  %v275_v9 = vld [vmem:[%s1058_s26 + $0x90] sm:$0xff] }
  0x14   : > { %274 = vst [vmem:[%s1063_s27 + $0x40] sm:$0xff] %v273_v8  ;;  %v277_v10 = vld [vmem:[%s1058_s26 + $0xa0] sm:$0xff]  ;;  %v279_v11 = vld [vmem:[%s1058_s26 + $0xb0] sm:$0xff]  ;;  %276 = vst [vmem:[%s1063_s27 + $0x48] sm:$0xff] %v275_v9 }
  0x15   : > { %278 = vst [vmem:[%s1063_s27 + $0x50] sm:$0xff] %v277_v10  ;;  %280 = vst [vmem:[%s1063_s27 + $0x58] sm:$0xff] %v279_v11  ;;  %v281_v12 = vld [vmem:[%s1058_s26 + $0xc0] sm:$0xff]  ;;  %v283_v13 = vld [vmem:[%s1058_s26 + $0xd0] sm:$0xff] }
  0x16   : > { %v285_v14 = vld [vmem:[%s1058_s26 + $0xe0] sm:$0xff]  ;;  %282 = vst [vmem:[%s1063_s27 + $0x60] sm:$0xff] %v281_v12  ;;  %284 = vst [vmem:[%s1063_s27 + $0x68] sm:$0xff] %v283_v13  ;;  %v287_v15 = vld [vmem:[%s1058_s26 + $0xf0] sm:$0xff] }
  0x17   : > { %286 = vst [vmem:[%s1063_s27 + $0x70] sm:$0xff] %v285_v14  ;;  %v289_v16 = vld [vmem:[%s1058_s26 + $0x100] sm:$0xff]  ;;  %v291_v17 = vld [vmem:[%s1058_s26 + $0x110] sm:$0xff]  ;;  %288 = vst [vmem:[%s1063_s27 + $0x78] sm:$0xff] %v287_v15 }
  0x18   : > { %290 = vst [vmem:[%s1063_s27 + $0x80] sm:$0xff] %v289_v16  ;;  %292 = vst [vmem:[%s1063_s27 + $0x88] sm:$0xff] %v291_v17  ;;  %v293_v18 = vld [vmem:[%s1058_s26 + $0x120] sm:$0xff]  ;;  %v295_v19 = vld [vmem:[%s1058_s26 + $0x130] sm:$0xff] }
  0x19   : > { %v297_v20 = vld [vmem:[%s1058_s26 + $0x140] sm:$0xff]  ;;  %294 = vst [vmem:[%s1063_s27 + $0x90] sm:$0xff] %v293_v18  ;;  %296 = vst [vmem:[%s1063_s27 + $0x98] sm:$0xff] %v295_v19  ;;  %v299_v21 = vld [vmem:[%s1058_s26 + $0x150] sm:$0xff] }
  0x1a   : > { %298 = vst [vmem:[%s1063_s27 + $0xa0] sm:$0xff] %v297_v20  ;;  %v301_v22 = vld [vmem:[%s1058_s26 + $0x160] sm:$0xff]  ;;  %v303_v23 = vld [vmem:[%s1058_s26 + $0x170] sm:$0xff]  ;;  %300 = vst [vmem:[%s1063_s27 + $0xa8] sm:$0xff] %v299_v21 }
  0x1b   : > { %302 = vst [vmem:[%s1063_s27 + $0xb0] sm:$0xff] %v301_v22  ;;  %304 = vst [vmem:[%s1063_s27 + $0xb8] sm:$0xff] %v303_v23  ;;  %v305_v24 = vld [vmem:[%s1058_s26 + $0x180] sm:$0xff]  ;;  %v307_v25 = vld [vmem:[%s1058_s26 + $0x190] sm:$0xff] }
  0x1c   : > { %v309_v26 = vld [vmem:[%s1058_s26 + $0x1a0] sm:$0xff]  ;;  %306 = vst [vmem:[%s1063_s27 + $0xc0] sm:$0xff] %v305_v24  ;;  %308 = vst [vmem:[%s1063_s27 + $0xc8] sm:$0xff] %v307_v25  ;;  %v311_v27 = vld [vmem:[%s1058_s26 + $0x1b0] sm:$0xff] }
  0x1d   : > { %310 = vst [vmem:[%s1063_s27 + $0xd0] sm:$0xff] %v309_v26  ;;  %v313_v28 = vld [vmem:[%s1058_s26 + $0x1c0] sm:$0xff]  ;;  %v315_v29 = vld [vmem:[%s1058_s26 + $0x1d0] sm:$0xff]  ;;  %312 = vst [vmem:[%s1063_s27 + $0xd8] sm:$0xff] %v311_v27 }
  0x1e   : > { %314 = vst [vmem:[%s1063_s27 + $0xe0] sm:$0xff] %v313_v28  ;;  %316 = vst [vmem:[%s1063_s27 + $0xe8] sm:$0xff] %v315_v29  ;;  %v317_v30 = vld [vmem:[%s1058_s26 + $0x1e0] sm:$0xff]  ;;  %v319_v31 = vld [vmem:[%s1058_s26 + $0x1f0] sm:$0xff] }
  0x1f   : > { %318 = vst [vmem:[%s1063_s27 + $0xf0] sm:$0xff] %v317_v30  ;;  %320 = vst [vmem:[%s1063_s27 + $0xf8] sm:$0xff] %v319_v31 }
  0x20 PF: > { %p819_p6 = scmp.ge.s32.totalorder %s990_s16, 1  ;;  %p333_p7 = scmp.lt.s32.totalorder %s990_s16, 3 }
  0x22   : > { %p334_p8 = pnand %p819_p6, %p333_p7 }
  0x23   : > { %s340_s28 = sand.u32 (!%p334_p8), 1, %s974_s12   ;;  %s821_s6 = sshll.u32 (!%p334_p8), %s982_s14, 1 }
  0x24   : > { %337 = sbr.rel (%p334_p8) target bundleno = 329 (0x149), region = 66  ;;  %s820_s4 = sshll.u32 (!%p334_p8), %s340_s28, 8 }
  0x25   : > { %s1136_s5 = scalar_lea.vmem (!%p334_p8), [#allocation3], %s820_s4  ;;  %p378_p9 = scmp.lt.s32.totalorder (!%p334_p8), %s821_s6, 3 }
  0x29   : > { %v1132_v32 = vld.sshfl [vmem:[%s1204_s0] sm:$0x11 pattern:$0x75316420]  ;;  %v438_v33 = vlaneseq  ;;  %v992_v34 = vmov 1966171168  }
  0x2a   : > { %v436_v35 = vunpack.c.l.s4 %v992_v34  ;;  %v904_v37 = vld [vmem:[%s1136_s5 + $0x74] ss:$8 sps:$4 sm:$0xff]   ;;  %v906_v38 = vld [vmem:[%s1136_s5 + $0x70] ss:$8 sps:$4 sm:$0xff]   ;;  %v434_v39 = vcombine.high %v1132_v32, %v1132_v32  ;;  %v907_v41 = vld [vmem:[%s1136_s5 + $0x64] ss:$8 sps:$4 sm:$0xff]  }
  0x2b   : > { %v1134_v36 = vshrl.u32 %v438_v33, 7  ;;  %611 = vmatprep.subr.bf16.mxu0 %v904_v37  ;;  %v909_v42 = vld [vmem:[%s1136_s5 + $0x60] ss:$8 sps:$4 sm:$0xff]   ;;  %v910_v44 = vld [vmem:[%s1136_s5 + $0x54] ss:$8 sps:$4 sm:$0xff]   ;;  %v993_v10 = vmov 0.0  }
  0x2c   : > { %v437_v40 = vunpack.c.0.s8 %v436_v35  ;;  %612 = vmatpush1.bf16.msra.mxu0 %v906_v38  ;;  %v912_v46 = vld [vmem:[%s1136_s5 + $0x50] ss:$8 sps:$4 sm:$0xff]   ;;  %v913_v47 = vld [vmem:[%s1136_s5 + $0x44] ss:$8 sps:$4 sm:$0xff]   ;;  %v915_v48 = vld [vmem:[%s1136_s5 + $0x40] ss:$8 sps:$4 sm:$0xff]  }
  0x2d   : > { %613 = vmatprep.subr.bf16.mxu0 %v907_v41  ;;  %v916_v49 = vld [vmem:[%s1136_s5 + $0x34] ss:$8 sps:$4 sm:$0xff]   ;;  %v918_v50 = vld [vmem:[%s1136_s5 + $0x30] ss:$8 sps:$4 sm:$0xff]   ;;  %v919_v51 = vld [vmem:[%s1136_s5 + $0x24] ss:$8 sps:$4 sm:$0xff]  }
  0x2e   : > { %v1145_v43 = vsub.s32 %v437_v40, %v1134_v36  ;;  %v921_v52 = vld [vmem:[%s1136_s5 + $0x20] ss:$8 sps:$4 sm:$0xff]   ;;  %v922_v53 = vld [vmem:[%s1136_s5 + $0x14] ss:$8 sps:$4 sm:$0xff]   ;;  %v924_v54 = vld [vmem:[%s1136_s5 + $0x10] ss:$8 sps:$4 sm:$0xff]  }
  0x2f   : > { %v925_v55 = vld [vmem:[%s1136_s5 + $0x4] ss:$8 sps:$4 sm:$0xff]   ;;  %v927_v56 = vld [vmem:[%s1136_s5] ss:$8 sps:$4 sm:$0xff]   ;;  %v928_v57 = vld [vmem:[%s1136_s5 + $0xf4] ss:$8 sps:$4 sm:$0xff]  }
  0x30   : > { %v448_v45 = vrot.slane %v434_v39, %v1145_v43  ;;  %614 = vmatpush1.bf16.msra.mxu0 %v909_v42  ;;  %v930_v58 = vld [vmem:[%s1136_s5 + $0xf0] ss:$8 sps:$4 sm:$0xff]   ;;  %v931_v59 = vld [vmem:[%s1136_s5 + $0xe4] ss:$8 sps:$4 sm:$0xff]   ;;  %v933_v60 = vld [vmem:[%s1136_s5 + $0xe0] ss:$8 sps:$4 sm:$0xff]   ;;  %v441_v9 = vrot.slane %v1132_v32, %v1145_v43 }
  0x31   : > { %615 = vmatprep.subr.bf16.mxu0 %v910_v44  ;;  %v934_v61 = vld [vmem:[%s1136_s5 + $0xd4] ss:$8 sps:$4 sm:$0xff]   ;;  %v936_v62 = vld [vmem:[%s1136_s5 + $0xd0] ss:$8 sps:$4 sm:$0xff]   ;;  %v937_v63 = vld [vmem:[%s1136_s5 + $0xc4] ss:$8 sps:$4 sm:$0xff]  }
  0x32   : > { %643 = vmatprep.mubr.bf16.mxu0 %v448_v45  ;;  %v939_v0 = vld [vmem:[%s1136_s5 + $0xc0] ss:$8 sps:$4 sm:$0xff]   ;;  %v940_v1 = vld [vmem:[%s1136_s5 + $0xb4] ss:$8 sps:$4 sm:$0xff]   ;;  %v942_v2 = vld [vmem:[%s1136_s5 + $0xb0] ss:$8 sps:$4 sm:$0xff]  }
  0x33   : > { %v943_v3 = vld [vmem:[%s1136_s5 + $0xa4] ss:$8 sps:$4 sm:$0xff]   ;;  %v945_v4 = vld [vmem:[%s1136_s5 + $0xa0] ss:$8 sps:$4 sm:$0xff]   ;;  %v946_v5 = vld [vmem:[%s1136_s5 + $0x94] ss:$8 sps:$4 sm:$0xff]  }
  0x34   : > { %616 = vmatpush1.bf16.msra.mxu0 %v912_v46  ;;  %v948_v6 = vld [vmem:[%s1136_s5 + $0x90] ss:$8 sps:$4 sm:$0xff]   ;;  %v949_v7 = vld [vmem:[%s1136_s5 + $0x84] ss:$8 sps:$4 sm:$0xff]   ;;  %v951_v8 = vld [vmem:[%s1136_s5 + $0x80] ss:$8 sps:$4 sm:$0xff]  }
  0x35   : > { %617 = vmatprep.subr.bf16.mxu0 %v913_v47  ;;  %391 = vst [vmem:[#allocation2] sm:$0xf] %v993_v10  ;;  %v994_v11 = vmov 1983009808   ;;  %s1215_s6 = smov (!%p378_p9, %s821_s6), 3  ;;  %v673_v16 = vsub.s32 0, %v1134_v36 }
  0x36   : > { %v656_v12 = vunpack.c.l.s4 %v994_v11  ;;  %s380_s9 = scalar_lea.vmem %s1206_s2, %s1215_s6  ;;  %v677_v17 = vsub.s32 1, %v1134_v36  ;;  %s385_s12 = scalar_lea.vmem %s1207_s3, %s1215_s6 }
  0x37   : > { %v669_v19 = vld [vmem:[%s380_s9] sm:$0x3] }
  0x38   : > { %618 = vmatpush1.bf16.msra.mxu0 %v915_v48  ;;  %v657_v13 = vunpack.c.0.s8 %v656_v12  ;;  %v674_v24 = vrot.slane %v669_v19, %v673_v16  ;;  %v678_v25 = vrot.slane %v669_v19, %v677_v17 }
  0x39   : > { %619 = vmatprep.subr.bf16.mxu0 %v916_v49 }
  0x3a   : > { %v660_v15 = vsub.s32 %v657_v13, %v1134_v36  ;;  %v679_v28 = vcombine.low %v674_v24, %v678_v25 }
  0x3c   : > { %620 = vmatpush1.bf16.msra.mxu0 %v918_v50  ;;  %v392_v21 = vld [vmem:[#allocation2] sm:$0xf]  ;;  %v686_v29 = vrot.slane %v679_v28, %v660_v15 }
  0x3d   : > { %621 = vmatprep.subr.bf16.mxu0 %v919_v51 }
  0x40   : > { %622 = vmatpush1.bf16.msra.mxu0 %v921_v52 }
  0x41   : > { %623 = vmatprep.subr.bf16.mxu0 %v922_v53 }
  0x44   : > { %624 = vmatpush1.bf16.msra.mxu0 %v924_v54 }
  0x45   : > { %625 = vmatprep.subr.bf16.mxu0 %v925_v55 }
  0x48   : > { %626 = vmatpush1.bf16.msra.mxu0 %v927_v56 }
  0x49   : > { %627 = vmatprep.subr.bf16.mxu0 %v928_v57 }
  0x4c   : > { %628 = vmatpush2.bf16.msra.mxu0 %v930_v58 }
  0x4d   : > { %629 = vmatprep.subr.bf16.mxu0 %v931_v59 }
  0x50   : > { %630 = vmatpush2.bf16.msra.mxu0 %v933_v60 }
  0x51   : > { %631 = vmatprep.subr.bf16.mxu0 %v934_v61 }
  0x54   : > { %632 = vmatpush2.bf16.msra.mxu0 %v936_v62 }
  0x55   : > { %633 = vmatprep.subr.bf16.mxu0 %v937_v63 }
  0x58   : > { %634 = vmatpush2.bf16.msra.mxu0 %v939_v0 }
  0x59   : > { %635 = vmatprep.subr.bf16.mxu0 %v940_v1 }
  0x5c   : > { %636 = vmatpush2.bf16.msra.mxu0 %v942_v2 }
  0x5d   : > { %637 = vmatprep.subr.bf16.mxu0 %v943_v3 }
  0x60   : > { %638 = vmatpush2.bf16.msra.mxu0 %v945_v4 }
  0x61   : > { %639 = vmatprep.subr.bf16.mxu0 %v946_v5 }
  0x64   : > { %640 = vmatpush2.bf16.msra.mxu0 %v948_v6 }
  0x65   : > { %641 = vmatprep.subr.bf16.mxu0 %v949_v7 }
  0x68   : > { %642 = vmatpush2.bf16.msra.mxu0 %v951_v8 }
  0x6b   : > { %644 = vmatmul.mubr.bf16.vlgmr.msra.gmra.mxu0 %v441_v9 }
 0x12b   : > { %v645_v14 = vpop.f32.mrf.mxu0 }
 0x12d   : > { %v647_v18 = vpop.f32.mrf.mxu0 }
 0x12e   : > { %v654_v20 = vcombine.low %v645_v14, %v647_v18 }
 0x12f   : > { %v649_v22 = vpop.f32.mrf.mxu0 }
 0x130   : > { %v661_v23 = vrot.slane %v654_v20, %v660_v15 }
 0x131   : > { %v650_v26 = vpop.f32.mrf.mxu0 }
 0x132   : > { %v663_v27 = vadd.f32 %v661_v23, %v392_v21 }
 0x134   : > { %664 = vst [vmem:[#allocation2] sm:$0xf] %v663_v27 }
 0x13b   : > { %v668_v30 = vld [vmem:[#allocation2] sm:$0xf] }
 0x13c   : > { %v688_v31 = vadd.f32 %v686_v29, %v668_v30 }
 0x13e   : > { %v689_v32 = vmax.f32 %v688_v31, 0.0 }
 0x140   : > { %v697_v33 = vrot.slane %v689_v32, %v660_v15 }
 0x142   : > { %v698_v34 = vcombine.high %v697_v33, %v697_v33 }
 0x144   : > { %v856_v35 = vpack.c.bf16 %v698_v34, %v697_v33 }
 0x146   : > { %v712_v36 = vrot.slane %v856_v35, %v1145_v43 }
 0x148   : > { %857 = vst.sshfl [vmem:[%s385_s12] sm:$0x5 pattern:$0x73625140] %v712_v36 }
 0x149 PF: > { %s13_s16 = sadd.s32 1, %s990_s16   ;;  %s1208_s12 = smov %s978_s13 }
 0x14a   : > { %p10_p10 = scmp.ge.s32.totalorder %s13_s16, 4   ;;  %s1209_s13 = smov %s1050_s20 }
 0x14b   : > { %s1210_s14 = smov %s986_s15  ;;  %s1211_s15 = smov %s1213_s17 }
 0x14c   :  { %12 = sbr.rel (!%p10_p10) target bundleno = 3 (0x3), region = 119 }

// kernel: vggish_forward.12
= control target key start
LH: loop header
LB: loop body
LE: loop exit
PB: predicated region body
PF: predicated region fallthrough
CT: control target
= control target key end

     0   :  { %s2601_s12 = smov 0   ;;  %s2603_s13 = smov 0   ;;  %s3202_s0 = inlined_call_operand.vmem [shape: bf16[2,20,128], index: 0, kind: input, shape index: {}]   ;;  %s3203_s1 = inlined_call_operand.vmem [shape: bf16[1152,256], index: 1, kind: input, shape index: {}]   ;;  %s3204_s2 = inlined_call_operand.vmem [shape: f32[1,256], index: 2, kind: input, shape index: {}]   ;;  %s3205_s3 = inlined_call_operand.vmem [shape: bf16[2,2,2,256], index: 3, kind: output, shape index: {}]  }
   0x1   :  { %s2605_s14 = smov 0   ;;  %s2607_s15 = smov 0  }
   0x2   :  { %s2609_s16 = smov 0   ;;  %s2611_s17 = smov 0  }
   0x3   :  { %s2613_s18 = smov 0   ;;  %s2615_s19 = smov 0  }
   0x4   :  { %s2617_s20 = smov 0  }
   0x5 LB: > { %s1997_s21 = sadd.s32 4294967295, %s2577_s20   ;;  %s22_s22 = sadd.s32 1, %s2569_s18  ;;  %s2577_s20 = sphi %s2617_s20, %s13_s20   ;;  %s2573_s19 = sphi %s2615_s19, %s3214_s19   ;;  %s2569_s18 = sphi %s2613_s18, %s3213_s18   ;;  %s2565_s17 = sphi %s2611_s17, %s3212_s17   ;;  %s2561_s16 = sphi %s2609_s16, %s3211_s16   ;;  %s2557_s15 = sphi %s2607_s15, %s3210_s15   ;;  %s2553_s14 = sphi %s2605_s14, %s3209_s14   ;;  %s2549_s13 = sphi %s2603_s13, %s3208_s13   ;;  %s2545_s12 = sphi %s2601_s12, %s3207_s12  }
   0x6   : > { %p23_p0 = scmp.ge.s32.totalorder %s22_s22, 2  ;;  %s25_s23 = sadd.s32 1, %s2573_s19 }
   0x7   : > { %s58_s24 = sadd.s32 1, %s2557_s15  ;;  %p65_p1 = scmp.ne.s32.totalorder %s2557_s15, %s2553_s14 }
   0x8   : > { %s3216_s22 = smov (%p23_p0, %s22_s22), 0  ;;  %s3218_s23 = smov (!%p23_p0, %s25_s23), %s2573_s19 }
   0x9   : > { %s55_s25 = ssub.s32 %s2569_s18, %s3216_s22  ;;  %p66_p2 = scmp.eq.s32.totalorder %s2577_s20, 0 }
   0xa   : > { %p27_p3 = scmp.ge.s32.totalorder %s3218_s23, 2  ;;  %p56_p4 = scmp.eq.s32.totalorder %s55_s25, 0 }
   0xb   : > { %p67_p5 = por %p66_p2, %p65_p1  ;;  %s112_s26 = sadd.s32 1, %s2549_s13 }
   0xc   : > { %s3220_s23 = smov (%p27_p3, %s3218_s23), 0  ;;  %p122_p6 = scmp.ne.s32.totalorder %s2549_s13, %s2545_s12 }
   0xd   : > { %s2662_s27 = scalar_select %p56_p4, %s2557_s15, %s58_s24  }
   0xe   : > { %s107_s28 = ssub.s32 %s2573_s19, %s3220_s23  ;;  %p123_p7 = scmp.eq.s32.totalorder %s1997_s21, 3 }
   0xf   : > { %s109_s29 = sor.u32 %s107_s28, %s55_s25  ;;  %p2000_p10 = scmp.ge.s32.totalorder %s2577_s20, 4 }
  0x10   : > { %p110_p8 = scmp.eq.s32.totalorder %s109_s29, 0  ;;  %p2668_p9 = por %p123_p7, %p122_p6 }
  0x11   : > { %145 = sbr.rel (%p2000_p10) target bundleno = 122 (0x7a), region = 16 }
  0x12   : > { %s2673_s4 = scalar_select %p110_p8, %s2549_s13, %s112_s26  }
  0x16   : > { %156 = sbr.rel (!%p67_p5) target bundleno = 122 (0x7a), region = 24  ;;  %s158_s5 = sand.u32 (%p67_p5), 1, %s2557_s15  }
  0x17   : > { %s2001_s6 = sshll.u32 (%p67_p5), %s2569_s18, 2  ;;  %s2351_s7 = smul.u32 (%p67_p5), 576, %s158_s5 }
  0x18   : > { %s2681_s10 = scalar_lea.vmem (%p67_p5), %s3203_s1, %s2001_s6 }
  0x19   : > { %v179_v0 = vld [vmem:[%s2681_s10] sm:$0xf] (%p67_p5)  ;;  %v181_v1 = vld [vmem:[%s2681_s10 + $0x8] sm:$0xf] (%p67_p5)  ;;  %v183_v2 = vld [vmem:[%s2681_s10 + $0x10] sm:$0xf] (%p67_p5) }
  0x1a   : > { %v185_v3 = vld [vmem:[%s2681_s10 + $0x18] sm:$0xf] (%p67_p5)  ;;  %v187_v4 = vld [vmem:[%s2681_s10 + $0x20] sm:$0xf] (%p67_p5)  ;;  %s2688_s11 = scalar_lea.vmem (%p67_p5), [#allocation3], %s2351_s7 }
  0x1b   : > { %180 = vst [vmem:[%s2688_s11] sm:$0xf] %v179_v0  ;;  %182 = vst [vmem:[%s2688_s11 + $0x4] sm:$0xf] %v181_v1  ;;  %v189_v5 = vld [vmem:[%s2681_s10 + $0x28] sm:$0xf] }
  0x1c   : > { %184 = vst [vmem:[%s2688_s11 + $0x8] sm:$0xf] %v183_v2  ;;  %186 = vst [vmem:[%s2688_s11 + $0xc] sm:$0xf] %v185_v3  ;;  %v191_v6 = vld [vmem:[%s2681_s10 + $0x30] sm:$0xf] }
  0x1d   : > { %188 = vst [vmem:[%s2688_s11 + $0x10] sm:$0xf] %v187_v4  ;;  %v193_v7 = vld [vmem:[%s2681_s10 + $0x38] sm:$0xf]  ;;  %190 = vst [vmem:[%s2688_s11 + $0x14] sm:$0xf] %v189_v5 }
  0x1e   : > { %192 = vst [vmem:[%s2688_s11 + $0x18] sm:$0xf] %v191_v6  ;;  %194 = vst [vmem:[%s2688_s11 + $0x1c] sm:$0xf] %v193_v7  ;;  %v195_v8 = vld [vmem:[%s2681_s10 + $0x40] sm:$0xf] }
  0x1f   : > { %v197_v9 = vld [vmem:[%s2681_s10 + $0x48] sm:$0xf]  ;;  %v199_v10 = vld [vmem:[%s2681_s10 + $0x50] sm:$0xf]  ;;  %196 = vst [vmem:[%s2688_s11 + $0x20] sm:$0xf] %v195_v8 }
  0x20   : > { %198 = vst [vmem:[%s2688_s11 + $0x24] sm:$0xf] %v197_v9  ;;  %200 = vst [vmem:[%s2688_s11 + $0x28] sm:$0xf] %v199_v10  ;;  %v201_v11 = vld [vmem:[%s2681_s10 + $0x58] sm:$0xf] }
  0x21   : > { %v203_v12 = vld [vmem:[%s2681_s10 + $0x60] sm:$0xf]  ;;  %v205_v13 = vld [vmem:[%s2681_s10 + $0x68] sm:$0xf]  ;;  %202 = vst [vmem:[%s2688_s11 + $0x2c] sm:$0xf] %v201_v11 }
  0x22   : > { %204 = vst [vmem:[%s2688_s11 + $0x30] sm:$0xf] %v203_v12  ;;  %206 = vst [vmem:[%s2688_s11 + $0x34] sm:$0xf] %v205_v13  ;;  %v207_v14 = vld [vmem:[%s2681_s10 + $0x70] sm:$0xf] }
  0x23   : > { %v209_v15 = vld [vmem:[%s2681_s10 + $0x78] sm:$0xf]  ;;  %v211_v16 = vld [vmem:[%s2681_s10 + $0x80] sm:$0xf]  ;;  %208 = vst [vmem:[%s2688_s11 + $0x38] sm:$0xf] %v207_v14 }
  0x24   : > { %210 = vst [vmem:[%s2688_s11 + $0x3c] sm:$0xf] %v209_v15  ;;  %212 = vst [vmem:[%s2688_s11 + $0x40] sm:$0xf] %v211_v16  ;;  %v213_v17 = vld [vmem:[%s2681_s10 + $0x88] sm:$0xf] }
  0x25   : > { %v215_v18 = vld [vmem:[%s2681_s10 + $0x90] sm:$0xf]  ;;  %v217_v19 = vld [vmem:[%s2681_s10 + $0x98] sm:$0xf]  ;;  %214 = vst [vmem:[%s2688_s11 + $0x44] sm:$0xf] %v213_v17 }
  0x26   : > { %216 = vst [vmem:[%s2688_s11 + $0x48] sm:$0xf] %v215_v18  ;;  %218 = vst [vmem:[%s2688_s11 + $0x4c] sm:$0xf] %v217_v19  ;;  %v219_v20 = vld [vmem:[%s2681_s10 + $0xa0] sm:$0xf] }
  0x27   : > { %v221_v21 = vld [vmem:[%s2681_s10 + $0xa8] sm:$0xf]  ;;  %v223_v22 = vld [vmem:[%s2681_s10 + $0xb0] sm:$0xf]  ;;  %220 = vst [vmem:[%s2688_s11 + $0x50] sm:$0xf] %v219_v20 }
  0x28   : > { %222 = vst [vmem:[%s2688_s11 + $0x54] sm:$0xf] %v221_v21  ;;  %224 = vst [vmem:[%s2688_s11 + $0x58] sm:$0xf] %v223_v22  ;;  %v225_v23 = vld [vmem:[%s2681_s10 + $0xb8] sm:$0xf] }
  0x29   : > { %v227_v24 = vld [vmem:[%s2681_s10 + $0xc0] sm:$0xf]  ;;  %v229_v25 = vld [vmem:[%s2681_s10 + $0xc8] sm:$0xf]  ;;  %226 = vst [vmem:[%s2688_s11 + $0x5c] sm:$0xf] %v225_v23 }
  0x2a   : > { %228 = vst [vmem:[%s2688_s11 + $0x60] sm:$0xf] %v227_v24  ;;  %230 = vst [vmem:[%s2688_s11 + $0x64] sm:$0xf] %v229_v25  ;;  %v231_v26 = vld [vmem:[%s2681_s10 + $0xd0] sm:$0xf] }
  0x2b   : > { %v233_v27 = vld [vmem:[%s2681_s10 + $0xd8] sm:$0xf]  ;;  %v235_v28 = vld [vmem:[%s2681_s10 + $0xe0] sm:$0xf]  ;;  %232 = vst [vmem:[%s2688_s11 + $0x68] sm:$0xf] %v231_v26 }
  0x2c   : > { %234 = vst [vmem:[%s2688_s11 + $0x6c] sm:$0xf] %v233_v27  ;;  %236 = vst [vmem:[%s2688_s11 + $0x70] sm:$0xf] %v235_v28  ;;  %v237_v29 = vld [vmem:[%s2681_s10 + $0xe8] sm:$0xf] }
  0x2d   : > { %v239_v30 = vld [vmem:[%s2681_s10 + $0xf0] sm:$0xf]  ;;  %v241_v31 = vld [vmem:[%s2681_s10 + $0xf8] sm:$0xf]  ;;  %238 = vst [vmem:[%s2688_s11 + $0x74] sm:$0xf] %v237_v29 }
  0x2e   : > { %240 = vst [vmem:[%s2688_s11 + $0x78] sm:$0xf] %v239_v30  ;;  %242 = vst [vmem:[%s2688_s11 + $0x7c] sm:$0xf] %v241_v31  ;;  %v243_v32 = vld [vmem:[%s2681_s10 + $0x100] sm:$0xf] }
  0x2f   : > { %v245_v33 = vld [vmem:[%s2681_s10 + $0x108] sm:$0xf]  ;;  %v247_v34 = vld [vmem:[%s2681_s10 + $0x110] sm:$0xf]  ;;  %244 = vst [vmem:[%s2688_s11 + $0x80] sm:$0xf] %v243_v32 }
  0x30   : > { %246 = vst [vmem:[%s2688_s11 + $0x84] sm:$0xf] %v245_v33  ;;  %248 = vst [vmem:[%s2688_s11 + $0x88] sm:$0xf] %v247_v34  ;;  %v249_v35 = vld [vmem:[%s2681_s10 + $0x118] sm:$0xf] }
  0x31   : > { %v251_v36 = vld [vmem:[%s2681_s10 + $0x120] sm:$0xf]  ;;  %v253_v37 = vld [vmem:[%s2681_s10 + $0x128] sm:$0xf]  ;;  %250 = vst [vmem:[%s2688_s11 + $0x8c] sm:$0xf] %v249_v35 }
  0x32   : > { %252 = vst [vmem:[%s2688_s11 + $0x90] sm:$0xf] %v251_v36  ;;  %254 = vst [vmem:[%s2688_s11 + $0x94] sm:$0xf] %v253_v37  ;;  %v255_v38 = vld [vmem:[%s2681_s10 + $0x130] sm:$0xf] }
  0x33   : > { %v257_v39 = vld [vmem:[%s2681_s10 + $0x138] sm:$0xf]  ;;  %v259_v40 = vld [vmem:[%s2681_s10 + $0x140] sm:$0xf]  ;;  %256 = vst [vmem:[%s2688_s11 + $0x98] sm:$0xf] %v255_v38 }
  0x34   : > { %258 = vst [vmem:[%s2688_s11 + $0x9c] sm:$0xf] %v257_v39  ;;  %260 = vst [vmem:[%s2688_s11 + $0xa0] sm:$0xf] %v259_v40  ;;  %v261_v41 = vld [vmem:[%s2681_s10 + $0x148] sm:$0xf] }
  0x35   : > { %v263_v42 = vld [vmem:[%s2681_s10 + $0x150] sm:$0xf]  ;;  %v265_v43 = vld [vmem:[%s2681_s10 + $0x158] sm:$0xf]  ;;  %262 = vst [vmem:[%s2688_s11 + $0xa4] sm:$0xf] %v261_v41 }
  0x36   : > { %264 = vst [vmem:[%s2688_s11 + $0xa8] sm:$0xf] %v263_v42  ;;  %266 = vst [vmem:[%s2688_s11 + $0xac] sm:$0xf] %v265_v43  ;;  %v267_v44 = vld [vmem:[%s2681_s10 + $0x160] sm:$0xf] }
  0x37   : > { %v269_v45 = vld [vmem:[%s2681_s10 + $0x168] sm:$0xf]  ;;  %v271_v46 = vld [vmem:[%s2681_s10 + $0x170] sm:$0xf]  ;;  %268 = vst [vmem:[%s2688_s11 + $0xb0] sm:$0xf] %v267_v44 }
  0x38   : > { %270 = vst [vmem:[%s2688_s11 + $0xb4] sm:$0xf] %v269_v45  ;;  %272 = vst [vmem:[%s2688_s11 + $0xb8] sm:$0xf] %v271_v46  ;;  %v273_v47 = vld [vmem:[%s2681_s10 + $0x178] sm:$0xf] }
  0x39   : > { %v275_v48 = vld [vmem:[%s2681_s10 + $0x180] sm:$0xf]  ;;  %v277_v49 = vld [vmem:[%s2681_s10 + $0x188] sm:$0xf]  ;;  %274 = vst [vmem:[%s2688_s11 + $0xbc] sm:$0xf] %v273_v47 }
  0x3a   : > { %276 = vst [vmem:[%s2688_s11 + $0xc0] sm:$0xf] %v275_v48  ;;  %278 = vst [vmem:[%s2688_s11 + $0xc4] sm:$0xf] %v277_v49  ;;  %v279_v50 = vld [vmem:[%s2681_s10 + $0x190] sm:$0xf] }
  0x3b   : > { %v281_v51 = vld [vmem:[%s2681_s10 + $0x198] sm:$0xf]  ;;  %v283_v52 = vld [vmem:[%s2681_s10 + $0x1a0] sm:$0xf]  ;;  %280 = vst [vmem:[%s2688_s11 + $0xc8] sm:$0xf] %v279_v50 }
  0x3c   : > { %282 = vst [vmem:[%s2688_s11 + $0xcc] sm:$0xf] %v281_v51  ;;  %284 = vst [vmem:[%s2688_s11 + $0xd0] sm:$0xf] %v283_v52  ;;  %v285_v53 = vld [vmem:[%s2681_s10 + $0x1a8] sm:$0xf] }
  0x3d   : > { %v287_v54 = vld [vmem:[%s2681_s10 + $0x1b0] sm:$0xf]  ;;  %v289_v55 = vld [vmem:[%s2681_s10 + $0x1b8] sm:$0xf]  ;;  %286 = vst [vmem:[%s2688_s11 + $0xd4] sm:$0xf] %v285_v53 }
  0x3e   : > { %288 = vst [vmem:[%s2688_s11 + $0xd8] sm:$0xf] %v287_v54  ;;  %290 = vst [vmem:[%s2688_s11 + $0xdc] sm:$0xf] %v289_v55  ;;  %v291_v56 = vld [vmem:[%s2681_s10 + $0x1c0] sm:$0xf] }
  0x3f   : > { %v293_v57 = vld [vmem:[%s2681_s10 + $0x1c8] sm:$0xf]  ;;  %v295_v58 = vld [vmem:[%s2681_s10 + $0x1d0] sm:$0xf]  ;;  %292 = vst [vmem:[%s2688_s11 + $0xe0] sm:$0xf] %v291_v56 }
  0x40   : > { %294 = vst [vmem:[%s2688_s11 + $0xe4] sm:$0xf] %v293_v57  ;;  %296 = vst [vmem:[%s2688_s11 + $0xe8] sm:$0xf] %v295_v58  ;;  %v297_v59 = vld [vmem:[%s2681_s10 + $0x1d8] sm:$0xf] }
  0x41   : > { %v299_v60 = vld [vmem:[%s2681_s10 + $0x1e0] sm:$0xf]  ;;  %v301_v61 = vld [vmem:[%s2681_s10 + $0x1e8] sm:$0xf]  ;;  %298 = vst [vmem:[%s2688_s11 + $0xec] sm:$0xf] %v297_v59 }
  0x42   : > { %300 = vst [vmem:[%s2688_s11 + $0xf0] sm:$0xf] %v299_v60  ;;  %302 = vst [vmem:[%s2688_s11 + $0xf4] sm:$0xf] %v301_v61  ;;  %v303_v62 = vld [vmem:[%s2681_s10 + $0x1f0] sm:$0xf] }
  0x43   : > { %v305_v63 = vld [vmem:[%s2681_s10 + $0x1f8] sm:$0xf]  ;;  %v307_v0 = vld [vmem:[%s2681_s10 + $0x200] sm:$0xf]  ;;  %304 = vst [vmem:[%s2688_s11 + $0xf8] sm:$0xf] %v303_v62 }
  0x44   : > { %306 = vst [vmem:[%s2688_s11 + $0xfc] sm:$0xf] %v305_v63  ;;  %308 = vst [vmem:[%s2688_s11 + $0x100] sm:$0xf] %v307_v0  ;;  %v309_v1 = vld [vmem:[%s2681_s10 + $0x208] sm:$0xf] }
  0x45   : > { %v311_v2 = vld [vmem:[%s2681_s10 + $0x210] sm:$0xf]  ;;  %v313_v3 = vld [vmem:[%s2681_s10 + $0x218] sm:$0xf]  ;;  %310 = vst [vmem:[%s2688_s11 + $0x104] sm:$0xf] %v309_v1 }
  0x46   : > { %312 = vst [vmem:[%s2688_s11 + $0x108] sm:$0xf] %v311_v2  ;;  %314 = vst [vmem:[%s2688_s11 + $0x10c] sm:$0xf] %v313_v3  ;;  %v315_v4 = vld [vmem:[%s2681_s10 + $0x220] sm:$0xf] }
  0x47   : > { %v317_v5 = vld [vmem:[%s2681_s10 + $0x228] sm:$0xf]  ;;  %v319_v6 = vld [vmem:[%s2681_s10 + $0x230] sm:$0xf]  ;;  %316 = vst [vmem:[%s2688_s11 + $0x110] sm:$0xf] %v315_v4 }
  0x48   : > { %318 = vst [vmem:[%s2688_s11 + $0x114] sm:$0xf] %v317_v5  ;;  %320 = vst [vmem:[%s2688_s11 + $0x118] sm:$0xf] %v319_v6  ;;  %v321_v7 = vld [vmem:[%s2681_s10 + $0x238] sm:$0xf] }
  0x49   : > { %v323_v8 = vld [vmem:[%s2681_s10 + $0x240] sm:$0xf]  ;;  %v325_v9 = vld [vmem:[%s2681_s10 + $0x248] sm:$0xf]  ;;  %322 = vst [vmem:[%s2688_s11 + $0x11c] sm:$0xf] %v321_v7 }
  0x4a   : > { %324 = vst [vmem:[%s2688_s11 + $0x120] sm:$0xf] %v323_v8  ;;  %326 = vst [vmem:[%s2688_s11 + $0x124] sm:$0xf] %v325_v9  ;;  %v327_v10 = vld [vmem:[%s2681_s10 + $0x250] sm:$0xf] }
  0x4b   : > { %v329_v11 = vld [vmem:[%s2681_s10 + $0x258] sm:$0xf]  ;;  %v331_v12 = vld [vmem:[%s2681_s10 + $0x260] sm:$0xf]  ;;  %328 = vst [vmem:[%s2688_s11 + $0x128] sm:$0xf] %v327_v10 }
  0x4c   : > { %330 = vst [vmem:[%s2688_s11 + $0x12c] sm:$0xf] %v329_v11  ;;  %332 = vst [vmem:[%s2688_s11 + $0x130] sm:$0xf] %v331_v12  ;;  %v333_v13 = vld [vmem:[%s2681_s10 + $0x268] sm:$0xf] }
  0x4d   : > { %v335_v14 = vld [vmem:[%s2681_s10 + $0x270] sm:$0xf]  ;;  %v337_v15 = vld [vmem:[%s2681_s10 + $0x278] sm:$0xf]  ;;  %334 = vst [vmem:[%s2688_s11 + $0x134] sm:$0xf] %v333_v13 }
  0x4e   : > { %336 = vst [vmem:[%s2688_s11 + $0x138] sm:$0xf] %v335_v14  ;;  %338 = vst [vmem:[%s2688_s11 + $0x13c] sm:$0xf] %v337_v15  ;;  %v339_v16 = vld [vmem:[%s2681_s10 + $0x280] sm:$0xf] }
  0x4f   : > { %v341_v17 = vld [vmem:[%s2681_s10 + $0x288] sm:$0xf]  ;;  %v343_v18 = vld [vmem:[%s2681_s10 + $0x290] sm:$0xf]  ;;  %340 = vst [vmem:[%s2688_s11 + $0x140] sm:$0xf] %v339_v16 }
  0x50   : > { %342 = vst [vmem:[%s2688_s11 + $0x144] sm:$0xf] %v341_v17  ;;  %344 = vst [vmem:[%s2688_s11 + $0x148] sm:$0xf] %v343_v18  ;;  %v345_v19 = vld [vmem:[%s2681_s10 + $0x298] sm:$0xf] }
  0x51   : > { %v347_v20 = vld [vmem:[%s2681_s10 + $0x2a0] sm:$0xf]  ;;  %v349_v21 = vld [vmem:[%s2681_s10 + $0x2a8] sm:$0xf]  ;;  %346 = vst [vmem:[%s2688_s11 + $0x14c] sm:$0xf] %v345_v19 }
  0x52   : > { %348 = vst [vmem:[%s2688_s11 + $0x150] sm:$0xf] %v347_v20  ;;  %350 = vst [vmem:[%s2688_s11 + $0x154] sm:$0xf] %v349_v21  ;;  %v351_v22 = vld [vmem:[%s2681_s10 + $0x2b0] sm:$0xf] }
  0x53   : > { %v353_v23 = vld [vmem:[%s2681_s10 + $0x2b8] sm:$0xf]  ;;  %v355_v24 = vld [vmem:[%s2681_s10 + $0x2c0] sm:$0xf]  ;;  %352 = vst [vmem:[%s2688_s11 + $0x158] sm:$0xf] %v351_v22 }
  0x54   : > { %354 = vst [vmem:[%s2688_s11 + $0x15c] sm:$0xf] %v353_v23  ;;  %356 = vst [vmem:[%s2688_s11 + $0x160] sm:$0xf] %v355_v24  ;;  %v357_v25 = vld [vmem:[%s2681_s10 + $0x2c8] sm:$0xf] }
  0x55   : > { %v359_v26 = vld [vmem:[%s2681_s10 + $0x2d0] sm:$0xf]  ;;  %v361_v27 = vld [vmem:[%s2681_s10 + $0x2d8] sm:$0xf]  ;;  %358 = vst [vmem:[%s2688_s11 + $0x164] sm:$0xf] %v357_v25 }
  0x56   : > { %360 = vst [vmem:[%s2688_s11 + $0x168] sm:$0xf] %v359_v26  ;;  %362 = vst [vmem:[%s2688_s11 + $0x16c] sm:$0xf] %v361_v27  ;;  %v363_v28 = vld [vmem:[%s2681_s10 + $0x2e0] sm:$0xf] }
  0x57   : > { %v365_v29 = vld [vmem:[%s2681_s10 + $0x2e8] sm:$0xf]  ;;  %v367_v30 = vld [vmem:[%s2681_s10 + $0x2f0] sm:$0xf]  ;;  %364 = vst [vmem:[%s2688_s11 + $0x170] sm:$0xf] %v363_v28 }
  0x58   : > { %366 = vst [vmem:[%s2688_s11 + $0x174] sm:$0xf] %v365_v29  ;;  %368 = vst [vmem:[%s2688_s11 + $0x178] sm:$0xf] %v367_v30  ;;  %v369_v31 = vld [vmem:[%s2681_s10 + $0x2f8] sm:$0xf] }
  0x59   : > { %v371_v32 = vld [vmem:[%s2681_s10 + $0x300] sm:$0xf]  ;;  %v373_v33 = vld [vmem:[%s2681_s10 + $0x308] sm:$0xf]  ;;  %370 = vst [vmem:[%s2688_s11 + $0x17c] sm:$0xf] %v369_v31 }
  0x5a   : > { %372 = vst [vmem:[%s2688_s11 + $0x180] sm:$0xf] %v371_v32  ;;  %374 = vst [vmem:[%s2688_s11 + $0x184] sm:$0xf] %v373_v33  ;;  %v375_v34 = vld [vmem:[%s2681_s10 + $0x310] sm:$0xf] }
  0x5b   : > { %v377_v35 = vld [vmem:[%s2681_s10 + $0x318] sm:$0xf]  ;;  %v379_v36 = vld [vmem:[%s2681_s10 + $0x320] sm:$0xf]  ;;  %376 = vst [vmem:[%s2688_s11 + $0x188] sm:$0xf] %v375_v34 }
  0x5c   : > { %378 = vst [vmem:[%s2688_s11 + $0x18c] sm:$0xf] %v377_v35  ;;  %380 = vst [vmem:[%s2688_s11 + $0x190] sm:$0xf] %v379_v36  ;;  %v381_v37 = vld [vmem:[%s2681_s10 + $0x328] sm:$0xf] }
  0x5d   : > { %v383_v38 = vld [vmem:[%s2681_s10 + $0x330] sm:$0xf]  ;;  %v385_v39 = vld [vmem:[%s2681_s10 + $0x338] sm:$0xf]  ;;  %382 = vst [vmem:[%s2688_s11 + $0x194] sm:$0xf] %v381_v37 }
  0x5e   : > { %384 = vst [vmem:[%s2688_s11 + $0x198] sm:$0xf] %v383_v38  ;;  %386 = vst [vmem:[%s2688_s11 + $0x19c] sm:$0xf] %v385_v39  ;;  %v387_v40 = vld [vmem:[%s2681_s10 + $0x340] sm:$0xf] }
  0x5f   : > { %v389_v41 = vld [vmem:[%s2681_s10 + $0x348] sm:$0xf]  ;;  %v391_v42 = vld [vmem:[%s2681_s10 + $0x350] sm:$0xf]  ;;  %388 = vst [vmem:[%s2688_s11 + $0x1a0] sm:$0xf] %v387_v40 }
  0x60   : > { %390 = vst [vmem:[%s2688_s11 + $0x1a4] sm:$0xf] %v389_v41  ;;  %392 = vst [vmem:[%s2688_s11 + $0x1a8] sm:$0xf] %v391_v42  ;;  %v393_v43 = vld [vmem:[%s2681_s10 + $0x358] sm:$0xf] }
  0x61   : > { %v395_v44 = vld [vmem:[%s2681_s10 + $0x360] sm:$0xf]  ;;  %v397_v45 = vld [vmem:[%s2681_s10 + $0x368] sm:$0xf]  ;;  %394 = vst [vmem:[%s2688_s11 + $0x1ac] sm:$0xf] %v393_v43 }
  0x62   : > { %396 = vst [vmem:[%s2688_s11 + $0x1b0] sm:$0xf] %v395_v44  ;;  %398 = vst [vmem:[%s2688_s11 + $0x1b4] sm:$0xf] %v397_v45  ;;  %v399_v46 = vld [vmem:[%s2681_s10 + $0x370] sm:$0xf] }
  0x63   : > { %v401_v47 = vld [vmem:[%s2681_s10 + $0x378] sm:$0xf]  ;;  %v403_v48 = vld [vmem:[%s2681_s10 + $0x380] sm:$0xf]  ;;  %400 = vst [vmem:[%s2688_s11 + $0x1b8] sm:$0xf] %v399_v46 }
  0x64   : > { %402 = vst [vmem:[%s2688_s11 + $0x1bc] sm:$0xf] %v401_v47  ;;  %404 = vst [vmem:[%s2688_s11 + $0x1c0] sm:$0xf] %v403_v48  ;;  %v405_v49 = vld [vmem:[%s2681_s10 + $0x388] sm:$0xf] }
  0x65   : > { %v407_v50 = vld [vmem:[%s2681_s10 + $0x390] sm:$0xf]  ;;  %v409_v51 = vld [vmem:[%s2681_s10 + $0x398] sm:$0xf]  ;;  %406 = vst [vmem:[%s2688_s11 + $0x1c4] sm:$0xf] %v405_v49 }
  0x66   : > { %408 = vst [vmem:[%s2688_s11 + $0x1c8] sm:$0xf] %v407_v50  ;;  %410 = vst [vmem:[%s2688_s11 + $0x1cc] sm:$0xf] %v409_v51  ;;  %v411_v52 = vld [vmem:[%s2681_s10 + $0x3a0] sm:$0xf] }
  0x67   : > { %v413_v53 = vld [vmem:[%s2681_s10 + $0x3a8] sm:$0xf]  ;;  %v415_v54 = vld [vmem:[%s2681_s10 + $0x3b0] sm:$0xf]  ;;  %412 = vst [vmem:[%s2688_s11 + $0x1d0] sm:$0xf] %v411_v52 }
  0x68   : > { %414 = vst [vmem:[%s2688_s11 + $0x1d4] sm:$0xf] %v413_v53  ;;  %416 = vst [vmem:[%s2688_s11 + $0x1d8] sm:$0xf] %v415_v54  ;;  %v417_v55 = vld [vmem:[%s2681_s10 + $0x3b8] sm:$0xf] }
  0x69   : > { %v419_v56 = vld [vmem:[%s2681_s10 + $0x3c0] sm:$0xf]  ;;  %v421_v57 = vld [vmem:[%s2681_s10 + $0x3c8] sm:$0xf]  ;;  %418 = vst [vmem:[%s2688_s11 + $0x1dc] sm:$0xf] %v417_v55 }
  0x6a   : > { %420 = vst [vmem:[%s2688_s11 + $0x1e0] sm:$0xf] %v419_v56  ;;  %422 = vst [vmem:[%s2688_s11 + $0x1e4] sm:$0xf] %v421_v57  ;;  %v423_v58 = vld [vmem:[%s2681_s10 + $0x3d0] sm:$0xf] }
  0x6b   : > { %v425_v59 = vld [vmem:[%s2681_s10 + $0x3d8] sm:$0xf]  ;;  %v427_v60 = vld [vmem:[%s2681_s10 + $0x3e0] sm:$0xf]  ;;  %424 = vst [vmem:[%s2688_s11 + $0x1e8] sm:$0xf] %v423_v58 }
  0x6c   : > { %426 = vst [vmem:[%s2688_s11 + $0x1ec] sm:$0xf] %v425_v59  ;;  %428 = vst [vmem:[%s2688_s11 + $0x1f0] sm:$0xf] %v427_v60  ;;  %v429_v61 = vld [vmem:[%s2681_s10 + $0x3e8] sm:$0xf] }
  0x6d   : > { %v431_v62 = vld [vmem:[%s2681_s10 + $0x3f0] sm:$0xf]  ;;  %v433_v63 = vld [vmem:[%s2681_s10 + $0x3f8] sm:$0xf]  ;;  %430 = vst [vmem:[%s2688_s11 + $0x1f4] sm:$0xf] %v429_v61 }
  0x6e   : > { %432 = vst [vmem:[%s2688_s11 + $0x1f8] sm:$0xf] %v431_v62  ;;  %434 = vst [vmem:[%s2688_s11 + $0x1fc] sm:$0xf] %v433_v63  ;;  %v435_v0 = vld [vmem:[%s2681_s10 + $0x400] sm:$0xf] }
  0x6f   : > { %v437_v1 = vld [vmem:[%s2681_s10 + $0x408] sm:$0xf]  ;;  %v439_v2 = vld [vmem:[%s2681_s10 + $0x410] sm:$0xf]  ;;  %436 = vst [vmem:[%s2688_s11 + $0x200] sm:$0xf] %v435_v0 }
  0x70   : > { %438 = vst [vmem:[%s2688_s11 + $0x204] sm:$0xf] %v437_v1  ;;  %440 = vst [vmem:[%s2688_s11 + $0x208] sm:$0xf] %v439_v2  ;;  %v441_v3 = vld [vmem:[%s2681_s10 + $0x418] sm:$0xf] }
  0x71   : > { %v443_v4 = vld [vmem:[%s2681_s10 + $0x420] sm:$0xf]  ;;  %v445_v5 = vld [vmem:[%s2681_s10 + $0x428] sm:$0xf]  ;;  %442 = vst [vmem:[%s2688_s11 + $0x20c] sm:$0xf] %v441_v3 }
  0x72   : > { %444 = vst [vmem:[%s2688_s11 + $0x210] sm:$0xf] %v443_v4  ;;  %446 = vst [vmem:[%s2688_s11 + $0x214] sm:$0xf] %v445_v5  ;;  %v447_v6 = vld [vmem:[%s2681_s10 + $0x430] sm:$0xf] }
  0x73   : > { %v449_v7 = vld [vmem:[%s2681_s10 + $0x438] sm:$0xf]  ;;  %v451_v8 = vld [vmem:[%s2681_s10 + $0x440] sm:$0xf]  ;;  %448 = vst [vmem:[%s2688_s11 + $0x218] sm:$0xf] %v447_v6 }
  0x74   : > { %450 = vst [vmem:[%s2688_s11 + $0x21c] sm:$0xf] %v449_v7  ;;  %452 = vst [vmem:[%s2688_s11 + $0x220] sm:$0xf] %v451_v8  ;;  %v453_v9 = vld [vmem:[%s2681_s10 + $0x448] sm:$0xf] }
  0x75   : > { %v455_v10 = vld [vmem:[%s2681_s10 + $0x450] sm:$0xf]  ;;  %v457_v11 = vld [vmem:[%s2681_s10 + $0x458] sm:$0xf]  ;;  %454 = vst [vmem:[%s2688_s11 + $0x224] sm:$0xf] %v453_v9 }
  0x76   : > { %456 = vst [vmem:[%s2688_s11 + $0x228] sm:$0xf] %v455_v10  ;;  %458 = vst [vmem:[%s2688_s11 + $0x22c] sm:$0xf] %v457_v11  ;;  %v459_v12 = vld [vmem:[%s2681_s10 + $0x460] sm:$0xf] }
  0x77   : > { %v461_v13 = vld [vmem:[%s2681_s10 + $0x468] sm:$0xf]  ;;  %v463_v14 = vld [vmem:[%s2681_s10 + $0x470] sm:$0xf]  ;;  %460 = vst [vmem:[%s2688_s11 + $0x230] sm:$0xf] %v459_v12 }
  0x78   : > { %462 = vst [vmem:[%s2688_s11 + $0x234] sm:$0xf] %v461_v13  ;;  %464 = vst [vmem:[%s2688_s11 + $0x238] sm:$0xf] %v463_v14  ;;  %v465_v15 = vld [vmem:[%s2681_s10 + $0x478] sm:$0xf] }
  0x79   : > { %466 = vst [vmem:[%s2688_s11 + $0x23c] sm:$0xf] %v465_v15 }
  0x7a PF: > { %p2002_p11 = scmp.ge.s32.totalorder %s2577_s20, 1  ;;  %p783_p12 = scmp.lt.s32.totalorder %s2577_s20, 5 }
  0x7c   : > { %p784_p13 = pnand %p2002_p11, %p783_p12 }
  0x7d   : > { %s790_s21 = sand.u32 (!%p784_p13), 1, %s2553_s14   ;;  %p820_p0 = scmp.lt.s32.totalorder (!%p784_p13), %s2565_s17, 1 }
  0x7e   : > { %787 = sbr.rel (%p784_p13) target bundleno = 511 (0x1ff), region = 69  ;;  %p825_p1 = scmp.lt.s32.totalorder (!%p784_p13), %s2561_s16, 1 }
  0x7f   : > { %s2352_s24 = smul.u32 (!%p784_p13), 576, %s790_s21  ;;  %s817_s10 = sand.u32 (!%p784_p13), 1, %s2545_s12  }
  0x80   : > { %s2003_s11 = sshll.u32 (!%p784_p13), %s817_s10, 1 }
  0x81   : > { %s2982_s25 = scalar_lea.vmem (!%p784_p13), [#allocation3], %s2352_s24  ;;  %s819_s21 = scalar_lea.vmem (!%p784_p13), [#allocation4], %s2003_s11 }
  0x83   : > { %v2579_v16 = vmov 0.0   ;;  %vm2580_vm0 = vmmov 0   ;;  %v2428_v17 = vld [vmem:[%s2982_s25 + $0x78] sm:$0xff]   ;;  %v2430_v19 = vld [vmem:[%s2982_s25 + $0x70] sm:$0xff]   ;;  %s821_s14 = scalar_select %p820_p0, %s2565_s17, 1  ;;  %v2432_v21 = vld [vmem:[%s2982_s25 + $0x68] sm:$0xff]  }
  0x84   : > { %2171 = vmatprep.subr.bf16.mxu0 %v2579_v16  ;;  %2191 = vmatprep.subr.bf16.mxu1 %v2579_v16  ;;  %v2429_v18 = vld [vmem:[%s2982_s25 + $0x38] sm:$0xff]   ;;  %v2431_v20 = vld [vmem:[%s2982_s25 + $0x30] sm:$0xff]   ;;  %v2433_v22 = vld [vmem:[%s2982_s25 + $0x28] sm:$0xff]   ;;  %s826_s6 = scalar_select %p825_p1, %s2561_s16, 1 }
  0x85   : > { %2187 = vmatprep.mubr.msk.bf16.mxu0 %vm2580_vm0, %v2579_v16  ;;  %2207 = vmatprep.mubr.msk.bf16.mxu1 %vm2580_vm0, %v2579_v16  ;;  %s2353_s26 = smul.u32 12, %s821_s14  ;;  %v2434_v23 = vld [vmem:[%s2982_s25 + $0x60] sm:$0xff]   ;;  %v2436_v25 = vld [vmem:[%s2982_s25 + $0x58] sm:$0xff]   ;;  %v2438_v30 = vld [vmem:[%s2982_s25 + $0x50] sm:$0xff]   ;;  %s2087_s24 = sshll.u32 (%p2668_p9), %s2565_s17, 2 }
  0x86   : > { %2172 = vmatpush3.bf16.msra.mxu0 %v2428_v17  ;;  %2192 = vmatpush3.bf16.msra.mxu1 %v2429_v18  ;;  %v2435_v24 = vld [vmem:[%s2982_s25 + $0x20] sm:$0xff]   ;;  %v2437_v26 = vld [vmem:[%s2982_s25 + $0x18] sm:$0xff]   ;;  %v2439_v31 = vld [vmem:[%s2982_s25 + $0x10] sm:$0xff]   ;;  %s827_s9 = scalar_lea.vmem %s3204_s2, %s826_s6 }
  0x87   : > { %2173 = vmatprep.subr.bf16.mxu0 %v2579_v16  ;;  %2193 = vmatprep.subr.bf16.mxu1 %v2579_v16  ;;  %s3003_s5 = scalar_lea.vmem %s3202_s0, %s2353_s26  ;;  %v2440_v33 = vld [vmem:[%s2982_s25 + $0x48] sm:$0xff]   ;;  %v2442_v37 = vld [vmem:[%s2982_s25 + $0x40] sm:$0xff]   ;;  %v2445_v40 = vld [vmem:[%s2982_s25 + $0xb8] sm:$0xff]  }
  0x88   : > { %v829_v27 = vld [vmem:[%s3003_s5] sm:$0xf]  ;;  %v3011_v28 = vld [vmem:[%s3003_s5 + $0x4] sm:$0x1]  ;;  %v2441_v34 = vld [vmem:[%s2982_s25 + $0x8] sm:$0xff]  }
  0x89   : > { %v2005_v29 = vcombine.low %v829_v27, %v3011_v28  ;;  %v2443_v38 = vld [vmem:[%s2982_s25] sm:$0xff]   ;;  %v2446_v41 = vld [vmem:[%s2982_s25 + $0xf8] sm:$0xff]   ;;  %v2447_v42 = vld [vmem:[%s2982_s25 + $0xb0] sm:$0xff]  }
  0x8a   : > { %2174 = vmatpush3.bf16.msra.mxu0 %v2430_v19  ;;  %2194 = vmatpush3.bf16.msra.mxu1 %v2431_v20  ;;  %v2448_v43 = vld [vmem:[%s2982_s25 + $0xf0] sm:$0xff]   ;;  %v2449_v44 = vld [vmem:[%s2982_s25 + $0xa8] sm:$0xff]   ;;  %v2451_v46 = vld [vmem:[%s2982_s25 + $0xa0] sm:$0xff]  }
  0x8b   : > { %2175 = vmatprep.subr.bf16.mxu0 %v2579_v16  ;;  %2195 = vmatprep.subr.bf16.mxu1 %v2579_v16  ;;  %v871_v32 = vshll.u32 %v2005_v29, 16  ;;  %v869_v35 = vshrl.u32 %v2005_v29, 16  ;;  %v2450_v45 = vld [vmem:[%s2982_s25 + $0xe8] sm:$0xff]   ;;  %v2452_v47 = vld [vmem:[%s2982_s25 + $0xe0] sm:$0xff]   ;;  %v2453_v48 = vld [vmem:[%s2982_s25 + $0x98] sm:$0xff]  }
  0x8c   : > { %v2454_v49 = vld [vmem:[%s2982_s25 + $0xd8] sm:$0xff]   ;;  %v2455_v50 = vld [vmem:[%s2982_s25 + $0x90] sm:$0xff]   ;;  %v2457_v52 = vld [vmem:[%s2982_s25 + $0x88] sm:$0xff]  }
  0x8d   : > { %v873_v36 = vrot.slane %v871_v32, 1  ;;  %v2456_v51 = vld [vmem:[%s2982_s25 + $0xd0] sm:$0xff]   ;;  %v2458_v53 = vld [vmem:[%s2982_s25 + $0xc8] sm:$0xff]   ;;  %v1052_v54 = vld [vmem:[%s3003_s5] sm:$0xe] }
  0x8e   : > { %2176 = vmatpush3.bf16.msra.mxu0 %v2432_v21  ;;  %2196 = vmatpush3.bf16.msra.mxu1 %v2433_v22  ;;  %v1163_v55 = vld [vmem:[%s3003_s5] sm:$0xc]  ;;  %v1164_v56 = vld [vmem:[%s3003_s5 + $0x4] sm:$0x3]  ;;  %v2022_v57 = vcombine.low %v1052_v54, %v3011_v28  ;;  %v2459_v58 = vld [vmem:[%s2982_s25 + $0x80] sm:$0xff]  }
  0x8f   : > { %2177 = vmatprep.subr.bf16.mxu0 %v2579_v16  ;;  %2197 = vmatprep.subr.bf16.mxu1 %v2579_v16  ;;  %v874_v39 = vor.u32 %v873_v36, %v869_v35  ;;  %v2031_v59 = vcombine.low %v1163_v55, %v1164_v56  ;;  %v2460_v60 = vld [vmem:[%s2982_s25 + $0xc0] sm:$0xff]   ;;  %v2462_v62 = vld [vmem:[%s2982_s25 + $0x138] sm:$0xff]   ;;  %v2466_v1 = vld [vmem:[%s2982_s25 + $0x130] sm:$0xff]  }
  0x90   : > { %v1072_v61 = vrot.slane %v2022_v57, 1  ;;  %v2465_v0 = vld [vmem:[%s2982_s25 + $0x178] sm:$0xff]   ;;  %v2467_v2 = vld [vmem:[%s2982_s25 + $0x170] sm:$0xff]   ;;  %v2468_v3 = vld [vmem:[%s2982_s25 + $0x128] sm:$0xff]  }
  0x91   : > { %v1186_v63 = vrot.slane %v2031_v59, 2  ;;  %v2469_v4 = vld [vmem:[%s2982_s25 + $0x168] sm:$0xff]   ;;  %v2470_v5 = vld [vmem:[%s2982_s25 + $0x120] sm:$0xff]   ;;  %v1277_v7 = vld [vmem:[%s3003_s5 + $0x4] sm:$0x7] }
  0x92   : > { %2178 = vmatpush3.bf16.msra.mxu0 %v2434_v23  ;;  %2198 = vmatpush3.bf16.msra.mxu1 %v2435_v24  ;;  %v2471_v6 = vld [vmem:[%s2982_s25 + $0x160] sm:$0xff]   ;;  %v2472_v8 = vld [vmem:[%s2982_s25 + $0x118] sm:$0xff]   ;;  %v2040_v10 = vcombine.low %v1163_v55, %v1277_v7  ;;  %v2474_v11 = vld [vmem:[%s2982_s25 + $0x110] sm:$0xff]  }
  0x93   : > { %2179 = vmatprep.subr.bf16.mxu0 %v2579_v16  ;;  %2199 = vmatprep.subr.bf16.mxu1 %v2579_v16  ;;  %v2473_v9 = vld [vmem:[%s2982_s25 + $0x158] sm:$0xff]   ;;  %v2475_v12 = vld [vmem:[%s2982_s25 + $0x150] sm:$0xff]   ;;  %v2476_v15 = vld [vmem:[%s2982_s25 + $0x108] sm:$0xff]  }
  0x94   : > { %v1298_v13 = vshrl.u32 %v2040_v10, 16  ;;  %v1301_v14 = vshll.u32 %v2040_v10, 16  ;;  %v2477_v17 = vld [vmem:[%s2982_s25 + $0x148] sm:$0xff]   ;;  %v1395_v18 = vld [vmem:[%s3003_s5] sm:$0x8]  ;;  %v2478_v21 = vld [vmem:[%s2982_s25 + $0x100] sm:$0xff]  }
  0x95   : > { %v2049_v22 = vcombine.low %v1395_v18, %v1277_v7  ;;  %v2479_v23 = vld [vmem:[%s2982_s25 + $0x140] sm:$0xff]   ;;  %v2483_v28 = vld [vmem:[%s2982_s25 + $0x1b0] sm:$0xff]   ;;  %v2490_v35 = vld [vmem:[%s2982_s25 + $0x1d8] sm:$0xff]  }
  0x96   : > { %2180 = vmatpush3.bf16.msra.mxu0 %v2436_v25  ;;  %2200 = vmatpush3.bf16.msra.mxu1 %v2437_v26  ;;  %v1300_v19 = vrot.slane %v1298_v13, 2  ;;  %v1303_v20 = vrot.slane %v1301_v14, 3  ;;  %v2480_v25 = vld [vmem:[%s2982_s25 + $0x1b8] sm:$0xff]   ;;  %v2484_v29 = vld [vmem:[%s2982_s25 + $0x1f0] sm:$0xff]   ;;  %v2487_v32 = vld [vmem:[%s2982_s25 + $0x1a0] sm:$0xff]  }
  0x97   : > { %2181 = vmatprep.subr.bf16.mxu0 %v2579_v16  ;;  %2201 = vmatprep.subr.bf16.mxu1 %v2579_v16  ;;  %v1415_v26 = vrot.slane %v2049_v22, 3  ;;  %v1612_v36 = vld [vmem:[%s3003_s5 + $0x4] sm:$0xf]  ;;  %v2503_v55 = vld [vmem:[%s2982_s25 + $0x210] sm:$0xff]   ;;  %v2504_v56 = vld [vmem:[%s2982_s25 + $0x208] sm:$0xff]  }
  0x98   : > { %v1304_v24 = vor.u32 %v1303_v20, %v1300_v19  ;;  %v2502_v54 = vld [vmem:[%s2982_s25 + $0x218] sm:$0xff]   ;;  %v2505_v59 = vld [vmem:[%s2982_s25 + $0x200] sm:$0xff]  }
  0x99   : > { %v1732_v57 = vld [vmem:[%s3003_s5 + $0x4] sm:$0xe] }
  0x9a   : > { %2182 = vmatpush3.bf16.msra.mxu0 %v2438_v30  ;;  %2202 = vmatpush3.bf16.msra.mxu1 %v2439_v31  ;;  %v2485_v30 = vld [vmem:[%s2982_s25 + $0x1a8] sm:$0xff]  }
  0x9b   : > { %2183 = vmatprep.subr.bf16.mxu0 %v2579_v16  ;;  %2203 = vmatprep.subr.bf16.mxu1 %v2579_v16  ;;  %v2486_v31 = vld [vmem:[%s2982_s25 + $0x1e8] sm:$0xff]  }
  0x9e   : > { %2184 = vmatpush3.bf16.msra.mxu0 %v2440_v33  ;;  %2204 = vmatpush3.bf16.msra.mxu1 %v2441_v34  ;;  %v2488_v33 = vld [vmem:[%s2982_s25 + $0x1e0] sm:$0xff]   ;;  %v2489_v34 = vld [vmem:[%s2982_s25 + $0x198] sm:$0xff]  }
  0x9f   : > { %2185 = vmatprep.subr.bf16.mxu0 %v2579_v16  ;;  %2205 = vmatprep.subr.bf16.mxu1 %v2579_v16 }
  0xa2   : > { %2186 = vmatpush3.bf16.msra.mxu0 %v2442_v37  ;;  %2206 = vmatpush3.bf16.msra.mxu1 %v2443_v38  ;;  %v1613_v37 = vld [vmem:[%s3003_s5 + $0x8] sm:$0x1]  ;;  %v2491_v38 = vld [vmem:[%s2982_s25 + $0x190] sm:$0xff]  }
  0xa3   : > { %2211 = vmatprep.subr.bf16.mxu0 %v2579_v16  ;;  %2231 = vmatprep.subr.bf16.mxu1 %v2579_v16 }
  0xa5   : > { %2188 = vmatmul.mubr.bf16.vlgmr.msra.gmra.mxu0 %v874_v39  ;;  %2208 = vmatmul.mubr.bf16.vlgmr.msra.gmra.mxu1 %v829_v27  ;;  %v2482_v27 = vld [vmem:[%s2982_s25 + $0x1f8] sm:$0xff]   ;;  %v2066_v39 = vcombine.low %v1612_v36, %v1613_v37 }
  0xa6   : > { %2212 = vmatpush3.bf16.msra.mxu0 %v2445_v40  ;;  %2232 = vmatpush3.bf16.msra.mxu1 %v2446_v41  ;;  %v2492_v40 = vld [vmem:[%s2982_s25 + $0x1d0] sm:$0xff]   ;;  %v2493_v41 = vld [vmem:[%s2982_s25 + $0x188] sm:$0xff]  }
  0xa7   : > { %2213 = vmatprep.subr.bf16.mxu0 %v2579_v16  ;;  %2233 = vmatprep.subr.bf16.mxu1 %v2579_v16 }
  0xa8   : > { %2227 = vmatprep.mubr.msk.bf16.mxu0 %vm2580_vm0, %v2579_v16  ;;  %2247 = vmatprep.mubr.msk.bf16.mxu1 %vm2580_vm0, %v2579_v16 }
  0xaa   : > { %2214 = vmatpush3.bf16.msra.mxu0 %v2447_v42  ;;  %2234 = vmatpush3.bf16.msra.mxu1 %v2448_v43  ;;  %v1638_v42 = vshll.u32 %v2066_v39, 16  ;;  %v2494_v43 = vld [vmem:[%s2982_s25 + $0x1c8] sm:$0xff]  }
  0xab   : > { %2215 = vmatprep.subr.bf16.mxu0 %v2579_v16  ;;  %2235 = vmatprep.subr.bf16.mxu1 %v2579_v16 }
  0xae   : > { %2216 = vmatpush3.bf16.msra.mxu0 %v2449_v44  ;;  %2236 = vmatpush3.bf16.msra.mxu1 %v2450_v45  ;;  %v2495_v44 = vld [vmem:[%s2982_s25 + $0x180] sm:$0xff]   ;;  %v1636_v45 = vshrl.u32 %v2066_v39, 16 }
  0xaf   : > { %2217 = vmatprep.subr.bf16.mxu0 %v2579_v16  ;;  %2237 = vmatprep.subr.bf16.mxu1 %v2579_v16 }
  0xb2   : > { %2218 = vmatpush3.bf16.msra.mxu0 %v2451_v46  ;;  %2238 = vmatpush3.bf16.msra.mxu1 %v2452_v47  ;;  %v1640_v46 = vrot.slane %v1638_v42, 1  ;;  %v2496_v47 = vld [vmem:[%s2982_s25 + $0x1c0] sm:$0xff]  }
  0xb3   : > { %2219 = vmatprep.subr.bf16.mxu0 %v2579_v16  ;;  %2239 = vmatprep.subr.bf16.mxu1 %v2579_v16 }
  0xb6   : > { %2220 = vmatpush3.bf16.msra.mxu0 %v2453_v48  ;;  %2240 = vmatpush3.bf16.msra.mxu1 %v2454_v49  ;;  %v1506_v48 = vld [vmem:[%s3003_s5 + $0x4] sm:$0xf] }
  0xb7   : > { %2221 = vmatprep.subr.bf16.mxu0 %v2579_v16  ;;  %2241 = vmatprep.subr.bf16.mxu1 %v2579_v16  ;;  %v2497_v49 = vld [vmem:[%s2982_s25 + $0x238] sm:$0xff]  }
  0xba   : > { %2222 = vmatpush3.bf16.msra.mxu0 %v2455_v50  ;;  %2242 = vmatpush3.bf16.msra.mxu1 %v2456_v51  ;;  %v1641_v50 = vor.u32 %v1640_v46, %v1636_v45  ;;  %v2499_v51 = vld [vmem:[%s2982_s25 + $0x230] sm:$0xff]  }
  0xbb   : > { %2223 = vmatprep.subr.bf16.mxu0 %v2579_v16  ;;  %2243 = vmatprep.subr.bf16.mxu1 %v2579_v16 }
  0xbe   : > { %2224 = vmatpush3.bf16.msra.mxu0 %v2457_v52  ;;  %2244 = vmatpush3.bf16.msra.mxu1 %v2458_v53  ;;  %v2500_v52 = vld [vmem:[%s2982_s25 + $0x228] sm:$0xff]   ;;  %v2501_v53 = vld [vmem:[%s2982_s25 + $0x220] sm:$0xff]   ;;  %s1868_s25 = sadd.s32 (%p2668_p9), %s2561_s16, %s2087_s24 }
  0xbf   : > { %2225 = vmatprep.subr.bf16.mxu0 %v2579_v16  ;;  %2245 = vmatprep.subr.bf16.mxu1 %v2579_v16  ;;  %s1869_s12 = scalar_lea.vmem (%p2668_p9), %s3205_s3, %s1868_s25 }
  0xc2   : > { %2226 = vmatpush3.bf16.msra.mxu0 %v2459_v58  ;;  %2246 = vmatpush3.bf16.msra.mxu1 %v2460_v60  ;;  %v2075_v58 = vcombine.low %v1732_v57, %v1613_v37  ;;  %v2084_v37 = vld [vmem:[%s827_s9] ss:$0 sm:$0xff] }
  0xc3   : > { %2251 = vmatprep.subr.bf16.mxu0 %v2579_v16  ;;  %2271 = vmatprep.subr.bf16.mxu1 %v2579_v16 }
  0xc4   : > { %v1752_v60 = vrot.slane %v2075_v58, 1 }
  0xc5   : > { %2228 = vmatmul.mubr.bf16.vlgmr.msra.gmra.mxu0 %v1072_v61  ;;  %2248 = vmatmul.mubr.bf16.vlgmr.msra.gmra.mxu1 %v1186_v63 }
  0xc6   : > { %2252 = vmatpush3.bf16.msra.mxu0 %v2462_v62  ;;  %2272 = vmatpush3.bf16.msra.mxu1 %v2465_v0 }
  0xc7   : > { %2253 = vmatprep.subr.bf16.mxu0 %v2579_v16  ;;  %2273 = vmatprep.subr.bf16.mxu1 %v2579_v16 }
  0xc8   : > { %2267 = vmatprep.mubr.msk.bf16.mxu0 %vm2580_vm0, %v2579_v16  ;;  %2287 = vmatprep.mubr.msk.bf16.mxu1 %vm2580_vm0, %v2579_v16 }
  0xca   : > { %2254 = vmatpush3.bf16.msra.mxu0 %v2466_v1  ;;  %2274 = vmatpush3.bf16.msra.mxu1 %v2467_v2 }
  0xcb   : > { %2255 = vmatprep.subr.bf16.mxu0 %v2579_v16  ;;  %2275 = vmatprep.subr.bf16.mxu1 %v2579_v16 }
  0xce   : > { %2256 = vmatpush3.bf16.msra.mxu0 %v2468_v3  ;;  %2276 = vmatpush3.bf16.msra.mxu1 %v2469_v4 }
  0xcf   : > { %2257 = vmatprep.subr.bf16.mxu0 %v2579_v16  ;;  %2277 = vmatprep.subr.bf16.mxu1 %v2579_v16 }
  0xd2   : > { %2258 = vmatpush3.bf16.msra.mxu0 %v2470_v5  ;;  %2278 = vmatpush3.bf16.msra.mxu1 %v2471_v6 }
  0xd3   : > { %2259 = vmatprep.subr.bf16.mxu0 %v2579_v16  ;;  %2279 = vmatprep.subr.bf16.mxu1 %v2579_v16 }
  0xd6   : > { %2260 = vmatpush3.bf16.msra.mxu0 %v2472_v8  ;;  %2280 = vmatpush3.bf16.msra.mxu1 %v2473_v9 }
  0xd7   : > { %2261 = vmatprep.subr.bf16.mxu0 %v2579_v16  ;;  %2281 = vmatprep.subr.bf16.mxu1 %v2579_v16 }
  0xda   : > { %2262 = vmatpush3.bf16.msra.mxu0 %v2474_v11  ;;  %2282 = vmatpush3.bf16.msra.mxu1 %v2475_v12 }
  0xdb   : > { %2263 = vmatprep.subr.bf16.mxu0 %v2579_v16  ;;  %2283 = vmatprep.subr.bf16.mxu1 %v2579_v16 }
  0xde   : > { %2264 = vmatpush3.bf16.msra.mxu0 %v2476_v15  ;;  %2284 = vmatpush3.bf16.msra.mxu1 %v2477_v17 }
  0xdf   : > { %2265 = vmatprep.subr.bf16.mxu0 %v2579_v16  ;;  %2285 = vmatprep.subr.bf16.mxu1 %v2579_v16 }
  0xe2   : > { %2266 = vmatpush3.bf16.msra.mxu0 %v2478_v21  ;;  %2286 = vmatpush3.bf16.msra.mxu1 %v2479_v23 }
  0xe3   : > { %2291 = vmatprep.subr.bf16.mxu0 %v2579_v16  ;;  %2311 = vmatprep.subr.bf16.mxu1 %v2579_v16 }
  0xe5   : > { %2268 = vmatmul.mubr.bf16.vlgmr.msra.gmra.mxu0 %v1304_v24  ;;  %2288 = vmatmul.mubr.bf16.vlgmr.msra.gmra.mxu1 %v1415_v26 }
  0xe6   : > { %2292 = vmatpush3.bf16.msra.mxu0 %v2480_v25  ;;  %2312 = vmatpush3.bf16.msra.mxu1 %v2482_v27 }
  0xe7   : > { %2293 = vmatprep.subr.bf16.mxu0 %v2579_v16  ;;  %2313 = vmatprep.subr.bf16.mxu1 %v2579_v16 }
  0xe8   : > { %2307 = vmatprep.mubr.msk.bf16.mxu0 %vm2580_vm0, %v2579_v16  ;;  %2327 = vmatprep.mubr.msk.bf16.mxu1 %vm2580_vm0, %v2579_v16 }
  0xea   : > { %2294 = vmatpush3.bf16.msra.mxu0 %v2483_v28  ;;  %2314 = vmatpush3.bf16.msra.mxu1 %v2484_v29 }
  0xeb   : > { %2295 = vmatprep.subr.bf16.mxu0 %v2579_v16  ;;  %2315 = vmatprep.subr.bf16.mxu1 %v2579_v16 }
  0xee   : > { %2296 = vmatpush3.bf16.msra.mxu0 %v2485_v30  ;;  %2316 = vmatpush3.bf16.msra.mxu1 %v2486_v31 }
  0xef   : > { %2297 = vmatprep.subr.bf16.mxu0 %v2579_v16  ;;  %2317 = vmatprep.subr.bf16.mxu1 %v2579_v16 }
  0xf2   : > { %2298 = vmatpush3.bf16.msra.mxu0 %v2487_v32  ;;  %2318 = vmatpush3.bf16.msra.mxu1 %v2488_v33 }
  0xf3   : > { %2299 = vmatprep.subr.bf16.mxu0 %v2579_v16  ;;  %2319 = vmatprep.subr.bf16.mxu1 %v2579_v16 }
  0xf6   : > { %2300 = vmatpush3.bf16.msra.mxu0 %v2489_v34  ;;  %2320 = vmatpush3.bf16.msra.mxu1 %v2490_v35 }
  0xf7   : > { %2301 = vmatprep.subr.bf16.mxu0 %v2579_v16  ;;  %2321 = vmatprep.subr.bf16.mxu1 %v2579_v16 }
  0xfa   : > { %2302 = vmatpush3.bf16.msra.mxu0 %v2491_v38  ;;  %2322 = vmatpush3.bf16.msra.mxu1 %v2492_v40 }
  0xfb   : > { %2303 = vmatprep.subr.bf16.mxu0 %v2579_v16  ;;  %2323 = vmatprep.subr.bf16.mxu1 %v2579_v16 }
  0xfe   : > { %2304 = vmatpush3.bf16.msra.mxu0 %v2493_v41  ;;  %2324 = vmatpush3.bf16.msra.mxu1 %v2494_v43 }
  0xff   : > { %2305 = vmatprep.subr.bf16.mxu0 %v2579_v16  ;;  %2325 = vmatprep.subr.bf16.mxu1 %v2579_v16 }
 0x102   : > { %2306 = vmatpush3.bf16.msra.mxu0 %v2495_v44  ;;  %2326 = vmatpush3.bf16.msra.mxu1 %v2496_v47 }
 0x103   : > { %2331 = vmatprep.subr.bf16.mxu0 %v2579_v16 }
 0x105   : > { %2308 = vmatmul.mubr.bf16.vlgmr.msra.gmra.mxu0 %v1506_v48  ;;  %2328 = vmatmul.mubr.bf16.vlgmr.msra.gmra.mxu1 %v1641_v50 }
 0x106   : > { %2332 = vmatpush3.bf16.msra.mxu0 %v2497_v49  ;;  %2347 = vmatprep.mubr.msk.bf16.mxu0 %vm2580_vm0, %v2579_v16 }
 0x107   : > { %2333 = vmatprep.subr.bf16.mxu0 %v2579_v16 }
 0x10a   : > { %2334 = vmatpush3.bf16.msra.mxu0 %v2499_v51 }
 0x10b   : > { %2335 = vmatprep.subr.bf16.mxu0 %v2579_v16 }
 0x10e   : > { %2336 = vmatpush3.bf16.msra.mxu0 %v2500_v52 }
 0x10f   : > { %2337 = vmatprep.subr.bf16.mxu0 %v2579_v16 }
 0x112   : > { %2338 = vmatpush3.bf16.msra.mxu0 %v2501_v53 }
 0x113   : > { %2339 = vmatprep.subr.bf16.mxu0 %v2579_v16 }
 0x116   : > { %2340 = vmatpush3.bf16.msra.mxu0 %v2502_v54 }
 0x117   : > { %2341 = vmatprep.subr.bf16.mxu0 %v2579_v16 }
 0x11a   : > { %2342 = vmatpush3.bf16.msra.mxu0 %v2503_v55 }
 0x11b   : > { %2343 = vmatprep.subr.bf16.mxu0 %v2579_v16 }
 0x11e   : > { %2344 = vmatpush3.bf16.msra.mxu0 %v2504_v56 }
 0x11f   : > { %2345 = vmatprep.subr.bf16.mxu0 %v2579_v16 }
 0x122   : > { %2346 = vmatpush3.bf16.msra.mxu0 %v2505_v59 }
 0x125   : > { %2348 = vmatmul.mubr.bf16.vlgmr.msra.gmra.mxu0 %v1752_v60 }
 0x165   : > { %v958_v61 = vpop.f32.mrf.mxu0  ;;  %v1046_v62 = vpop.f32.mrf.mxu1 }
 0x166   : > { %v1047_v63 = vadd.f32 %v1046_v62, %v958_v61 }
 0x167   : > { %v2189_v0 = vpop.f32.mrf.mxu0  ;;  %v2209_v1 = vpop.f32.mrf.mxu1 }
 0x169   : > { %v961_v2 = vpop.f32.mrf.mxu0  ;;  %v1049_v3 = vpop.f32.mrf.mxu1 }
 0x16b   : > { %v2190_v4 = vpop.f32.mrf.mxu0  ;;  %v2210_v5 = vpop.f32.mrf.mxu1 }
 0x185   : > { %v1156_v6 = vpop.f32.mrf.mxu0  ;;  %v1270_v8 = vpop.f32.mrf.mxu1 }
 0x186   : > { %v1162_v7 = vadd.f32 %v1156_v6, %v1047_v63 }
 0x187   : > { %v2229_v9 = vpop.f32.mrf.mxu0  ;;  %v2249_v11 = vpop.f32.mrf.mxu1 }
 0x188   : > { %v1276_v10 = vadd.f32 %v1270_v8, %v1162_v7 }
 0x189   : > { %v1159_v12 = vpop.f32.mrf.mxu0  ;;  %v1273_v16 = vpop.f32.mrf.mxu1 }
 0x18b   : > { %v2230_v13 = vpop.f32.mrf.mxu0  ;;  %v2250_v14 = vpop.f32.mrf.mxu1 }
 0x1a5   : > { %v1388_v15 = vpop.f32.mrf.mxu0  ;;  %v1499_v17 = vpop.f32.mrf.mxu1 }
 0x1a6   : > { %v1394_v32 = vadd.f32 %v1388_v15, %v1276_v10 }
 0x1a7   : > { %v2269_v18 = vpop.f32.mrf.mxu0  ;;  %v2289_v19 = vpop.f32.mrf.mxu1 }
 0x1a8   : > { %v1505_v33 = vadd.f32 %v1499_v17, %v1394_v32 }
 0x1a9   : > { %v1391_v20 = vpop.f32.mrf.mxu0  ;;  %v1502_v21 = vpop.f32.mrf.mxu1 }
 0x1ab   : > { %v2270_v22 = vpop.f32.mrf.mxu0  ;;  %v2290_v23 = vpop.f32.mrf.mxu1 }
 0x1c5   : > { %v1605_v24 = vpop.f32.mrf.mxu0  ;;  %v1725_v25 = vpop.f32.mrf.mxu1 }
 0x1c6   : > { %v1611_v34 = vadd.f32 %v1605_v24, %v1505_v33 }
 0x1c7   : > { %v2309_v26 = vpop.f32.mrf.mxu0  ;;  %v2329_v27 = vpop.f32.mrf.mxu1 }
 0x1c8   : > { %v1731_v35 = vadd.f32 %v1725_v25, %v1611_v34 }
 0x1c9   : > { %v1608_v28 = vpop.f32.mrf.mxu0  ;;  %v1728_v29 = vpop.f32.mrf.mxu1 }
 0x1cb   : > { %v2310_v30 = vpop.f32.mrf.mxu0  ;;  %v2330_v31 = vpop.f32.mrf.mxu1 }
 0x1e5   : > { %v1836_v36 = vpop.f32.mrf.mxu0 }
 0x1e6   : > { %v1842_v38 = vadd.f32 %v1836_v36, %v1731_v35 }
 0x1e7   : > { %v2349_v39 = vpop.f32.mrf.mxu0 }
 0x1e8   : > { %v1850_v40 = vadd.f32 %v2084_v37, %v1842_v38 }
 0x1e9   : > { %v1839_v41 = vpop.f32.mrf.mxu0 }
 0x1ea   : > { %v1851_v42 = vmax.f32 %v1850_v40, 0.0 }
 0x1eb   : > { %v2350_v43 = vpop.f32.mrf.mxu0 }
 0x1ec   : > { %1852 = vst [vmem:[#allocation2] sm:$0xff] %v1851_v42 }
 0x1f2   : > { %1866 = sbr.rel (!%p2668_p9) target bundleno = 511 (0x1ff), region = 77 }
 0x1f3   : > { %v1853_v44 = vld [vmem:[#allocation2] sm:$0x3]  ;;  %v1856_v45 = vld [vmem:[#allocation2 + $0x4] sm:$0x3] }
 0x1f4   : > { %v1854_v46 = vpack.c.bf16 %v1853_v44, %v1853_v44  ;;  %v1857_v47 = vpack.c.bf16 %v1856_v45, %v1856_v45 }
 0x1f6   : > { %1855 = vst [vmem:[%s819_s21] sm:$0x1] %v1854_v46  ;;  %2085 = vst [vmem:[%s819_s21 + $0x1] sm:$0x1] %v1857_v47 }
 0x1fd   : > { %v1886_v48 = vld [vmem:[%s819_s21] sm:$0x1]  ;;  %v1888_v49 = vld [vmem:[%s819_s21 + $0x1] sm:$0x1] }
 0x1fe   : > { %1887 = vst [vmem:[%s1869_s12] sm:$0x1] %v1886_v48  ;;  %1889 = vst [vmem:[%s1869_s12 + $0x2] sm:$0x1] %v1888_v49 }
 0x1ff PF: > { %s13_s20 = sadd.s32 1, %s2577_s20   ;;  %s3207_s12 = smov %s2549_s13 }
 0x200   : > { %p10_p2 = scmp.ge.s32.totalorder %s13_s20, 6   ;;  %s3208_s13 = smov %s2673_s4 }
 0x201   : > { %s3209_s14 = smov %s2557_s15  ;;  %s3210_s15 = smov %s2662_s27 }
 0x202   : > { %s3211_s16 = smov %s2569_s18  ;;  %s3212_s17 = smov %s2573_s19 }
 0x203   : > { %s3213_s18 = smov %s3216_s22  ;;  %s3214_s19 = smov %s3220_s23 }
 0x204   :  { %12 = sbr.rel (!%p10_p2) target bundleno = 5 (0x5), region = 149 }

// kernel: vggish_forward.15
= control target key start
LH: loop header
LB: loop body
LE: loop exit
PB: predicated region body
PF: predicated region fallthrough
CT: control target
= control target key end

     0   :  { %v100_v30 = vlaneseq  ;;  %v554_v34 = vmov 1966171168   ;;  %s685_s0 = inlined_call_operand.vmem [shape: bf16[2,512], index: 0, kind: input, shape index: {}]   ;;  %s686_s1 = inlined_call_operand.vmem [shape: bf16[512,10], index: 1, kind: input, shape index: {}]   ;;  %s687_s2 = inlined_call_operand.vmem [shape: f32[1,10], index: 2, kind: input, shape index: {}]   ;;  %s688_s3 = inlined_call_operand.hbm [shape: f32[2,10], index: 3, kind: output, shape index: {}]  }
   0x1   :  { %v500_v0 = vld [vmem:[%s686_s1 + $0x78] sm:$0xff]   ;;  %v504_v4 = vld [vmem:[%s686_s1 + $0x70] sm:$0xff]   ;;  %v508_v8 = vld [vmem:[%s686_s1 + $0x68] sm:$0xff]   ;;  %v98_v35 = vunpack.c.l.s4 %v554_v34 }
   0x2   :  { %v501_v1 = vld [vmem:[%s686_s1 + $0xf8] sm:$0xff]   ;;  %453 = vmatprep.subr.bf16.mxu0 %v500_v0  ;;  %v505_v5 = vld [vmem:[%s686_s1 + $0xf0] sm:$0xff]   ;;  %v509_v9 = vld [vmem:[%s686_s1 + $0xe8] sm:$0xff]   ;;  %v101_v36 = vshrl.u32 %v100_v30, 7 }
   0x3   :  { %v502_v2 = vld [vmem:[%s686_s1 + $0x38] sm:$0xff]   ;;  %475 = vmatprep.subr.bf16.mxu1 %v501_v1  ;;  %v506_v6 = vld [vmem:[%s686_s1 + $0x30] sm:$0xff]   ;;  %v510_v10 = vld [vmem:[%s686_s1 + $0x28] sm:$0xff]  }
   0x4   :  { %v503_v3 = vld [vmem:[%s686_s1 + $0xb8] sm:$0xff]   ;;  %454 = vmatpush3.bf16.msra.mxu0 %v502_v2  ;;  %v507_v7 = vld [vmem:[%s686_s1 + $0xb0] sm:$0xff]   ;;  %v511_v11 = vld [vmem:[%s686_s1 + $0xa8] sm:$0xff]  }
   0x5   :  { %476 = vmatpush3.bf16.msra.mxu1 %v503_v3  ;;  %455 = vmatprep.subr.bf16.mxu0 %v504_v4  ;;  %v512_v12 = vld [vmem:[%s686_s1 + $0x60] sm:$0xff]   ;;  %v516_v16 = vld [vmem:[%s686_s1 + $0x58] sm:$0xff]   ;;  %v520_v20 = vld [vmem:[%s686_s1 + $0x50] sm:$0xff]  }
   0x6   :  { %477 = vmatprep.subr.bf16.mxu1 %v505_v5  ;;  %v513_v13 = vld [vmem:[%s686_s1 + $0xe0] sm:$0xff]   ;;  %v517_v17 = vld [vmem:[%s686_s1 + $0xd8] sm:$0xff]   ;;  %v521_v21 = vld [vmem:[%s686_s1 + $0xd0] sm:$0xff]  }
   0x7   :  { %v514_v14 = vld [vmem:[%s686_s1 + $0x20] sm:$0xff]   ;;  %v518_v18 = vld [vmem:[%s686_s1 + $0x18] sm:$0xff]   ;;  %v522_v22 = vld [vmem:[%s686_s1 + $0x10] sm:$0xff]  }
   0x8   :  { %456 = vmatpush3.bf16.msra.mxu0 %v506_v6  ;;  %v515_v15 = vld [vmem:[%s686_s1 + $0xa0] sm:$0xff]   ;;  %v519_v19 = vld [vmem:[%s686_s1 + $0x98] sm:$0xff]   ;;  %v523_v23 = vld [vmem:[%s686_s1 + $0x90] sm:$0xff]  }
   0x9   :  { %478 = vmatpush3.bf16.msra.mxu1 %v507_v7  ;;  %457 = vmatprep.subr.bf16.mxu0 %v508_v8  ;;  %v524_v24 = vld [vmem:[%s686_s1 + $0x48] sm:$0xff]   ;;  %v528_v28 = vld [vmem:[%s686_s1 + $0x40] sm:$0xff]  }
   0xa   :  { %479 = vmatprep.subr.bf16.mxu1 %v509_v9  ;;  %v525_v25 = vld [vmem:[%s686_s1 + $0xc8] sm:$0xff]   ;;  %v529_v29 = vld [vmem:[%s686_s1 + $0xc0] sm:$0xff]  }
   0xb   :  { %v526_v26 = vld [vmem:[%s686_s1 + $0x8] sm:$0xff]   ;;  %v530_v31 = vld [vmem:[%s686_s1] sm:$0xff]  }
   0xc   :  { %458 = vmatpush3.bf16.msra.mxu0 %v510_v10  ;;  %v527_v27 = vld [vmem:[%s686_s1 + $0x88] sm:$0xff]   ;;  %v531_v32 = vld [vmem:[%s686_s1 + $0x80] sm:$0xff]  }
   0xd   :  { %480 = vmatpush3.bf16.msra.mxu1 %v511_v11  ;;  %459 = vmatprep.subr.bf16.mxu0 %v512_v12  ;;  %v419_v33 = vld.sshfl [vmem:[%s685_s0] sm:$0x33 pattern:$0x75316420] }
   0xe   :  { %481 = vmatprep.subr.bf16.mxu1 %v513_v13 }
  0x10   :  { %460 = vmatpush3.bf16.msra.mxu0 %v514_v14 }
  0x11   :  { %482 = vmatpush3.bf16.msra.mxu1 %v515_v15  ;;  %461 = vmatprep.subr.bf16.mxu0 %v516_v16 }
  0x12   :  { %483 = vmatprep.subr.bf16.mxu1 %v517_v17 }
  0x14   :  { %462 = vmatpush3.bf16.msra.mxu0 %v518_v18 }
  0x15   :  { %484 = vmatpush3.bf16.msra.mxu1 %v519_v19  ;;  %463 = vmatprep.subr.bf16.mxu0 %v520_v20 }
  0x16   :  { %485 = vmatprep.subr.bf16.mxu1 %v521_v21 }
  0x18   :  { %464 = vmatpush3.bf16.msra.mxu0 %v522_v22 }
  0x19   :  { %486 = vmatpush3.bf16.msra.mxu1 %v523_v23  ;;  %465 = vmatprep.subr.bf16.mxu0 %v524_v24 }
  0x1a   :  { %487 = vmatprep.subr.bf16.mxu1 %v525_v25 }
  0x1c   :  { %466 = vmatpush3.bf16.msra.mxu0 %v526_v26 }
  0x1d   :  { %488 = vmatpush3.bf16.msra.mxu1 %v527_v27  ;;  %467 = vmatprep.subr.bf16.mxu0 %v528_v28 }
  0x1e   :  { %489 = vmatprep.subr.bf16.mxu1 %v529_v29 }
  0x20   :  { %468 = vmatpush3.bf16.msra.mxu0 %v530_v31 }
  0x21   :  { %490 = vmatpush3.bf16.msra.mxu1 %v531_v32 }
  0x22   :  { %8 = vsyncpa [#allocation4], 0  ;;  %v96_v37 = vcombine.high %v419_v33, %v419_v33  ;;  %v99_v38 = vunpack.c.0.s8 %v98_v35  ;;  %vm20_vm0 = vcmask 74752   ;;  %v555_v44 = vmov 0.0   ;;  %v452_v58 = vld [vmem:[%s687_s2] ss:$0 sm:$0xff] }
  0x23   :  { %21 = vst.msk [vmem:[#allocation2] sm:$0x3] %vm20_vm0, %v555_v44  ;;  %s556_s24 = smov [#allocation3]  }
  0x24   :  { %v102_v39 = vsub.s32 %v99_v38, %v101_v36  ;;  %s411_s25 = sshll.u32 %s556_s24, 4  ;;  %s412_s25 = int_to_ptr.vmem [resolvable:$true] %s411_s25 }
  0x25   :  { %s532_s26 = scalar_lea.vmem %s412_s25, 32  ;;  %p537_p1 = scmp.lt.s32.totalorder %s412_s25, %s412_s25 }
  0x26   :  { %v110_v40 = vrot.slane %v96_v37, %v102_v39  ;;  %v103_v41 = vrot.slane %v419_v33, %v102_v39  ;;  %p533_p0 = scmp.ne.s32.totalorder %s412_s25, %s532_s26  ;;  %p538_p2 = scmp.lt.s32.totalorder %s532_s26, %s532_s26 }
  0x28   :  { %341 = vmatprep.mubr.bf16.mxu0 %v110_v40  ;;  %v112_v42 = vcombine.high %v110_v40, %v110_v40  ;;  %v111_v43 = vcombine.high %v103_v41, %v103_v41  ;;  %p539_p3 = por %p538_p2, %p537_p1 }
  0x29   :  { %342 = vmatmul.mubr.bf16.vlgmr.msra.gmra.mxu0 %v103_v41 }
  0x2a   :  { %381 = vmatprep.mubr.bf16.mxu1 %v112_v42  ;;  %v22_v54 = vld [vmem:[#allocation2] sm:$0x3]  ;;  %p540_p4 = pnand %p539_p3, %p533_p0 }
  0x2b   :  { %382 = vmatmul.mubr.bf16.vlgmr.msra.gmra.mxu1 %v111_v43 }
  0xe9   :  { %v469_v45 = vpop.f32.mrf.mxu0 }
  0xeb   :  { %v491_v46 = vpop.f32.mrf.mxu1  ;;  %v470_v47 = vpop.f32.mrf.mxu0 }
  0xec   :  { %v471_v48 = vadd.f32 %v470_v47, %v469_v45 }
  0xed   :  { %v492_v49 = vpop.f32.mrf.mxu1  ;;  %v472_v50 = vpop.f32.mrf.mxu0 }
  0xee   :  { %v493_v51 = vadd.f32 %v492_v49, %v491_v46 }
  0xef   :  { %v494_v52 = vpop.f32.mrf.mxu1  ;;  %v473_v53 = vpop.f32.mrf.mxu0 }
  0xf0   :  { %v384_v55 = vadd.f32 %v493_v51, %v471_v48 }
  0xf1   :  { %v495_v56 = vpop.f32.mrf.mxu1 }
  0xf2   :  { %v389_v57 = vadd.f32 %v384_v55, %v22_v54 }
  0xf4   :  { %391 = vst.msk [vmem:[#allocation2] sm:$0x3] %vm20_vm0, %v389_v57 }
  0xfb   :  { %v395_v59 = vld [vmem:[#allocation2] sm:$0x3] }
  0xfc   :  { %v403_v60 = vadd.f32 %v452_v58, %v395_v59 }
  0xfe   :  { %404 = vst.msk [vmem:[#allocation3] sm:$0x3] %vm20_vm0, %v403_v60 }
  0xff   :  { %543 = shalt.err (!%p540_p4)
}
 0x100   :  { %414 = dma.vmem_to_hbm [thread:$0]  %s412_s25, 32, %s688_s3, [#allocation4]  }
 0x101   :  { %552 = dma.done.wait [#allocation4], 32  }
 0x102   :  { %553 = vsyncadd [#allocation4], 4294967264 }
 0x103   :  { %418 = vsyncpa [#allocation4], 1 }

// kernel: vggish_forward.13
= control target key start
LH: loop header
LB: loop body
LE: loop exit
PB: predicated region body
PF: predicated region fallthrough
CT: control target
= control target key end

     0   :  { %s3862_s12 = smov 0   ;;  %s3864_s13 = smov 0   ;;  %s4710_s0 = inlined_call_operand.vmem [shape: bf16[2,20,256], index: 0, kind: input, shape index: {}]   ;;  %s4711_s1 = inlined_call_operand.vmem [shape: bf16[2304,256], index: 1, kind: input, shape index: {}]   ;;  %s4712_s2 = inlined_call_operand.vmem [shape: f32[1,256], index: 2, kind: input, shape index: {}]   ;;  %s4713_s3 = inlined_call_operand.vmem [shape: bf16[2,1,1,256], index: 3, kind: output, shape index: {}]  }
   0x1   :  { %s3866_s14 = smov 0   ;;  %s3868_s15 = smov 0  }
   0x2   :  { %s3870_s16 = smov 0   ;;  %s3872_s17 = smov 0  }
   0x3   :  { %s3874_s18 = smov 0  }
   0x4 LB: > { %s22_s19 = sadd.s32 1, %s3832_s16  ;;  %s25_s20 = sadd.s32 1, %s3836_s17  ;;  %s3840_s18 = sphi %s3874_s18, %s13_s18   ;;  %s3836_s17 = sphi %s3872_s17, %s4719_s17   ;;  %s3832_s16 = sphi %s3870_s16, %s4718_s16   ;;  %s3828_s15 = sphi %s3868_s15, %s4717_s15   ;;  %s3824_s14 = sphi %s3866_s14, %s4716_s14   ;;  %s3820_s13 = sphi %s3864_s13, %s4715_s13   ;;  %s3816_s12 = sphi %s3862_s12, %s4714_s12  }
   0x5   : > { %p23_p0 = scmp.ge.s32.totalorder %s22_s19, 2  ;;  %s58_s21 = sadd.s32 1, %s3820_s13 }
   0x6   : > { %p65_p1 = scmp.ne.s32.totalorder %s3820_s13, %s3816_s12  ;;  %p66_p2 = scmp.eq.s32.totalorder %s3840_s18, 0 }
   0x7   : > { %s4721_s19 = smov (%p23_p0, %s22_s19), 0  ;;  %s4723_s20 = smov (!%p23_p0, %s25_s20), %s3836_s17 }
   0x8   : > { %s55_s22 = ssub.s32 %s3832_s16, %s4721_s19  ;;  %p67_p3 = por %p66_p2, %p65_p1 }
   0x9   : > { %p27_p4 = scmp.ge.s32.totalorder %s4723_s20, 2  ;;  %p56_p5 = scmp.eq.s32.totalorder %s55_s22, 0 }
   0xa   : > { %p3197_p6 = scmp.ge.s32.totalorder %s3840_s18, 4 }
   0xb   : > { %s4725_s20 = smov (%p27_p4, %s4723_s20), 0 }
   0xc   : > { %s3911_s23 = scalar_select %p56_p5, %s3820_s13, %s58_s21  }
   0xd   : > { %145 = sbr.rel (%p3197_p6) target bundleno = 214 (0xd6), region = 16 }
  0x12   : > { %156 = sbr.rel (!%p67_p3) target bundleno = 214 (0xd6), region = 24  ;;  %s158_s24 = sand.u32 (%p67_p3), 1, %s3820_s13  }
  0x13   : > { %s3198_s25 = sshll.u32 (%p67_p3), %s3832_s16, 2  ;;  %s3565_s26 = smul.u32 (%p67_p3), 1152, %s158_s24 }
  0x14   : > { %s3919_s29 = scalar_lea.vmem (%p67_p3), %s4711_s1, %s3198_s25 }
  0x15   : > { %v179_v0 = vld [vmem:[%s3919_s29] sm:$0xf] (%p67_p3)  ;;  %v181_v1 = vld [vmem:[%s3919_s29 + $0x8] sm:$0xf] (%p67_p3)  ;;  %v183_v2 = vld [vmem:[%s3919_s29 + $0x10] sm:$0xf] (%p67_p3) }
  0x16   : > { %v185_v3 = vld [vmem:[%s3919_s29 + $0x18] sm:$0xf] (%p67_p3)  ;;  %v187_v4 = vld [vmem:[%s3919_s29 + $0x20] sm:$0xf] (%p67_p3)  ;;  %s3926_s30 = scalar_lea.vmem (%p67_p3), [#allocation3], %s3565_s26 }
  0x17   : > { %180 = vst [vmem:[%s3926_s30] sm:$0xf] %v179_v0  ;;  %182 = vst [vmem:[%s3926_s30 + $0x4] sm:$0xf] %v181_v1  ;;  %v189_v5 = vld [vmem:[%s3919_s29 + $0x28] sm:$0xf] }
  0x18   : > { %184 = vst [vmem:[%s3926_s30 + $0x8] sm:$0xf] %v183_v2  ;;  %186 = vst [vmem:[%s3926_s30 + $0xc] sm:$0xf] %v185_v3  ;;  %v191_v6 = vld [vmem:[%s3919_s29 + $0x30] sm:$0xf] }
  0x19   : > { %188 = vst [vmem:[%s3926_s30 + $0x10] sm:$0xf] %v187_v4  ;;  %v193_v7 = vld [vmem:[%s3919_s29 + $0x38] sm:$0xf]  ;;  %190 = vst [vmem:[%s3926_s30 + $0x14] sm:$0xf] %v189_v5 }
  0x1a   : > { %192 = vst [vmem:[%s3926_s30 + $0x18] sm:$0xf] %v191_v6  ;;  %194 = vst [vmem:[%s3926_s30 + $0x1c] sm:$0xf] %v193_v7  ;;  %v195_v8 = vld [vmem:[%s3919_s29 + $0x40] sm:$0xf] }
  0x1b   : > { %v197_v9 = vld [vmem:[%s3919_s29 + $0x48] sm:$0xf]  ;;  %v199_v10 = vld [vmem:[%s3919_s29 + $0x50] sm:$0xf]  ;;  %196 = vst [vmem:[%s3926_s30 + $0x20] sm:$0xf] %v195_v8 }
  0x1c   : > { %198 = vst [vmem:[%s3926_s30 + $0x24] sm:$0xf] %v197_v9  ;;  %200 = vst [vmem:[%s3926_s30 + $0x28] sm:$0xf] %v199_v10  ;;  %v201_v11 = vld [vmem:[%s3919_s29 + $0x58] sm:$0xf] }
  0x1d   : > { %v203_v12 = vld [vmem:[%s3919_s29 + $0x60] sm:$0xf]  ;;  %v205_v13 = vld [vmem:[%s3919_s29 + $0x68] sm:$0xf]  ;;  %202 = vst [vmem:[%s3926_s30 + $0x2c] sm:$0xf] %v201_v11 }
  0x1e   : > { %204 = vst [vmem:[%s3926_s30 + $0x30] sm:$0xf] %v203_v12  ;;  %206 = vst [vmem:[%s3926_s30 + $0x34] sm:$0xf] %v205_v13  ;;  %v207_v14 = vld [vmem:[%s3919_s29 + $0x70] sm:$0xf] }
  0x1f   : > { %v209_v15 = vld [vmem:[%s3919_s29 + $0x78] sm:$0xf]  ;;  %v211_v16 = vld [vmem:[%s3919_s29 + $0x80] sm:$0xf]  ;;  %208 = vst [vmem:[%s3926_s30 + $0x38] sm:$0xf] %v207_v14 }
  0x20   : > { %210 = vst [vmem:[%s3926_s30 + $0x3c] sm:$0xf] %v209_v15  ;;  %212 = vst [vmem:[%s3926_s30 + $0x40] sm:$0xf] %v211_v16  ;;  %v213_v17 = vld [vmem:[%s3919_s29 + $0x88] sm:$0xf] }
  0x21   : > { %v215_v18 = vld [vmem:[%s3919_s29 + $0x90] sm:$0xf]  ;;  %v217_v19 = vld [vmem:[%s3919_s29 + $0x98] sm:$0xf]  ;;  %214 = vst [vmem:[%s3926_s30 + $0x44] sm:$0xf] %v213_v17 }
  0x22   : > { %216 = vst [vmem:[%s3926_s30 + $0x48] sm:$0xf] %v215_v18  ;;  %218 = vst [vmem:[%s3926_s30 + $0x4c] sm:$0xf] %v217_v19  ;;  %v219_v20 = vld [vmem:[%s3919_s29 + $0xa0] sm:$0xf] }
  0x23   : > { %v221_v21 = vld [vmem:[%s3919_s29 + $0xa8] sm:$0xf]  ;;  %v223_v22 = vld [vmem:[%s3919_s29 + $0xb0] sm:$0xf]  ;;  %220 = vst [vmem:[%s3926_s30 + $0x50] sm:$0xf] %v219_v20 }
  0x24   : > { %222 = vst [vmem:[%s3926_s30 + $0x54] sm:$0xf] %v221_v21  ;;  %224 = vst [vmem:[%s3926_s30 + $0x58] sm:$0xf] %v223_v22  ;;  %v225_v23 = vld [vmem:[%s3919_s29 + $0xb8] sm:$0xf] }
  0x25   : > { %v227_v24 = vld [vmem:[%s3919_s29 + $0xc0] sm:$0xf]  ;;  %v229_v25 = vld [vmem:[%s3919_s29 + $0xc8] sm:$0xf]  ;;  %226 = vst [vmem:[%s3926_s30 + $0x5c] sm:$0xf] %v225_v23 }
  0x26   : > { %228 = vst [vmem:[%s3926_s30 + $0x60] sm:$0xf] %v227_v24  ;;  %230 = vst [vmem:[%s3926_s30 + $0x64] sm:$0xf] %v229_v25  ;;  %v231_v26 = vld [vmem:[%s3919_s29 + $0xd0] sm:$0xf] }
  0x27   : > { %v233_v27 = vld [vmem:[%s3919_s29 + $0xd8] sm:$0xf]  ;;  %v235_v28 = vld [vmem:[%s3919_s29 + $0xe0] sm:$0xf]  ;;  %232 = vst [vmem:[%s3926_s30 + $0x68] sm:$0xf] %v231_v26 }
  0x28   : > { %234 = vst [vmem:[%s3926_s30 + $0x6c] sm:$0xf] %v233_v27  ;;  %236 = vst [vmem:[%s3926_s30 + $0x70] sm:$0xf] %v235_v28  ;;  %v237_v29 = vld [vmem:[%s3919_s29 + $0xe8] sm:$0xf] }
  0x29   : > { %v239_v30 = vld [vmem:[%s3919_s29 + $0xf0] sm:$0xf]  ;;  %v241_v31 = vld [vmem:[%s3919_s29 + $0xf8] sm:$0xf]  ;;  %238 = vst [vmem:[%s3926_s30 + $0x74] sm:$0xf] %v237_v29 }
  0x2a   : > { %240 = vst [vmem:[%s3926_s30 + $0x78] sm:$0xf] %v239_v30  ;;  %242 = vst [vmem:[%s3926_s30 + $0x7c] sm:$0xf] %v241_v31  ;;  %v243_v32 = vld [vmem:[%s3919_s29 + $0x100] sm:$0xf] }
  0x2b   : > { %v245_v33 = vld [vmem:[%s3919_s29 + $0x108] sm:$0xf]  ;;  %v247_v34 = vld [vmem:[%s3919_s29 + $0x110] sm:$0xf]  ;;  %244 = vst [vmem:[%s3926_s30 + $0x80] sm:$0xf] %v243_v32 }
  0x2c   : > { %246 = vst [vmem:[%s3926_s30 + $0x84] sm:$0xf] %v245_v33  ;;  %248 = vst [vmem:[%s3926_s30 + $0x88] sm:$0xf] %v247_v34  ;;  %v249_v35 = vld [vmem:[%s3919_s29 + $0x118] sm:$0xf] }
  0x2d   : > { %v251_v36 = vld [vmem:[%s3919_s29 + $0x120] sm:$0xf]  ;;  %v253_v37 = vld [vmem:[%s3919_s29 + $0x128] sm:$0xf]  ;;  %250 = vst [vmem:[%s3926_s30 + $0x8c] sm:$0xf] %v249_v35 }
  0x2e   : > { %252 = vst [vmem:[%s3926_s30 + $0x90] sm:$0xf] %v251_v36  ;;  %254 = vst [vmem:[%s3926_s30 + $0x94] sm:$0xf] %v253_v37  ;;  %v255_v38 = vld [vmem:[%s3919_s29 + $0x130] sm:$0xf] }
  0x2f   : > { %v257_v39 = vld [vmem:[%s3919_s29 + $0x138] sm:$0xf]  ;;  %v259_v40 = vld [vmem:[%s3919_s29 + $0x140] sm:$0xf]  ;;  %256 = vst [vmem:[%s3926_s30 + $0x98] sm:$0xf] %v255_v38 }
  0x30   : > { %258 = vst [vmem:[%s3926_s30 + $0x9c] sm:$0xf] %v257_v39  ;;  %260 = vst [vmem:[%s3926_s30 + $0xa0] sm:$0xf] %v259_v40  ;;  %v261_v41 = vld [vmem:[%s3919_s29 + $0x148] sm:$0xf] }
  0x31   : > { %v263_v42 = vld [vmem:[%s3919_s29 + $0x150] sm:$0xf]  ;;  %v265_v43 = vld [vmem:[%s3919_s29 + $0x158] sm:$0xf]  ;;  %262 = vst [vmem:[%s3926_s30 + $0xa4] sm:$0xf] %v261_v41 }
  0x32   : > { %264 = vst [vmem:[%s3926_s30 + $0xa8] sm:$0xf] %v263_v42  ;;  %266 = vst [vmem:[%s3926_s30 + $0xac] sm:$0xf] %v265_v43  ;;  %v267_v44 = vld [vmem:[%s3919_s29 + $0x160] sm:$0xf] }
  0x33   : > { %v269_v45 = vld [vmem:[%s3919_s29 + $0x168] sm:$0xf]  ;;  %v271_v46 = vld [vmem:[%s3919_s29 + $0x170] sm:$0xf]  ;;  %268 = vst [vmem:[%s3926_s30 + $0xb0] sm:$0xf] %v267_v44 }
  0x34   : > { %270 = vst [vmem:[%s3926_s30 + $0xb4] sm:$0xf] %v269_v45  ;;  %272 = vst [vmem:[%s3926_s30 + $0xb8] sm:$0xf] %v271_v46  ;;  %v273_v47 = vld [vmem:[%s3919_s29 + $0x178] sm:$0xf] }
  0x35   : > { %v275_v48 = vld [vmem:[%s3919_s29 + $0x180] sm:$0xf]  ;;  %v277_v49 = vld [vmem:[%s3919_s29 + $0x188] sm:$0xf]  ;;  %274 = vst [vmem:[%s3926_s30 + $0xbc] sm:$0xf] %v273_v47 }
  0x36   : > { %276 = vst [vmem:[%s3926_s30 + $0xc0] sm:$0xf] %v275_v48  ;;  %278 = vst [vmem:[%s3926_s30 + $0xc4] sm:$0xf] %v277_v49  ;;  %v279_v50 = vld [vmem:[%s3919_s29 + $0x190] sm:$0xf] }
  0x37   : > { %v281_v51 = vld [vmem:[%s3919_s29 + $0x198] sm:$0xf]  ;;  %v283_v52 = vld [vmem:[%s3919_s29 + $0x1a0] sm:$0xf]  ;;  %280 = vst [vmem:[%s3926_s30 + $0xc8] sm:$0xf] %v279_v50 }
  0x38   : > { %282 = vst [vmem:[%s3926_s30 + $0xcc] sm:$0xf] %v281_v51  ;;  %284 = vst [vmem:[%s3926_s30 + $0xd0] sm:$0xf] %v283_v52  ;;  %v285_v53 = vld [vmem:[%s3919_s29 + $0x1a8] sm:$0xf] }
  0x39   : > { %v287_v54 = vld [vmem:[%s3919_s29 + $0x1b0] sm:$0xf]  ;;  %v289_v55 = vld [vmem:[%s3919_s29 + $0x1b8] sm:$0xf]  ;;  %286 = vst [vmem:[%s3926_s30 + $0xd4] sm:$0xf] %v285_v53 }
  0x3a   : > { %288 = vst [vmem:[%s3926_s30 + $0xd8] sm:$0xf] %v287_v54  ;;  %290 = vst [vmem:[%s3926_s30 + $0xdc] sm:$0xf] %v289_v55  ;;  %v291_v56 = vld [vmem:[%s3919_s29 + $0x1c0] sm:$0xf] }
  0x3b   : > { %v293_v57 = vld [vmem:[%s3919_s29 + $0x1c8] sm:$0xf]  ;;  %v295_v58 = vld [vmem:[%s3919_s29 + $0x1d0] sm:$0xf]  ;;  %292 = vst [vmem:[%s3926_s30 + $0xe0] sm:$0xf] %v291_v56 }
  0x3c   : > { %294 = vst [vmem:[%s3926_s30 + $0xe4] sm:$0xf] %v293_v57  ;;  %296 = vst [vmem:[%s3926_s30 + $0xe8] sm:$0xf] %v295_v58  ;;  %v297_v59 = vld [vmem:[%s3919_s29 + $0x1d8] sm:$0xf] }
  0x3d   : > { %v299_v60 = vld [vmem:[%s3919_s29 + $0x1e0] sm:$0xf]  ;;  %v301_v61 = vld [vmem:[%s3919_s29 + $0x1e8] sm:$0xf]  ;;  %298 = vst [vmem:[%s3926_s30 + $0xec] sm:$0xf] %v297_v59 }
  0x3e   : > { %300 = vst [vmem:[%s3926_s30 + $0xf0] sm:$0xf] %v299_v60  ;;  %302 = vst [vmem:[%s3926_s30 + $0xf4] sm:$0xf] %v301_v61  ;;  %v303_v62 = vld [vmem:[%s3919_s29 + $0x1f0] sm:$0xf] }
  0x3f   : > { %v305_v63 = vld [vmem:[%s3919_s29 + $0x1f8] sm:$0xf]  ;;  %v307_v0 = vld [vmem:[%s3919_s29 + $0x200] sm:$0xf]  ;;  %304 = vst [vmem:[%s3926_s30 + $0xf8] sm:$0xf] %v303_v62 }
  0x40   : > { %306 = vst [vmem:[%s3926_s30 + $0xfc] sm:$0xf] %v305_v63  ;;  %308 = vst [vmem:[%s3926_s30 + $0x100] sm:$0xf] %v307_v0  ;;  %v309_v1 = vld [vmem:[%s3919_s29 + $0x208] sm:$0xf] }
  0x41   : > { %v311_v2 = vld [vmem:[%s3919_s29 + $0x210] sm:$0xf]  ;;  %v313_v3 = vld [vmem:[%s3919_s29 + $0x218] sm:$0xf]  ;;  %310 = vst [vmem:[%s3926_s30 + $0x104] sm:$0xf] %v309_v1 }
  0x42   : > { %312 = vst [vmem:[%s3926_s30 + $0x108] sm:$0xf] %v311_v2  ;;  %314 = vst [vmem:[%s3926_s30 + $0x10c] sm:$0xf] %v313_v3  ;;  %v315_v4 = vld [vmem:[%s3919_s29 + $0x220] sm:$0xf] }
  0x43   : > { %v317_v5 = vld [vmem:[%s3919_s29 + $0x228] sm:$0xf]  ;;  %v319_v6 = vld [vmem:[%s3919_s29 + $0x230] sm:$0xf]  ;;  %316 = vst [vmem:[%s3926_s30 + $0x110] sm:$0xf] %v315_v4 }
  0x44   : > { %318 = vst [vmem:[%s3926_s30 + $0x114] sm:$0xf] %v317_v5  ;;  %320 = vst [vmem:[%s3926_s30 + $0x118] sm:$0xf] %v319_v6  ;;  %v321_v7 = vld [vmem:[%s3919_s29 + $0x238] sm:$0xf] }
  0x45   : > { %v323_v8 = vld [vmem:[%s3919_s29 + $0x240] sm:$0xf]  ;;  %v325_v9 = vld [vmem:[%s3919_s29 + $0x248] sm:$0xf]  ;;  %322 = vst [vmem:[%s3926_s30 + $0x11c] sm:$0xf] %v321_v7 }
  0x46   : > { %324 = vst [vmem:[%s3926_s30 + $0x120] sm:$0xf] %v323_v8  ;;  %326 = vst [vmem:[%s3926_s30 + $0x124] sm:$0xf] %v325_v9  ;;  %v327_v10 = vld [vmem:[%s3919_s29 + $0x250] sm:$0xf] }
  0x47   : > { %v329_v11 = vld [vmem:[%s3919_s29 + $0x258] sm:$0xf]  ;;  %v331_v12 = vld [vmem:[%s3919_s29 + $0x260] sm:$0xf]  ;;  %328 = vst [vmem:[%s3926_s30 + $0x128] sm:$0xf] %v327_v10 }
  0x48   : > { %330 = vst [vmem:[%s3926_s30 + $0x12c] sm:$0xf] %v329_v11  ;;  %332 = vst [vmem:[%s3926_s30 + $0x130] sm:$0xf] %v331_v12  ;;  %v333_v13 = vld [vmem:[%s3919_s29 + $0x268] sm:$0xf] }
  0x49   : > { %v335_v14 = vld [vmem:[%s3919_s29 + $0x270] sm:$0xf]  ;;  %v337_v15 = vld [vmem:[%s3919_s29 + $0x278] sm:$0xf]  ;;  %334 = vst [vmem:[%s3926_s30 + $0x134] sm:$0xf] %v333_v13 }
  0x4a   : > { %336 = vst [vmem:[%s3926_s30 + $0x138] sm:$0xf] %v335_v14  ;;  %338 = vst [vmem:[%s3926_s30 + $0x13c] sm:$0xf] %v337_v15  ;;  %v339_v16 = vld [vmem:[%s3919_s29 + $0x280] sm:$0xf] }
  0x4b   : > { %v341_v17 = vld [vmem:[%s3919_s29 + $0x288] sm:$0xf]  ;;  %v343_v18 = vld [vmem:[%s3919_s29 + $0x290] sm:$0xf]  ;;  %340 = vst [vmem:[%s3926_s30 + $0x140] sm:$0xf] %v339_v16 }
  0x4c   : > { %342 = vst [vmem:[%s3926_s30 + $0x144] sm:$0xf] %v341_v17  ;;  %344 = vst [vmem:[%s3926_s30 + $0x148] sm:$0xf] %v343_v18  ;;  %v345_v19 = vld [vmem:[%s3919_s29 + $0x298] sm:$0xf] }
  0x4d   : > { %v347_v20 = vld [vmem:[%s3919_s29 + $0x2a0] sm:$0xf]  ;;  %v349_v21 = vld [vmem:[%s3919_s29 + $0x2a8] sm:$0xf]  ;;  %346 = vst [vmem:[%s3926_s30 + $0x14c] sm:$0xf] %v345_v19 }
  0x4e   : > { %348 = vst [vmem:[%s3926_s30 + $0x150] sm:$0xf] %v347_v20  ;;  %350 = vst [vmem:[%s3926_s30 + $0x154] sm:$0xf] %v349_v21  ;;  %v351_v22 = vld [vmem:[%s3919_s29 + $0x2b0] sm:$0xf] }
  0x4f   : > { %v353_v23 = vld [vmem:[%s3919_s29 + $0x2b8] sm:$0xf]  ;;  %v355_v24 = vld [vmem:[%s3919_s29 + $0x2c0] sm:$0xf]  ;;  %352 = vst [vmem:[%s3926_s30 + $0x158] sm:$0xf] %v351_v22 }
  0x50   : > { %354 = vst [vmem:[%s3926_s30 + $0x15c] sm:$0xf] %v353_v23  ;;  %356 = vst [vmem:[%s3926_s30 + $0x160] sm:$0xf] %v355_v24  ;;  %v357_v25 = vld [vmem:[%s3919_s29 + $0x2c8] sm:$0xf] }
  0x51   : > { %v359_v26 = vld [vmem:[%s3919_s29 + $0x2d0] sm:$0xf]  ;;  %v361_v27 = vld [vmem:[%s3919_s29 + $0x2d8] sm:$0xf]  ;;  %358 = vst [vmem:[%s3926_s30 + $0x164] sm:$0xf] %v357_v25 }
  0x52   : > { %360 = vst [vmem:[%s3926_s30 + $0x168] sm:$0xf] %v359_v26  ;;  %362 = vst [vmem:[%s3926_s30 + $0x16c] sm:$0xf] %v361_v27  ;;  %v363_v28 = vld [vmem:[%s3919_s29 + $0x2e0] sm:$0xf] }
  0x53   : > { %v365_v29 = vld [vmem:[%s3919_s29 + $0x2e8] sm:$0xf]  ;;  %v367_v30 = vld [vmem:[%s3919_s29 + $0x2f0] sm:$0xf]  ;;  %364 = vst [vmem:[%s3926_s30 + $0x170] sm:$0xf] %v363_v28 }
  0x54   : > { %366 = vst [vmem:[%s3926_s30 + $0x174] sm:$0xf] %v365_v29  ;;  %368 = vst [vmem:[%s3926_s30 + $0x178] sm:$0xf] %v367_v30  ;;  %v369_v31 = vld [vmem:[%s3919_s29 + $0x2f8] sm:$0xf] }
  0x55   : > { %v371_v32 = vld [vmem:[%s3919_s29 + $0x300] sm:$0xf]  ;;  %v373_v33 = vld [vmem:[%s3919_s29 + $0x308] sm:$0xf]  ;;  %370 = vst [vmem:[%s3926_s30 + $0x17c] sm:$0xf] %v369_v31 }
  0x56   : > { %372 = vst [vmem:[%s3926_s30 + $0x180] sm:$0xf] %v371_v32  ;;  %374 = vst [vmem:[%s3926_s30 + $0x184] sm:$0xf] %v373_v33  ;;  %v375_v34 = vld [vmem:[%s3919_s29 + $0x310] sm:$0xf] }
  0x57   : > { %v377_v35 = vld [vmem:[%s3919_s29 + $0x318] sm:$0xf]  ;;  %v379_v36 = vld [vmem:[%s3919_s29 + $0x320] sm:$0xf]  ;;  %376 = vst [vmem:[%s3926_s30 + $0x188] sm:$0xf] %v375_v34 }
  0x58   : > { %378 = vst [vmem:[%s3926_s30 + $0x18c] sm:$0xf] %v377_v35  ;;  %380 = vst [vmem:[%s3926_s30 + $0x190] sm:$0xf] %v379_v36  ;;  %v381_v37 = vld [vmem:[%s3919_s29 + $0x328] sm:$0xf] }
  0x59   : > { %v383_v38 = vld [vmem:[%s3919_s29 + $0x330] sm:$0xf]  ;;  %v385_v39 = vld [vmem:[%s3919_s29 + $0x338] sm:$0xf]  ;;  %382 = vst [vmem:[%s3926_s30 + $0x194] sm:$0xf] %v381_v37 }
  0x5a   : > { %384 = vst [vmem:[%s3926_s30 + $0x198] sm:$0xf] %v383_v38  ;;  %386 = vst [vmem:[%s3926_s30 + $0x19c] sm:$0xf] %v385_v39  ;;  %v387_v40 = vld [vmem:[%s3919_s29 + $0x340] sm:$0xf] }
  0x5b   : > { %v389_v41 = vld [vmem:[%s3919_s29 + $0x348] sm:$0xf]  ;;  %v391_v42 = vld [vmem:[%s3919_s29 + $0x350] sm:$0xf]  ;;  %388 = vst [vmem:[%s3926_s30 + $0x1a0] sm:$0xf] %v387_v40 }
  0x5c   : > { %390 = vst [vmem:[%s3926_s30 + $0x1a4] sm:$0xf] %v389_v41  ;;  %392 = vst [vmem:[%s3926_s30 + $0x1a8] sm:$0xf] %v391_v42  ;;  %v393_v43 = vld [vmem:[%s3919_s29 + $0x358] sm:$0xf] }
  0x5d   : > { %v395_v44 = vld [vmem:[%s3919_s29 + $0x360] sm:$0xf]  ;;  %v397_v45 = vld [vmem:[%s3919_s29 + $0x368] sm:$0xf]  ;;  %394 = vst [vmem:[%s3926_s30 + $0x1ac] sm:$0xf] %v393_v43 }
  0x5e   : > { %396 = vst [vmem:[%s3926_s30 + $0x1b0] sm:$0xf] %v395_v44  ;;  %398 = vst [vmem:[%s3926_s30 + $0x1b4] sm:$0xf] %v397_v45  ;;  %v399_v46 = vld [vmem:[%s3919_s29 + $0x370] sm:$0xf] }
  0x5f   : > { %v401_v47 = vld [vmem:[%s3919_s29 + $0x378] sm:$0xf]  ;;  %v403_v48 = vld [vmem:[%s3919_s29 + $0x380] sm:$0xf]  ;;  %400 = vst [vmem:[%s3926_s30 + $0x1b8] sm:$0xf] %v399_v46 }
  0x60   : > { %402 = vst [vmem:[%s3926_s30 + $0x1bc] sm:$0xf] %v401_v47  ;;  %404 = vst [vmem:[%s3926_s30 + $0x1c0] sm:$0xf] %v403_v48  ;;  %v405_v49 = vld [vmem:[%s3919_s29 + $0x388] sm:$0xf] }
  0x61   : > { %v407_v50 = vld [vmem:[%s3919_s29 + $0x390] sm:$0xf]  ;;  %v409_v51 = vld [vmem:[%s3919_s29 + $0x398] sm:$0xf]  ;;  %406 = vst [vmem:[%s3926_s30 + $0x1c4] sm:$0xf] %v405_v49 }
  0x62   : > { %408 = vst [vmem:[%s3926_s30 + $0x1c8] sm:$0xf] %v407_v50  ;;  %410 = vst [vmem:[%s3926_s30 + $0x1cc] sm:$0xf] %v409_v51  ;;  %v411_v52 = vld [vmem:[%s3919_s29 + $0x3a0] sm:$0xf] }
  0x63   : > { %v413_v53 = vld [vmem:[%s3919_s29 + $0x3a8] sm:$0xf]  ;;  %v415_v54 = vld [vmem:[%s3919_s29 + $0x3b0] sm:$0xf]  ;;  %412 = vst [vmem:[%s3926_s30 + $0x1d0] sm:$0xf] %v411_v52 }
  0x64   : > { %414 = vst [vmem:[%s3926_s30 + $0x1d4] sm:$0xf] %v413_v53  ;;  %416 = vst [vmem:[%s3926_s30 + $0x1d8] sm:$0xf] %v415_v54  ;;  %v417_v55 = vld [vmem:[%s3919_s29 + $0x3b8] sm:$0xf] }
  0x65   : > { %v419_v56 = vld [vmem:[%s3919_s29 + $0x3c0] sm:$0xf]  ;;  %v421_v57 = vld [vmem:[%s3919_s29 + $0x3c8] sm:$0xf]  ;;  %418 = vst [vmem:[%s3926_s30 + $0x1dc] sm:$0xf] %v417_v55 }
  0x66   : > { %420 = vst [vmem:[%s3926_s30 + $0x1e0] sm:$0xf] %v419_v56  ;;  %422 = vst [vmem:[%s3926_s30 + $0x1e4] sm:$0xf] %v421_v57  ;;  %v423_v58 = vld [vmem:[%s3919_s29 + $0x3d0] sm:$0xf] }
  0x67   : > { %v425_v59 = vld [vmem:[%s3919_s29 + $0x3d8] sm:$0xf]  ;;  %v427_v60 = vld [vmem:[%s3919_s29 + $0x3e0] sm:$0xf]  ;;  %424 = vst [vmem:[%s3926_s30 + $0x1e8] sm:$0xf] %v423_v58 }
  0x68   : > { %426 = vst [vmem:[%s3926_s30 + $0x1ec] sm:$0xf] %v425_v59  ;;  %428 = vst [vmem:[%s3926_s30 + $0x1f0] sm:$0xf] %v427_v60  ;;  %v429_v61 = vld [vmem:[%s3919_s29 + $0x3e8] sm:$0xf] }
  0x69   : > { %v431_v62 = vld [vmem:[%s3919_s29 + $0x3f0] sm:$0xf]  ;;  %v433_v63 = vld [vmem:[%s3919_s29 + $0x3f8] sm:$0xf]  ;;  %430 = vst [vmem:[%s3926_s30 + $0x1f4] sm:$0xf] %v429_v61 }
  0x6a   : > { %432 = vst [vmem:[%s3926_s30 + $0x1f8] sm:$0xf] %v431_v62  ;;  %434 = vst [vmem:[%s3926_s30 + $0x1fc] sm:$0xf] %v433_v63  ;;  %v435_v0 = vld [vmem:[%s3919_s29 + $0x400] sm:$0xf] }
  0x6b   : > { %v437_v1 = vld [vmem:[%s3919_s29 + $0x408] sm:$0xf]  ;;  %v439_v2 = vld [vmem:[%s3919_s29 + $0x410] sm:$0xf]  ;;  %436 = vst [vmem:[%s3926_s30 + $0x200] sm:$0xf] %v435_v0 }
  0x6c   : > { %438 = vst [vmem:[%s3926_s30 + $0x204] sm:$0xf] %v437_v1  ;;  %440 = vst [vmem:[%s3926_s30 + $0x208] sm:$0xf] %v439_v2  ;;  %v441_v3 = vld [vmem:[%s3919_s29 + $0x418] sm:$0xf] }
  0x6d   : > { %v443_v4 = vld [vmem:[%s3919_s29 + $0x420] sm:$0xf]  ;;  %v445_v5 = vld [vmem:[%s3919_s29 + $0x428] sm:$0xf]  ;;  %442 = vst [vmem:[%s3926_s30 + $0x20c] sm:$0xf] %v441_v3 }
  0x6e   : > { %444 = vst [vmem:[%s3926_s30 + $0x210] sm:$0xf] %v443_v4  ;;  %446 = vst [vmem:[%s3926_s30 + $0x214] sm:$0xf] %v445_v5  ;;  %v447_v6 = vld [vmem:[%s3919_s29 + $0x430] sm:$0xf] }
  0x6f   : > { %v449_v7 = vld [vmem:[%s3919_s29 + $0x438] sm:$0xf]  ;;  %v451_v8 = vld [vmem:[%s3919_s29 + $0x440] sm:$0xf]  ;;  %448 = vst [vmem:[%s3926_s30 + $0x218] sm:$0xf] %v447_v6 }
  0x70   : > { %450 = vst [vmem:[%s3926_s30 + $0x21c] sm:$0xf] %v449_v7  ;;  %452 = vst [vmem:[%s3926_s30 + $0x220] sm:$0xf] %v451_v8  ;;  %v453_v9 = vld [vmem:[%s3919_s29 + $0x448] sm:$0xf] }
  0x71   : > { %v455_v10 = vld [vmem:[%s3919_s29 + $0x450] sm:$0xf]  ;;  %v457_v11 = vld [vmem:[%s3919_s29 + $0x458] sm:$0xf]  ;;  %454 = vst [vmem:[%s3926_s30 + $0x224] sm:$0xf] %v453_v9 }
  0x72   : > { %456 = vst [vmem:[%s3926_s30 + $0x228] sm:$0xf] %v455_v10  ;;  %458 = vst [vmem:[%s3926_s30 + $0x22c] sm:$0xf] %v457_v11  ;;  %v459_v12 = vld [vmem:[%s3919_s29 + $0x460] sm:$0xf] }
  0x73   : > { %v461_v13 = vld [vmem:[%s3919_s29 + $0x468] sm:$0xf]  ;;  %v463_v14 = vld [vmem:[%s3919_s29 + $0x470] sm:$0xf]  ;;  %460 = vst [vmem:[%s3926_s30 + $0x230] sm:$0xf] %v459_v12 }
  0x74   : > { %462 = vst [vmem:[%s3926_s30 + $0x234] sm:$0xf] %v461_v13  ;;  %464 = vst [vmem:[%s3926_s30 + $0x238] sm:$0xf] %v463_v14  ;;  %v465_v15 = vld [vmem:[%s3919_s29 + $0x478] sm:$0xf] }
  0x75   : > { %v467_v16 = vld [vmem:[%s3919_s29 + $0x480] sm:$0xf]  ;;  %v469_v17 = vld [vmem:[%s3919_s29 + $0x488] sm:$0xf]  ;;  %466 = vst [vmem:[%s3926_s30 + $0x23c] sm:$0xf] %v465_v15 }
  0x76   : > { %468 = vst [vmem:[%s3926_s30 + $0x240] sm:$0xf] %v467_v16  ;;  %470 = vst [vmem:[%s3926_s30 + $0x244] sm:$0xf] %v469_v17  ;;  %v471_v18 = vld [vmem:[%s3919_s29 + $0x490] sm:$0xf] }
  0x77   : > { %v473_v19 = vld [vmem:[%s3919_s29 + $0x498] sm:$0xf]  ;;  %v475_v20 = vld [vmem:[%s3919_s29 + $0x4a0] sm:$0xf]  ;;  %472 = vst [vmem:[%s3926_s30 + $0x248] sm:$0xf] %v471_v18 }
  0x78   : > { %474 = vst [vmem:[%s3926_s30 + $0x24c] sm:$0xf] %v473_v19  ;;  %476 = vst [vmem:[%s3926_s30 + $0x250] sm:$0xf] %v475_v20  ;;  %v477_v21 = vld [vmem:[%s3919_s29 + $0x4a8] sm:$0xf] }
  0x79   : > { %v479_v22 = vld [vmem:[%s3919_s29 + $0x4b0] sm:$0xf]  ;;  %v481_v23 = vld [vmem:[%s3919_s29 + $0x4b8] sm:$0xf]  ;;  %478 = vst [vmem:[%s3926_s30 + $0x254] sm:$0xf] %v477_v21 }
  0x7a   : > { %480 = vst [vmem:[%s3926_s30 + $0x258] sm:$0xf] %v479_v22  ;;  %482 = vst [vmem:[%s3926_s30 + $0x25c] sm:$0xf] %v481_v23  ;;  %v483_v24 = vld [vmem:[%s3919_s29 + $0x4c0] sm:$0xf] }
  0x7b   : > { %v485_v25 = vld [vmem:[%s3919_s29 + $0x4c8] sm:$0xf]  ;;  %v487_v26 = vld [vmem:[%s3919_s29 + $0x4d0] sm:$0xf]  ;;  %484 = vst [vmem:[%s3926_s30 + $0x260] sm:$0xf] %v483_v24 }
  0x7c   : > { %486 = vst [vmem:[%s3926_s30 + $0x264] sm:$0xf] %v485_v25  ;;  %488 = vst [vmem:[%s3926_s30 + $0x268] sm:$0xf] %v487_v26  ;;  %v489_v27 = vld [vmem:[%s3919_s29 + $0x4d8] sm:$0xf] }
  0x7d   : > { %v491_v28 = vld [vmem:[%s3919_s29 + $0x4e0] sm:$0xf]  ;;  %v493_v29 = vld [vmem:[%s3919_s29 + $0x4e8] sm:$0xf]  ;;  %490 = vst [vmem:[%s3926_s30 + $0x26c] sm:$0xf] %v489_v27 }
  0x7e   : > { %492 = vst [vmem:[%s3926_s30 + $0x270] sm:$0xf] %v491_v28  ;;  %494 = vst [vmem:[%s3926_s30 + $0x274] sm:$0xf] %v493_v29  ;;  %v495_v30 = vld [vmem:[%s3919_s29 + $0x4f0] sm:$0xf] }
  0x7f   : > { %v497_v31 = vld [vmem:[%s3919_s29 + $0x4f8] sm:$0xf]  ;;  %v499_v32 = vld [vmem:[%s3919_s29 + $0x500] sm:$0xf]  ;;  %496 = vst [vmem:[%s3926_s30 + $0x278] sm:$0xf] %v495_v30 }
  0x80   : > { %498 = vst [vmem:[%s3926_s30 + $0x27c] sm:$0xf] %v497_v31  ;;  %500 = vst [vmem:[%s3926_s30 + $0x280] sm:$0xf] %v499_v32  ;;  %v501_v33 = vld [vmem:[%s3919_s29 + $0x508] sm:$0xf] }
  0x81   : > { %v503_v34 = vld [vmem:[%s3919_s29 + $0x510] sm:$0xf]  ;;  %v505_v35 = vld [vmem:[%s3919_s29 + $0x518] sm:$0xf]  ;;  %502 = vst [vmem:[%s3926_s30 + $0x284] sm:$0xf] %v501_v33 }
  0x82   : > { %504 = vst [vmem:[%s3926_s30 + $0x288] sm:$0xf] %v503_v34  ;;  %506 = vst [vmem:[%s3926_s30 + $0x28c] sm:$0xf] %v505_v35  ;;  %v507_v36 = vld [vmem:[%s3919_s29 + $0x520] sm:$0xf] }
  0x83   : > { %v509_v37 = vld [vmem:[%s3919_s29 + $0x528] sm:$0xf]  ;;  %v511_v38 = vld [vmem:[%s3919_s29 + $0x530] sm:$0xf]  ;;  %508 = vst [vmem:[%s3926_s30 + $0x290] sm:$0xf] %v507_v36 }
  0x84   : > { %510 = vst [vmem:[%s3926_s30 + $0x294] sm:$0xf] %v509_v37  ;;  %512 = vst [vmem:[%s3926_s30 + $0x298] sm:$0xf] %v511_v38  ;;  %v513_v39 = vld [vmem:[%s3919_s29 + $0x538] sm:$0xf] }
  0x85   : > { %v515_v40 = vld [vmem:[%s3919_s29 + $0x540] sm:$0xf]  ;;  %v517_v41 = vld [vmem:[%s3919_s29 + $0x548] sm:$0xf]  ;;  %514 = vst [vmem:[%s3926_s30 + $0x29c] sm:$0xf] %v513_v39 }
  0x86   : > { %516 = vst [vmem:[%s3926_s30 + $0x2a0] sm:$0xf] %v515_v40  ;;  %518 = vst [vmem:[%s3926_s30 + $0x2a4] sm:$0xf] %v517_v41  ;;  %v519_v42 = vld [vmem:[%s3919_s29 + $0x550] sm:$0xf] }
  0x87   : > { %v521_v43 = vld [vmem:[%s3919_s29 + $0x558] sm:$0xf]  ;;  %v523_v44 = vld [vmem:[%s3919_s29 + $0x560] sm:$0xf]  ;;  %520 = vst [vmem:[%s3926_s30 + $0x2a8] sm:$0xf] %v519_v42 }
  0x88   : > { %522 = vst [vmem:[%s3926_s30 + $0x2ac] sm:$0xf] %v521_v43  ;;  %524 = vst [vmem:[%s3926_s30 + $0x2b0] sm:$0xf] %v523_v44  ;;  %v525_v45 = vld [vmem:[%s3919_s29 + $0x568] sm:$0xf] }
  0x89   : > { %v527_v46 = vld [vmem:[%s3919_s29 + $0x570] sm:$0xf]  ;;  %v529_v47 = vld [vmem:[%s3919_s29 + $0x578] sm:$0xf]  ;;  %526 = vst [vmem:[%s3926_s30 + $0x2b4] sm:$0xf] %v525_v45 }
  0x8a   : > { %528 = vst [vmem:[%s3926_s30 + $0x2b8] sm:$0xf] %v527_v46  ;;  %530 = vst [vmem:[%s3926_s30 + $0x2bc] sm:$0xf] %v529_v47  ;;  %v531_v48 = vld [vmem:[%s3919_s29 + $0x580] sm:$0xf] }
  0x8b   : > { %v533_v49 = vld [vmem:[%s3919_s29 + $0x588] sm:$0xf]  ;;  %v535_v50 = vld [vmem:[%s3919_s29 + $0x590] sm:$0xf]  ;;  %532 = vst [vmem:[%s3926_s30 + $0x2c0] sm:$0xf] %v531_v48 }
  0x8c   : > { %534 = vst [vmem:[%s3926_s30 + $0x2c4] sm:$0xf] %v533_v49  ;;  %536 = vst [vmem:[%s3926_s30 + $0x2c8] sm:$0xf] %v535_v50  ;;  %v537_v51 = vld [vmem:[%s3919_s29 + $0x598] sm:$0xf] }
  0x8d   : > { %v539_v52 = vld [vmem:[%s3919_s29 + $0x5a0] sm:$0xf]  ;;  %v541_v53 = vld [vmem:[%s3919_s29 + $0x5a8] sm:$0xf]  ;;  %538 = vst [vmem:[%s3926_s30 + $0x2cc] sm:$0xf] %v537_v51 }
  0x8e   : > { %540 = vst [vmem:[%s3926_s30 + $0x2d0] sm:$0xf] %v539_v52  ;;  %542 = vst [vmem:[%s3926_s30 + $0x2d4] sm:$0xf] %v541_v53  ;;  %v543_v54 = vld [vmem:[%s3919_s29 + $0x5b0] sm:$0xf] }
  0x8f   : > { %v545_v55 = vld [vmem:[%s3919_s29 + $0x5b8] sm:$0xf]  ;;  %v547_v56 = vld [vmem:[%s3919_s29 + $0x5c0] sm:$0xf]  ;;  %544 = vst [vmem:[%s3926_s30 + $0x2d8] sm:$0xf] %v543_v54 }
  0x90   : > { %546 = vst [vmem:[%s3926_s30 + $0x2dc] sm:$0xf] %v545_v55  ;;  %548 = vst [vmem:[%s3926_s30 + $0x2e0] sm:$0xf] %v547_v56  ;;  %v549_v57 = vld [vmem:[%s3919_s29 + $0x5c8] sm:$0xf] }
  0x91   : > { %v551_v58 = vld [vmem:[%s3919_s29 + $0x5d0] sm:$0xf]  ;;  %v553_v59 = vld [vmem:[%s3919_s29 + $0x5d8] sm:$0xf]  ;;  %550 = vst [vmem:[%s3926_s30 + $0x2e4] sm:$0xf] %v549_v57 }
  0x92   : > { %552 = vst [vmem:[%s3926_s30 + $0x2e8] sm:$0xf] %v551_v58  ;;  %554 = vst [vmem:[%s3926_s30 + $0x2ec] sm:$0xf] %v553_v59  ;;  %v555_v60 = vld [vmem:[%s3919_s29 + $0x5e0] sm:$0xf] }
  0x93   : > { %v557_v61 = vld [vmem:[%s3919_s29 + $0x5e8] sm:$0xf]  ;;  %v559_v62 = vld [vmem:[%s3919_s29 + $0x5f0] sm:$0xf]  ;;  %556 = vst [vmem:[%s3926_s30 + $0x2f0] sm:$0xf] %v555_v60 }
  0x94   : > { %558 = vst [vmem:[%s3926_s30 + $0x2f4] sm:$0xf] %v557_v61  ;;  %560 = vst [vmem:[%s3926_s30 + $0x2f8] sm:$0xf] %v559_v62  ;;  %v561_v63 = vld [vmem:[%s3919_s29 + $0x5f8] sm:$0xf] }
  0x95   : > { %v563_v0 = vld [vmem:[%s3919_s29 + $0x600] sm:$0xf]  ;;  %v565_v1 = vld [vmem:[%s3919_s29 + $0x608] sm:$0xf]  ;;  %562 = vst [vmem:[%s3926_s30 + $0x2fc] sm:$0xf] %v561_v63 }
  0x96   : > { %564 = vst [vmem:[%s3926_s30 + $0x300] sm:$0xf] %v563_v0  ;;  %566 = vst [vmem:[%s3926_s30 + $0x304] sm:$0xf] %v565_v1  ;;  %v567_v2 = vld [vmem:[%s3919_s29 + $0x610] sm:$0xf] }
  0x97   : > { %v569_v3 = vld [vmem:[%s3919_s29 + $0x618] sm:$0xf]  ;;  %v571_v4 = vld [vmem:[%s3919_s29 + $0x620] sm:$0xf]  ;;  %568 = vst [vmem:[%s3926_s30 + $0x308] sm:$0xf] %v567_v2 }
  0x98   : > { %570 = vst [vmem:[%s3926_s30 + $0x30c] sm:$0xf] %v569_v3  ;;  %572 = vst [vmem:[%s3926_s30 + $0x310] sm:$0xf] %v571_v4  ;;  %v573_v5 = vld [vmem:[%s3919_s29 + $0x628] sm:$0xf] }
  0x99   : > { %v575_v6 = vld [vmem:[%s3919_s29 + $0x630] sm:$0xf]  ;;  %v577_v7 = vld [vmem:[%s3919_s29 + $0x638] sm:$0xf]  ;;  %574 = vst [vmem:[%s3926_s30 + $0x314] sm:$0xf] %v573_v5 }
  0x9a   : > { %576 = vst [vmem:[%s3926_s30 + $0x318] sm:$0xf] %v575_v6  ;;  %578 = vst [vmem:[%s3926_s30 + $0x31c] sm:$0xf] %v577_v7  ;;  %v579_v8 = vld [vmem:[%s3919_s29 + $0x640] sm:$0xf] }
  0x9b   : > { %v581_v9 = vld [vmem:[%s3919_s29 + $0x648] sm:$0xf]  ;;  %v583_v10 = vld [vmem:[%s3919_s29 + $0x650] sm:$0xf]  ;;  %580 = vst [vmem:[%s3926_s30 + $0x320] sm:$0xf] %v579_v8 }
  0x9c   : > { %582 = vst [vmem:[%s3926_s30 + $0x324] sm:$0xf] %v581_v9  ;;  %584 = vst [vmem:[%s3926_s30 + $0x328] sm:$0xf] %v583_v10  ;;  %v585_v11 = vld [vmem:[%s3919_s29 + $0x658] sm:$0xf] }
  0x9d   : > { %v587_v12 = vld [vmem:[%s3919_s29 + $0x660] sm:$0xf]  ;;  %v589_v13 = vld [vmem:[%s3919_s29 + $0x668] sm:$0xf]  ;;  %586 = vst [vmem:[%s3926_s30 + $0x32c] sm:$0xf] %v585_v11 }
  0x9e   : > { %588 = vst [vmem:[%s3926_s30 + $0x330] sm:$0xf] %v587_v12  ;;  %590 = vst [vmem:[%s3926_s30 + $0x334] sm:$0xf] %v589_v13  ;;  %v591_v14 = vld [vmem:[%s3919_s29 + $0x670] sm:$0xf] }
  0x9f   : > { %v593_v15 = vld [vmem:[%s3919_s29 + $0x678] sm:$0xf]  ;;  %v595_v16 = vld [vmem:[%s3919_s29 + $0x680] sm:$0xf]  ;;  %592 = vst [vmem:[%s3926_s30 + $0x338] sm:$0xf] %v591_v14 }
  0xa0   : > { %594 = vst [vmem:[%s3926_s30 + $0x33c] sm:$0xf] %v593_v15  ;;  %596 = vst [vmem:[%s3926_s30 + $0x340] sm:$0xf] %v595_v16  ;;  %v597_v17 = vld [vmem:[%s3919_s29 + $0x688] sm:$0xf] }
  0xa1   : > { %v599_v18 = vld [vmem:[%s3919_s29 + $0x690] sm:$0xf]  ;;  %v601_v19 = vld [vmem:[%s3919_s29 + $0x698] sm:$0xf]  ;;  %598 = vst [vmem:[%s3926_s30 + $0x344] sm:$0xf] %v597_v17 }
  0xa2   : > { %600 = vst [vmem:[%s3926_s30 + $0x348] sm:$0xf] %v599_v18  ;;  %602 = vst [vmem:[%s3926_s30 + $0x34c] sm:$0xf] %v601_v19  ;;  %v603_v20 = vld [vmem:[%s3919_s29 + $0x6a0] sm:$0xf] }
  0xa3   : > { %v605_v21 = vld [vmem:[%s3919_s29 + $0x6a8] sm:$0xf]  ;;  %v607_v22 = vld [vmem:[%s3919_s29 + $0x6b0] sm:$0xf]  ;;  %604 = vst [vmem:[%s3926_s30 + $0x350] sm:$0xf] %v603_v20 }
  0xa4   : > { %606 = vst [vmem:[%s3926_s30 + $0x354] sm:$0xf] %v605_v21  ;;  %608 = vst [vmem:[%s3926_s30 + $0x358] sm:$0xf] %v607_v22  ;;  %v609_v23 = vld [vmem:[%s3919_s29 + $0x6b8] sm:$0xf] }
  0xa5   : > { %v611_v24 = vld [vmem:[%s3919_s29 + $0x6c0] sm:$0xf]  ;;  %v613_v25 = vld [vmem:[%s3919_s29 + $0x6c8] sm:$0xf]  ;;  %610 = vst [vmem:[%s3926_s30 + $0x35c] sm:$0xf] %v609_v23 }
  0xa6   : > { %612 = vst [vmem:[%s3926_s30 + $0x360] sm:$0xf] %v611_v24  ;;  %614 = vst [vmem:[%s3926_s30 + $0x364] sm:$0xf] %v613_v25  ;;  %v615_v26 = vld [vmem:[%s3919_s29 + $0x6d0] sm:$0xf] }
  0xa7   : > { %v617_v27 = vld [vmem:[%s3919_s29 + $0x6d8] sm:$0xf]  ;;  %v619_v28 = vld [vmem:[%s3919_s29 + $0x6e0] sm:$0xf]  ;;  %616 = vst [vmem:[%s3926_s30 + $0x368] sm:$0xf] %v615_v26 }
  0xa8   : > { %618 = vst [vmem:[%s3926_s30 + $0x36c] sm:$0xf] %v617_v27  ;;  %620 = vst [vmem:[%s3926_s30 + $0x370] sm:$0xf] %v619_v28  ;;  %v621_v29 = vld [vmem:[%s3919_s29 + $0x6e8] sm:$0xf] }
  0xa9   : > { %v623_v30 = vld [vmem:[%s3919_s29 + $0x6f0] sm:$0xf]  ;;  %v625_v31 = vld [vmem:[%s3919_s29 + $0x6f8] sm:$0xf]  ;;  %622 = vst [vmem:[%s3926_s30 + $0x374] sm:$0xf] %v621_v29 }
  0xaa   : > { %624 = vst [vmem:[%s3926_s30 + $0x378] sm:$0xf] %v623_v30  ;;  %626 = vst [vmem:[%s3926_s30 + $0x37c] sm:$0xf] %v625_v31  ;;  %v627_v32 = vld [vmem:[%s3919_s29 + $0x700] sm:$0xf] }
  0xab   : > { %v629_v33 = vld [vmem:[%s3919_s29 + $0x708] sm:$0xf]  ;;  %v631_v34 = vld [vmem:[%s3919_s29 + $0x710] sm:$0xf]  ;;  %628 = vst [vmem:[%s3926_s30 + $0x380] sm:$0xf] %v627_v32 }
  0xac   : > { %630 = vst [vmem:[%s3926_s30 + $0x384] sm:$0xf] %v629_v33  ;;  %632 = vst [vmem:[%s3926_s30 + $0x388] sm:$0xf] %v631_v34  ;;  %v633_v35 = vld [vmem:[%s3919_s29 + $0x718] sm:$0xf] }
  0xad   : > { %v635_v36 = vld [vmem:[%s3919_s29 + $0x720] sm:$0xf]  ;;  %v637_v37 = vld [vmem:[%s3919_s29 + $0x728] sm:$0xf]  ;;  %634 = vst [vmem:[%s3926_s30 + $0x38c] sm:$0xf] %v633_v35 }
  0xae   : > { %636 = vst [vmem:[%s3926_s30 + $0x390] sm:$0xf] %v635_v36  ;;  %638 = vst [vmem:[%s3926_s30 + $0x394] sm:$0xf] %v637_v37  ;;  %v639_v38 = vld [vmem:[%s3919_s29 + $0x730] sm:$0xf] }
  0xaf   : > { %v641_v39 = vld [vmem:[%s3919_s29 + $0x738] sm:$0xf]  ;;  %v643_v40 = vld [vmem:[%s3919_s29 + $0x740] sm:$0xf]  ;;  %640 = vst [vmem:[%s3926_s30 + $0x398] sm:$0xf] %v639_v38 }
  0xb0   : > { %642 = vst [vmem:[%s3926_s30 + $0x39c] sm:$0xf] %v641_v39  ;;  %644 = vst [vmem:[%s3926_s30 + $0x3a0] sm:$0xf] %v643_v40  ;;  %v645_v41 = vld [vmem:[%s3919_s29 + $0x748] sm:$0xf] }
  0xb1   : > { %v647_v42 = vld [vmem:[%s3919_s29 + $0x750] sm:$0xf]  ;;  %v649_v43 = vld [vmem:[%s3919_s29 + $0x758] sm:$0xf]  ;;  %646 = vst [vmem:[%s3926_s30 + $0x3a4] sm:$0xf] %v645_v41 }
  0xb2   : > { %648 = vst [vmem:[%s3926_s30 + $0x3a8] sm:$0xf] %v647_v42  ;;  %650 = vst [vmem:[%s3926_s30 + $0x3ac] sm:$0xf] %v649_v43  ;;  %v651_v44 = vld [vmem:[%s3919_s29 + $0x760] sm:$0xf] }
  0xb3   : > { %v653_v45 = vld [vmem:[%s3919_s29 + $0x768] sm:$0xf]  ;;  %v655_v46 = vld [vmem:[%s3919_s29 + $0x770] sm:$0xf]  ;;  %652 = vst [vmem:[%s3926_s30 + $0x3b0] sm:$0xf] %v651_v44 }
  0xb4   : > { %654 = vst [vmem:[%s3926_s30 + $0x3b4] sm:$0xf] %v653_v45  ;;  %656 = vst [vmem:[%s3926_s30 + $0x3b8] sm:$0xf] %v655_v46  ;;  %v657_v47 = vld [vmem:[%s3919_s29 + $0x778] sm:$0xf] }
  0xb5   : > { %v659_v48 = vld [vmem:[%s3919_s29 + $0x780] sm:$0xf]  ;;  %v661_v49 = vld [vmem:[%s3919_s29 + $0x788] sm:$0xf]  ;;  %658 = vst [vmem:[%s3926_s30 + $0x3bc] sm:$0xf] %v657_v47 }
  0xb6   : > { %660 = vst [vmem:[%s3926_s30 + $0x3c0] sm:$0xf] %v659_v48  ;;  %662 = vst [vmem:[%s3926_s30 + $0x3c4] sm:$0xf] %v661_v49  ;;  %v663_v50 = vld [vmem:[%s3919_s29 + $0x790] sm:$0xf] }
  0xb7   : > { %v665_v51 = vld [vmem:[%s3919_s29 + $0x798] sm:$0xf]  ;;  %v667_v52 = vld [vmem:[%s3919_s29 + $0x7a0] sm:$0xf]  ;;  %664 = vst [vmem:[%s3926_s30 + $0x3c8] sm:$0xf] %v663_v50 }
  0xb8   : > { %666 = vst [vmem:[%s3926_s30 + $0x3cc] sm:$0xf] %v665_v51  ;;  %668 = vst [vmem:[%s3926_s30 + $0x3d0] sm:$0xf] %v667_v52  ;;  %v669_v53 = vld [vmem:[%s3919_s29 + $0x7a8] sm:$0xf] }
  0xb9   : > { %v671_v54 = vld [vmem:[%s3919_s29 + $0x7b0] sm:$0xf]  ;;  %v673_v55 = vld [vmem:[%s3919_s29 + $0x7b8] sm:$0xf]  ;;  %670 = vst [vmem:[%s3926_s30 + $0x3d4] sm:$0xf] %v669_v53 }
  0xba   : > { %672 = vst [vmem:[%s3926_s30 + $0x3d8] sm:$0xf] %v671_v54  ;;  %674 = vst [vmem:[%s3926_s30 + $0x3dc] sm:$0xf] %v673_v55  ;;  %v675_v56 = vld [vmem:[%s3919_s29 + $0x7c0] sm:$0xf] }
  0xbb   : > { %v677_v57 = vld [vmem:[%s3919_s29 + $0x7c8] sm:$0xf]  ;;  %v679_v58 = vld [vmem:[%s3919_s29 + $0x7d0] sm:$0xf]  ;;  %676 = vst [vmem:[%s3926_s30 + $0x3e0] sm:$0xf] %v675_v56 }
  0xbc   : > { %678 = vst [vmem:[%s3926_s30 + $0x3e4] sm:$0xf] %v677_v57  ;;  %680 = vst [vmem:[%s3926_s30 + $0x3e8] sm:$0xf] %v679_v58  ;;  %v681_v59 = vld [vmem:[%s3919_s29 + $0x7d8] sm:$0xf] }
  0xbd   : > { %v683_v60 = vld [vmem:[%s3919_s29 + $0x7e0] sm:$0xf]  ;;  %v685_v61 = vld [vmem:[%s3919_s29 + $0x7e8] sm:$0xf]  ;;  %682 = vst [vmem:[%s3926_s30 + $0x3ec] sm:$0xf] %v681_v59 }
  0xbe   : > { %684 = vst [vmem:[%s3926_s30 + $0x3f0] sm:$0xf] %v683_v60  ;;  %686 = vst [vmem:[%s3926_s30 + $0x3f4] sm:$0xf] %v685_v61  ;;  %v687_v62 = vld [vmem:[%s3919_s29 + $0x7f0] sm:$0xf] }
  0xbf   : > { %v689_v63 = vld [vmem:[%s3919_s29 + $0x7f8] sm:$0xf]  ;;  %v691_v0 = vld [vmem:[%s3919_s29 + $0x800] sm:$0xf]  ;;  %688 = vst [vmem:[%s3926_s30 + $0x3f8] sm:$0xf] %v687_v62 }
  0xc0   : > { %690 = vst [vmem:[%s3926_s30 + $0x3fc] sm:$0xf] %v689_v63  ;;  %692 = vst [vmem:[%s3926_s30 + $0x400] sm:$0xf] %v691_v0  ;;  %v693_v1 = vld [vmem:[%s3919_s29 + $0x808] sm:$0xf] }
  0xc1   : > { %v695_v2 = vld [vmem:[%s3919_s29 + $0x810] sm:$0xf]  ;;  %v697_v3 = vld [vmem:[%s3919_s29 + $0x818] sm:$0xf]  ;;  %694 = vst [vmem:[%s3926_s30 + $0x404] sm:$0xf] %v693_v1 }
  0xc2   : > { %696 = vst [vmem:[%s3926_s30 + $0x408] sm:$0xf] %v695_v2  ;;  %698 = vst [vmem:[%s3926_s30 + $0x40c] sm:$0xf] %v697_v3  ;;  %v699_v4 = vld [vmem:[%s3919_s29 + $0x820] sm:$0xf] }
  0xc3   : > { %v701_v5 = vld [vmem:[%s3919_s29 + $0x828] sm:$0xf]  ;;  %v703_v6 = vld [vmem:[%s3919_s29 + $0x830] sm:$0xf]  ;;  %700 = vst [vmem:[%s3926_s30 + $0x410] sm:$0xf] %v699_v4 }
  0xc4   : > { %702 = vst [vmem:[%s3926_s30 + $0x414] sm:$0xf] %v701_v5  ;;  %704 = vst [vmem:[%s3926_s30 + $0x418] sm:$0xf] %v703_v6  ;;  %v705_v7 = vld [vmem:[%s3919_s29 + $0x838] sm:$0xf] }
  0xc5   : > { %v707_v8 = vld [vmem:[%s3919_s29 + $0x840] sm:$0xf]  ;;  %v709_v9 = vld [vmem:[%s3919_s29 + $0x848] sm:$0xf]  ;;  %706 = vst [vmem:[%s3926_s30 + $0x41c] sm:$0xf] %v705_v7 }
  0xc6   : > { %708 = vst [vmem:[%s3926_s30 + $0x420] sm:$0xf] %v707_v8  ;;  %710 = vst [vmem:[%s3926_s30 + $0x424] sm:$0xf] %v709_v9  ;;  %v711_v10 = vld [vmem:[%s3919_s29 + $0x850] sm:$0xf] }
  0xc7   : > { %v713_v11 = vld [vmem:[%s3919_s29 + $0x858] sm:$0xf]  ;;  %v715_v12 = vld [vmem:[%s3919_s29 + $0x860] sm:$0xf]  ;;  %712 = vst [vmem:[%s3926_s30 + $0x428] sm:$0xf] %v711_v10 }
  0xc8   : > { %714 = vst [vmem:[%s3926_s30 + $0x42c] sm:$0xf] %v713_v11  ;;  %716 = vst [vmem:[%s3926_s30 + $0x430] sm:$0xf] %v715_v12  ;;  %v717_v13 = vld [vmem:[%s3919_s29 + $0x868] sm:$0xf] }
  0xc9   : > { %v719_v14 = vld [vmem:[%s3919_s29 + $0x870] sm:$0xf]  ;;  %v721_v15 = vld [vmem:[%s3919_s29 + $0x878] sm:$0xf]  ;;  %718 = vst [vmem:[%s3926_s30 + $0x434] sm:$0xf] %v717_v13 }
  0xca   : > { %720 = vst [vmem:[%s3926_s30 + $0x438] sm:$0xf] %v719_v14  ;;  %722 = vst [vmem:[%s3926_s30 + $0x43c] sm:$0xf] %v721_v15  ;;  %v723_v16 = vld [vmem:[%s3919_s29 + $0x880] sm:$0xf] }
  0xcb   : > { %v725_v17 = vld [vmem:[%s3919_s29 + $0x888] sm:$0xf]  ;;  %v727_v18 = vld [vmem:[%s3919_s29 + $0x890] sm:$0xf]  ;;  %724 = vst [vmem:[%s3926_s30 + $0x440] sm:$0xf] %v723_v16 }
  0xcc   : > { %726 = vst [vmem:[%s3926_s30 + $0x444] sm:$0xf] %v725_v17  ;;  %728 = vst [vmem:[%s3926_s30 + $0x448] sm:$0xf] %v727_v18  ;;  %v729_v19 = vld [vmem:[%s3919_s29 + $0x898] sm:$0xf] }
  0xcd   : > { %v731_v20 = vld [vmem:[%s3919_s29 + $0x8a0] sm:$0xf]  ;;  %v733_v21 = vld [vmem:[%s3919_s29 + $0x8a8] sm:$0xf]  ;;  %730 = vst [vmem:[%s3926_s30 + $0x44c] sm:$0xf] %v729_v19 }
  0xce   : > { %732 = vst [vmem:[%s3926_s30 + $0x450] sm:$0xf] %v731_v20  ;;  %734 = vst [vmem:[%s3926_s30 + $0x454] sm:$0xf] %v733_v21  ;;  %v735_v22 = vld [vmem:[%s3919_s29 + $0x8b0] sm:$0xf] }
  0xcf   : > { %v737_v23 = vld [vmem:[%s3919_s29 + $0x8b8] sm:$0xf]  ;;  %v739_v24 = vld [vmem:[%s3919_s29 + $0x8c0] sm:$0xf]  ;;  %736 = vst [vmem:[%s3926_s30 + $0x458] sm:$0xf] %v735_v22 }
  0xd0   : > { %738 = vst [vmem:[%s3926_s30 + $0x45c] sm:$0xf] %v737_v23  ;;  %740 = vst [vmem:[%s3926_s30 + $0x460] sm:$0xf] %v739_v24  ;;  %v741_v25 = vld [vmem:[%s3919_s29 + $0x8c8] sm:$0xf] }
  0xd1   : > { %v743_v26 = vld [vmem:[%s3919_s29 + $0x8d0] sm:$0xf]  ;;  %v745_v27 = vld [vmem:[%s3919_s29 + $0x8d8] sm:$0xf]  ;;  %742 = vst [vmem:[%s3926_s30 + $0x464] sm:$0xf] %v741_v25 }
  0xd2   : > { %744 = vst [vmem:[%s3926_s30 + $0x468] sm:$0xf] %v743_v26  ;;  %746 = vst [vmem:[%s3926_s30 + $0x46c] sm:$0xf] %v745_v27  ;;  %v747_v28 = vld [vmem:[%s3919_s29 + $0x8e0] sm:$0xf] }
  0xd3   : > { %v749_v29 = vld [vmem:[%s3919_s29 + $0x8e8] sm:$0xf]  ;;  %v751_v30 = vld [vmem:[%s3919_s29 + $0x8f0] sm:$0xf]  ;;  %748 = vst [vmem:[%s3926_s30 + $0x470] sm:$0xf] %v747_v28 }
  0xd4   : > { %750 = vst [vmem:[%s3926_s30 + $0x474] sm:$0xf] %v749_v29  ;;  %752 = vst [vmem:[%s3926_s30 + $0x478] sm:$0xf] %v751_v30  ;;  %v753_v31 = vld [vmem:[%s3919_s29 + $0x8f8] sm:$0xf] }
  0xd5   : > { %754 = vst [vmem:[%s3926_s30 + $0x47c] sm:$0xf] %v753_v31 }
  0xd6 PF: > { %p3199_p7 = scmp.ge.s32.totalorder %s3840_s18, 1  ;;  %p1359_p8 = scmp.lt.s32.totalorder %s3840_s18, 5 }
  0xd8   : > { %p1360_p9 = pnand %p3199_p7, %p1359_p8 }
  0xd9   : > { %s1366_s4 = sand.u32 (!%p1360_p9), 1, %s3816_s12   ;;  %p1399_p10 = scmp.lt.s32.totalorder (!%p1360_p9), %s3828_s15, 1 }
  0xda   : > { %1363 = sbr.rel (%p1360_p9) target bundleno = 605 (0x25d), region = 69  ;;  %p1404_p11 = scmp.lt.s32.totalorder (!%p1360_p9), %s3824_s14, 1 }
  0xdb   : > { %s3566_s5 = smul.u32 (!%p1360_p9), 1152, %s1366_s4 }
  0xdd   : > { %s4502_s6 = scalar_lea.vmem (!%p1360_p9), [#allocation3], %s3566_s5 }
  0xdf   : > { %v3624_v32 = vld [vmem:[%s4502_s6 + $0xf8] sm:$0xff]   ;;  %v3628_v36 = vld [vmem:[%s4502_s6 + $0xf0] sm:$0xff]   ;;  %v3632_v40 = vld [vmem:[%s4502_s6 + $0xe8] sm:$0xff]   ;;  %s4727_s15 = smov (!%p1399_p10, %s3828_s15), 1  ;;  %s4729_s14 = smov (!%p1404_p11, %s3824_s14), 1  ;;  %vm3087_vm0 = vcmask 1040384  }
  0xe0   : > { %v3625_v33 = vld [vmem:[%s4502_s6 + $0x78] sm:$0xff]   ;;  %3367 = vmatprep.subr.bf16.mxu0 %v3624_v32  ;;  %v3629_v37 = vld [vmem:[%s4502_s6 + $0x70] sm:$0xff]   ;;  %v3633_v41 = vld [vmem:[%s4502_s6 + $0x68] sm:$0xff]   ;;  %s3567_s7 = smul.u32 24, %s4727_s15  ;;  %s1406_s21 = scalar_lea.vmem %s4712_s2, %s4729_s14  ;;  %vm3088_vm1 = vsmask.f32 256 }
  0xe1   : > { %v3626_v34 = vld [vmem:[%s4502_s6 + $0xb8] sm:$0xff]   ;;  %3389 = vmatprep.subr.bf16.mxu1 %v3625_v33  ;;  %v3630_v38 = vld [vmem:[%s4502_s6 + $0xb0] sm:$0xff]   ;;  %v3634_v42 = vld [vmem:[%s4502_s6 + $0xa8] sm:$0xff]   ;;  %s3201_s22 = sshll.u32 %s4727_s15, 1 }
  0xe2   : > { %v3627_v35 = vld [vmem:[%s4502_s6 + $0x38] sm:$0xff]   ;;  %3368 = vmatpush3.bf16.msra.mxu0 %v3626_v34  ;;  %v3631_v39 = vld [vmem:[%s4502_s6 + $0x30] sm:$0xff]   ;;  %v3635_v43 = vld [vmem:[%s4502_s6 + $0x28] sm:$0xff]   ;;  %s4542_s10 = scalar_lea.vmem %s4710_s0, %s3567_s7  ;;  %s1412_s24 = sadd.s32 %s3201_s22, %s4729_s14 }
  0xe3   : > { %3390 = vmatpush3.bf16.msra.mxu1 %v3627_v35  ;;  %3369 = vmatprep.subr.bf16.mxu0 %v3628_v36  ;;  %v3636_v44 = vld [vmem:[%s4502_s6 + $0xe0] sm:$0xff]   ;;  %v3640_v48 = vld [vmem:[%s4502_s6 + $0xd8] sm:$0xff]   ;;  %v3644_v52 = vld [vmem:[%s4502_s6 + $0xd0] sm:$0xff]   ;;  %s1413_s27 = scalar_lea.vmem %s4713_s3, %s1412_s24 }
  0xe4   : > { %3391 = vmatprep.subr.bf16.mxu1 %v3629_v37  ;;  %v3637_v45 = vld [vmem:[%s4502_s6 + $0x60] sm:$0xff]   ;;  %v3641_v49 = vld [vmem:[%s4502_s6 + $0x58] sm:$0xff]   ;;  %v3645_v53 = vld [vmem:[%s4502_s6 + $0x50] sm:$0xff]  }
  0xe5   : > { %v3638_v46 = vld [vmem:[%s4502_s6 + $0xa0] sm:$0xff]   ;;  %v3642_v50 = vld [vmem:[%s4502_s6 + $0x98] sm:$0xff]   ;;  %v3646_v54 = vld [vmem:[%s4502_s6 + $0x90] sm:$0xff]  }
  0xe6   : > { %3370 = vmatpush3.bf16.msra.mxu0 %v3630_v38  ;;  %v3639_v47 = vld [vmem:[%s4502_s6 + $0x20] sm:$0xff]   ;;  %v3643_v51 = vld [vmem:[%s4502_s6 + $0x18] sm:$0xff]   ;;  %v3647_v55 = vld [vmem:[%s4502_s6 + $0x10] sm:$0xff]  }
  0xe7   : > { %3392 = vmatpush3.bf16.msra.mxu1 %v3631_v39  ;;  %3371 = vmatprep.subr.bf16.mxu0 %v3632_v40  ;;  %v3648_v56 = vld [vmem:[%s4502_s6 + $0xc8] sm:$0xff]   ;;  %v3652_v60 = vld [vmem:[%s4502_s6 + $0xc0] sm:$0xff]   ;;  %v1415_v0 = vld [vmem:[%s4542_s10] sm:$0xff] }
  0xe8   : > { %3393 = vmatprep.subr.bf16.mxu1 %v3633_v41  ;;  %v3649_v57 = vld [vmem:[%s4502_s6 + $0x48] sm:$0xff]   ;;  %v3653_v61 = vld [vmem:[%s4502_s6 + $0x40] sm:$0xff]   ;;  %v3221_v3 = vcombine.high %v1415_v0, %v1415_v0  ;;  %v3220_v5 = vcombine.low %v1415_v0, %v1415_v0  ;;  %v3660_v6 = vld [vmem:[%s4502_s6 + $0x178] sm:$0xff]  }
  0xe9   : > { %v3650_v58 = vld [vmem:[%s4502_s6 + $0x88] sm:$0xff]   ;;  %v3654_v62 = vld [vmem:[%s4502_s6 + $0x80] sm:$0xff]   ;;  %v3662_v11 = vld [vmem:[%s4502_s6 + $0x1f8] sm:$0xff]  }
  0xea   : > { %3372 = vmatpush3.bf16.msra.mxu0 %v3634_v42  ;;  %v3651_v59 = vld [vmem:[%s4502_s6 + $0x8] sm:$0xff]   ;;  %v3655_v63 = vld [vmem:[%s4502_s6] sm:$0xff]   ;;  %1773 = vmatprep.mubr.bf16.mxu1 %v3221_v3  ;;  %v3661_v14 = vld [vmem:[%s4502_s6 + $0x138] sm:$0xff]  }
  0xeb   : > { %3394 = vmatpush3.bf16.msra.mxu1 %v3635_v43  ;;  %3373 = vmatprep.subr.bf16.mxu0 %v3636_v44  ;;  %v4548_v1 = vld [vmem:[%s4542_s10 + $0x8] sm:$0x11]  ;;  %v3663_v15 = vld [vmem:[%s4502_s6 + $0x1b8] sm:$0xff]   ;;  %v3664_v18 = vld [vmem:[%s4502_s6 + $0x170] sm:$0xff]  }
  0xec   : > { %3395 = vmatprep.subr.bf16.mxu1 %v3637_v45  ;;  %v3203_v2 = vcombine.high %v1415_v0, %v4548_v1  ;;  %v3202_v4 = vcombine.low %v1415_v0, %v4548_v1  ;;  %v3666_v19 = vld [vmem:[%s4502_s6 + $0x1f0] sm:$0xff]   ;;  %v3668_v22 = vld [vmem:[%s4502_s6 + $0x168] sm:$0xff]   ;;  %v3672_v26 = vld [vmem:[%s4502_s6 + $0x160] sm:$0xff]  }
  0xed   : > { %v3667_v20 = vld [vmem:[%s4502_s6 + $0x1b0] sm:$0xff]   ;;  %v3670_v23 = vld [vmem:[%s4502_s6 + $0x1e8] sm:$0xff]   ;;  %v3674_v27 = vld [vmem:[%s4502_s6 + $0x1e0] sm:$0xff]  }
  0xee   : > { %3374 = vmatpush3.bf16.msra.mxu0 %v3638_v46  ;;  %v1497_v7 = vshrl.u32 %v3203_v2, 16  ;;  %v1499_v8 = vshll.u32 %v3203_v2, 16  ;;  %v1490_v9 = vshrl.u32 %v3202_v4, 16  ;;  %v1492_v10 = vshll.u32 %v3202_v4, 16  ;;  %v3665_v21 = vld [vmem:[%s4502_s6 + $0x130] sm:$0xff]   ;;  %v3671_v24 = vld [vmem:[%s4502_s6 + $0x1a8] sm:$0xff]   ;;  %vm3089_vm2 = vmand %vm3087_vm0, %vm3088_vm1 }
  0xef   : > { %3396 = vmatpush3.bf16.msra.mxu1 %v3639_v47  ;;  %3375 = vmatprep.subr.bf16.mxu0 %v3640_v48  ;;  %v3669_v25 = vld [vmem:[%s4502_s6 + $0x128] sm:$0xff]   ;;  %v3675_v28 = vld [vmem:[%s4502_s6 + $0x1a0] sm:$0xff]   ;;  %v3676_v30 = vld [vmem:[%s4502_s6 + $0x158] sm:$0xff]  }
  0xf0   : > { %3397 = vmatprep.subr.bf16.mxu1 %v3641_v49  ;;  %v1501_v12 = vrot.slane %v1499_v8, 1  ;;  %v1494_v13 = vrot.slane %v1492_v10, 1  ;;  %v3673_v29 = vld [vmem:[%s4502_s6 + $0x120] sm:$0xff]   ;;  %v3678_v31 = vld [vmem:[%s4502_s6 + $0x1d8] sm:$0xff]   ;;  %v3680_v34 = vld [vmem:[%s4502_s6 + $0x150] sm:$0xff]  }
  0xf1   : > { %v3679_v32 = vld [vmem:[%s4502_s6 + $0x198] sm:$0xff]   ;;  %v3682_v35 = vld [vmem:[%s4502_s6 + $0x1d0] sm:$0xff]   ;;  %v3684_v38 = vld [vmem:[%s4502_s6 + $0x148] sm:$0xff]  }
  0xf2   : > { %3376 = vmatpush3.bf16.msra.mxu0 %v3642_v50  ;;  %v1502_v16 = vor.u32 %v1501_v12, %v1497_v7  ;;  %v1495_v17 = vor.u32 %v1494_v13, %v1490_v9  ;;  %v3677_v33 = vld [vmem:[%s4502_s6 + $0x118] sm:$0xff]   ;;  %v3683_v36 = vld [vmem:[%s4502_s6 + $0x190] sm:$0xff]   ;;  %v3686_v39 = vld [vmem:[%s4502_s6 + $0x1c8] sm:$0xff]  }
  0xf3   : > { %3398 = vmatpush3.bf16.msra.mxu1 %v3643_v51  ;;  %3377 = vmatprep.subr.bf16.mxu0 %v3644_v52  ;;  %v3681_v37 = vld [vmem:[%s4502_s6 + $0x110] sm:$0xff]   ;;  %v3687_v40 = vld [vmem:[%s4502_s6 + $0x188] sm:$0xff]   ;;  %v3688_v42 = vld [vmem:[%s4502_s6 + $0x140] sm:$0xff]  }
  0xf4   : > { %3399 = vmatprep.subr.bf16.mxu1 %v3645_v53  ;;  %1633 = vmatprep.mubr.bf16.mxu0 %v1502_v16  ;;  %v3685_v41 = vld [vmem:[%s4502_s6 + $0x108] sm:$0xff]   ;;  %v3690_v43 = vld [vmem:[%s4502_s6 + $0x1c0] sm:$0xff]   ;;  %v1781_v44 = vld [vmem:[%s4542_s10] sm:$0xee] }
  0xf5   : > { %v3238_v45 = vcombine.low %v1781_v44, %v4548_v1  ;;  %v3239_v46 = vcombine.high %v1781_v44, %v4548_v1  ;;  %v3693_v47 = vld [vmem:[%s4502_s6 + $0x180] sm:$0xff]   ;;  %v4587_v48 = vld [vmem:[%s4542_s10] sm:$0xcc]  ;;  %v3701_v0 = vld [vmem:[%s4502_s6 + $0x230] sm:$0xff]  }
  0xf6   : > { %3378 = vmatpush3.bf16.msra.mxu0 %v3646_v54  ;;  %v3689_v49 = vld [vmem:[%s4502_s6 + $0x100] sm:$0xff]   ;;  %v3694_v52 = vld [vmem:[%s4502_s6 + $0x278] sm:$0xff]   ;;  %v3704_v1 = vld [vmem:[%s4502_s6 + $0x268] sm:$0xff]  }
  0xf7   : > { %3400 = vmatpush3.bf16.msra.mxu1 %v3647_v55  ;;  %3379 = vmatprep.subr.bf16.mxu0 %v3648_v56  ;;  %v1820_v50 = vrot.slane %v3239_v46, 1  ;;  %v1961_v51 = vld [vmem:[%s4542_s10 + $0x8] sm:$0x33]  ;;  %v1819_v55 = vrot.slane %v3238_v45, 1  ;;  %v3698_v56 = vld [vmem:[%s4502_s6 + $0x2f8] sm:$0xff]   ;;  %v3706_v2 = vld [vmem:[%s4502_s6 + $0x2e8] sm:$0xff]  }
  0xf8   : > { %3401 = vmatprep.subr.bf16.mxu1 %v3649_v57  ;;  %v3256_v53 = vcombine.low %v4587_v48, %v1961_v51  ;;  %v3257_v54 = vcombine.high %v4587_v48, %v1961_v51  ;;  %v3707_v3 = vld [vmem:[%s4502_s6 + $0x2a8] sm:$0xff]   ;;  %v3711_v7 = vld [vmem:[%s4502_s6 + $0x2a0] sm:$0xff]   ;;  %v3712_v9 = vld [vmem:[%s4502_s6 + $0x258] sm:$0xff]  }
  0xf9   : > { %v3705_v4 = vld [vmem:[%s4502_s6 + $0x228] sm:$0xff]   ;;  %v3709_v8 = vld [vmem:[%s4502_s6 + $0x220] sm:$0xff]   ;;  %v3714_v10 = vld [vmem:[%s4502_s6 + $0x2d8] sm:$0xff]  }
  0xfa   : > { %3380 = vmatpush3.bf16.msra.mxu0 %v3650_v58  ;;  %v2002_v57 = vrot.slane %v3256_v53, 2  ;;  %v2003_v58 = vrot.slane %v3257_v54, 2  ;;  %v3713_v12 = vld [vmem:[%s4502_s6 + $0x218] sm:$0xff]   ;;  %v3716_v13 = vld [vmem:[%s4502_s6 + $0x250] sm:$0xff]   ;;  %v3740_v51 = vld [vmem:[%s4502_s6 + $0x368] sm:$0xff]  }
  0xfb   : > { %3402 = vmatpush3.bf16.msra.mxu1 %v3651_v59  ;;  %3381 = vmatprep.subr.bf16.mxu0 %v3652_v60  ;;  %v3697_v59 = vld [vmem:[%s4502_s6 + $0x238] sm:$0xff]   ;;  %v3717_v16 = vld [vmem:[%s4502_s6 + $0x210] sm:$0xff]   ;;  %v3742_v53 = vld [vmem:[%s4502_s6 + $0x3e8] sm:$0xff]  }
  0xfc   : > { %3403 = vmatprep.subr.bf16.mxu1 %v3653_v61  ;;  %v3699_v60 = vld [vmem:[%s4502_s6 + $0x2b8] sm:$0xff]   ;;  %v3700_v61 = vld [vmem:[%s4502_s6 + $0x270] sm:$0xff]   ;;  %v3743_v54 = vld [vmem:[%s4502_s6 + $0x3a8] sm:$0xff]  }
  0xfd   : > { %v3735_v44 = vld [vmem:[%s4502_s6 + $0x3b8] sm:$0xff]  }
  0xfe   : > { %3382 = vmatpush3.bf16.msra.mxu0 %v3654_v62  ;;  %v3702_v62 = vld [vmem:[%s4502_s6 + $0x2f0] sm:$0xff]  }
  0xff   : > { %3404 = vmatpush3.bf16.msra.mxu1 %v3655_v63  ;;  %3411 = vmatprep.subr.bf16.mxu0 %v3660_v6  ;;  %v3703_v63 = vld [vmem:[%s4502_s6 + $0x2b0] sm:$0xff]   ;;  %v3710_v6 = vld [vmem:[%s4502_s6 + $0x2e0] sm:$0xff]  }
 0x100   : > { %3433 = vmatprep.subr.bf16.mxu1 %v3662_v11  ;;  %v3715_v11 = vld [vmem:[%s4502_s6 + $0x298] sm:$0xff]  }
 0x101   : > { %1634 = vmatmul.mubr.bf16.vlgmr.msra.gmra.mxu0 %v1495_v17  ;;  %v3720_v17 = vld [vmem:[%s4502_s6 + $0x248] sm:$0xff]  }
 0x102   : > { %1774 = vmatmul.mubr.bf16.vlgmr.msra.gmra.mxu1 %v3220_v5  ;;  %3412 = vmatpush3.bf16.msra.mxu0 %v3661_v14  ;;  %v3708_v5 = vld [vmem:[%s4502_s6 + $0x260] sm:$0xff]   ;;  %v3718_v14 = vld [vmem:[%s4502_s6 + $0x2d0] sm:$0xff]  }
 0x103   : > { %3434 = vmatpush3.bf16.msra.mxu1 %v3663_v15  ;;  %3413 = vmatprep.subr.bf16.mxu0 %v3664_v18  ;;  %v3719_v15 = vld [vmem:[%s4502_s6 + $0x290] sm:$0xff]   ;;  %v3722_v18 = vld [vmem:[%s4502_s6 + $0x2c8] sm:$0xff]  }
 0x104   : > { %3435 = vmatprep.subr.bf16.mxu1 %v3666_v19  ;;  %1951 = vmatprep.mubr.bf16.mxu0 %v1820_v50  ;;  %v3723_v19 = vld [vmem:[%s4502_s6 + $0x288] sm:$0xff]   ;;  %v3739_v50 = vld [vmem:[%s4502_s6 + $0x3b0] sm:$0xff]  }
 0x105   : > { %2134 = vmatprep.mubr.bf16.mxu1 %v2003_v58  ;;  %v3747_v58 = vld [vmem:[%s4502_s6 + $0x3a0] sm:$0xff]  }
 0x106   : > { %3414 = vmatpush3.bf16.msra.mxu0 %v3665_v21  ;;  %v3724_v21 = vld [vmem:[%s4502_s6 + $0x240] sm:$0xff]  }
 0x107   : > { %3436 = vmatpush3.bf16.msra.mxu1 %v3667_v20  ;;  %3415 = vmatprep.subr.bf16.mxu0 %v3668_v22  ;;  %v3721_v20 = vld [vmem:[%s4502_s6 + $0x208] sm:$0xff]   ;;  %v3725_v22 = vld [vmem:[%s4502_s6 + $0x200] sm:$0xff]  }
 0x108   : > { %3437 = vmatprep.subr.bf16.mxu1 %v3670_v23  ;;  %v3726_v23 = vld [vmem:[%s4502_s6 + $0x2c0] sm:$0xff]  }
 0x10a   : > { %3416 = vmatpush3.bf16.msra.mxu0 %v3669_v25 }
 0x10b   : > { %3438 = vmatpush3.bf16.msra.mxu1 %v3671_v24  ;;  %3417 = vmatprep.subr.bf16.mxu0 %v3672_v26  ;;  %v2143_v24 = vld [vmem:[%s4542_s10 + $0x8] sm:$0x77] }
 0x10c   : > { %3439 = vmatprep.subr.bf16.mxu1 %v3674_v27  ;;  %v3275_v25 = vcombine.high %v4587_v48, %v2143_v24  ;;  %v3728_v26 = vld [vmem:[%s4502_s6 + $0x280] sm:$0xff]   ;;  %v3274_v27 = vcombine.low %v4587_v48, %v2143_v24  ;;  %v3737_v48 = vld [vmem:[%s4502_s6 + $0x330] sm:$0xff]  }
 0x10e   : > { %3418 = vmatpush3.bf16.msra.mxu0 %v3673_v29  ;;  %v2190_v29 = vshrl.u32 %v3275_v25, 16 }
 0x10f   : > { %3440 = vmatpush3.bf16.msra.mxu1 %v3675_v28  ;;  %3419 = vmatprep.subr.bf16.mxu0 %v3676_v30  ;;  %v3730_v28 = vld [vmem:[%s4502_s6 + $0x378] sm:$0xff]   ;;  %v2193_v30 = vshll.u32 %v3275_v25, 16 }
 0x110   : > { %3441 = vmatprep.subr.bf16.mxu1 %v3678_v31  ;;  %v2182_v31 = vshrl.u32 %v3274_v27, 16 }
 0x112   : > { %3420 = vmatpush3.bf16.msra.mxu0 %v3677_v33  ;;  %v2336_v33 = vld [vmem:[%s4542_s10] sm:$0x88] }
 0x113   : > { %3442 = vmatpush3.bf16.msra.mxu1 %v3679_v32  ;;  %3421 = vmatprep.subr.bf16.mxu0 %v3680_v34  ;;  %v2185_v32 = vshll.u32 %v3274_v27, 16  ;;  %v3292_v34 = vcombine.low %v2336_v33, %v2143_v24 }
 0x114   : > { %3443 = vmatprep.subr.bf16.mxu1 %v3682_v35  ;;  %v3293_v35 = vcombine.high %v2336_v33, %v2143_v24  ;;  %v3776_v33 = vld [vmem:[%s4502_s6 + $0x458] sm:$0xff]  }
 0x116   : > { %3422 = vmatpush3.bf16.msra.mxu0 %v3681_v37  ;;  %v2195_v37 = vrot.slane %v2193_v30, 3  ;;  %v3773_v30 = vld [vmem:[%s4502_s6 + $0x428] sm:$0xff]  }
 0x117   : > { %3444 = vmatpush3.bf16.msra.mxu1 %v3683_v36  ;;  %3423 = vmatprep.subr.bf16.mxu0 %v3684_v38  ;;  %v2192_v36 = vrot.slane %v2190_v29, 2  ;;  %v2184_v38 = vrot.slane %v2182_v31, 2  ;;  %v3772_v29 = vld [vmem:[%s4502_s6 + $0x468] sm:$0xff]   ;;  %v3774_v31 = vld [vmem:[%s4502_s6 + $0x460] sm:$0xff]  }
 0x118   : > { %3445 = vmatprep.subr.bf16.mxu1 %v3686_v39  ;;  %v2187_v39 = vrot.slane %v2185_v32, 3  ;;  %v3775_v32 = vld [vmem:[%s4502_s6 + $0x420] sm:$0xff]  }
 0x119   : > { %v2196_v45 = vor.u32 %v2195_v37, %v2192_v36  ;;  %v3777_v36 = vld [vmem:[%s4502_s6 + $0x418] sm:$0xff]  }
 0x11a   : > { %3424 = vmatpush3.bf16.msra.mxu0 %v3685_v41  ;;  %v2374_v41 = vrot.slane %v3292_v34, 3  ;;  %v2188_v46 = vor.u32 %v2187_v39, %v2184_v38  ;;  %v2887_v34 = vld [vmem:[%s4542_s10 + $0x8] sm:$0xee]  ;;  %v3778_v38 = vld [vmem:[%s4502_s6 + $0x450] sm:$0xff]  }
 0x11b   : > { %3446 = vmatpush3.bf16.msra.mxu1 %v3687_v40  ;;  %3425 = vmatprep.subr.bf16.mxu0 %v3688_v42  ;;  %v3733_v40 = vld [vmem:[%s4502_s6 + $0x338] sm:$0xff]   ;;  %v2375_v42 = vrot.slane %v3293_v35, 3  ;;  %v3779_v39 = vld [vmem:[%s4502_s6 + $0x410] sm:$0xff]  }
 0x11c   : > { %3447 = vmatprep.subr.bf16.mxu1 %v3690_v43  ;;  %v3734_v43 = vld [vmem:[%s4502_s6 + $0x3f8] sm:$0xff]  }
 0x11e   : > { %3426 = vmatpush3.bf16.msra.mxu0 %v3689_v49  ;;  %v3738_v49 = vld [vmem:[%s4502_s6 + $0x3f0] sm:$0xff]  }
 0x11f   : > { %3448 = vmatpush3.bf16.msra.mxu1 %v3693_v47  ;;  %3455 = vmatprep.subr.bf16.mxu0 %v3694_v52  ;;  %v3736_v47 = vld [vmem:[%s4502_s6 + $0x370] sm:$0xff]   ;;  %v3741_v52 = vld [vmem:[%s4502_s6 + $0x328] sm:$0xff]  }
 0x120   : > { %3477 = vmatprep.subr.bf16.mxu1 %v3698_v56  ;;  %v3745_v56 = vld [vmem:[%s4502_s6 + $0x320] sm:$0xff]  }
 0x121   : > { %1952 = vmatmul.mubr.bf16.vlgmr.msra.gmra.mxu0 %v1819_v55  ;;  %v3744_v55 = vld [vmem:[%s4502_s6 + $0x360] sm:$0xff]  }
 0x122   : > { %2135 = vmatmul.mubr.bf16.vlgmr.msra.gmra.mxu1 %v2002_v57  ;;  %3456 = vmatpush3.bf16.msra.mxu0 %v3697_v59  ;;  %v3746_v57 = vld [vmem:[%s4502_s6 + $0x3e0] sm:$0xff]   ;;  %v3748_v59 = vld [vmem:[%s4502_s6 + $0x358] sm:$0xff]  }
 0x123   : > { %3478 = vmatpush3.bf16.msra.mxu1 %v3699_v60  ;;  %3457 = vmatprep.subr.bf16.mxu0 %v3700_v61  ;;  %v3749_v60 = vld [vmem:[%s4502_s6 + $0x318] sm:$0xff]  }
 0x124   : > { %3479 = vmatprep.subr.bf16.mxu1 %v3702_v62  ;;  %2506 = vmatprep.mubr.bf16.mxu1 %v2375_v42  ;;  %v3750_v61 = vld [vmem:[%s4502_s6 + $0x3d8] sm:$0xff]   ;;  %v3782_v42 = vld [vmem:[%s4502_s6 + $0x440] sm:$0xff]  }
 0x125   : > { %2327 = vmatprep.mubr.bf16.mxu0 %v2196_v45  ;;  %v3751_v62 = vld [vmem:[%s4502_s6 + $0x398] sm:$0xff]  }
 0x126   : > { %3458 = vmatpush3.bf16.msra.mxu0 %v3701_v0  ;;  %v3753_v0 = vld [vmem:[%s4502_s6 + $0x310] sm:$0xff]  }
 0x127   : > { %3480 = vmatpush3.bf16.msra.mxu1 %v3703_v63  ;;  %3459 = vmatprep.subr.bf16.mxu0 %v3704_v1  ;;  %v3752_v63 = vld [vmem:[%s4502_s6 + $0x350] sm:$0xff]  }
 0x128   : > { %3481 = vmatprep.subr.bf16.mxu1 %v3706_v2  ;;  %v3754_v1 = vld [vmem:[%s4502_s6 + $0x3d0] sm:$0xff]  }
 0x129   : > { %v3755_v2 = vld [vmem:[%s4502_s6 + $0x390] sm:$0xff]  }
 0x12a   : > { %3460 = vmatpush3.bf16.msra.mxu0 %v3705_v4  ;;  %v3757_v4 = vld [vmem:[%s4502_s6 + $0x308] sm:$0xff]  }
 0x12b   : > { %3482 = vmatpush3.bf16.msra.mxu1 %v3707_v3  ;;  %3461 = vmatprep.subr.bf16.mxu0 %v3708_v5  ;;  %v3756_v3 = vld [vmem:[%s4502_s6 + $0x348] sm:$0xff]  }
 0x12c   : > { %3483 = vmatprep.subr.bf16.mxu1 %v3710_v6  ;;  %v3758_v5 = vld [vmem:[%s4502_s6 + $0x3c8] sm:$0xff]  }
 0x12d   : > { %v3759_v6 = vld [vmem:[%s4502_s6 + $0x388] sm:$0xff]  }
 0x12e   : > { %3462 = vmatpush3.bf16.msra.mxu0 %v3709_v8  ;;  %v3761_v8 = vld [vmem:[%s4502_s6 + $0x300] sm:$0xff]  }
 0x12f   : > { %3484 = vmatpush3.bf16.msra.mxu1 %v3711_v7  ;;  %3463 = vmatprep.subr.bf16.mxu0 %v3712_v9  ;;  %v3760_v7 = vld [vmem:[%s4502_s6 + $0x340] sm:$0xff]  }
 0x130   : > { %3485 = vmatprep.subr.bf16.mxu1 %v3714_v10  ;;  %v3762_v9 = vld [vmem:[%s4502_s6 + $0x3c0] sm:$0xff]  }
 0x131   : > { %v2515_v10 = vld [vmem:[%s4542_s10 + $0x8] sm:$0xff] }
 0x132   : > { %3464 = vmatpush3.bf16.msra.mxu0 %v3713_v12  ;;  %v3765_v12 = vld [vmem:[%s4502_s6 + $0x380] sm:$0xff]  }
 0x133   : > { %3486 = vmatpush3.bf16.msra.mxu1 %v3715_v11  ;;  %3465 = vmatprep.subr.bf16.mxu0 %v3716_v13  ;;  %v3311_v11 = vcombine.high %v2515_v10, %v2515_v10  ;;  %v3766_v13 = vld [vmem:[%s4502_s6 + $0x478] sm:$0xff]  }
 0x134   : > { %3487 = vmatprep.subr.bf16.mxu1 %v3718_v14  ;;  %v2693_v14 = vld [vmem:[%s4542_s10 + $0x10] sm:$0x11] }
 0x135   : > { %v3347_v35 = vcombine.high %v2887_v34, %v2693_v14 }
 0x136   : > { %3466 = vmatpush3.bf16.msra.mxu0 %v3717_v16  ;;  %v3328_v16 = vcombine.low %v2515_v10, %v2693_v14 }
 0x137   : > { %3488 = vmatpush3.bf16.msra.mxu1 %v3719_v15  ;;  %3467 = vmatprep.subr.bf16.mxu0 %v3720_v17  ;;  %v3310_v15 = vcombine.low %v2515_v10, %v2515_v10  ;;  %v3329_v17 = vcombine.high %v2515_v10, %v2693_v14  ;;  %v2926_v37 = vrot.slane %v3347_v35, 1 }
 0x138   : > { %3489 = vmatprep.subr.bf16.mxu1 %v3722_v18  ;;  %v3769_v18 = vld [vmem:[%s4502_s6 + $0x438] sm:$0xff]  }
 0x13a   : > { %3468 = vmatpush3.bf16.msra.mxu0 %v3721_v20  ;;  %v2744_v20 = vshll.u32 %v3329_v17, 16 }
 0x13b   : > { %3490 = vmatpush3.bf16.msra.mxu1 %v3723_v19  ;;  %3469 = vmatprep.subr.bf16.mxu0 %v3724_v21  ;;  %v2742_v19 = vshrl.u32 %v3329_v17, 16  ;;  %v2735_v21 = vshrl.u32 %v3328_v16, 16 }
 0x13c   : > { %3491 = vmatprep.subr.bf16.mxu1 %v3726_v23  ;;  %v3770_v23 = vld [vmem:[%s4502_s6 + $0x470] sm:$0xff]   ;;  %v2746_v24 = vrot.slane %v2744_v20, 1 }
 0x13e   : > { %3470 = vmatpush3.bf16.msra.mxu0 %v3725_v22  ;;  %v2737_v22 = vshll.u32 %v3328_v16, 16  ;;  %v2747_v27 = vor.u32 %v2746_v24, %v2742_v19 }
 0x13f   : > { %3492 = vmatpush3.bf16.msra.mxu1 %v3728_v26  ;;  %3499 = vmatprep.subr.bf16.mxu0 %v3730_v28  ;;  %v3771_v26 = vld [vmem:[%s4502_s6 + $0x430] sm:$0xff]  }
 0x140   : > { %3521 = vmatprep.subr.bf16.mxu1 %v3734_v43  ;;  %v2739_v25 = vrot.slane %v2737_v22, 1  ;;  %v3346_v43 = vcombine.low %v2887_v34, %v2693_v14 }
 0x141   : > { %2328 = vmatmul.mubr.bf16.vlgmr.msra.gmra.mxu0 %v2188_v46 }
 0x142   : > { %2507 = vmatmul.mubr.bf16.vlgmr.msra.gmra.mxu1 %v2374_v41  ;;  %3500 = vmatpush3.bf16.msra.mxu0 %v3733_v40  ;;  %v2740_v28 = vor.u32 %v2739_v25, %v2735_v21  ;;  %v3780_v40 = vld [vmem:[%s4502_s6 + $0x448] sm:$0xff]   ;;  %v2925_v45 = vrot.slane %v3346_v43, 1 }
 0x143   : > { %3522 = vmatpush3.bf16.msra.mxu1 %v3735_v44  ;;  %3501 = vmatprep.subr.bf16.mxu0 %v3736_v47  ;;  %v3781_v41 = vld [vmem:[%s4502_s6 + $0x408] sm:$0xff]   ;;  %v3783_v44 = vld [vmem:[%s4502_s6 + $0x400] sm:$0xff]  }
 0x144   : > { %3523 = vmatprep.subr.bf16.mxu1 %v3738_v49  ;;  %2683 = vmatprep.mubr.bf16.mxu0 %v3311_v11 }
 0x145   : > { %2878 = vmatprep.mubr.bf16.mxu1 %v2747_v27 }
 0x146   : > { %3502 = vmatpush3.bf16.msra.mxu0 %v3737_v48 }
 0x147   : > { %3524 = vmatpush3.bf16.msra.mxu1 %v3739_v50  ;;  %3503 = vmatprep.subr.bf16.mxu0 %v3740_v51 }
 0x148   : > { %3525 = vmatprep.subr.bf16.mxu1 %v3742_v53 }
 0x14a   : > { %3504 = vmatpush3.bf16.msra.mxu0 %v3741_v52 }
 0x14b   : > { %3526 = vmatpush3.bf16.msra.mxu1 %v3743_v54  ;;  %3505 = vmatprep.subr.bf16.mxu0 %v3744_v55 }
 0x14c   : > { %3527 = vmatprep.subr.bf16.mxu1 %v3746_v57 }
 0x14e   : > { %3506 = vmatpush3.bf16.msra.mxu0 %v3745_v56 }
 0x14f   : > { %3528 = vmatpush3.bf16.msra.mxu1 %v3747_v58  ;;  %3507 = vmatprep.subr.bf16.mxu0 %v3748_v59 }
 0x150   : > { %3529 = vmatprep.subr.bf16.mxu1 %v3750_v61 }
 0x152   : > { %3508 = vmatpush3.bf16.msra.mxu0 %v3749_v60 }
 0x153   : > { %3530 = vmatpush3.bf16.msra.mxu1 %v3751_v62  ;;  %3509 = vmatprep.subr.bf16.mxu0 %v3752_v63 }
 0x154   : > { %3531 = vmatprep.subr.bf16.mxu1 %v3754_v1 }
 0x156   : > { %3510 = vmatpush3.bf16.msra.mxu0 %v3753_v0 }
 0x157   : > { %3532 = vmatpush3.bf16.msra.mxu1 %v3755_v2  ;;  %3511 = vmatprep.subr.bf16.mxu0 %v3756_v3 }
 0x158   : > { %3533 = vmatprep.subr.bf16.mxu1 %v3758_v5 }
 0x15a   : > { %3512 = vmatpush3.bf16.msra.mxu0 %v3757_v4 }
 0x15b   : > { %3534 = vmatpush3.bf16.msra.mxu1 %v3759_v6  ;;  %3513 = vmatprep.subr.bf16.mxu0 %v3760_v7 }
 0x15c   : > { %3535 = vmatprep.subr.bf16.mxu1 %v3762_v9 }
 0x15e   : > { %3514 = vmatpush3.bf16.msra.mxu0 %v3761_v8 }
 0x15f   : > { %3536 = vmatpush3.bf16.msra.mxu1 %v3765_v12  ;;  %3543 = vmatprep.subr.bf16.mxu0 %v3766_v13 }
 0x161   : > { %2684 = vmatmul.mubr.bf16.vlgmr.msra.gmra.mxu0 %v3310_v15 }
 0x162   : > { %3544 = vmatpush3.bf16.msra.mxu0 %v3769_v18  ;;  %2879 = vmatmul.mubr.bf16.vlgmr.msra.gmra.mxu1 %v2740_v28 }
 0x163   : > { %3545 = vmatprep.subr.bf16.mxu0 %v3770_v23  ;;  %3057 = vmatprep.mubr.bf16.mxu0 %v2926_v37 }
 0x166   : > { %3546 = vmatpush3.bf16.msra.mxu0 %v3771_v26 }
 0x167   : > { %3547 = vmatprep.subr.bf16.mxu0 %v3772_v29 }
 0x16a   : > { %3548 = vmatpush3.bf16.msra.mxu0 %v3773_v30 }
 0x16b   : > { %3549 = vmatprep.subr.bf16.mxu0 %v3774_v31 }
 0x16e   : > { %3550 = vmatpush3.bf16.msra.mxu0 %v3775_v32  ;;  %v3364_v32 = vld [vmem:[%s1406_s21] ss:$0 sm:$0xff] }
 0x16f   : > { %3551 = vmatprep.subr.bf16.mxu0 %v3776_v33 }
 0x172   : > { %3552 = vmatpush3.bf16.msra.mxu0 %v3777_v36 }
 0x173   : > { %3553 = vmatprep.subr.bf16.mxu0 %v3778_v38 }
 0x176   : > { %3554 = vmatpush3.bf16.msra.mxu0 %v3779_v39 }
 0x177   : > { %3555 = vmatprep.subr.bf16.mxu0 %v3780_v40 }
 0x17a   : > { %3556 = vmatpush3.bf16.msra.mxu0 %v3781_v41 }
 0x17b   : > { %3557 = vmatprep.subr.bf16.mxu0 %v3782_v42 }
 0x17e   : > { %3558 = vmatpush3.bf16.msra.mxu0 %v3783_v44 }
 0x181   : > { %3058 = vmatmul.mubr.bf16.vlgmr.msra.gmra.mxu0 %v2925_v45  ;;  %v3090_v45 = vld [vmem:[%s1413_s27] sm:$0x1] }
 0x1c1   : > { %v3383_v50 = vpop.f32.mrf.mxu0 }
 0x1c2   : > { %v3405_v46 = vpop.f32.mrf.mxu1 }
 0x1c3   : > { %v3384_v52 = vpop.f32.mrf.mxu0 }
 0x1c4   : > { %v3406_v47 = vpop.f32.mrf.mxu1  ;;  %v3385_v53 = vadd.f32 %v3384_v52, %v3383_v50 }
 0x1c5   : > { %v3407_v48 = vadd.f32 %v3406_v47, %v3405_v46  ;;  %v3386_v54 = vpop.f32.mrf.mxu0 }
 0x1c6   : > { %v3408_v49 = vpop.f32.mrf.mxu1 }
 0x1c7   : > { %v1776_v55 = vadd.f32 %v3407_v48, %v3385_v53  ;;  %v3387_v56 = vpop.f32.mrf.mxu0 }
 0x1c8   : > { %v3409_v51 = vpop.f32.mrf.mxu1 }
 0x1e1   : > { %v3427_v58 = vpop.f32.mrf.mxu0 }
 0x1e2   : > { %v3449_v57 = vpop.f32.mrf.mxu1 }
 0x1e3   : > { %v3428_v60 = vpop.f32.mrf.mxu0 }
 0x1e4   : > { %v3450_v59 = vpop.f32.mrf.mxu1  ;;  %v3429_v62 = vadd.f32 %v3428_v60, %v3427_v58 }
 0x1e5   : > { %v3451_v61 = vadd.f32 %v3450_v59, %v3449_v57  ;;  %v3430_v0 = vpop.f32.mrf.mxu0 }
 0x1e6   : > { %v3452_v63 = vpop.f32.mrf.mxu1  ;;  %v1959_v1 = vadd.f32 %v3429_v62, %v1776_v55 }
 0x1e7   : > { %v3431_v3 = vpop.f32.mrf.mxu0 }
 0x1e8   : > { %v3453_v2 = vpop.f32.mrf.mxu1  ;;  %v2142_v4 = vadd.f32 %v3451_v61, %v1959_v1 }
 0x201   : > { %v3471_v6 = vpop.f32.mrf.mxu0 }
 0x202   : > { %v3493_v5 = vpop.f32.mrf.mxu1 }
 0x203   : > { %v3472_v8 = vpop.f32.mrf.mxu0 }
 0x204   : > { %v3494_v7 = vpop.f32.mrf.mxu1  ;;  %v3473_v21 = vadd.f32 %v3472_v8, %v3471_v6 }
 0x205   : > { %v3474_v10 = vpop.f32.mrf.mxu0  ;;  %v3495_v23 = vadd.f32 %v3494_v7, %v3493_v5 }
 0x206   : > { %v3496_v9 = vpop.f32.mrf.mxu1  ;;  %v2335_v22 = vadd.f32 %v3473_v21, %v2142_v4 }
 0x207   : > { %v3475_v12 = vpop.f32.mrf.mxu0 }
 0x208   : > { %v3497_v11 = vpop.f32.mrf.mxu1  ;;  %v2514_v25 = vadd.f32 %v3495_v23, %v2335_v22 }
 0x221   : > { %v3515_v13 = vpop.f32.mrf.mxu0 }
 0x222   : > { %v3537_v16 = vpop.f32.mrf.mxu1 }
 0x223   : > { %v3516_v14 = vpop.f32.mrf.mxu0 }
 0x224   : > { %v3538_v18 = vpop.f32.mrf.mxu1  ;;  %v3517_v24 = vadd.f32 %v3516_v14, %v3515_v13 }
 0x225   : > { %v3518_v15 = vpop.f32.mrf.mxu0  ;;  %v3539_v27 = vadd.f32 %v3538_v18, %v3537_v16 }
 0x226   : > { %v3540_v19 = vpop.f32.mrf.mxu1  ;;  %v2691_v26 = vadd.f32 %v3517_v24, %v2514_v25 }
 0x227   : > { %v3519_v17 = vpop.f32.mrf.mxu0 }
 0x228   : > { %v3541_v20 = vpop.f32.mrf.mxu1  ;;  %v2886_v30 = vadd.f32 %v3539_v27, %v2691_v26 }
 0x241   : > { %v3559_v28 = vpop.f32.mrf.mxu0 }
 0x243   : > { %v3560_v29 = vpop.f32.mrf.mxu0 }
 0x244   : > { %v3561_v31 = vadd.f32 %v3560_v29, %v3559_v28 }
 0x245   : > { %v3562_v33 = vpop.f32.mrf.mxu0 }
 0x246   : > { %v3065_v34 = vadd.f32 %v3561_v31, %v2886_v30 }
 0x247   : > { %v3563_v35 = vpop.f32.mrf.mxu0 }
 0x248   : > { %v3073_v36 = vadd.f32 %v3364_v32, %v3065_v34 }
 0x24a   : > { %v3074_v37 = vmax.f32 %v3073_v36, 0.0 }
 0x24c   : > { %3075 = vst [vmem:[#allocation2] sm:$0xff] %v3074_v37 }
 0x253   : > { %v3076_v38 = vld [vmem:[#allocation2] ss:$2 sm:$0x1]  ;;  %v3078_v39 = vld [vmem:[#allocation2 + $0x1] ss:$2 sm:$0x1] }
 0x254   : > { %v3079_v40 = vmax.f32 %v3076_v38, %v3078_v39  ;;  %v3081_v41 = vld [vmem:[#allocation2 + $0x4] ss:$2 sm:$0x1]  ;;  %v3083_v42 = vld [vmem:[#allocation2 + $0x5] ss:$2 sm:$0x1] }
 0x255   : > { %v3084_v43 = vmax.f32 %v3081_v41, %v3083_v42 }
 0x257   : > { %v3085_v44 = vmax.f32 %v3079_v40, %v3084_v43 }
 0x259   : > { %v3086_v46 = vpack.c.bf16 %v3085_v44, %v3085_v44 }
 0x25b   : > { %v3091_v47 = vsel %vm3089_vm2, %v3086_v46, %v3090_v45 }
 0x25c   : > { %3092 = vst [vmem:[%s1413_s27] sm:$0x1] %v3091_v47 }
 0x25d PF: > { %s13_s18 = sadd.s32 1, %s3840_s18   ;;  %s4714_s12 = smov %s3820_s13 }
 0x25e   : > { %p10_p12 = scmp.ge.s32.totalorder %s13_s18, 6   ;;  %s4715_s13 = smov %s3911_s23 }
 0x25f   : > { %s4716_s14 = smov %s3832_s16  ;;  %s4717_s15 = smov %s3836_s17 }
 0x260   : > { %s4718_s16 = smov %s4721_s19  ;;  %s4719_s17 = smov %s4725_s20 }
 0x261   :  { %12 = sbr.rel (!%p10_p12) target bundleno = 4 (0x4), region = 117 }

</bundles_post_ra>
